<compile_context>
chip_gen: v5e
topology: v5e:2x2
jax: 0.10.0
libtpu: 0.0.40
codegen_flags: <defaults>
</compile_context>

<pallas_src>
import functools
import math

import jax
import jax.numpy as jnp
from jax.experimental import pallas as pl
from jax.experimental.pallas import tpu as pltpu

OBS_MEAN = 0.0
OBS_STD = 255.0
HIDDEN = 512
CPAD = 128                      # lane-dense channel padding for conv outputs
NEG_SLOPE = 0.2                 # nn.LeakyReLU(0.2) in the reference module
BN_EPS = 1e-5
VMEM_LIMIT = 48 * 1024 * 1024   # explicit scoped-VMEM budget (< v7x 64 MiB)


def _round_up(x, m):
    return ((x + m - 1) // m) * m


# ---------------------------------------------------------------------------
# Pallas kernels
# ---------------------------------------------------------------------------
def _pass1_kernel(*refs, m_real, tm, tiles_per_group, use_act, has_affine):
    """bf16 MXU matmul + bias (+ LeakyReLU) + BN-stat accumulation.

    Grid (G, tiles_per_group): leading axis "parallel" (per-core partial
    stats on v7x), inner axis "arbitrary" (revisits the (1,1,C) accumulators).
    Optional per-column affine on the A tile = the previous layer's BatchNorm
    folded in, so conv layers need no pass-2 kernel at all.
    """
    if has_affine:
        a_ref, scale_ref, shift_ref, w_ref, b_ref, y_ref, sum_ref, ssq_ref = refs
    else:
        a_ref, w_ref, b_ref, y_ref, sum_ref, ssq_ref = refs

    c = pl.program_id(0)
    i = pl.program_id(1)
    tile_idx = c * tiles_per_group + i

    a = a_ref[...]                                         # (tm, K) bf16
    if has_affine:                                         # prev layer's BN
        a = (a.astype(jnp.float32) * scale_ref[...] + shift_ref[...]
             ).astype(jnp.bfloat16)
    y = jnp.dot(a, w_ref[...], preferred_element_type=jnp.float32)
    y = y + b_ref[...]
    if use_act:
        y = jnp.where(y >= 0.0, y, NEG_SLOPE * y)
    y_ref[...] = y.astype(y_ref.dtype)                     # bf16 store (convs)

    # Mask rows added by padding M up to a multiple of tm; stats stay in f32.
    row = tile_idx * tm + jax.lax.broadcasted_iota(jnp.int32, (tm, 1), 0)
    yv = jnp.where(row < m_real, y, 0.0)

    @pl.when(i == 0)
    def _():
        sum_ref[...] = jnp.zeros_like(sum_ref)
        ssq_ref[...] = jnp.zeros_like(ssq_ref)

    sum_ref[...] += jnp.sum(yv, axis=0, keepdims=True)[None]
    ssq_ref[...] += jnp.sum(yv * yv, axis=0, keepdims=True)[None]


def _bn_critic_kernel(y_ref, scale_ref, shift_ref, cw_ref, cb_ref,
                      feat_ref, crit_ref):
    """fc pass 2: BatchNorm1d (precomputed scale/shift) + fused critic head.

    The 512->1 head is a VPU broadcast-multiply + lane reduction (keeps the
    MXU free and avoids masked 1-lane matmul stores).
    """
    xn = y_ref[...] * scale_ref[...] + shift_ref[...]
    feat_ref[...] = xn.astype(feat_ref.dtype)
    crit_ref[...] = (jnp.sum(xn * cw_ref[...], axis=-1, keepdims=True)
                     + cb_ref[...])


# ---------------------------------------------------------------------------
# Layer wrappers
# ---------------------------------------------------------------------------
def _pass1(a, w, b, *, affine=None, use_act=True, y_dtype=jnp.bfloat16,
           tm_max=1024):
    """Run the pass-1 kernel on A (M, K_real) against W (K_pad, C)."""
    M = a.shape[0]
    Kp, C = w.shape

    # Pad ragged contracting dims with zero columns (weights carry zero rows).
    if a.shape[1] != Kp:
        a = jnp.pad(a, ((0, 0), (0, Kp - a.shape[1])))
        if affine is not None:
            affine = tuple(jnp.pad(v, ((0, 0), (0, Kp - v.shape[1])))
                           for v in affine)

    # Balanced M tiles: avoid a mostly-padding tail tile.
    n0 = pl.cdiv(M, tm_max)
    tm = _round_up(pl.cdiv(M, n0), 16)
    n_tiles = pl.cdiv(M, tm)
    Mp = n_tiles * tm
    if Mp != M:
        a = jnp.pad(a, ((0, Mp - M), (0, 0)))
    a = a.astype(jnp.bfloat16)

    # Leading "parallel" axis: shards tiles across the two TensorCores on v7x
    # with per-core partial stats; a plain sequential loop on v5e/v6e.
    G = 2 if (n_tiles >= 2 and n_tiles % 2 == 0) else 1
    tpg = n_tiles // G

    a_spec = pl.BlockSpec((tm, Kp), lambda c, i: (c * tpg + i, 0))
    y_spec = pl.BlockSpec((tm, C), lambda c, i: (c * tpg + i, 0))
    w_spec = pl.BlockSpec((Kp, C), lambda c, i: (0, 0))
    row_spec = pl.BlockSpec((1, C), lambda c, i: (0, 0))
    vec_spec = pl.BlockSpec((1, Kp), lambda c, i: (0, 0))
    stat_spec = pl.BlockSpec((1, 1, C), lambda c, i: (c, 0, 0))

    in_specs = [a_spec]
    operands = [a]
    if affine is not None:
        in_specs += [vec_spec, vec_spec]
        operands += [affine[0].astype(jnp.float32),
                     affine[1].astype(jnp.float32)]
    in_specs += [w_spec, row_spec]
    operands += [w, b]

    y, ssum, ssq = pl.pallas_call(
        functools.partial(_pass1_kernel, m_real=M, tm=tm, tiles_per_group=tpg,
                          use_act=use_act, has_affine=affine is not None),
        grid=(G, tpg),
        in_specs=in_specs,
        out_specs=(y_spec, stat_spec, stat_spec),
        out_shape=(jax.ShapeDtypeStruct((Mp, C), y_dtype),
                   jax.ShapeDtypeStruct((G, 1, C), jnp.float32),
                   jax.ShapeDtypeStruct((G, 1, C), jnp.float32)),
        compiler_params=pltpu.CompilerParams(
            dimension_semantics=("parallel", "arbitrary"),
            vmem_limit_bytes=VMEM_LIMIT),
    )(*operands)
    return y, ssum, ssq, tm


def _fc_pass2(y, scale, shift, cw, cb, tm):
    """BatchNorm1d (as affine) + critic head over the fc pre-BN output."""
    Mp, C = y.shape
    n_tiles = Mp // tm
    row = pl.BlockSpec((1, C), lambda i: (0, 0))
    feat, crit = pl.pallas_call(
        _bn_critic_kernel,
        grid=(n_tiles,),
        in_specs=[pl.BlockSpec((tm, C), lambda i: (i, 0)),
                  row, row, row,
                  pl.BlockSpec((1, 1), lambda i: (0, 0))],
        out_specs=(pl.BlockSpec((tm, C), lambda i: (i, 0)),
                   pl.BlockSpec((tm, 1), lambda i: (i, 0))),
        out_shape=(jax.ShapeDtypeStruct((Mp, C), jnp.float32),
                   jax.ShapeDtypeStruct((Mp, 1), jnp.float32)),
        compiler_params=pltpu.CompilerParams(
            dimension_semantics=("parallel",),
            vmem_limit_bytes=VMEM_LIMIT),
    )(y, scale, shift, cw, cb)
    return feat, crit


def _bn_affine(ssum, ssq, gamma, beta, m, real_c, eps=BN_EPS):
    """Fold training-mode BatchNorm into a per-channel affine y*scale + shift.

    Tiny (1,C) XLA math on the kernel-accumulated sums.  Variance uses
    E[x^2]-E[x]^2 in f32 with a clamp at 0 (biased variance, matching
    PyTorch's training-mode normalization).
    """
    s = jnp.sum(ssum, axis=0)[:, :real_c]
    q = jnp.sum(ssq, axis=0)[:, :real_c]
    mu = s / m
    var = jnp.maximum(q / m - mu * mu, 0.0)
    scale = gamma * jax.lax.rsqrt(var + eps)
    shift = beta - mu * scale
    return scale, shift


def _im2col(x_nhwc, kh, kw, s, real_c):
    """Valid-conv patch matrix, reading only the real (un-padded) channels.

    TODO(synk): still materialized by XLA between layers; an in-kernel tap
    gather (kh*kw accumulated strided matmuls) would avoid the 4x-9x
    activation expansion through HBM.
    """
    N, H, W, _ = x_nhwc.shape
    oh = (H - kh) // s + 1
    ow = (W - kw) // s + 1
    x = x_nhwc[..., :real_c]
    taps = [x[:, i:i + s * (oh - 1) + 1:s, j:j + s * (ow - 1) + 1:s, :]
            for i in range(kh) for j in range(kw)]
    p = jnp.stack(taps, axis=3)                     # (N, oh, ow, kh*kw, c)
    return p.reshape(N * oh * ow, kh * kw * real_c), oh, ow


# ---------------------------------------------------------------------------
# Parameter init (orthogonal, with layout / obs-norm folding)
# ---------------------------------------------------------------------------
def orthogonal(key, shape, gain=1.0):
    rows = shape[0]
    cols = math.prod(shape[1:])
    n, m = max(rows, cols), min(rows, cols)
    a = jax.random.normal(key, (n, m), dtype=jnp.float32)
    q, r = jnp.linalg.qr(a)
    q = q * jnp.sign(jnp.diagonal(r))
    if rows < cols:
        q = q.T
    return (gain * q).reshape(shape).astype(jnp.float32)


def init_params(key, num_inputs, hidden=HIDDEN):
    ks = jax.random.split(key, 5)
    relu_gain = math.sqrt(2.0)
    p = {}

    def conv_w_matrix(k, cout, cin, ksz):
        w = orthogonal(k, (cout, cin, ksz, ksz), relu_gain)     # PyTorch OIHW
        # rows in (kh, kw, cin) order -> matches _im2col column order
        return jnp.transpose(w, (2, 3, 1, 0)).reshape(ksz * ksz * cin, cout)

    def add_conv(name, wm, cout):
        k_pad = _round_up(wm.shape[0], 128)                     # zero K rows
        wm = jnp.pad(wm, ((0, k_pad - wm.shape[0]), (0, CPAD - cout)))
        p[f"{name}_w"] = wm.astype(jnp.bfloat16)
        p[f"{name}_g"] = jnp.ones((1, cout), jnp.float32)
        p[f"{name}_beta"] = jnp.zeros((1, cout), jnp.float32)

    # conv1: obs normalization (x - mean) / (std + 1e-5) folded into W and b.
    w1 = conv_w_matrix(ks[0], 32, num_inputs, 8)                # (256, 32)
    inv = 1.0 / (OBS_STD + 1e-5)
    b1 = -OBS_MEAN * inv * jnp.sum(w1, axis=0, keepdims=True)   # (1, 32)
    add_conv("c1", w1 * inv, 32)
    p["c1_b"] = jnp.pad(b1, ((0, 0), (0, CPAD - 32))).astype(jnp.float32)

    add_conv("c2", conv_w_matrix(ks[1], 64, 32, 4), 64)         # K = 512
    p["c2_b"] = jnp.zeros((1, CPAD), jnp.float32)
    add_conv("c3", conv_w_matrix(ks[2], 64, 64, 3), 64)         # K = 576->640
    p["c3_b"] = jnp.zeros((1, CPAD), jnp.float32)

    # Linear(64*7*7, hidden): fold PyTorch's NCHW flatten (c,h,w) ordering into
    # the weight rows (our flatten order is (h,w,c)); pad K 3136 -> 3200.
    wfc = orthogonal(ks[3], (hidden, 64 * 7 * 7), relu_gain)
    wfc = jnp.transpose(wfc.reshape(hidden, 64, 7, 7), (2, 3, 1, 0))
    wfc = wfc.reshape(7 * 7 * 64, hidden)
    wfc = jnp.pad(wfc, ((0, _round_up(7 * 7 * 64, 128) - 7 * 7 * 64), (0, 0)))
    p["fc_w"] = wfc.astype(jnp.bfloat16)
    p["fc_b"] = jnp.zeros((1, hidden), jnp.float32)
    p["fc_g"] = jnp.ones((1, hidden), jnp.float32)
    p["fc_beta"] = jnp.zeros((1, hidden), jnp.float32)

    # critic_linear: Linear(hidden, 1), stored as a (1, hidden) row vector so
    # the head can be a VPU reduce inside the fc pass-2 kernel.
    p["cr_w"] = orthogonal(ks[4], (1, hidden), 1.0)
    p["cr_b"] = jnp.zeros((1, 1), jnp.float32)
    return p


# ---------------------------------------------------------------------------
# Forward
# ---------------------------------------------------------------------------
def cnn_base_forward(params, inputs, rnn_hxs, masks):
    N = inputs.shape[0]
    x = jnp.transpose(inputs, (0, 2, 3, 1)).astype(jnp.bfloat16)   # NHWC

    # conv1 (8x8 stride 4): obs normalization already folded into c1_w / c1_b.
    a1, oh1, ow1 = _im2col(x, 8, 8, 4, x.shape[-1])
    m1 = N * oh1 * ow1
    y1, s1, q1, _ = _pass1(a1, params["c1_w"], params["c1_b"], use_act=True)
    sc1, sh1 = _bn_affine(s1, q1, params["c1_g"], params["c1_beta"], m1, 32)
    y1 = y1[:m1].reshape(N, oh1, ow1, CPAD)

    # conv2 (4x4 stride 2): conv1's BatchNorm folded into the A-tile affine.
    a2, oh2, ow2 = _im2col(y1, 4, 4, 2, 32)
    m2 = N * oh2 * ow2
    y2, s2, q2, _ = _pass1(a2, params["c2_w"], params["c2_b"],
                           affine=(jnp.tile(sc1, (1, 16)),
                                   jnp.tile(sh1, (1, 16))),
                           use_act=True)
    sc2, sh2 = _bn_affine(s2, q2, params["c2_g"], params["c2_beta"], m2, 64)
    y2 = y2[:m2].reshape(N, oh2, ow2, CPAD)

    # conv3 (3x3 stride 1)
    a3, oh3, ow3 = _im2col(y2, 3, 3, 1, 64)
    m3 = N * oh3 * ow3
    y3, s3, q3, _ = _pass1(a3, params["c3_w"], params["c3_b"],
                           affine=(jnp.tile(sc2, (1, 9)),
                                   jnp.tile(sh2, (1, 9))),
                           use_act=True)
    sc3, sh3 = _bn_affine(s3, q3, params["c3_g"], params["c3_beta"], m3, 64)
    y3 = y3[:m3].reshape(N, oh3, ow3, CPAD)

    # Flatten in (h, w, c) order (fc_w rows were built to match) and
    # Linear(3136, 512); conv3's BatchNorm folded into the A affine.
    xf = y3[..., :64].reshape(N, oh3 * ow3 * 64)
    y4, s4, q4, tm4 = _pass1(xf, params["fc_w"], params["fc_b"],
                             affine=(jnp.tile(sc3, (1, oh3 * ow3)),
                                     jnp.tile(sh3, (1, oh3 * ow3))),
                             use_act=False, y_dtype=jnp.float32, tm_max=512)
    sc4, sh4 = _bn_affine(s4, q4, params["fc_g"], params["fc_beta"], N, HIDDEN)

    # fc pass 2: BatchNorm1d + fused critic head.
    feat, crit = _fc_pass2(y4, sc4, sh4, params["cr_w"], params["cr_b"], tm4)

    # TODO(synk): recurrent=True GRUCell path not implemented (module default
    # recurrent=False); rnn_hxs passes through unchanged, masks unused.
    return crit[:N], feat[:N], rnn_hxs


if __name__ == "__main__":
    key = jax.random.PRNGKey(0)
    kp, kx = jax.random.split(key)
    N, num_inputs = 2, 4
    params = init_params(kp, num_inputs)
    # 84x84 spatial is what the Linear(64*7*7, hidden) in the module implies.
    inputs = jax.random.uniform(kx, (N, num_inputs, 84, 84), jnp.float32,
                                minval=0.0, maxval=255.0)
    rnn_hxs = jnp.zeros((N, 1), jnp.float32)   # recurrent_hidden_state_size==1
    masks = jnp.ones((N, 1), jnp.float32)

    critic, feat, hxs = jax.jit(cnn_base_forward)(params, inputs, rnn_hxs,
                                                  masks)
    jax.block_until_ready((critic, feat, hxs))
    assert critic.shape == (N, 1)
    assert feat.shape == (N, HIDDEN)
    assert hxs.shape == (N, 1)
    assert bool(jnp.all(jnp.isfinite(critic))) and bool(jnp.all(jnp.isfinite(feat)))
    print("KERNEL_OK")
</pallas_src>

<mosaic_0001>
module attributes {stable_mosaic.version = 11 : i64} {
  func.func @_pass1_kernel(%arg0: i32, %arg1: i32, %arg2: memref<800x256xbf16, #tpu.memory_space<vmem>>, %arg3: memref<256x128xbf16, #tpu.memory_space<vmem>>, %arg4: memref<1x128xf32, #tpu.memory_space<vmem>>, %arg5: memref<800x128xbf16, #tpu.memory_space<vmem>>, %arg6: memref<1x1x128xf32, #tpu.memory_space<vmem>>, %arg7: memref<1x1x128xf32, #tpu.memory_space<vmem>>) attributes {dimension_semantics = [#tpu.dimension_semantics<parallel>, #tpu.dimension_semantics<arbitrary>], iteration_bounds = array<i64: 1, 1>, scalar_prefetch = 0 : i64, scratch_operands = 0 : i64, tpu.core_type = #tpu.core_type<tc>, window_params = [{transform_indices = @transform_0, window_bounds = array<i64: 800, 256>}, {pipeline_mode = #tpu.pipeline_mode<synchronous>, transform_indices = @transform_1, window_bounds = array<i64: 256, 128>}, {pipeline_mode = #tpu.pipeline_mode<synchronous>, transform_indices = @transform_2, window_bounds = array<i64: 1, 128>}, {transform_indices = @transform_3, window_bounds = array<i64: 800, 128>}, {transform_indices = @transform_4, window_bounds = array<i64: 1, 1, 128>}, {transform_indices = @transform_5, window_bounds = array<i64: 1, 1, 128>}]} {
    %c1_i32 = arith.constant 1 : i32
    %0 = arith.muli %arg0, %c1_i32 : i32
    %1 = arith.addi %0, %arg1 : i32
    %c0 = arith.constant 0 : index
    %c0_0 = arith.constant 0 : index
    %2 = vector.load %arg2[%c0, %c0_0] : memref<800x256xbf16, #tpu.memory_space<vmem>>, vector<800x256xbf16>
    %c0_1 = arith.constant 0 : index
    %c0_2 = arith.constant 0 : index
    %3 = vector.load %arg3[%c0_1, %c0_2] : memref<256x128xbf16, #tpu.memory_space<vmem>>, vector<256x128xbf16>
    %cst = arith.constant dense<0.000000e+00> : vector<800x128xf32>
    %4 = tpu.matmul %2, %3, %cst {dimension_numbers = #tpu.dot_dimension_numbers<[1], [0], [0], [1], [0, 0, 1, 1], [], []>} : vector<800x256xbf16>, vector<256x128xbf16>, vector<800x128xf32> -> vector<800x128xf32>
    %c0_3 = arith.constant 0 : index
    %c0_4 = arith.constant 0 : index
    %5 = vector.load %arg4[%c0_3, %c0_4] : memref<1x128xf32, #tpu.memory_space<vmem>>, vector<1x128xf32>
    %6 = vector.broadcast %5 : vector<1x128xf32> to vector<800x128xf32>
    %7 = arith.addf %4, %6 : vector<800x128xf32>
    %cst_5 = arith.constant 0.000000e+00 : f32
    %8 = vector.broadcast %cst_5 : f32 to vector<800x128xf32>
    %9 = arith.cmpf oge, %7, %8 : vector<800x128xf32>
    %cst_6 = arith.constant 2.000000e-01 : f32
    %10 = vector.broadcast %cst_6 : f32 to vector<800x128xf32>
    %11 = arith.mulf %10, %7 : vector<800x128xf32>
    %12 = arith.select %9, %7, %11 : vector<800x128xi1>, vector<800x128xf32>
    %13 = arith.truncf %12 : vector<800x128xf32> to vector<800x128xbf16>
    %c0_7 = arith.constant 0 : index
    %c0_8 = arith.constant 0 : index
    %14 = vector.load %arg5[%c0_7, %c0_8] : memref<800x128xbf16, #tpu.memory_space<vmem>>, vector<800x128xbf16>
    tpu.vector_store %arg5[%c0_7, %c0_8], %13 {strides = array<i32>} : memref<800x128xbf16, #tpu.memory_space<vmem>>, vector<800x128xbf16>,
    %c800_i32 = arith.constant 800 : i32
    %15 = arith.muli %1, %c800_i32 : i32
    %16 = tpu.iota {dimensions = array<i32: 0>} : vector<800x1xi32>
    %17 = vector.broadcast %15 : i32 to vector<800x1xi32>
    %18 = arith.addi %17, %16 : vector<800x1xi32>
    %c800_i32_9 = arith.constant 800 : i32
    %19 = vector.broadcast %c800_i32_9 : i32 to vector<800x1xi32>
    %20 = arith.cmpi slt, %18, %19 : vector<800x1xi32>
    %cst_10 = arith.constant 0.000000e+00 : f32
    %21 = vector.shape_cast %20 : vector<800x1xi1> to vector<800x1xi1>
    %22 = vector.broadcast %21 : vector<800x1xi1> to vector<800x128xi1>
    %23 = vector.broadcast %cst_10 : f32 to vector<800x128xf32>
    %24 = arith.select %22, %12, %23 : vector<800x128xi1>, vector<800x128xf32>
    %c0_i32 = arith.constant 0 : i32
    %25 = arith.cmpi eq, %arg1, %c0_i32 : i32
    %26 = arith.extui %25 : i1 to i32
    %c0_i32_11 = arith.constant 0 : i32
    %27 = arith.cmpi ne, %26, %c0_i32_11 : i32
    scf.if %27 {
      %cst_26 = arith.constant 0.000000e+00 : f32
      %41 = vector.broadcast %cst_26 : f32 to vector<1x1x128xf32>
      %c0_27 = arith.constant 0 : index
      %c0_28 = arith.constant 0 : index
      %c0_29 = arith.constant 0 : index
      %42 = vector.load %arg6[%c0_27, %c0_28, %c0_29] : memref<1x1x128xf32, #tpu.memory_space<vmem>>, vector<1x1x128xf32>
      tpu.vector_store %arg6[%c0_27, %c0_28, %c0_29], %41 {strides = array<i32>} : memref<1x1x128xf32, #tpu.memory_space<vmem>>, vector<1x1x128xf32>,
      %cst_30 = arith.constant 0.000000e+00 : f32
      %43 = vector.broadcast %cst_30 : f32 to vector<1x1x128xf32>
      %c0_31 = arith.constant 0 : index
      %c0_32 = arith.constant 0 : index
      %c0_33 = arith.constant 0 : index
      %44 = vector.load %arg7[%c0_31, %c0_32, %c0_33] : memref<1x1x128xf32, #tpu.memory_space<vmem>>, vector<1x1x128xf32>
      tpu.vector_store %arg7[%c0_31, %c0_32, %c0_33], %43 {strides = array<i32>} : memref<1x1x128xf32, #tpu.memory_space<vmem>>, vector<1x1x128xf32>,
    } else {
    }
    %c0_12 = arith.constant 0 : index
    %c0_13 = arith.constant 0 : index
    %c0_14 = arith.constant 0 : index
    %28 = vector.load %arg6[%c0_12, %c0_13, %c0_14] : memref<1x1x128xf32, #tpu.memory_space<vmem>>, vector<1x1x128xf32>
    %cst_15 = arith.constant dense<0.000000e+00> : vector<128xf32>
    %29 = vector.multi_reduction <add>, %24, %cst_15 [0] : vector<800x128xf32> to vector<128xf32>
    %30 = vector.shape_cast %29 : vector<128xf32> to vector<1x128xf32>
    %31 = vector.shape_cast %30 : vector<1x128xf32> to vector<1x1x128xf32>
    %32 = arith.addf %28, %31 : vector<1x1x128xf32>
    %c0_16 = arith.constant 0 : index
    %c0_17 = arith.constant 0 : index
    %c0_18 = arith.constant 0 : index
    %33 = vector.load %arg6[%c0_16, %c0_17, %c0_18] : memref<1x1x128xf32, #tpu.memory_space<vmem>>, vector<1x1x128xf32>
    tpu.vector_store %arg6[%c0_16, %c0_17, %c0_18], %32 {strides = array<i32>} : memref<1x1x128xf32, #tpu.memory_space<vmem>>, vector<1x1x128xf32>,
    %c0_19 = arith.constant 0 : index
    %c0_20 = arith.constant 0 : index
    %c0_21 = arith.constant 0 : index
    %34 = vector.load %arg7[%c0_19, %c0_20, %c0_21] : memref<1x1x128xf32, #tpu.memory_space<vmem>>, vector<1x1x128xf32>
    %35 = arith.mulf %24, %24 : vector<800x128xf32>
    %cst_22 = arith.constant dense<0.000000e+00> : vector<128xf32>
    %36 = vector.multi_reduction <add>, %35, %cst_22 [0] : vector<800x128xf32> to vector<128xf32>
    %37 = vector.shape_cast %36 : vector<128xf32> to vector<1x128xf32>
    %38 = vector.shape_cast %37 : vector<1x128xf32> to vector<1x1x128xf32>
    %39 = arith.addf %34, %38 : vector<1x1x128xf32>
    %c0_23 = arith.constant 0 : index
    %c0_24 = arith.constant 0 : index
    %c0_25 = arith.constant 0 : index
    %40 = vector.load %arg7[%c0_23, %c0_24, %c0_25] : memref<1x1x128xf32, #tpu.memory_space<vmem>>, vector<1x1x128xf32>
    tpu.vector_store %arg7[%c0_23, %c0_24, %c0_25], %39 {strides = array<i32>} : memref<1x1x128xf32, #tpu.memory_space<vmem>>, vector<1x1x128xf32>,
    return
  }
  func.func @transform_0(%arg0: i32, %arg1: i32) -> (i32, i32) {
    %c1_i32 = arith.constant 1 : i32
    %0 = arith.muli %arg0, %c1_i32 : i32
    %1 = arith.addi %0, %arg1 : i32
    %c0_i32 = arith.constant 0 : i32
    %c0_i32_0 = arith.constant 0 : i32
    return %1, %c0_i32 : i32, i32
  }
  func.func @transform_1(%arg0: i32, %arg1: i32) -> (i32, i32) {
    %c0_i32 = arith.constant 0 : i32
    %c0_i32_0 = arith.constant 0 : i32
    %c0_i32_1 = arith.constant 0 : i32
    return %c0_i32, %c0_i32_0 : i32, i32
  }
  func.func @transform_2(%arg0: i32, %arg1: i32) -> (i32, i32) {
    %c0_i32 = arith.constant 0 : i32
    %c0_i32_0 = arith.constant 0 : i32
    %c0_i32_1 = arith.constant 0 : i32
    return %c0_i32, %c0_i32_0 : i32, i32
  }
  func.func @transform_3(%arg0: i32, %arg1: i32) -> (i32, i32) {
    %c1_i32 = arith.constant 1 : i32
    %0 = arith.muli %arg0, %c1_i32 : i32
    %1 = arith.addi %0, %arg1 : i32
    %c0_i32 = arith.constant 0 : i32
    %c0_i32_0 = arith.constant 0 : i32
    return %1, %c0_i32 : i32, i32
  }
  func.func @transform_4(%arg0: i32, %arg1: i32) -> (i32, i32, i32) {
    %c0_i32 = arith.constant 0 : i32
    %c0_i32_0 = arith.constant 0 : i32
    %c0_i32_1 = arith.constant 0 : i32
    return %arg0, %c0_i32, %c0_i32_0 : i32, i32, i32
  }
  func.func @transform_5(%arg0: i32, %arg1: i32) -> (i32, i32, i32) {
    %c0_i32 = arith.constant 0 : i32
    %c0_i32_0 = arith.constant 0 : i32
    %c0_i32_1 = arith.constant 0 : i32
    return %arg0, %c0_i32, %c0_i32_0 : i32, i32, i32
  }
}

module attributes {stable_mosaic.version = 11 : i64} {
  func.func @_pass1_kernel(%arg0: i32, %arg1: i32, %arg2: memref<176x512xbf16, #tpu.memory_space<vmem>>, %arg3: memref<1x512xf32, #tpu.memory_space<vmem>>, %arg4: memref<1x512xf32, #tpu.memory_space<vmem>>, %arg5: memref<512x128xbf16, #tpu.memory_space<vmem>>, %arg6: memref<1x128xf32, #tpu.memory_space<vmem>>, %arg7: memref<176x128xbf16, #tpu.memory_space<vmem>>, %arg8: memref<1x1x128xf32, #tpu.memory_space<vmem>>, %arg9: memref<1x1x128xf32, #tpu.memory_space<vmem>>) attributes {dimension_semantics = [#tpu.dimension_semantics<parallel>, #tpu.dimension_semantics<arbitrary>], iteration_bounds = array<i64: 1, 1>, scalar_prefetch = 0 : i64, scratch_operands = 0 : i64, tpu.core_type = #tpu.core_type<tc>, window_params = [{transform_indices = @transform_0, window_bounds = array<i64: 176, 512>}, {pipeline_mode = #tpu.pipeline_mode<synchronous>, transform_indices = @transform_1, window_bounds = array<i64: 1, 512>}, {pipeline_mode = #tpu.pipeline_mode<synchronous>, transform_indices = @transform_2, window_bounds = array<i64: 1, 512>}, {pipeline_mode = #tpu.pipeline_mode<synchronous>, transform_indices = @transform_3, window_bounds = array<i64: 512, 128>}, {pipeline_mode = #tpu.pipeline_mode<synchronous>, transform_indices = @transform_4, window_bounds = array<i64: 1, 128>}, {transform_indices = @transform_5, window_bounds = array<i64: 176, 128>}, {transform_indices = @transform_6, window_bounds = array<i64: 1, 1, 128>}, {transform_indices = @transform_7, window_bounds = array<i64: 1, 1, 128>}]} {
    %c1_i32 = arith.constant 1 : i32
    %0 = arith.muli %arg0, %c1_i32 : i32
    %1 = arith.addi %0, %arg1 : i32
    %c0 = arith.constant 0 : index
    %c0_0 = arith.constant 0 : index
    %2 = vector.load %arg2[%c0, %c0_0] : memref<176x512xbf16, #tpu.memory_space<vmem>>, vector<176x512xbf16>
    %3 = arith.extf %2 : vector<176x512xbf16> to vector<176x512xf32>
    %c0_1 = arith.constant 0 : index
    %c0_2 = arith.constant 0 : index
    %4 = vector.load %arg3[%c0_1, %c0_2] : memref<1x512xf32, #tpu.memory_space<vmem>>, vector<1x512xf32>
    %5 = vector.broadcast %4 : vector<1x512xf32> to vector<176x512xf32>
    %6 = arith.mulf %3, %5 : vector<176x512xf32>
    %c0_3 = arith.constant 0 : index
    %c0_4 = arith.constant 0 : index
    %7 = vector.load %arg4[%c0_3, %c0_4] : memref<1x512xf32, #tpu.memory_space<vmem>>, vector<1x512xf32>
    %8 = vector.broadcast %7 : vector<1x512xf32> to vector<176x512xf32>
    %9 = arith.addf %6, %8 : vector<176x512xf32>
    %10 = arith.truncf %9 : vector<176x512xf32> to vector<176x512xbf16>
    %c0_5 = arith.constant 0 : index
    %c0_6 = arith.constant 0 : index
    %11 = vector.load %arg5[%c0_5, %c0_6] : memref<512x128xbf16, #tpu.memory_space<vmem>>, vector<512x128xbf16>
    %cst = arith.constant dense<0.000000e+00> : vector<176x128xf32>
    %12 = tpu.matmul %10, %11, %cst {dimension_numbers = #tpu.dot_dimension_numbers<[1], [0], [0], [1], [0, 0, 1, 1], [], []>} : vector<176x512xbf16>, vector<512x128xbf16>, vector<176x128xf32> -> vector<176x128xf32>
    %c0_7 = arith.constant 0 : index
    %c0_8 = arith.constant 0 : index
    %13 = vector.load %arg6[%c0_7, %c0_8] : memref<1x128xf32, #tpu.memory_space<vmem>>, vector<1x128xf32>
    %14 = vector.broadcast %13 : vector<1x128xf32> to vector<176x128xf32>
    %15 = arith.addf %12, %14 : vector<176x128xf32>
    %cst_9 = arith.constant 0.000000e+00 : f32
    %16 = vector.broadcast %cst_9 : f32 to vector<176x128xf32>
    %17 = arith.cmpf oge, %15, %16 : vector<176x128xf32>
    %cst_10 = arith.constant 2.000000e-01 : f32
    %18 = vector.broadcast %cst_10 : f32 to vector<176x128xf32>
    %19 = arith.mulf %18, %15 : vector<176x128xf32>
    %20 = arith.select %17, %15, %19 : vector<176x128xi1>, vector<176x128xf32>
    %21 = arith.truncf %20 : vector<176x128xf32> to vector<176x128xbf16>
    %c0_11 = arith.constant 0 : index
    %c0_12 = arith.constant 0 : index
    %22 = vector.load %arg7[%c0_11, %c0_12] : memref<176x128xbf16, #tpu.memory_space<vmem>>, vector<176x128xbf16>
    tpu.vector_store %arg7[%c0_11, %c0_12], %21 {strides = array<i32>} : memref<176x128xbf16, #tpu.memory_space<vmem>>, vector<176x128xbf16>,
    %c176_i32 = arith.constant 176 : i32
    %23 = arith.muli %1, %c176_i32 : i32
    %24 = tpu.iota {dimensions = array<i32: 0>} : vector<176x1xi32>
    %25 = vector.broadcast %23 : i32 to vector<176x1xi32>
    %26 = arith.addi %25, %24 : vector<176x1xi32>
    %c162_i32 = arith.constant 162 : i32
    %27 = vector.broadcast %c162_i32 : i32 to vector<176x1xi32>
    %28 = arith.cmpi slt, %26, %27 : vector<176x1xi32>
    %cst_13 = arith.constant 0.000000e+00 : f32
    %29 = vector.shape_cast %28 : vector<176x1xi1> to vector<176x1xi1>
    %30 = vector.broadcast %29 : vector<176x1xi1> to vector<176x128xi1>
    %31 = vector.broadcast %cst_13 : f32 to vector<176x128xf32>
    %32 = arith.select %30, %20, %31 : vector<176x128xi1>, vector<176x128xf32>
    %c0_i32 = arith.constant 0 : i32
    %33 = arith.cmpi eq, %arg1, %c0_i32 : i32
    %34 = arith.extui %33 : i1 to i32
    %c0_i32_14 = arith.constant 0 : i32
    %35 = arith.cmpi ne, %34, %c0_i32_14 : i32
    scf.if %35 {
      %cst_29 = arith.constant 0.000000e+00 : f32
      %49 = vector.broadcast %cst_29 : f32 to vector<1x1x128xf32>
      %c0_30 = arith.constant 0 : index
      %c0_31 = arith.constant 0 : index
      %c0_32 = arith.constant 0 : index
      %50 = vector.load %arg8[%c0_30, %c0_31, %c0_32] : memref<1x1x128xf32, #tpu.memory_space<vmem>>, vector<1x1x128xf32>
      tpu.vector_store %arg8[%c0_30, %c0_31, %c0_32], %49 {strides = array<i32>} : memref<1x1x128xf32, #tpu.memory_space<vmem>>, vector<1x1x128xf32>,
      %cst_33 = arith.constant 0.000000e+00 : f32
      %51 = vector.broadcast %cst_33 : f32 to vector<1x1x128xf32>
      %c0_34 = arith.constant 0 : index
      %c0_35 = arith.constant 0 : index
      %c0_36 = arith.constant 0 : index
      %52 = vector.load %arg9[%c0_34, %c0_35, %c0_36] : memref<1x1x128xf32, #tpu.memory_space<vmem>>, vector<1x1x128xf32>
      tpu.vector_store %arg9[%c0_34, %c0_35, %c0_36], %51 {strides = array<i32>} : memref<1x1x128xf32, #tpu.memory_space<vmem>>, vector<1x1x128xf32>,
    } else {
    }
    %c0_15 = arith.constant 0 : index
    %c0_16 = arith.constant 0 : index
    %c0_17 = arith.constant 0 : index
    %36 = vector.load %arg8[%c0_15, %c0_16, %c0_17] : memref<1x1x128xf32, #tpu.memory_space<vmem>>, vector<1x1x128xf32>
    %cst_18 = arith.constant dense<0.000000e+00> : vector<128xf32>
    %37 = vector.multi_reduction <add>, %32, %cst_18 [0] : vector<176x128xf32> to vector<128xf32>
    %38 = vector.shape_cast %37 : vector<128xf32> to vector<1x128xf32>
    %39 = vector.shape_cast %38 : vector<1x128xf32> to vector<1x1x128xf32>
    %40 = arith.addf %36, %39 : vector<1x1x128xf32>
    %c0_19 = arith.constant 0 : index
    %c0_20 = arith.constant 0 : index
    %c0_21 = arith.constant 0 : index
    %41 = vector.load %arg8[%c0_19, %c0_20, %c0_21] : memref<1x1x128xf32, #tpu.memory_space<vmem>>, vector<1x1x128xf32>
    tpu.vector_store %arg8[%c0_19, %c0_20, %c0_21], %40 {strides = array<i32>} : memref<1x1x128xf32, #tpu.memory_space<vmem>>, vector<1x1x128xf32>,
    %c0_22 = arith.constant 0 : index
    %c0_23 = arith.constant 0 : index
    %c0_24 = arith.constant 0 : index
    %42 = vector.load %arg9[%c0_22, %c0_23, %c0_24] : memref<1x1x128xf32, #tpu.memory_space<vmem>>, vector<1x1x128xf32>
    %43 = arith.mulf %32, %32 : vector<176x128xf32>
    %cst_25 = arith.constant dense<0.000000e+00> : vector<128xf32>
    %44 = vector.multi_reduction <add>, %43, %cst_25 [0] : vector<176x128xf32> to vector<128xf32>
    %45 = vector.shape_cast %44 : vector<128xf32> to vector<1x128xf32>
    %46 = vector.shape_cast %45 : vector<1x128xf32> to vector<1x1x128xf32>
    %47 = arith.addf %42, %46 : vector<1x1x128xf32>
    %c0_26 = arith.constant 0 : index
    %c0_27 = arith.constant 0 : index
    %c0_28 = arith.constant 0 : index
    %48 = vector.load %arg9[%c0_26, %c0_27, %c0_28] : memref<1x1x128xf32, #tpu.memory_space<vmem>>, vector<1x1x128xf32>
    tpu.vector_store %arg9[%c0_26, %c0_27, %c0_28], %47 {strides = array<i32>} : memref<1x1x128xf32, #tpu.memory_space<vmem>>, vector<1x1x128xf32>,
    return
  }
  func.func @transform_0(%arg0: i32, %arg1: i32) -> (i32, i32) {
    %c1_i32 = arith.constant 1 : i32
    %0 = arith.muli %arg0, %c1_i32 : i32
    %1 = arith.addi %0, %arg1 : i32
    %c0_i32 = arith.constant 0 : i32
    %c0_i32_0 = arith.constant 0 : i32
    return %1, %c0_i32 : i32, i32
  }
  func.func @transform_1(%arg0: i32, %arg1: i32) -> (i32, i32) {
    %c0_i32 = arith.constant 0 : i32
    %c0_i32_0 = arith.constant 0 : i32
    %c0_i32_1 = arith.constant 0 : i32
    return %c0_i32, %c0_i32_0 : i32, i32
  }
  func.func @transform_2(%arg0: i32, %arg1: i32) -> (i32, i32) {
    %c0_i32 = arith.constant 0 : i32
    %c0_i32_0 = arith.constant 0 : i32
    %c0_i32_1 = arith.constant 0 : i32
    return %c0_i32, %c0_i32_0 : i32, i32
  }
  func.func @transform_3(%arg0: i32, %arg1: i32) -> (i32, i32) {
    %c0_i32 = arith.constant 0 : i32
    %c0_i32_0 = arith.constant 0 : i32
    %c0_i32_1 = arith.constant 0 : i32
    return %c0_i32, %c0_i32_0 : i32, i32
  }
  func.func @transform_4(%arg0: i32, %arg1: i32) -> (i32, i32) {
    %c0_i32 = arith.constant 0 : i32
    %c0_i32_0 = arith.constant 0 : i32
    %c0_i32_1 = arith.constant 0 : i32
    return %c0_i32, %c0_i32_0 : i32, i32
  }
  func.func @transform_5(%arg0: i32, %arg1: i32) -> (i32, i32) {
    %c1_i32 = arith.constant 1 : i32
    %0 = arith.muli %arg0, %c1_i32 : i32
    %1 = arith.addi %0, %arg1 : i32
    %c0_i32 = arith.constant 0 : i32
    %c0_i32_0 = arith.constant 0 : i32
    return %1, %c0_i32 : i32, i32
  }
  func.func @transform_6(%arg0: i32, %arg1: i32) -> (i32, i32, i32) {
    %c0_i32 = arith.constant 0 : i32
    %c0_i32_0 = arith.constant 0 : i32
    %c0_i32_1 = arith.constant 0 : i32
    return %arg0, %c0_i32, %c0_i32_0 : i32, i32, i32
  }
  func.func @transform_7(%arg0: i32, %arg1: i32) -> (i32, i32, i32) {
    %c0_i32 = arith.constant 0 : i32
    %c0_i32_0 = arith.constant 0 : i32
    %c0_i32_1 = arith.constant 0 : i32
    return %arg0, %c0_i32, %c0_i32_0 : i32, i32, i32
  }
}

module attributes {stable_mosaic.version = 11 : i64} {
  func.func @_pass1_kernel(%arg0: i32, %arg1: i32, %arg2: memref<112x640xbf16, #tpu.memory_space<vmem>>, %arg3: memref<1x640xf32, #tpu.memory_space<vmem>>, %arg4: memref<1x640xf32, #tpu.memory_space<vmem>>, %arg5: memref<640x128xbf16, #tpu.memory_space<vmem>>, %arg6: memref<1x128xf32, #tpu.memory_space<vmem>>, %arg7: memref<112x128xbf16, #tpu.memory_space<vmem>>, %arg8: memref<1x1x128xf32, #tpu.memory_space<vmem>>, %arg9: memref<1x1x128xf32, #tpu.memory_space<vmem>>) attributes {dimension_semantics = [#tpu.dimension_semantics<parallel>, #tpu.dimension_semantics<arbitrary>], iteration_bounds = array<i64: 1, 1>, scalar_prefetch = 0 : i64, scratch_operands = 0 : i64, tpu.core_type = #tpu.core_type<tc>, window_params = [{transform_indices = @transform_0, window_bounds = array<i64: 112, 640>}, {pipeline_mode = #tpu.pipeline_mode<synchronous>, transform_indices = @transform_1, window_bounds = array<i64: 1, 640>}, {pipeline_mode = #tpu.pipeline_mode<synchronous>, transform_indices = @transform_2, window_bounds = array<i64: 1, 640>}, {pipeline_mode = #tpu.pipeline_mode<synchronous>, transform_indices = @transform_3, window_bounds = array<i64: 640, 128>}, {pipeline_mode = #tpu.pipeline_mode<synchronous>, transform_indices = @transform_4, window_bounds = array<i64: 1, 128>}, {transform_indices = @transform_5, window_bounds = array<i64: 112, 128>}, {transform_indices = @transform_6, window_bounds = array<i64: 1, 1, 128>}, {transform_indices = @transform_7, window_bounds = array<i64: 1, 1, 128>}]} {
    %c1_i32 = arith.constant 1 : i32
    %0 = arith.muli %arg0, %c1_i32 : i32
    %1 = arith.addi %0, %arg1 : i32
    %c0 = arith.constant 0 : index
    %c0_0 = arith.constant 0 : index
    %2 = vector.load %arg2[%c0, %c0_0] : memref<112x640xbf16, #tpu.memory_space<vmem>>, vector<112x640xbf16>
    %3 = arith.extf %2 : vector<112x640xbf16> to vector<112x640xf32>
    %c0_1 = arith.constant 0 : index
    %c0_2 = arith.constant 0 : index
    %4 = vector.load %arg3[%c0_1, %c0_2] : memref<1x640xf32, #tpu.memory_space<vmem>>, vector<1x640xf32>
    %5 = vector.broadcast %4 : vector<1x640xf32> to vector<112x640xf32>
    %6 = arith.mulf %3, %5 : vector<112x640xf32>
    %c0_3 = arith.constant 0 : index
    %c0_4 = arith.constant 0 : index
    %7 = vector.load %arg4[%c0_3, %c0_4] : memref<1x640xf32, #tpu.memory_space<vmem>>, vector<1x640xf32>
    %8 = vector.broadcast %7 : vector<1x640xf32> to vector<112x640xf32>
    %9 = arith.addf %6, %8 : vector<112x640xf32>
    %10 = arith.truncf %9 : vector<112x640xf32> to vector<112x640xbf16>
    %c0_5 = arith.constant 0 : index
    %c0_6 = arith.constant 0 : index
    %11 = vector.load %arg5[%c0_5, %c0_6] : memref<640x128xbf16, #tpu.memory_space<vmem>>, vector<640x128xbf16>
    %cst = arith.constant dense<0.000000e+00> : vector<112x128xf32>
    %12 = tpu.matmul %10, %11, %cst {dimension_numbers = #tpu.dot_dimension_numbers<[1], [0], [0], [1], [0, 0, 1, 1], [], []>} : vector<112x640xbf16>, vector<640x128xbf16>, vector<112x128xf32> -> vector<112x128xf32>
    %c0_7 = arith.constant 0 : index
    %c0_8 = arith.constant 0 : index
    %13 = vector.load %arg6[%c0_7, %c0_8] : memref<1x128xf32, #tpu.memory_space<vmem>>, vector<1x128xf32>
    %14 = vector.broadcast %13 : vector<1x128xf32> to vector<112x128xf32>
    %15 = arith.addf %12, %14 : vector<112x128xf32>
    %cst_9 = arith.constant 0.000000e+00 : f32
    %16 = vector.broadcast %cst_9 : f32 to vector<112x128xf32>
    %17 = arith.cmpf oge, %15, %16 : vector<112x128xf32>
    %cst_10 = arith.constant 2.000000e-01 : f32
    %18 = vector.broadcast %cst_10 : f32 to vector<112x128xf32>
    %19 = arith.mulf %18, %15 : vector<112x128xf32>
    %20 = arith.select %17, %15, %19 : vector<112x128xi1>, vector<112x128xf32>
    %21 = arith.truncf %20 : vector<112x128xf32> to vector<112x128xbf16>
    %c0_11 = arith.constant 0 : index
    %c0_12 = arith.constant 0 : index
    %22 = vector.load %arg7[%c0_11, %c0_12] : memref<112x128xbf16, #tpu.memory_space<vmem>>, vector<112x128xbf16>
    tpu.vector_store %arg7[%c0_11, %c0_12], %21 {strides = array<i32>} : memref<112x128xbf16, #tpu.memory_space<vmem>>, vector<112x128xbf16>,
    %c112_i32 = arith.constant 112 : i32
    %23 = arith.muli %1, %c112_i32 : i32
    %24 = tpu.iota {dimensions = array<i32: 0>} : vector<112x1xi32>
    %25 = vector.broadcast %23 : i32 to vector<112x1xi32>
    %26 = arith.addi %25, %24 : vector<112x1xi32>
    %c98_i32 = arith.constant 98 : i32
    %27 = vector.broadcast %c98_i32 : i32 to vector<112x1xi32>
    %28 = arith.cmpi slt, %26, %27 : vector<112x1xi32>
    %cst_13 = arith.constant 0.000000e+00 : f32
    %29 = vector.shape_cast %28 : vector<112x1xi1> to vector<112x1xi1>
    %30 = vector.broadcast %29 : vector<112x1xi1> to vector<112x128xi1>
    %31 = vector.broadcast %cst_13 : f32 to vector<112x128xf32>
    %32 = arith.select %30, %20, %31 : vector<112x128xi1>, vector<112x128xf32>
    %c0_i32 = arith.constant 0 : i32
    %33 = arith.cmpi eq, %arg1, %c0_i32 : i32
    %34 = arith.extui %33 : i1 to i32
    %c0_i32_14 = arith.constant 0 : i32
    %35 = arith.cmpi ne, %34, %c0_i32_14 : i32
    scf.if %35 {
      %cst_29 = arith.constant 0.000000e+00 : f32
      %49 = vector.broadcast %cst_29 : f32 to vector<1x1x128xf32>
      %c0_30 = arith.constant 0 : index
      %c0_31 = arith.constant 0 : index
      %c0_32 = arith.constant 0 : index
      %50 = vector.load %arg8[%c0_30, %c0_31, %c0_32] : memref<1x1x128xf32, #tpu.memory_space<vmem>>, vector<1x1x128xf32>
      tpu.vector_store %arg8[%c0_30, %c0_31, %c0_32], %49 {strides = array<i32>} : memref<1x1x128xf32, #tpu.memory_space<vmem>>, vector<1x1x128xf32>,
      %cst_33 = arith.constant 0.000000e+00 : f32
      %51 = vector.broadcast %cst_33 : f32 to vector<1x1x128xf32>
      %c0_34 = arith.constant 0 : index
      %c0_35 = arith.constant 0 : index
      %c0_36 = arith.constant 0 : index
      %52 = vector.load %arg9[%c0_34, %c0_35, %c0_36] : memref<1x1x128xf32, #tpu.memory_space<vmem>>, vector<1x1x128xf32>
      tpu.vector_store %arg9[%c0_34, %c0_35, %c0_36], %51 {strides = array<i32>} : memref<1x1x128xf32, #tpu.memory_space<vmem>>, vector<1x1x128xf32>,
    } else {
    }
    %c0_15 = arith.constant 0 : index
    %c0_16 = arith.constant 0 : index
    %c0_17 = arith.constant 0 : index
    %36 = vector.load %arg8[%c0_15, %c0_16, %c0_17] : memref<1x1x128xf32, #tpu.memory_space<vmem>>, vector<1x1x128xf32>
    %cst_18 = arith.constant dense<0.000000e+00> : vector<128xf32>
    %37 = vector.multi_reduction <add>, %32, %cst_18 [0] : vector<112x128xf32> to vector<128xf32>
    %38 = vector.shape_cast %37 : vector<128xf32> to vector<1x128xf32>
    %39 = vector.shape_cast %38 : vector<1x128xf32> to vector<1x1x128xf32>
    %40 = arith.addf %36, %39 : vector<1x1x128xf32>
    %c0_19 = arith.constant 0 : index
    %c0_20 = arith.constant 0 : index
    %c0_21 = arith.constant 0 : index
    %41 = vector.load %arg8[%c0_19, %c0_20, %c0_21] : memref<1x1x128xf32, #tpu.memory_space<vmem>>, vector<1x1x128xf32>
    tpu.vector_store %arg8[%c0_19, %c0_20, %c0_21], %40 {strides = array<i32>} : memref<1x1x128xf32, #tpu.memory_space<vmem>>, vector<1x1x128xf32>,
    %c0_22 = arith.constant 0 : index
    %c0_23 = arith.constant 0 : index
    %c0_24 = arith.constant 0 : index
    %42 = vector.load %arg9[%c0_22, %c0_23, %c0_24] : memref<1x1x128xf32, #tpu.memory_space<vmem>>, vector<1x1x128xf32>
    %43 = arith.mulf %32, %32 : vector<112x128xf32>
    %cst_25 = arith.constant dense<0.000000e+00> : vector<128xf32>
    %44 = vector.multi_reduction <add>, %43, %cst_25 [0] : vector<112x128xf32> to vector<128xf32>
    %45 = vector.shape_cast %44 : vector<128xf32> to vector<1x128xf32>
    %46 = vector.shape_cast %45 : vector<1x128xf32> to vector<1x1x128xf32>
    %47 = arith.addf %42, %46 : vector<1x1x128xf32>
    %c0_26 = arith.constant 0 : index
    %c0_27 = arith.constant 0 : index
    %c0_28 = arith.constant 0 : index
    %48 = vector.load %arg9[%c0_26, %c0_27, %c0_28] : memref<1x1x128xf32, #tpu.memory_space<vmem>>, vector<1x1x128xf32>
    tpu.vector_store %arg9[%c0_26, %c0_27, %c0_28], %47 {strides = array<i32>} : memref<1x1x128xf32, #tpu.memory_space<vmem>>, vector<1x1x128xf32>,
    return
  }
  func.func @transform_0(%arg0: i32, %arg1: i32) -> (i32, i32) {
    %c1_i32 = arith.constant 1 : i32
    %0 = arith.muli %arg0, %c1_i32 : i32
    %1 = arith.addi %0, %arg1 : i32
    %c0_i32 = arith.constant 0 : i32
    %c0_i32_0 = arith.constant 0 : i32
    return %1, %c0_i32 : i32, i32
  }
  func.func @transform_1(%arg0: i32, %arg1: i32) -> (i32, i32) {
    %c0_i32 = arith.constant 0 : i32
    %c0_i32_0 = arith.constant 0 : i32
    %c0_i32_1 = arith.constant 0 : i32
    return %c0_i32, %c0_i32_0 : i32, i32
  }
  func.func @transform_2(%arg0: i32, %arg1: i32) -> (i32, i32) {
    %c0_i32 = arith.constant 0 : i32
    %c0_i32_0 = arith.constant 0 : i32
    %c0_i32_1 = arith.constant 0 : i32
    return %c0_i32, %c0_i32_0 : i32, i32
  }
  func.func @transform_3(%arg0: i32, %arg1: i32) -> (i32, i32) {
    %c0_i32 = arith.constant 0 : i32
    %c0_i32_0 = arith.constant 0 : i32
    %c0_i32_1 = arith.constant 0 : i32
    return %c0_i32, %c0_i32_0 : i32, i32
  }
  func.func @transform_4(%arg0: i32, %arg1: i32) -> (i32, i32) {
    %c0_i32 = arith.constant 0 : i32
    %c0_i32_0 = arith.constant 0 : i32
    %c0_i32_1 = arith.constant 0 : i32
    return %c0_i32, %c0_i32_0 : i32, i32
  }
  func.func @transform_5(%arg0: i32, %arg1: i32) -> (i32, i32) {
    %c1_i32 = arith.constant 1 : i32
    %0 = arith.muli %arg0, %c1_i32 : i32
    %1 = arith.addi %0, %arg1 : i32
    %c0_i32 = arith.constant 0 : i32
    %c0_i32_0 = arith.constant 0 : i32
    return %1, %c0_i32 : i32, i32
  }
  func.func @transform_6(%arg0: i32, %arg1: i32) -> (i32, i32, i32) {
    %c0_i32 = arith.constant 0 : i32
    %c0_i32_0 = arith.constant 0 : i32
    %c0_i32_1 = arith.constant 0 : i32
    return %arg0, %c0_i32, %c0_i32_0 : i32, i32, i32
  }
  func.func @transform_7(%arg0: i32, %arg1: i32) -> (i32, i32, i32) {
    %c0_i32 = arith.constant 0 : i32
    %c0_i32_0 = arith.constant 0 : i32
    %c0_i32_1 = arith.constant 0 : i32
    return %arg0, %c0_i32, %c0_i32_0 : i32, i32, i32
  }
}

module attributes {stable_mosaic.version = 11 : i64} {
  func.func @_bn_critic_kernel(%arg0: i32, %arg1: memref<16x512xf32, #tpu.memory_space<vmem>>, %arg2: memref<1x512xf32, #tpu.memory_space<vmem>>, %arg3: memref<1x512xf32, #tpu.memory_space<vmem>>, %arg4: memref<1x512xf32, #tpu.memory_space<vmem>>, %arg5: memref<1x1xf32, #tpu.memory_space<vmem>>, %arg6: memref<16x512xf32, #tpu.memory_space<vmem>>, %arg7: memref<16x1xf32, #tpu.memory_space<vmem>>) attributes {dimension_semantics = [#tpu.dimension_semantics<parallel>], iteration_bounds = array<i64: 1>, scalar_prefetch = 0 : i64, scratch_operands = 0 : i64, tpu.core_type = #tpu.core_type<tc>, window_params = [{transform_indices = @transform_0, window_bounds = array<i64: 16, 512>}, {pipeline_mode = #tpu.pipeline_mode<synchronous>, transform_indices = @transform_1, window_bounds = array<i64: 1, 512>}, {pipeline_mode = #tpu.pipeline_mode<synchronous>, transform_indices = @transform_2, window_bounds = array<i64: 1, 512>}, {pipeline_mode = #tpu.pipeline_mode<synchronous>, transform_indices = @transform_3, window_bounds = array<i64: 1, 512>}, {pipeline_mode = #tpu.pipeline_mode<synchronous>, transform_indices = @transform_4, window_bounds = array<i64: 1, 1>}, {transform_indices = @transform_5, window_bounds = array<i64: 16, 512>}, {transform_indices = @transform_6, window_bounds = array<i64: 16, 1>}]} {
    %c0 = arith.constant 0 : index
    %c0_0 = arith.constant 0 : index
    %0 = vector.load %arg1[%c0, %c0_0] : memref<16x512xf32, #tpu.memory_space<vmem>>, vector<16x512xf32>
    %c0_1 = arith.constant 0 : index
    %c0_2 = arith.constant 0 : index
    %1 = vector.load %arg2[%c0_1, %c0_2] : memref<1x512xf32, #tpu.memory_space<vmem>>, vector<1x512xf32>
    %2 = vector.broadcast %1 : vector<1x512xf32> to vector<16x512xf32>
    %3 = arith.mulf %0, %2 : vector<16x512xf32>
    %c0_3 = arith.constant 0 : index
    %c0_4 = arith.constant 0 : index
    %4 = vector.load %arg3[%c0_3, %c0_4] : memref<1x512xf32, #tpu.memory_space<vmem>>, vector<1x512xf32>
    %5 = vector.broadcast %4 : vector<1x512xf32> to vector<16x512xf32>
    %6 = arith.addf %3, %5 : vector<16x512xf32>
    %c0_5 = arith.constant 0 : index
    %c0_6 = arith.constant 0 : index
    %7 = vector.load %arg6[%c0_5, %c0_6] : memref<16x512xf32, #tpu.memory_space<vmem>>, vector<16x512xf32>
    tpu.vector_store %arg6[%c0_5, %c0_6], %6 {strides = array<i32>} : memref<16x512xf32, #tpu.memory_space<vmem>>, vector<16x512xf32>,
    %c0_7 = arith.constant 0 : index
    %c0_8 = arith.constant 0 : index
    %8 = vector.load %arg4[%c0_7, %c0_8] : memref<1x512xf32, #tpu.memory_space<vmem>>, vector<1x512xf32>
    %9 = vector.broadcast %8 : vector<1x512xf32> to vector<16x512xf32>
    %10 = arith.mulf %6, %9 : vector<16x512xf32>
    %cst = arith.constant dense<0.000000e+00> : vector<16xf32>
    %11 = vector.multi_reduction <add>, %10, %cst [1] : vector<16x512xf32> to vector<16xf32>
    %12 = vector.shape_cast %11 : vector<16xf32> to vector<16x1xf32>
    %c0_9 = arith.constant 0 : index
    %c0_10 = arith.constant 0 : index
    %13 = vector.load %arg5[%c0_9, %c0_10] : memref<1x1xf32, #tpu.memory_space<vmem>>, vector<1x1xf32>
    %14 = vector.broadcast %13 : vector<1x1xf32> to vector<16x1xf32>
    %15 = arith.addf %12, %14 : vector<16x1xf32>
    %c0_11 = arith.constant 0 : index
    %c0_12 = arith.constant 0 : index
    %16 = vector.load %arg7[%c0_11, %c0_12] : memref<16x1xf32, #tpu.memory_space<vmem>>, vector<16x1xf32>
    tpu.vector_store %arg7[%c0_11, %c0_12], %15 {strides = array<i32>} : memref<16x1xf32, #tpu.memory_space<vmem>>, vector<16x1xf32>,
    return
  }
  func.func @transform_0(%arg0: i32) -> (i32, i32) {
    %c0_i32 = arith.constant 0 : i32
    %c0_i32_0 = arith.constant 0 : i32
    return %arg0, %c0_i32 : i32, i32
  }
  func.func @transform_1(%arg0: i32) -> (i32, i32) {
    %c0_i32 = arith.constant 0 : i32
    %c0_i32_0 = arith.constant 0 : i32
    %c0_i32_1 = arith.constant 0 : i32
    return %c0_i32, %c0_i32_0 : i32, i32
  }
  func.func @transform_2(%arg0: i32) -> (i32, i32) {
    %c0_i32 = arith.constant 0 : i32
    %c0_i32_0 = arith.constant 0 : i32
    %c0_i32_1 = arith.constant 0 : i32
    return %c0_i32, %c0_i32_0 : i32, i32
  }
  func.func @transform_3(%arg0: i32) -> (i32, i32) {
    %c0_i32 = arith.constant 0 : i32
    %c0_i32_0 = arith.constant 0 : i32
    %c0_i32_1 = arith.constant 0 : i32
    return %c0_i32, %c0_i32_0 : i32, i32
  }
  func.func @transform_4(%arg0: i32) -> (i32, i32) {
    %c0_i32 = arith.constant 0 : i32
    %c0_i32_0 = arith.constant 0 : i32
    %c0_i32_1 = arith.constant 0 : i32
    return %c0_i32, %c0_i32_0 : i32, i32
  }
  func.func @transform_5(%arg0: i32) -> (i32, i32) {
    %c0_i32 = arith.constant 0 : i32
    %c0_i32_0 = arith.constant 0 : i32
    return %arg0, %c0_i32 : i32, i32
  }
  func.func @transform_6(%arg0: i32) -> (i32, i32) {
    %c0_i32 = arith.constant 0 : i32
    %c0_i32_0 = arith.constant 0 : i32
    return %arg0, %c0_i32 : i32, i32
  }
}

module attributes {stable_mosaic.version = 11 : i64} {
  func.func @_pass1_kernel(%arg0: i32, %arg1: i32, %arg2: memref<16x3200xbf16, #tpu.memory_space<vmem>>, %arg3: memref<1x3200xf32, #tpu.memory_space<vmem>>, %arg4: memref<1x3200xf32, #tpu.memory_space<vmem>>, %arg5: memref<3200x512xbf16, #tpu.memory_space<vmem>>, %arg6: memref<1x512xf32, #tpu.memory_space<vmem>>, %arg7: memref<16x512xf32, #tpu.memory_space<vmem>>, %arg8: memref<1x1x512xf32, #tpu.memory_space<vmem>>, %arg9: memref<1x1x512xf32, #tpu.memory_space<vmem>>) attributes {dimension_semantics = [#tpu.dimension_semantics<parallel>, #tpu.dimension_semantics<arbitrary>], iteration_bounds = array<i64: 1, 1>, scalar_prefetch = 0 : i64, scratch_operands = 0 : i64, tpu.core_type = #tpu.core_type<tc>, window_params = [{transform_indices = @transform_0, window_bounds = array<i64: 16, 3200>}, {pipeline_mode = #tpu.pipeline_mode<synchronous>, transform_indices = @transform_1, window_bounds = array<i64: 1, 3200>}, {pipeline_mode = #tpu.pipeline_mode<synchronous>, transform_indices = @transform_2, window_bounds = array<i64: 1, 3200>}, {pipeline_mode = #tpu.pipeline_mode<synchronous>, transform_indices = @transform_3, window_bounds = array<i64: 3200, 512>}, {pipeline_mode = #tpu.pipeline_mode<synchronous>, transform_indices = @transform_4, window_bounds = array<i64: 1, 512>}, {transform_indices = @transform_5, window_bounds = array<i64: 16, 512>}, {transform_indices = @transform_6, window_bounds = array<i64: 1, 1, 512>}, {transform_indices = @transform_7, window_bounds = array<i64: 1, 1, 512>}]} {
    %c1_i32 = arith.constant 1 : i32
    %0 = arith.muli %arg0, %c1_i32 : i32
    %1 = arith.addi %0, %arg1 : i32
    %c0 = arith.constant 0 : index
    %c0_0 = arith.constant 0 : index
    %2 = vector.load %arg2[%c0, %c0_0] : memref<16x3200xbf16, #tpu.memory_space<vmem>>, vector<16x3200xbf16>
    %3 = arith.extf %2 : vector<16x3200xbf16> to vector<16x3200xf32>
    %c0_1 = arith.constant 0 : index
    %c0_2 = arith.constant 0 : index
    %4 = vector.load %arg3[%c0_1, %c0_2] : memref<1x3200xf32, #tpu.memory_space<vmem>>, vector<1x3200xf32>
    %5 = vector.broadcast %4 : vector<1x3200xf32> to vector<16x3200xf32>
    %6 = arith.mulf %3, %5 : vector<16x3200xf32>
    %c0_3 = arith.constant 0 : index
    %c0_4 = arith.constant 0 : index
    %7 = vector.load %arg4[%c0_3, %c0_4] : memref<1x3200xf32, #tpu.memory_space<vmem>>, vector<1x3200xf32>
    %8 = vector.broadcast %7 : vector<1x3200xf32> to vector<16x3200xf32>
    %9 = arith.addf %6, %8 : vector<16x3200xf32>
    %10 = arith.truncf %9 : vector<16x3200xf32> to vector<16x3200xbf16>
    %c0_5 = arith.constant 0 : index
    %c0_6 = arith.constant 0 : index
    %11 = vector.load %arg5[%c0_5, %c0_6] : memref<3200x512xbf16, #tpu.memory_space<vmem>>, vector<3200x512xbf16>
    %cst = arith.constant dense<0.000000e+00> : vector<16x512xf32>
    %12 = tpu.matmul %10, %11, %cst {dimension_numbers = #tpu.dot_dimension_numbers<[1], [0], [0], [1], [0, 0, 1, 1], [], []>} : vector<16x3200xbf16>, vector<3200x512xbf16>, vector<16x512xf32> -> vector<16x512xf32>
    %c0_7 = arith.constant 0 : index
    %c0_8 = arith.constant 0 : index
    %13 = vector.load %arg6[%c0_7, %c0_8] : memref<1x512xf32, #tpu.memory_space<vmem>>, vector<1x512xf32>
    %14 = vector.broadcast %13 : vector<1x512xf32> to vector<16x512xf32>
    %15 = arith.addf %12, %14 : vector<16x512xf32>
    %c0_9 = arith.constant 0 : index
    %c0_10 = arith.constant 0 : index
    %16 = vector.load %arg7[%c0_9, %c0_10] : memref<16x512xf32, #tpu.memory_space<vmem>>, vector<16x512xf32>
    tpu.vector_store %arg7[%c0_9, %c0_10], %15 {strides = array<i32>} : memref<16x512xf32, #tpu.memory_space<vmem>>, vector<16x512xf32>,
    %c16_i32 = arith.constant 16 : i32
    %17 = arith.muli %1, %c16_i32 : i32
    %18 = tpu.iota {dimensions = array<i32: 0>} : vector<16x1xi32>
    %19 = vector.broadcast %17 : i32 to vector<16x1xi32>
    %20 = arith.addi %19, %18 : vector<16x1xi32>
    %c2_i32 = arith.constant 2 : i32
    %21 = vector.broadcast %c2_i32 : i32 to vector<16x1xi32>
    %22 = arith.cmpi slt, %20, %21 : vector<16x1xi32>
    %cst_11 = arith.constant 0.000000e+00 : f32
    %23 = vector.shape_cast %22 : vector<16x1xi1> to vector<16x1xi1>
    %24 = vector.broadcast %23 : vector<16x1xi1> to vector<16x512xi1>
    %25 = vector.broadcast %cst_11 : f32 to vector<16x512xf32>
    %26 = arith.select %24, %15, %25 : vector<16x512xi1>, vector<16x512xf32>
    %c0_i32 = arith.constant 0 : i32
    %27 = arith.cmpi eq, %arg1, %c0_i32 : i32
    %28 = arith.extui %27 : i1 to i32
    %c0_i32_12 = arith.constant 0 : i32
    %29 = arith.cmpi ne, %28, %c0_i32_12 : i32
    scf.if %29 {
      %cst_27 = arith.constant 0.000000e+00 : f32
      %43 = vector.broadcast %cst_27 : f32 to vector<1x1x512xf32>
      %c0_28 = arith.constant 0 : index
      %c0_29 = arith.constant 0 : index
      %c0_30 = arith.constant 0 : index
      %44 = vector.load %arg8[%c0_28, %c0_29, %c0_30] : memref<1x1x512xf32, #tpu.memory_space<vmem>>, vector<1x1x512xf32>
      tpu.vector_store %arg8[%c0_28, %c0_29, %c0_30], %43 {strides = array<i32>} : memref<1x1x512xf32, #tpu.memory_space<vmem>>, vector<1x1x512xf32>,
      %cst_31 = arith.constant 0.000000e+00 : f32
      %45 = vector.broadcast %cst_31 : f32 to vector<1x1x512xf32>
      %c0_32 = arith.constant 0 : index
      %c0_33 = arith.constant 0 : index
      %c0_34 = arith.constant 0 : index
      %46 = vector.load %arg9[%c0_32, %c0_33, %c0_34] : memref<1x1x512xf32, #tpu.memory_space<vmem>>, vector<1x1x512xf32>
      tpu.vector_store %arg9[%c0_32, %c0_33, %c0_34], %45 {strides = array<i32>} : memref<1x1x512xf32, #tpu.memory_space<vmem>>, vector<1x1x512xf32>,
    } else {
    }
    %c0_13 = arith.constant 0 : index
    %c0_14 = arith.constant 0 : index
    %c0_15 = arith.constant 0 : index
    %30 = vector.load %arg8[%c0_13, %c0_14, %c0_15] : memref<1x1x512xf32, #tpu.memory_space<vmem>>, vector<1x1x512xf32>
    %cst_16 = arith.constant dense<0.000000e+00> : vector<512xf32>
    %31 = vector.multi_reduction <add>, %26, %cst_16 [0] : vector<16x512xf32> to vector<512xf32>
    %32 = vector.shape_cast %31 : vector<512xf32> to vector<1x512xf32>
    %33 = vector.shape_cast %32 : vector<1x512xf32> to vector<1x1x512xf32>
    %34 = arith.addf %30, %33 : vector<1x1x512xf32>
    %c0_17 = arith.constant 0 : index
    %c0_18 = arith.constant 0 : index
    %c0_19 = arith.constant 0 : index
    %35 = vector.load %arg8[%c0_17, %c0_18, %c0_19] : memref<1x1x512xf32, #tpu.memory_space<vmem>>, vector<1x1x512xf32>
    tpu.vector_store %arg8[%c0_17, %c0_18, %c0_19], %34 {strides = array<i32>} : memref<1x1x512xf32, #tpu.memory_space<vmem>>, vector<1x1x512xf32>,
    %c0_20 = arith.constant 0 : index
    %c0_21 = arith.constant 0 : index
    %c0_22 = arith.constant 0 : index
    %36 = vector.load %arg9[%c0_20, %c0_21, %c0_22] : memref<1x1x512xf32, #tpu.memory_space<vmem>>, vector<1x1x512xf32>
    %37 = arith.mulf %26, %26 : vector<16x512xf32>
    %cst_23 = arith.constant dense<0.000000e+00> : vector<512xf32>
    %38 = vector.multi_reduction <add>, %37, %cst_23 [0] : vector<16x512xf32> to vector<512xf32>
    %39 = vector.shape_cast %38 : vector<512xf32> to vector<1x512xf32>
    %40 = vector.shape_cast %39 : vector<1x512xf32> to vector<1x1x512xf32>
    %41 = arith.addf %36, %40 : vector<1x1x512xf32>
    %c0_24 = arith.constant 0 : index
    %c0_25 = arith.constant 0 : index
    %c0_26 = arith.constant 0 : index
    %42 = vector.load %arg9[%c0_24, %c0_25, %c0_26] : memref<1x1x512xf32, #tpu.memory_space<vmem>>, vector<1x1x512xf32>
    tpu.vector_store %arg9[%c0_24, %c0_25, %c0_26], %41 {strides = array<i32>} : memref<1x1x512xf32, #tpu.memory_space<vmem>>, vector<1x1x512xf32>,
    return
  }
  func.func @transform_0(%arg0: i32, %arg1: i32) -> (i32, i32) {
    %c1_i32 = arith.constant 1 : i32
    %0 = arith.muli %arg0, %c1_i32 : i32
    %1 = arith.addi %0, %arg1 : i32
    %c0_i32 = arith.constant 0 : i32
    %c0_i32_0 = arith.constant 0 : i32
    return %1, %c0_i32 : i32, i32
  }
  func.func @transform_1(%arg0: i32, %arg1: i32) -> (i32, i32) {
    %c0_i32 = arith.constant 0 : i32
    %c0_i32_0 = arith.constant 0 : i32
    %c0_i32_1 = arith.constant 0 : i32
    return %c0_i32, %c0_i32_0 : i32, i32
  }
  func.func @transform_2(%arg0: i32, %arg1: i32) -> (i32, i32) {
    %c0_i32 = arith.constant 0 : i32
    %c0_i32_0 = arith.constant 0 : i32
    %c0_i32_1 = arith.constant 0 : i32
    return %c0_i32, %c0_i32_0 : i32, i32
  }
  func.func @transform_3(%arg0: i32, %arg1: i32) -> (i32, i32) {
    %c0_i32 = arith.constant 0 : i32
    %c0_i32_0 = arith.constant 0 : i32
    %c0_i32_1 = arith.constant 0 : i32
    return %c0_i32, %c0_i32_0 : i32, i32
  }
  func.func @transform_4(%arg0: i32, %arg1: i32) -> (i32, i32) {
    %c0_i32 = arith.constant 0 : i32
    %c0_i32_0 = arith.constant 0 : i32
    %c0_i32_1 = arith.constant 0 : i32
    return %c0_i32, %c0_i32_0 : i32, i32
  }
  func.func @transform_5(%arg0: i32, %arg1: i32) -> (i32, i32) {
    %c1_i32 = arith.constant 1 : i32
    %0 = arith.muli %arg0, %c1_i32 : i32
    %1 = arith.addi %0, %arg1 : i32
    %c0_i32 = arith.constant 0 : i32
    %c0_i32_0 = arith.constant 0 : i32
    return %1, %c0_i32 : i32, i32
  }
  func.func @transform_6(%arg0: i32, %arg1: i32) -> (i32, i32, i32) {
    %c0_i32 = arith.constant 0 : i32
    %c0_i32_0 = arith.constant 0 : i32
    %c0_i32_1 = arith.constant 0 : i32
    return %arg0, %c0_i32, %c0_i32_0 : i32, i32, i32
  }
  func.func @transform_7(%arg0: i32, %arg1: i32) -> (i32, i32, i32) {
    %c0_i32 = arith.constant 0 : i32
    %c0_i32_0 = arith.constant 0 : i32
    %c0_i32_1 = arith.constant 0 : i32
    return %arg0, %c0_i32, %c0_i32_0 : i32, i32, i32
  }
}

</mosaic_0001>

<bundles_post_ra>
// kernel: cnn_base_forward.5
= control target key start
LH: loop header
LB: loop body
LE: loop exit
PB: predicated region body
PF: predicated region fallthrough
CT: control target
= control target key end

     0   :  { %s4987_s1 = inlined_call_operand.vmem [shape: bf16[256,128], index: 1, kind: input, shape index: {}]   ;;  %s4988_s2 = inlined_call_operand.vmem [shape: f32[1,128], index: 2, kind: input, shape index: {}]   ;;  %s4989_s0 = inlined_call_operand.vmem [shape: bf16[800,256], index: 0, kind: input, shape index: {}]   ;;  %s4990_s3 = inlined_call_operand.vmem [shape: bf16[800,128], index: 3, kind: output, shape index: {0}]   ;;  %s4991_s4 = inlined_call_operand.vmem [shape: f32[1,1,128], index: 4, kind: output, shape index: {1}]   ;;  %s4992_s5 = inlined_call_operand.vmem [shape: f32[1,1,128], index: 5, kind: output, shape index: {2}]  }
   0x1   :  { %v3343_v0 = vld [vmem:[%s4987_s1 + $0x38] sm:$0xff]  ;;  %v3342_v2 = vld [vmem:[%s4987_s1 + $0x30] sm:$0xff]  ;;  %v3341_v4 = vld [vmem:[%s4987_s1 + $0x28] sm:$0xff] }
   0x2   :  { %v3351_v1 = vld [vmem:[%s4987_s1 + $0x78] sm:$0xff]  ;;  %789 = vmatpush.bf16.msra.mxu0 %v3343_v0  ;;  %v3350_v3 = vld [vmem:[%s4987_s1 + $0x70] sm:$0xff]  ;;  %3651 = vmatpush.bf16.msra.mxu2 %v3343_v0  ;;  %v3349_v5 = vld [vmem:[%s4987_s1 + $0x68] sm:$0xff] }
   0x3   :  { %1048 = vmatpush.bf16.msra.mxu1 %v3351_v1  ;;  %3659 = vmatpush.bf16.msra.mxu3 %v3351_v1  ;;  %v3340_v6 = vld [vmem:[%s4987_s1 + $0x20] sm:$0xff]  ;;  %v3339_v8 = vld [vmem:[%s4987_s1 + $0x18] sm:$0xff]  ;;  %v3338_v10 = vld [vmem:[%s4987_s1 + $0x10] sm:$0xff] }
   0x4   :  { %v3348_v7 = vld [vmem:[%s4987_s1 + $0x60] sm:$0xff]  ;;  %v3347_v9 = vld [vmem:[%s4987_s1 + $0x58] sm:$0xff]  ;;  %v3346_v11 = vld [vmem:[%s4987_s1 + $0x50] sm:$0xff] }
   0x5   :  { %v3337_v12 = vld [vmem:[%s4987_s1 + $0x8] sm:$0xff]  ;;  %v3336_v14 = vld [vmem:[%s4987_s1] sm:$0xff]  ;;  %v2782_v22 = vld [vmem:[%s4989_s0 + $0x10] sm:$0xf] }
   0x6   :  { %790 = vmatpush.bf16.msra.mxu0 %v3342_v2  ;;  %3652 = vmatpush.bf16.msra.mxu2 %v3342_v2  ;;  %v3345_v13 = vld [vmem:[%s4987_s1 + $0x48] sm:$0xff]  ;;  %v3344_v15 = vld [vmem:[%s4987_s1 + $0x40] sm:$0xff]  ;;  %v3239_v23 = vld [vmem:[%s4989_s0 + $0x14] sm:$0xf0] }
   0x7   :  { %1049 = vmatpush.bf16.msra.mxu1 %v3350_v3  ;;  %3660 = vmatpush.bf16.msra.mxu3 %v3350_v3  ;;  %v2774_v16 = vld [vmem:[%s4989_s0] sm:$0xf]  ;;  %v3237_v17 = vld [vmem:[%s4989_s0 + $0x4] sm:$0xf0]  ;;  %v3236_v18 = vld [vmem:[%s4989_s0 + $0x4] sm:$0xf]  ;;  %v2783_v26 = vor.u32 %v3239_v23, %v2782_v22 }
   0x8   :  { %v2776_v19 = vld [vmem:[%s4989_s0 + $0x8] sm:$0xf0]  ;;  %v2775_v20 = vor.u32 %v3237_v17, %v2774_v16  ;;  %v3238_v24 = vld [vmem:[%s4989_s0 + $0x14] sm:$0xf]  ;;  %v2784_v25 = vld [vmem:[%s4989_s0 + $0x18] sm:$0xf0] }
   0x9   :  { %v2779_v21 = vor.u32 %v3236_v18, %v2776_v19  ;;  %v2787_v27 = vor.u32 %v3238_v24, %v2784_v25  ;;  %v2790_v28 = vld [vmem:[%s4989_s0 + $0x20] sm:$0xf]  ;;  %v3241_v29 = vld [vmem:[%s4989_s0 + $0x24] sm:$0xf0]  ;;  %v3240_v30 = vld [vmem:[%s4989_s0 + $0x24] sm:$0xf] }
   0xa   :  { %791 = vmatpush.bf16.msra.mxu0 %v3341_v4  ;;  %3653 = vmatpush.bf16.msra.mxu2 %v3341_v4  ;;  %v2792_v31 = vld [vmem:[%s4989_s0 + $0x28] sm:$0xf0]  ;;  %v2791_v32 = vor.u32 %v3241_v29, %v2790_v28  ;;  %v2798_v34 = vld [vmem:[%s4989_s0 + $0x30] sm:$0xf]  ;;  %v3243_v35 = vld [vmem:[%s4989_s0 + $0x34] sm:$0xf0] }
   0xb   :  { %1050 = vmatpush.bf16.msra.mxu1 %v3349_v5  ;;  %3661 = vmatpush.bf16.msra.mxu3 %v3349_v5  ;;  %v2795_v33 = vor.u32 %v3240_v30, %v2792_v31  ;;  %v3242_v36 = vld [vmem:[%s4989_s0 + $0x34] sm:$0xf]  ;;  %v2800_v37 = vld [vmem:[%s4989_s0 + $0x38] sm:$0xf0]  ;;  %v2799_v38 = vor.u32 %v3243_v35, %v2798_v34  ;;  %v2974_v40 = vld [vmem:[%s4989_s0 + $0x190] sm:$0xf] }
   0xc   :  { %v2803_v39 = vor.u32 %v3242_v36, %v2800_v37  ;;  %v3287_v41 = vld [vmem:[%s4989_s0 + $0x194] sm:$0xf0]  ;;  %v3286_v42 = vld [vmem:[%s4989_s0 + $0x194] sm:$0xf]  ;;  %v2976_v44 = vld [vmem:[%s4989_s0 + $0x198] sm:$0xf0] }
   0xd   :  { %v2975_v43 = vor.u32 %v3287_v41, %v2974_v40  ;;  %v2979_v45 = vor.u32 %v3286_v42, %v2976_v44  ;;  %v2806_v46 = vld [vmem:[%s4989_s0 + $0x40] sm:$0xf]  ;;  %v3245_v47 = vld [vmem:[%s4989_s0 + $0x44] sm:$0xf0]  ;;  %v3244_v48 = vld [vmem:[%s4989_s0 + $0x44] sm:$0xf] }
   0xe   :  { %792 = vmatpush.bf16.msra.mxu0 %v3340_v6  ;;  %3654 = vmatpush.bf16.msra.mxu2 %v3340_v6  ;;  %v2808_v49 = vld [vmem:[%s4989_s0 + $0x48] sm:$0xf0]  ;;  %v2807_v50 = vor.u32 %v3245_v47, %v2806_v46  ;;  %v2982_v52 = vld [vmem:[%s4989_s0 + $0x1a0] sm:$0xf]  ;;  %v3289_v53 = vld [vmem:[%s4989_s0 + $0x1a4] sm:$0xf0] }
   0xf   :  { %1051 = vmatpush.bf16.msra.mxu1 %v3348_v7  ;;  %3662 = vmatpush.bf16.msra.mxu3 %v3348_v7  ;;  %v2811_v51 = vor.u32 %v3244_v48, %v2808_v49  ;;  %v3288_v54 = vld [vmem:[%s4989_s0 + $0x1a4] sm:$0xf]  ;;  %v2983_v55 = vor.u32 %v3289_v53, %v2982_v52  ;;  %v2984_v56 = vld [vmem:[%s4989_s0 + $0x1a8] sm:$0xf0]  ;;  %v2814_v58 = vld [vmem:[%s4989_s0 + $0x50] sm:$0xf] }
  0x10   :  { %v2987_v57 = vor.u32 %v3288_v54, %v2984_v56  ;;  %v3247_v59 = vld [vmem:[%s4989_s0 + $0x54] sm:$0xf0]  ;;  %v3246_v60 = vld [vmem:[%s4989_s0 + $0x54] sm:$0xf]  ;;  %v2816_v61 = vld [vmem:[%s4989_s0 + $0x58] sm:$0xf0] }
  0x11   :  { %v2815_v62 = vor.u32 %v3247_v59, %v2814_v58  ;;  %v2819_v63 = vor.u32 %v3246_v60, %v2816_v61  ;;  %v2990_v0 = vld [vmem:[%s4989_s0 + $0x1b0] sm:$0xf]  ;;  %v3291_v1 = vld [vmem:[%s4989_s0 + $0x1b4] sm:$0xf0]  ;;  %v3290_v2 = vld [vmem:[%s4989_s0 + $0x1b4] sm:$0xf] }
  0x12   :  { %793 = vmatpush.bf16.msra.mxu0 %v3339_v8  ;;  %3655 = vmatpush.bf16.msra.mxu2 %v3339_v8  ;;  %v2991_v3 = vor.u32 %v3291_v1, %v2990_v0  ;;  %v2992_v4 = vld [vmem:[%s4989_s0 + $0x1b8] sm:$0xf0]  ;;  %v2822_v6 = vld [vmem:[%s4989_s0 + $0x60] sm:$0xf]  ;;  %v3249_v7 = vld [vmem:[%s4989_s0 + $0x64] sm:$0xf0] }
  0x13   :  { %1052 = vmatpush.bf16.msra.mxu1 %v3347_v9  ;;  %3663 = vmatpush.bf16.msra.mxu3 %v3347_v9  ;;  %v2995_v5 = vor.u32 %v3290_v2, %v2992_v4  ;;  %v3248_v8 = vld [vmem:[%s4989_s0 + $0x64] sm:$0xf]  ;;  %v2824_v9 = vld [vmem:[%s4989_s0 + $0x68] sm:$0xf0]  ;;  %v2830_v18 = vld [vmem:[%s4989_s0 + $0x70] sm:$0xf] }
  0x14   :  { %v3000_v16 = vld [vmem:[%s4989_s0 + $0x1c8] sm:$0xf0]  ;;  %v3251_v19 = vld [vmem:[%s4989_s0 + $0x74] sm:$0xf0]  ;;  %v3006_v24 = vld [vmem:[%s4989_s0 + $0x1d0] sm:$0xf] }
  0x15   :  { %v2831_v22 = vor.u32 %v3251_v19, %v2830_v18  ;;  %v3295_v25 = vld [vmem:[%s4989_s0 + $0x1d4] sm:$0xf0]  ;;  %v3008_v28 = vld [vmem:[%s4989_s0 + $0x1d8] sm:$0xf0]  ;;  %v2838_v30 = vld [vmem:[%s4989_s0 + $0x80] sm:$0xf] }
  0x16   :  { %794 = vmatpush.bf16.msra.mxu0 %v3338_v10  ;;  %3656 = vmatpush.bf16.msra.mxu2 %v3338_v10  ;;  %v2823_v10 = vor.u32 %v3249_v7, %v2822_v6  ;;  %v3253_v31 = vld [vmem:[%s4989_s0 + $0x84] sm:$0xf0]  ;;  %v3921_v34 = vld [vmem:[%s4988_s2] ss:$0 sm:$0xff]  ;;  %v3296_v44 = vld [vmem:[%s4989_s0 + $0x1e4] sm:$0xf] }
  0x17   :  { %1053 = vmatpush.bf16.msra.mxu1 %v3346_v11  ;;  %3664 = vmatpush.bf16.msra.mxu3 %v3346_v11  ;;  %v2827_v11 = vor.u32 %v3248_v8, %v2824_v9  ;;  %v2839_v35 = vor.u32 %v3253_v31, %v2838_v30  ;;  %v3014_v40 = vld [vmem:[%s4989_s0 + $0x1e0] sm:$0xf]  ;;  %v3297_v41 = vld [vmem:[%s4989_s0 + $0x1e4] sm:$0xf0]  ;;  %v2846_v52 = vld [vmem:[%s4989_s0 + $0x90] sm:$0xf] }
  0x18   :  { %v3255_v53 = vld [vmem:[%s4989_s0 + $0x94] sm:$0xf0]  ;;  %v3254_v54 = vld [vmem:[%s4989_s0 + $0x94] sm:$0xf]  ;;  %v3022_v6 = vld [vmem:[%s4989_s0 + $0x1f0] sm:$0xf] }
  0x19   :  { %v2847_v59 = vor.u32 %v3255_v53, %v2846_v52  ;;  %v3299_v7 = vld [vmem:[%s4989_s0 + $0x1f4] sm:$0xf0]  ;;  %v2862_v53 = vld [vmem:[%s4989_s0 + $0xb0] sm:$0xf] }
  0x1a   :  { %795 = vmatpush.bf16.msra.mxu0 %v3337_v12  ;;  %3657 = vmatpush.bf16.msra.mxu2 %v3337_v12  ;;  %v2998_v12 = vld [vmem:[%s4989_s0 + $0x1c0] sm:$0xf]  ;;  %v3023_v9 = vor.u32 %v3299_v7, %v3022_v6  ;;  %v3303_v6 = vld [vmem:[%s4989_s0 + $0x214] sm:$0xf0] }
  0x1b   :  { %1054 = vmatpush.bf16.msra.mxu1 %v3345_v13  ;;  %3665 = vmatpush.bf16.msra.mxu3 %v3345_v13  ;;  %v3293_v13 = vld [vmem:[%s4989_s0 + $0x1c4] sm:$0xf0] }
  0x1e   :  { %796 = vmatpush.bf16.msra.mxu0 %v3336_v14  ;;  %3658 = vmatpush.bf16.msra.mxu2 %v3336_v14  ;;  %v2999_v14 = vor.u32 %v3293_v13, %v2998_v12 }
  0x1f   :  { %1055 = vmatpush.bf16.msra.mxu1 %v3344_v15  ;;  %3666 = vmatpush.bf16.msra.mxu3 %v3344_v15  ;;  %v3292_v15 = vld [vmem:[%s4989_s0 + $0x1c4] sm:$0xf] }
  0x20   :  { %v3003_v17 = vor.u32 %v3292_v15, %v3000_v16 }
  0x21   :  { %797 = vmatmul.bf16.vlgmr.msra.gmra.mxu0 %v2775_v20  ;;  %922 = vmatmul.bf16.vlgmr.msra.gmra.mxu2 %v2975_v43  ;;  %v3250_v20 = vld [vmem:[%s4989_s0 + $0x74] sm:$0xf]  ;;  %v3015_v43 = vor.u32 %v3297_v41, %v3014_v40 }
  0x22   :  { %1056 = vmatmul.bf16.vlgmr.msra.gmra.mxu1 %v2779_v21  ;;  %1181 = vmatmul.bf16.vlgmr.msra.gmra.mxu3 %v2979_v45  ;;  %v2832_v21 = vld [vmem:[%s4989_s0 + $0x78] sm:$0xf0]  ;;  %v3016_v45 = vld [vmem:[%s4989_s0 + $0x1e8] sm:$0xf0] }
  0x23   :  { %v2835_v23 = vor.u32 %v3250_v20, %v2832_v21  ;;  %v3019_v46 = vor.u32 %v3296_v44, %v3016_v45  ;;  %v2854_v21 = vld [vmem:[%s4989_s0 + $0xa0] sm:$0xf] }
  0x31   :  { %802 = vmatmul.bf16.gmra.mxu0 %v2783_v26  ;;  %927 = vmatmul.bf16.gmra.mxu2 %v2983_v55  ;;  %v3007_v26 = vor.u32 %v3295_v25, %v3006_v24  ;;  %v2848_v55 = vld [vmem:[%s4989_s0 + $0x98] sm:$0xf0]  ;;  %v2856_v24 = vld [vmem:[%s4989_s0 + $0xa8] sm:$0xf0] }
  0x32   :  { %1061 = vmatmul.bf16.gmra.mxu1 %v2787_v27  ;;  %1186 = vmatmul.bf16.gmra.mxu3 %v2987_v57  ;;  %v3294_v27 = vld [vmem:[%s4989_s0 + $0x1d4] sm:$0xf]  ;;  %v2851_v60 = vor.u32 %v3254_v54, %v2848_v55  ;;  %v3259_v54 = vld [vmem:[%s4989_s0 + $0xb4] sm:$0xf0] }
  0x33   :  { %v3011_v29 = vor.u32 %v3294_v27, %v3008_v28  ;;  %v3258_v55 = vld [vmem:[%s4989_s0 + $0xb4] sm:$0xf] }
  0x41   :  { %807 = vmatmul.bf16.gmra.mxu0 %v2791_v32  ;;  %932 = vmatmul.bf16.gmra.mxu2 %v2991_v3  ;;  %v3252_v32 = vld [vmem:[%s4989_s0 + $0x84] sm:$0xf] }
  0x42   :  { %1066 = vmatmul.bf16.gmra.mxu1 %v2795_v33  ;;  %1191 = vmatmul.bf16.gmra.mxu3 %v2995_v5  ;;  %v2840_v33 = vld [vmem:[%s4989_s0 + $0x88] sm:$0xf0] }
  0x43   :  { %v2843_v36 = vor.u32 %v3252_v32, %v2840_v33 }
  0x51   :  { %812 = vmatmul.bf16.gmra.mxu0 %v2799_v38  ;;  %937 = vmatmul.bf16.gmra.mxu2 %v2999_v14 }
  0x52   :  { %1071 = vmatmul.bf16.gmra.mxu1 %v2803_v39  ;;  %1196 = vmatmul.bf16.gmra.mxu3 %v3003_v17 }
  0x61   :  { %817 = vmatmul.bf16.gmra.mxu0 %v2807_v50  ;;  %942 = vmatmul.bf16.gmra.mxu2 %v3007_v26 }
  0x62   :  { %1076 = vmatmul.bf16.gmra.mxu1 %v2811_v51  ;;  %1201 = vmatmul.bf16.gmra.mxu3 %v3011_v29 }
  0x71   :  { %822 = vmatmul.bf16.gmra.mxu0 %v2815_v62  ;;  %947 = vmatmul.bf16.gmra.mxu2 %v3015_v43  ;;  %v3032_v43 = vld [vmem:[%s4989_s0 + $0x208] sm:$0xf0] }
  0x72   :  { %1081 = vmatmul.bf16.gmra.mxu1 %v2819_v63  ;;  %1206 = vmatmul.bf16.gmra.mxu3 %v3019_v46 }
  0x81   :  { %827 = vmatmul.bf16.gmra.mxu0 %v2823_v10  ;;  %v3298_v10 = vld [vmem:[%s4989_s0 + $0x1f4] sm:$0xf]  ;;  %952 = vmatmul.bf16.gmra.mxu2 %v3023_v9 }
  0x82   :  { %1086 = vmatmul.bf16.gmra.mxu1 %v2827_v11  ;;  %v3024_v11 = vld [vmem:[%s4989_s0 + $0x1f8] sm:$0xf0]  ;;  %v3302_v9 = vld [vmem:[%s4989_s0 + $0x214] sm:$0xf] }
  0x83   :  { %v3027_v13 = vor.u32 %v3298_v10, %v3024_v11  ;;  %v3040_v10 = vld [vmem:[%s4989_s0 + $0x218] sm:$0xf0] }
  0x85   :  { %1211 = vmatmul.bf16.gmra.mxu3 %v3027_v13 }
  0x91   :  { %832 = vmatmul.bf16.gmra.mxu0 %v2831_v22  ;;  %v3257_v22 = vld [vmem:[%s4989_s0 + $0xa4] sm:$0xf0] }
  0x92   :  { %1091 = vmatmul.bf16.gmra.mxu1 %v2835_v23  ;;  %v3256_v23 = vld [vmem:[%s4989_s0 + $0xa4] sm:$0xf]  ;;  %v2855_v27 = vor.u32 %v3257_v22, %v2854_v21  ;;  %v2870_v21 = vld [vmem:[%s4989_s0 + $0xc0] sm:$0xf]  ;;  %v3261_v22 = vld [vmem:[%s4989_s0 + $0xc4] sm:$0xf0] }
  0x93   :  { %v2859_v28 = vor.u32 %v3256_v23, %v2856_v24  ;;  %v3260_v23 = vld [vmem:[%s4989_s0 + $0xc4] sm:$0xf]  ;;  %v2872_v24 = vld [vmem:[%s4989_s0 + $0xc8] sm:$0xf0] }
  0x9e   :  { %v798_v37 = vpop.f32.mrf.mxu0 }
  0x9f   :  { %v1057_v38 = vpop.f32.mrf.mxu1  ;;  %v799_v39 = vadd.f32 %v3921_v34, %v798_v37 }
  0xa1   :  { %837 = vmatmul.bf16.gmra.mxu0 %v2839_v35  ;;  %v1058_v42 = vadd.f32 %v1057_v38, %v799_v39  ;;  %v3030_v38 = vld [vmem:[%s4989_s0 + $0x200] sm:$0xf]  ;;  %v3301_v39 = vld [vmem:[%s4989_s0 + $0x204] sm:$0xf0] }
  0xa2   :  { %1096 = vmatmul.bf16.gmra.mxu1 %v2843_v36  ;;  %v3031_v41 = vor.u32 %v3301_v39, %v3030_v38 }
  0xa3   :  { %v1407_v49 = vmul.f32 0.2, %v1058_v42  ;;  %vm1307_vm0 = vcmp.ge.f32.partialorder %v1058_v42, 0.0 }
  0xa4   :  { %957 = vmatmul.bf16.gmra.mxu2 %v3031_v41 }
  0xa5   :  { %v1507_v56 = vsel %vm1307_vm0, %v1058_v42, %v1407_v49  ;;  %v3300_v42 = vld [vmem:[%s4989_s0 + $0x204] sm:$0xf] }
  0xa6   :  { %v800_v47 = vpop.f32.mrf.mxu0  ;;  %v2525_v61 = vmul.f32 %v1507_v56, %v1507_v56  ;;  %v3035_v45 = vor.u32 %v3300_v42, %v3032_v43 }
  0xa7   :  { %v1059_v48 = vpop.f32.mrf.mxu1  ;;  %v801_v50 = vadd.f32 %v3921_v34, %v800_v47 }
  0xa8   :  { %1216 = vmatmul.bf16.gmra.mxu3 %v3035_v45  ;;  %v3305_v45 = vld [vmem:[%s4989_s0 + $0x224] sm:$0xf0] }
  0xa9   :  { %v1060_v51 = vadd.f32 %v1059_v48, %v801_v50 }
  0xab   :  { %vm1308_vm1 = vcmp.ge.f32.partialorder %v1060_v51, 0.0  ;;  %v1408_v57 = vmul.f32 0.2, %v1060_v51 }
  0xad   :  { %v1508_v58 = vsel %vm1308_vm1, %v1060_v51, %v1408_v57 }
  0xae   :  { %v3355_v62 = vpack.c.bf16 %v1508_v58, %v1507_v56  ;;  %v2417_v63 = vadd.f32 %v1508_v58, %v1507_v56  ;;  %v2526_v0 = vmul.f32 %v1508_v58, %v1508_v58  ;;  %v803_v1 = vpop.f32.mrf.mxu0  ;;  %v2864_v56 = vld [vmem:[%s4989_s0 + $0xb8] sm:$0xf0] }
  0xaf   :  { %v1062_v2 = vpop.f32.mrf.mxu1  ;;  %v804_v3 = vadd.f32 %v3921_v34, %v803_v1 }
  0xb0   :  { %3356 = vst [vmem:[%s4990_s3] sm:$0xff] %v3355_v62   ;;  %v2625_v4 = vadd.f32 %v2526_v0, %v2525_v61 }
  0xb1   :  { %v1063_v5 = vadd.f32 %v1062_v2, %v804_v3  ;;  %842 = vmatmul.bf16.gmra.mxu0 %v2847_v59  ;;  %v2863_v59 = vor.u32 %v3259_v54, %v2862_v53  ;;  %v3048_v53 = vld [vmem:[%s4989_s0 + $0x228] sm:$0xf0] }
  0xb2   :  { %1101 = vmatmul.bf16.gmra.mxu1 %v2851_v60  ;;  %v2867_v60 = vor.u32 %v3258_v55, %v2864_v56 }
  0xb3   :  { %vm1309_vm2 = vcmp.ge.f32.partialorder %v1063_v5, 0.0  ;;  %v1409_v8 = vmul.f32 0.2, %v1063_v5 }
  0xb5   :  { %v1509_v12 = vsel %vm1309_vm2, %v1063_v5, %v1409_v8  ;;  %v3038_v5 = vld [vmem:[%s4989_s0 + $0x210] sm:$0xf] }
  0xb6   :  { %v2418_v14 = vadd.f32 %v2417_v63, %v1509_v12  ;;  %v2527_v15 = vmul.f32 %v1509_v12, %v1509_v12  ;;  %v805_v16 = vpop.f32.mrf.mxu0  ;;  %v3039_v8 = vor.u32 %v3303_v6, %v3038_v5  ;;  %v2880_v5 = vld [vmem:[%s4989_s0 + $0xd8] sm:$0xf0] }
  0xb7   :  { %v1064_v17 = vpop.f32.mrf.mxu1  ;;  %v806_v18 = vadd.f32 %v3921_v34, %v805_v16 }
  0xb8   :  { %v2626_v19 = vadd.f32 %v2625_v4, %v2527_v15  ;;  %962 = vmatmul.bf16.gmra.mxu2 %v3039_v8 }
  0xb9   :  { %v1065_v20 = vadd.f32 %v1064_v17, %v806_v18 }
  0xbb   :  { %vm1310_vm3 = vcmp.ge.f32.partialorder %v1065_v20, 0.0  ;;  %v1410_v25 = vmul.f32 0.2, %v1065_v20 }
  0xbd   :  { %v1510_v26 = vsel %vm1310_vm3, %v1065_v20, %v1410_v25  ;;  %v1182_v25 = vpop.f32.mrf.mxu3 }
  0xbe   :  { %v3360_v29 = vpack.c.bf16 %v1510_v26, %v1509_v12  ;;  %v2419_v30 = vadd.f32 %v2418_v14, %v1510_v26  ;;  %v2528_v31 = vmul.f32 %v1510_v26, %v1510_v26  ;;  %v808_v32 = vpop.f32.mrf.mxu0  ;;  %v3043_v12 = vor.u32 %v3302_v9, %v3040_v10 }
  0xbf   :  { %v1067_v33 = vpop.f32.mrf.mxu1  ;;  %v809_v35 = vadd.f32 %v3921_v34, %v808_v32 }
  0xc0   :  { %3602 = vst [vmem:[%s4990_s3 + $0x8] sm:$0xff] %v3360_v29   ;;  %v2627_v36 = vadd.f32 %v2626_v19, %v2528_v31  ;;  %1221 = vmatmul.bf16.gmra.mxu3 %v3043_v12  ;;  %v923_v19 = vpop.f32.mrf.mxu2  ;;  %v2875_v29 = vor.u32 %v3260_v23, %v2872_v24  ;;  %v3054_v24 = vld [vmem:[%s4989_s0 + $0x230] sm:$0xf] }
  0xc1   :  { %v1068_v37 = vadd.f32 %v1067_v33, %v809_v35  ;;  %847 = vmatmul.bf16.gmra.mxu0 %v2855_v27  ;;  %v924_v38 = vadd.f32 %v3921_v34, %v923_v19 }
  0xc2   :  { %1106 = vmatmul.bf16.gmra.mxu1 %v2859_v28  ;;  %v2871_v28 = vor.u32 %v3261_v22, %v2870_v21 }
  0xc3   :  { %vm1311_vm4 = vcmp.ge.f32.partialorder %v1068_v37, 0.0  ;;  %v1411_v40 = vmul.f32 0.2, %v1068_v37  ;;  %v1183_v42 = vadd.f32 %v1182_v25, %v924_v38  ;;  %v3307_v25 = vld [vmem:[%s4989_s0 + $0x234] sm:$0xf0] }
  0xc5   :  { %v1511_v44 = vsel %vm1311_vm4, %v1068_v37, %v1411_v40  ;;  %v1184_v43 = vpop.f32.mrf.mxu3  ;;  %vm1357_vm9 = vcmp.ge.f32.partialorder %v1183_v42, 0.0 }
  0xc6   :  { %v2420_v46 = vadd.f32 %v2419_v30, %v1511_v44  ;;  %v2529_v47 = vmul.f32 %v1511_v44, %v1511_v44  ;;  %v810_v48 = vpop.f32.mrf.mxu0 }
  0xc7   :  { %v1069_v49 = vpop.f32.mrf.mxu1  ;;  %v811_v50 = vadd.f32 %v3921_v34, %v810_v48 }
  0xc8   :  { %v2628_v51 = vadd.f32 %v2627_v36, %v2529_v47  ;;  %v925_v39 = vpop.f32.mrf.mxu2 }
  0xc9   :  { %v1070_v52 = vadd.f32 %v1069_v49, %v811_v50  ;;  %v926_v41 = vadd.f32 %v3921_v34, %v925_v39  ;;  %v1457_v49 = vmul.f32 0.2, %v1183_v42  ;;  %v3304_v50 = vld [vmem:[%s4989_s0 + $0x224] sm:$0xf] }
  0xcb   :  { %vm1312_vm5 = vcmp.ge.f32.partialorder %v1070_v52, 0.0  ;;  %v1412_v57 = vmul.f32 0.2, %v1070_v52  ;;  %v1185_v47 = vadd.f32 %v1184_v43, %v926_v41 }
  0xcd   :  { %v1512_v58 = vsel %vm1312_vm5, %v1070_v52, %v1412_v57  ;;  %v1458_v52 = vmul.f32 0.2, %v1185_v47  ;;  %vm1358_vm10 = vcmp.ge.f32.partialorder %v1185_v47, 0.0  ;;  %v1187_v6 = vpop.f32.mrf.mxu3 }
  0xce   :  { %v3365_v61 = vpack.c.bf16 %v1512_v58, %v1511_v44  ;;  %v2421_v62 = vadd.f32 %v2420_v46, %v1512_v58  ;;  %v2530_v63 = vmul.f32 %v1512_v58, %v1512_v58  ;;  %v813_v0 = vpop.f32.mrf.mxu0  ;;  %v3046_v44 = vld [vmem:[%s4989_s0 + $0x220] sm:$0xf]  ;;  %v4054_v58 = vsel %vm1357_vm9, %v1183_v42, %v1457_v49  ;;  %v3264_v49 = vld [vmem:[%s4989_s0 + $0xe4] sm:$0xf] }
  0xcf   :  { %v1072_v1 = vpop.f32.mrf.mxu1  ;;  %v814_v2 = vadd.f32 %v3921_v34, %v813_v0  ;;  %v3047_v48 = vor.u32 %v3305_v45, %v3046_v44 }
  0xd0   :  { %3603 = vst [vmem:[%s4990_s3 + $0x10] sm:$0xff] %v3365_v61   ;;  %v2629_v3 = vadd.f32 %v2628_v51, %v2530_v63  ;;  %v3051_v61 = vor.u32 %v3304_v50, %v3048_v53  ;;  %v928_v0 = vpop.f32.mrf.mxu2  ;;  %v2888_v50 = vld [vmem:[%s4989_s0 + $0xe8] sm:$0xf0] }
  0xd1   :  { %v1073_v4 = vadd.f32 %v1072_v1, %v814_v2  ;;  %852 = vmatmul.bf16.gmra.mxu0 %v2863_v59  ;;  %967 = vmatmul.bf16.gmra.mxu2 %v3047_v48  ;;  %v2878_v2 = vld [vmem:[%s4989_s0 + $0xd0] sm:$0xf]  ;;  %v3265_v48 = vld [vmem:[%s4989_s0 + $0xe4] sm:$0xf0] }
  0xd2   :  { %1111 = vmatmul.bf16.gmra.mxu1 %v2867_v60  ;;  %v4057_v60 = vsel %vm1358_vm10, %v1185_v47, %v1458_v52  ;;  %1226 = vmatmul.bf16.gmra.mxu3 %v3051_v61  ;;  %v2886_v47 = vld [vmem:[%s4989_s0 + $0xe0] sm:$0xf] }
  0xd3   :  { %vm1313_vm6 = vcmp.ge.f32.partialorder %v1073_v4, 0.0  ;;  %v1413_v7 = vmul.f32 0.2, %v1073_v4  ;;  %v3480_v63 = vpack.c.bf16 %v4057_v60, %v4054_v58 }
  0xd5   :  { %v1513_v11 = vsel %vm1313_vm6, %v1073_v4, %v1413_v7  ;;  %v3262_v4 = vld [vmem:[%s4989_s0 + $0xd4] sm:$0xf]  ;;  %3626 = vst [vmem:[%s4990_s3 + $0xc8] sm:$0xff] %v3480_v63   ;;  %v1189_v23 = vpop.f32.mrf.mxu3 }
  0xd6   :  { %v2422_v13 = vadd.f32 %v2421_v62, %v1513_v11  ;;  %v2531_v14 = vmul.f32 %v1513_v11, %v1513_v11  ;;  %v815_v15 = vpop.f32.mrf.mxu0  ;;  %v2883_v10 = vor.u32 %v3262_v4, %v2880_v5 }
  0xd7   :  { %v1074_v16 = vpop.f32.mrf.mxu1  ;;  %v816_v17 = vadd.f32 %v3921_v34, %v815_v15 }
  0xd8   :  { %v2630_v18 = vadd.f32 %v2629_v3, %v2531_v14  ;;  %v3263_v3 = vld [vmem:[%s4989_s0 + $0xd4] sm:$0xf0]  ;;  %v930_v19 = vpop.f32.mrf.mxu2 }
  0xd9   :  { %v1075_v20 = vadd.f32 %v1074_v16, %v816_v17  ;;  %v2879_v9 = vor.u32 %v3263_v3, %v2878_v2  ;;  %v931_v21 = vadd.f32 %v3921_v34, %v930_v19 }
  0xdb   :  { %vm1314_vm7 = vcmp.ge.f32.partialorder %v1075_v20, 0.0  ;;  %v1414_v26 = vmul.f32 0.2, %v1075_v20 }
  0xdd   :  { %v1514_v27 = vsel %vm1314_vm7, %v1075_v20, %v1414_v26 }
  0xde   :  { %v3370_v30 = vpack.c.bf16 %v1514_v27, %v1513_v11  ;;  %v2423_v31 = vadd.f32 %v2422_v13, %v1514_v27  ;;  %v2532_v32 = vmul.f32 %v1514_v27, %v1514_v27  ;;  %v818_v33 = vpop.f32.mrf.mxu0  ;;  %v1190_v27 = vadd.f32 %v1189_v23, %v931_v21 }
  0xdf   :  { %v1077_v35 = vpop.f32.mrf.mxu1  ;;  %v819_v36 = vadd.f32 %v3921_v34, %v818_v33  ;;  %v3056_v33 = vld [vmem:[%s4989_s0 + $0x238] sm:$0xf0] }
  0xe0   :  { %3604 = vst [vmem:[%s4990_s3 + $0x18] sm:$0xff] %v3370_v30   ;;  %v2631_v37 = vadd.f32 %v2630_v18, %v2532_v32  ;;  %v929_v18 = vadd.f32 %v3921_v34, %v928_v0  ;;  %v3306_v30 = vld [vmem:[%s4989_s0 + $0x234] sm:$0xf]  ;;  %v1460_v32 = vmul.f32 0.2, %v1190_v27  ;;  %vm1360_vm14 = vcmp.ge.f32.partialorder %v1190_v27, 0.0  ;;  %v933_v45 = vpop.f32.mrf.mxu2 }
  0xe1   :  { %v1078_v40 = vadd.f32 %v1077_v35, %v819_v36  ;;  %857 = vmatmul.bf16.gmra.mxu0 %v2871_v28  ;;  %v3055_v28 = vor.u32 %v3307_v25, %v3054_v24  ;;  %v3059_v42 = vor.u32 %v3306_v30, %v3056_v33  ;;  %v3267_v30 = vld [vmem:[%s4989_s0 + $0xf4] sm:$0xf0] }
  0xe2   :  { %1116 = vmatmul.bf16.gmra.mxu1 %v2875_v29  ;;  %v1188_v22 = vadd.f32 %v1187_v6, %v929_v18  ;;  %v4097_v41 = vsel %vm1360_vm14, %v1190_v27, %v1460_v32  ;;  %v2896_v32 = vld [vmem:[%s4989_s0 + $0xf8] sm:$0xf0] }
  0xe3   :  { %vm1315_vm8 = vcmp.ge.f32.partialorder %v1078_v40, 0.0  ;;  %v1415_v46 = vmul.f32 0.2, %v1078_v40  ;;  %972 = vmatmul.bf16.gmra.mxu2 %v3055_v28  ;;  %1231 = vmatmul.bf16.gmra.mxu3 %v3059_v42 }
  0xe4   :  { %vm1359_vm13 = vcmp.ge.f32.partialorder %v1188_v22, 0.0  ;;  %v1459_v29 = vmul.f32 0.2, %v1188_v22 }
  0xe5   :  { %v1515_v51 = vsel %vm1315_vm8, %v1078_v40, %v1415_v46 }
  0xe6   :  { %v2424_v54 = vadd.f32 %v2423_v31, %v1515_v51  ;;  %v2533_v55 = vmul.f32 %v1515_v51, %v1515_v51  ;;  %v820_v56 = vpop.f32.mrf.mxu0  ;;  %v4094_v39 = vsel %vm1359_vm13, %v1188_v22, %v1459_v29  ;;  %v2894_v29 = vld [vmem:[%s4989_s0 + $0xf0] sm:$0xf] }
  0xe7   :  { %v1079_v57 = vpop.f32.mrf.mxu1  ;;  %v821_v59 = vadd.f32 %v3921_v34, %v820_v56  ;;  %v3485_v44 = vpack.c.bf16 %v4097_v41, %v4094_v39 }
  0xe8   :  { %v2632_v62 = vadd.f32 %v2631_v37, %v2533_v55  ;;  %v2891_v55 = vor.u32 %v3264_v49, %v2888_v50  ;;  %v935_v2 = vpop.f32.mrf.mxu2 }
  0xe9   :  { %v1080_v1 = vadd.f32 %v1079_v57, %v821_v59  ;;  %3627 = vst [vmem:[%s4990_s3 + $0xd0] sm:$0xff] %v3485_v44   ;;  %v936_v4 = vadd.f32 %v3921_v34, %v935_v2 }
  0xeb   :  { %vm1316_vm11 = vcmp.ge.f32.partialorder %v1080_v1, 0.0  ;;  %v1416_v7 = vmul.f32 0.2, %v1080_v1 }
  0xed   :  { %v1516_v8 = vsel %vm1316_vm11, %v1080_v1, %v1416_v7  ;;  %v934_v1 = vadd.f32 %v3921_v34, %v933_v45  ;;  %v3062_v7 = vld [vmem:[%s4989_s0 + $0x240] sm:$0xf] }
  0xee   :  { %v3375_v11 = vpack.c.bf16 %v1516_v8, %v1515_v51  ;;  %v2425_v12 = vadd.f32 %v2424_v54, %v1516_v8  ;;  %v2534_v13 = vmul.f32 %v1516_v8, %v1516_v8  ;;  %v823_v14 = vpop.f32.mrf.mxu0  ;;  %v1192_v51 = vpop.f32.mrf.mxu3  ;;  %v2887_v54 = vor.u32 %v3265_v48, %v2886_v47  ;;  %v3309_v8 = vld [vmem:[%s4989_s0 + $0x244] sm:$0xf0] }
  0xef   :  { %v1082_v15 = vpop.f32.mrf.mxu1  ;;  %v824_v16 = vadd.f32 %v3921_v34, %v823_v14  ;;  %v1193_v5 = vadd.f32 %v1192_v51, %v934_v1  ;;  %v3072_v1 = vld [vmem:[%s4989_s0 + $0x258] sm:$0xf0] }
  0xf0   :  { %3605 = vst [vmem:[%s4990_s3 + $0x20] sm:$0xff] %v3375_v11   ;;  %v2633_v17 = vadd.f32 %v2632_v62, %v2534_v13  ;;  %v3063_v11 = vor.u32 %v3309_v8, %v3062_v7  ;;  %v3308_v13 = vld [vmem:[%s4989_s0 + $0x244] sm:$0xf]  ;;  %v938_v27 = vpop.f32.mrf.mxu2 }
  0xf1   :  { %v1083_v20 = vadd.f32 %v1082_v15, %v824_v16  ;;  %862 = vmatmul.bf16.gmra.mxu0 %v2879_v9  ;;  %vm1361_vm1 = vcmp.ge.f32.partialorder %v1193_v5, 0.0  ;;  %v3064_v16 = vld [vmem:[%s4989_s0 + $0x248] sm:$0xf0]  ;;  %v939_v48 = vadd.f32 %v3921_v34, %v938_v27 }
  0xf2   :  { %1121 = vmatmul.bf16.gmra.mxu1 %v2883_v10  ;;  %v3067_v24 = vor.u32 %v3308_v13, %v3064_v16  ;;  %v3268_v16 = vld [vmem:[%s4989_s0 + $0x104] sm:$0xf] }
  0xf3   :  { %vm1317_vm12 = vcmp.ge.f32.partialorder %v1083_v20, 0.0  ;;  %v1417_v26 = vmul.f32 0.2, %v1083_v20  ;;  %977 = vmatmul.bf16.gmra.mxu2 %v3063_v11 }
  0xf4   :  { %1236 = vmatmul.bf16.gmra.mxu3 %v3067_v24 }
  0xf5   :  { %v1517_v31 = vsel %vm1317_vm12, %v1083_v20, %v1417_v26 }
  0xf6   :  { %v2426_v35 = vadd.f32 %v2425_v12, %v1517_v31  ;;  %v2535_v36 = vmul.f32 %v1517_v31, %v1517_v31  ;;  %v825_v37 = vpop.f32.mrf.mxu0  ;;  %v1194_v6 = vpop.f32.mrf.mxu3  ;;  %v1461_v12 = vmul.f32 0.2, %v1193_v5 }
  0xf7   :  { %v1084_v38 = vpop.f32.mrf.mxu1  ;;  %v826_v40 = vadd.f32 %v3921_v34, %v825_v37  ;;  %v1195_v10 = vadd.f32 %v1194_v6, %v936_v4  ;;  %v2895_v37 = vor.u32 %v3267_v30, %v2894_v29 }
  0xf8   :  { %v2634_v43 = vadd.f32 %v2633_v17, %v2535_v36  ;;  %v4134_v21 = vsel %vm1361_vm1, %v1193_v5, %v1461_v12  ;;  %v940_v49 = vpop.f32.mrf.mxu2 }
  0xf9   :  { %v1085_v46 = vadd.f32 %v1084_v38, %v826_v40  ;;  %v1462_v15 = vmul.f32 0.2, %v1195_v10  ;;  %vm1362_vm2 = vcmp.ge.f32.partialorder %v1195_v10, 0.0  ;;  %v941_v51 = vadd.f32 %v3921_v34, %v940_v49 }
  0xfb   :  { %vm1318_vm15 = vcmp.ge.f32.partialorder %v1085_v46, 0.0  ;;  %v1418_v52 = vmul.f32 0.2, %v1085_v46  ;;  %v4137_v23 = vsel %vm1362_vm2, %v1195_v10, %v1462_v15  ;;  %v3269_v15 = vld [vmem:[%s4989_s0 + $0x104] sm:$0xf0] }
  0xfc   :  { %v3490_v26 = vpack.c.bf16 %v4137_v23, %v4134_v21 }
  0xfd   :  { %v1518_v53 = vsel %vm1318_vm15, %v1085_v46, %v1418_v52 }
  0xfe   :  { %v3380_v56 = vpack.c.bf16 %v1518_v53, %v1517_v31  ;;  %v2427_v57 = vadd.f32 %v2426_v35, %v1518_v53  ;;  %v2536_v59 = vmul.f32 %v1518_v53, %v1518_v53  ;;  %v828_v61 = vpop.f32.mrf.mxu0  ;;  %v3266_v31 = vld [vmem:[%s4989_s0 + $0xf4] sm:$0xf]  ;;  %3628 = vst [vmem:[%s4990_s3 + $0xd8] sm:$0xff] %v3490_v26   ;;  %v1197_v33 = vpop.f32.mrf.mxu3 }
  0xff   :  { %v1087_v62 = vpop.f32.mrf.mxu1  ;;  %v829_v63 = vadd.f32 %v3921_v34, %v828_v61  ;;  %v2899_v38 = vor.u32 %v3266_v31, %v2896_v32  ;;  %v1198_v52 = vadd.f32 %v1197_v33, %v939_v48 }
 0x100   :  { %3606 = vst [vmem:[%s4990_s3 + $0x28] sm:$0xff] %v3380_v56   ;;  %v2635_v0 = vadd.f32 %v2634_v43, %v2536_v59  ;;  %v943_v12 = vpop.f32.mrf.mxu2 }
 0x101   :  { %v1088_v3 = vadd.f32 %v1087_v62, %v829_v63  ;;  %867 = vmatmul.bf16.gmra.mxu0 %v2887_v54  ;;  %v3070_v54 = vld [vmem:[%s4989_s0 + $0x250] sm:$0xf]  ;;  %vm1363_vm5 = vcmp.ge.f32.partialorder %v1198_v52, 0.0  ;;  %v1463_v61 = vmul.f32 0.2, %v1198_v52  ;;  %v944_v32 = vadd.f32 %v3921_v34, %v943_v12 }
 0x102   :  { %1126 = vmatmul.bf16.gmra.mxu1 %v2891_v55  ;;  %v3311_v55 = vld [vmem:[%s4989_s0 + $0x254] sm:$0xf0]  ;;  %v3310_v62 = vld [vmem:[%s4989_s0 + $0x254] sm:$0xf] }
 0x103   :  { %vm1319_vm0 = vcmp.ge.f32.partialorder %v1088_v3, 0.0  ;;  %v1419_v9 = vmul.f32 0.2, %v1088_v3  ;;  %v3071_v59 = vor.u32 %v3311_v55, %v3070_v54  ;;  %v4174_v6 = vsel %vm1363_vm5, %v1198_v52, %v1463_v61 }
 0x105   :  { %v1519_v14 = vsel %vm1319_vm0, %v1088_v3, %v1419_v9  ;;  %982 = vmatmul.bf16.gmra.mxu2 %v3071_v59  ;;  %v3075_v9 = vor.u32 %v3310_v62, %v3072_v1  ;;  %v2910_v1 = vld [vmem:[%s4989_s0 + $0x110] sm:$0xf] }
 0x106   :  { %v2428_v17 = vadd.f32 %v2427_v57, %v1519_v14  ;;  %v2537_v18 = vmul.f32 %v1519_v14, %v1519_v14  ;;  %v830_v19 = vpop.f32.mrf.mxu0  ;;  %v1199_v53 = vpop.f32.mrf.mxu3 }
 0x107   :  { %v1089_v20 = vpop.f32.mrf.mxu1  ;;  %v831_v22 = vadd.f32 %v3921_v34, %v830_v19  ;;  %v1200_v57 = vadd.f32 %v1199_v53, %v941_v51  ;;  %1241 = vmatmul.bf16.gmra.mxu3 %v3075_v9 }
 0x108   :  { %v2636_v25 = vadd.f32 %v2635_v0, %v2537_v18  ;;  %v945_v33 = vpop.f32.mrf.mxu2 }
 0x109   :  { %v1090_v28 = vadd.f32 %v1089_v20, %v831_v22  ;;  %v1464_v0 = vmul.f32 0.2, %v1200_v57  ;;  %vm1364_vm6 = vcmp.ge.f32.partialorder %v1200_v57, 0.0 }
 0x10b   :  { %vm1320_vm3 = vcmp.ge.f32.partialorder %v1090_v28, 0.0  ;;  %v1420_v35 = vmul.f32 0.2, %v1090_v28  ;;  %v4177_v8 = vsel %vm1364_vm6, %v1200_v57, %v1464_v0 }
 0x10c   :  { %v3495_v11 = vpack.c.bf16 %v4177_v8, %v4174_v6 }
 0x10d   :  { %v1520_v36 = vsel %vm1320_vm3, %v1090_v28, %v1420_v35 }
 0x10e   :  { %v3385_v40 = vpack.c.bf16 %v1520_v36, %v1519_v14  ;;  %v2429_v42 = vadd.f32 %v2428_v17, %v1520_v36  ;;  %v2538_v43 = vmul.f32 %v1520_v36, %v1520_v36  ;;  %v833_v44 = vpop.f32.mrf.mxu0  ;;  %v2902_v14 = vld [vmem:[%s4989_s0 + $0x100] sm:$0xf]  ;;  %v2904_v17 = vld [vmem:[%s4989_s0 + $0x108] sm:$0xf0]  ;;  %3629 = vst [vmem:[%s4990_s3 + $0xe0] sm:$0xff] %v3495_v11   ;;  %v1202_v18 = vpop.f32.mrf.mxu3  ;;  %v946_v36 = vadd.f32 %v3921_v34, %v945_v33 }
 0x10f   :  { %v1092_v45 = vpop.f32.mrf.mxu1  ;;  %v834_v46 = vadd.f32 %v3921_v34, %v833_v44  ;;  %v2903_v22 = vor.u32 %v3269_v15, %v2902_v14  ;;  %v2907_v24 = vor.u32 %v3268_v16, %v2904_v17  ;;  %v3314_v33 = vld [vmem:[%s4989_s0 + $0x274] sm:$0xf] }
 0x110   :  { %3607 = vst [vmem:[%s4990_s3 + $0x30] sm:$0xff] %v3385_v40   ;;  %v2637_v47 = vadd.f32 %v2636_v25, %v2538_v43  ;;  %v3078_v40 = vld [vmem:[%s4989_s0 + $0x260] sm:$0xf] }
 0x111   :  { %v1093_v50 = vadd.f32 %v1092_v45, %v834_v46  ;;  %872 = vmatmul.bf16.gmra.mxu0 %v2895_v37  ;;  %v1203_v37 = vadd.f32 %v1202_v18, %v944_v32 }
 0x112   :  { %1131 = vmatmul.bf16.gmra.mxu1 %v2899_v38 }
 0x113   :  { %vm1321_vm4 = vcmp.ge.f32.partialorder %v1093_v50, 0.0  ;;  %v1421_v56 = vmul.f32 0.2, %v1093_v50  ;;  %vm1365_vm9 = vcmp.ge.f32.partialorder %v1203_v37, 0.0  ;;  %v1465_v46 = vmul.f32 0.2, %v1203_v37 }
 0x115   :  { %v1521_v63 = vsel %vm1321_vm4, %v1093_v50, %v1421_v56  ;;  %v3080_v50 = vld [vmem:[%s4989_s0 + $0x268] sm:$0xf0]  ;;  %v4214_v55 = vsel %vm1365_vm9, %v1203_v37, %v1465_v46  ;;  %v3088_v37 = vld [vmem:[%s4989_s0 + $0x278] sm:$0xf0] }
 0x116   :  { %v2430_v2 = vadd.f32 %v2429_v42, %v1521_v63  ;;  %v2539_v3 = vmul.f32 %v1521_v63, %v1521_v63  ;;  %v835_v4 = vpop.f32.mrf.mxu0  ;;  %v1204_v38 = vpop.f32.mrf.mxu3  ;;  %v3313_v42 = vld [vmem:[%s4989_s0 + $0x264] sm:$0xf0] }
 0x117   :  { %v1094_v5 = vpop.f32.mrf.mxu1  ;;  %v836_v7 = vadd.f32 %v3921_v34, %v835_v4  ;;  %v1205_v44 = vadd.f32 %v1204_v38, %v946_v36  ;;  %v3079_v45 = vor.u32 %v3313_v42, %v3078_v40  ;;  %v2912_v4 = vld [vmem:[%s4989_s0 + $0x118] sm:$0xf0] }
 0x118   :  { %v2638_v10 = vadd.f32 %v2637_v47, %v2539_v3  ;;  %v3312_v47 = vld [vmem:[%s4989_s0 + $0x264] sm:$0xf]  ;;  %v3270_v3 = vld [vmem:[%s4989_s0 + $0x114] sm:$0xf] }
 0x119   :  { %v1095_v13 = vadd.f32 %v1094_v5, %v836_v7  ;;  %v1466_v49 = vmul.f32 0.2, %v1205_v44  ;;  %987 = vmatmul.bf16.gmra.mxu2 %v3079_v45  ;;  %vm1366_vm10 = vcmp.ge.f32.partialorder %v1205_v44, 0.0  ;;  %v3083_v59 = vor.u32 %v3312_v47, %v3080_v50 }
 0x11a   :  { %v2915_v11 = vor.u32 %v3270_v3, %v2912_v4  ;;  %v3091_v47 = vor.u32 %v3314_v33, %v3088_v37 }
 0x11b   :  { %vm1322_vm7 = vcmp.ge.f32.partialorder %v1095_v13, 0.0  ;;  %v1422_v19 = vmul.f32 0.2, %v1095_v13  ;;  %v4217_v57 = vsel %vm1366_vm10, %v1205_v44, %v1466_v49  ;;  %1246 = vmatmul.bf16.gmra.mxu3 %v3083_v59 }
 0x11c   :  { %v3500_v62 = vpack.c.bf16 %v4217_v57, %v4214_v55 }
 0x11d   :  { %v1522_v20 = vsel %vm1322_vm7, %v1095_v13, %v1422_v19 }
 0x11e   :  { %v3390_v25 = vpack.c.bf16 %v1522_v20, %v1521_v63  ;;  %v2431_v26 = vadd.f32 %v2430_v2, %v1522_v20  ;;  %v2540_v27 = vmul.f32 %v1522_v20, %v1522_v20  ;;  %v838_v28 = vpop.f32.mrf.mxu0  ;;  %v948_v63 = vpop.f32.mrf.mxu2  ;;  %v3271_v2 = vld [vmem:[%s4989_s0 + $0x114] sm:$0xf0]  ;;  %3630 = vst [vmem:[%s4990_s3 + $0xe8] sm:$0xff] %v3500_v62  }
 0x11f   :  { %v1097_v29 = vpop.f32.mrf.mxu1  ;;  %v839_v30 = vadd.f32 %v3921_v34, %v838_v28  ;;  %v1207_v5 = vpop.f32.mrf.mxu3  ;;  %v949_v19 = vadd.f32 %v3921_v34, %v948_v63  ;;  %v3315_v28 = vld [vmem:[%s4989_s0 + $0x274] sm:$0xf0] }
 0x120   :  { %3608 = vst [vmem:[%s4990_s3 + $0x38] sm:$0xff] %v3390_v25   ;;  %v2639_v31 = vadd.f32 %v2638_v10, %v2540_v27  ;;  %v2911_v10 = vor.u32 %v3271_v2, %v2910_v1  ;;  %v3086_v27 = vld [vmem:[%s4989_s0 + $0x270] sm:$0xf] }
 0x121   :  { %v1098_v35 = vadd.f32 %v1097_v29, %v839_v30  ;;  %877 = vmatmul.bf16.gmra.mxu0 %v2903_v22  ;;  %v1208_v25 = vadd.f32 %v1207_v5, %v949_v19 }
 0x122   :  { %1136 = vmatmul.bf16.gmra.mxu1 %v2907_v24 }
 0x123   :  { %vm1323_vm8 = vcmp.ge.f32.partialorder %v1098_v35, 0.0  ;;  %v1423_v43 = vmul.f32 0.2, %v1098_v35  ;;  %vm1367_vm13 = vcmp.ge.f32.partialorder %v1208_v25, 0.0  ;;  %v1467_v32 = vmul.f32 0.2, %v1208_v25 }
 0x125   :  { %v1523_v48 = vsel %vm1323_vm8, %v1098_v35, %v1423_v43  ;;  %v4254_v44 = vsel %vm1367_vm13, %v1208_v25, %v1467_v32 }
 0x126   :  { %v2432_v51 = vadd.f32 %v2431_v26, %v1523_v48  ;;  %v2541_v52 = vmul.f32 %v1523_v48, %v1523_v48  ;;  %v840_v53 = vpop.f32.mrf.mxu0  ;;  %v950_v20 = vpop.f32.mrf.mxu2 }
 0x127   :  { %v1099_v54 = vpop.f32.mrf.mxu1  ;;  %v841_v56 = vadd.f32 %v3921_v34, %v840_v53  ;;  %v951_v24 = vadd.f32 %v3921_v34, %v950_v20  ;;  %v1209_v26 = vpop.f32.mrf.mxu3  ;;  %v3273_v53 = vld [vmem:[%s4989_s0 + $0x124] sm:$0xf0] }
 0x128   :  { %v2640_v61 = vadd.f32 %v2639_v31, %v2541_v52  ;;  %v3087_v31 = vor.u32 %v3315_v28, %v3086_v27  ;;  %v2918_v52 = vld [vmem:[%s4989_s0 + $0x120] sm:$0xf]  ;;  %v3096_v27 = vld [vmem:[%s4989_s0 + $0x288] sm:$0xf0] }
 0x129   :  { %v1100_v0 = vadd.f32 %v1099_v54, %v841_v56  ;;  %v1210_v30 = vadd.f32 %v1209_v26, %v951_v24  ;;  %v3272_v54 = vld [vmem:[%s4989_s0 + $0x124] sm:$0xf]  ;;  %v2920_v56 = vld [vmem:[%s4989_s0 + $0x128] sm:$0xf0]  ;;  %v2919_v63 = vor.u32 %v3273_v53, %v2918_v52 }
 0x12a   :  { %992 = vmatmul.bf16.gmra.mxu2 %v3087_v31  ;;  %v3316_v24 = vld [vmem:[%s4989_s0 + $0x284] sm:$0xf] }
 0x12b   :  { %vm1324_vm11 = vcmp.ge.f32.partialorder %v1100_v0, 0.0  ;;  %v1424_v7 = vmul.f32 0.2, %v1100_v0  ;;  %v1468_v36 = vmul.f32 0.2, %v1210_v30  ;;  %vm1368_vm14 = vcmp.ge.f32.partialorder %v1210_v30, 0.0  ;;  %1251 = vmatmul.bf16.gmra.mxu3 %v3091_v47 }
 0x12c   :  { %v2928_v47 = vld [vmem:[%s4989_s0 + $0x138] sm:$0xf0] }
 0x12d   :  { %v1524_v9 = vsel %vm1324_vm11, %v1100_v0, %v1424_v7  ;;  %v4257_v46 = vsel %vm1368_vm14, %v1210_v30, %v1468_v36  ;;  %v2923_v0 = vor.u32 %v3272_v54, %v2920_v56  ;;  %v3099_v36 = vor.u32 %v3316_v24, %v3096_v27 }
 0x12e   :  { %v3395_v12 = vpack.c.bf16 %v1524_v9, %v1523_v48  ;;  %v2433_v13 = vadd.f32 %v2432_v51, %v1524_v9  ;;  %v2542_v14 = vmul.f32 %v1524_v9, %v1524_v9  ;;  %v843_v15 = vpop.f32.mrf.mxu0  ;;  %v3505_v49 = vpack.c.bf16 %v4257_v46, %v4254_v44  ;;  %v953_v50 = vpop.f32.mrf.mxu2 }
 0x12f   :  { %v1102_v16 = vpop.f32.mrf.mxu1  ;;  %v844_v17 = vadd.f32 %v3921_v34, %v843_v15  ;;  %v1212_v59 = vpop.f32.mrf.mxu3 }
 0x130   :  { %3609 = vst [vmem:[%s4990_s3 + $0x40] sm:$0xff] %v3395_v12   ;;  %v2641_v18 = vadd.f32 %v2640_v61, %v2542_v14 }
 0x131   :  { %v1103_v22 = vadd.f32 %v1102_v16, %v844_v17  ;;  %882 = vmatmul.bf16.gmra.mxu0 %v2911_v10  ;;  %3631 = vst [vmem:[%s4990_s3 + $0xf0] sm:$0xff] %v3505_v49   ;;  %v954_v10 = vadd.f32 %v3921_v34, %v953_v50  ;;  %v3094_v16 = vld [vmem:[%s4989_s0 + $0x280] sm:$0xf]  ;;  %v3317_v17 = vld [vmem:[%s4989_s0 + $0x284] sm:$0xf0] }
 0x132   :  { %1141 = vmatmul.bf16.gmra.mxu1 %v2915_v11  ;;  %v3095_v20 = vor.u32 %v3317_v17, %v3094_v16 }
 0x133   :  { %vm1325_vm12 = vcmp.ge.f32.partialorder %v1103_v22, 0.0  ;;  %v1425_v29 = vmul.f32 0.2, %v1103_v22  ;;  %v1213_v14 = vadd.f32 %v1212_v59, %v954_v10  ;;  %v3319_v10 = vld [vmem:[%s4989_s0 + $0x294] sm:$0xf0] }
 0x135   :  { %v1525_v35 = vsel %vm1325_vm12, %v1103_v22, %v1425_v29  ;;  %vm1369_vm1 = vcmp.ge.f32.partialorder %v1213_v14, 0.0  ;;  %v1469_v22 = vmul.f32 0.2, %v1213_v14 }
 0x136   :  { %v2434_v38 = vadd.f32 %v2433_v13, %v1525_v35  ;;  %v2543_v40 = vmul.f32 %v1525_v35, %v1525_v35  ;;  %v845_v42 = vpop.f32.mrf.mxu0  ;;  %v955_v11 = vpop.f32.mrf.mxu2 }
 0x137   :  { %v1104_v43 = vpop.f32.mrf.mxu1  ;;  %v846_v45 = vadd.f32 %v3921_v34, %v845_v42  ;;  %v956_v13 = vadd.f32 %v3921_v34, %v955_v11  ;;  %v1214_v15 = vpop.f32.mrf.mxu3  ;;  %v4294_v32 = vsel %vm1369_vm1, %v1213_v14, %v1469_v22 }
 0x138   :  { %v2642_v48 = vadd.f32 %v2641_v18, %v2543_v40 }
 0x139   :  { %v1105_v51 = vadd.f32 %v1104_v43, %v846_v45  ;;  %v1215_v19 = vadd.f32 %v1214_v15, %v956_v13  ;;  %v2926_v43 = vld [vmem:[%s4989_s0 + $0x130] sm:$0xf]  ;;  %v3275_v45 = vld [vmem:[%s4989_s0 + $0x134] sm:$0xf0]  ;;  %v3318_v15 = vld [vmem:[%s4989_s0 + $0x294] sm:$0xf] }
 0x13a   :  { %997 = vmatmul.bf16.gmra.mxu2 %v3095_v20 }
 0x13b   :  { %vm1326_vm15 = vcmp.ge.f32.partialorder %v1105_v51, 0.0  ;;  %v1426_v61 = vmul.f32 0.2, %v1105_v51  ;;  %v1470_v26 = vmul.f32 0.2, %v1215_v19  ;;  %vm1370_vm2 = vcmp.ge.f32.partialorder %v1215_v19, 0.0  ;;  %1256 = vmatmul.bf16.gmra.mxu3 %v3099_v36 }
 0x13c   :  { %v2934_v36 = vld [vmem:[%s4989_s0 + $0x140] sm:$0xf] }
 0x13d   :  { %v1526_v62 = vsel %vm1326_vm15, %v1105_v51, %v1426_v61  ;;  %v2927_v51 = vor.u32 %v3275_v45, %v2926_v43 }
 0x13e   :  { %v3400_v1 = vpack.c.bf16 %v1526_v62, %v1525_v35  ;;  %v2435_v2 = vadd.f32 %v2434_v38, %v1526_v62  ;;  %v2544_v3 = vmul.f32 %v1526_v62, %v1526_v62  ;;  %v848_v4 = vpop.f32.mrf.mxu0  ;;  %v4297_v35 = vsel %vm1370_vm2, %v1215_v19, %v1470_v26  ;;  %v958_v40 = vpop.f32.mrf.mxu2  ;;  %v4319_v62 = vld [vmem:[%s4988_s2] ss:$0 sm:$0xff] }
 0x13f   :  { %v1107_v5 = vpop.f32.mrf.mxu1  ;;  %v849_v7 = vadd.f32 %v3921_v34, %v848_v4  ;;  %v3510_v38 = vpack.c.bf16 %v4297_v35, %v4294_v32 }
 0x140   :  { %3610 = vst [vmem:[%s4990_s3 + $0x48] sm:$0xff] %v3400_v1   ;;  %v2643_v9 = vadd.f32 %v2642_v48, %v2544_v3  ;;  %v1217_v48 = vpop.f32.mrf.mxu3  ;;  %v959_v1 = vadd.f32 %v4319_v62, %v958_v40  ;;  %v2936_v40 = vld [vmem:[%s4989_s0 + $0x148] sm:$0xf0] }
 0x141   :  { %v1108_v12 = vadd.f32 %v1107_v5, %v849_v7  ;;  %887 = vmatmul.bf16.gmra.mxu0 %v2919_v63  ;;  %3632 = vst [vmem:[%s4990_s3 + $0xf8] sm:$0xff] %v3510_v38   ;;  %v3276_v38 = vld [vmem:[%s4989_s0 + $0x144] sm:$0xf] }
 0x142   :  { %1146 = vmatmul.bf16.gmra.mxu1 %v2923_v0  ;;  %v1218_v5 = vadd.f32 %v1217_v48, %v959_v1 }
 0x143   :  { %vm1327_vm0 = vcmp.ge.f32.partialorder %v1108_v12, 0.0  ;;  %v1427_v18 = vmul.f32 0.2, %v1108_v12 }
 0x144   :  { %vm1371_vm5 = vcmp.ge.f32.partialorder %v1218_v5, 0.0  ;;  %v1471_v14 = vmul.f32 0.2, %v1218_v5 }
 0x145   :  { %v1527_v25 = vsel %vm1327_vm0, %v1108_v12, %v1427_v18  ;;  %v3104_v18 = vld [vmem:[%s4989_s0 + $0x298] sm:$0xf0] }
 0x146   :  { %v2436_v28 = vadd.f32 %v2435_v2, %v1527_v25  ;;  %v2545_v29 = vmul.f32 %v1527_v25, %v1527_v25  ;;  %v850_v30 = vpop.f32.mrf.mxu0  ;;  %v960_v2 = vpop.f32.mrf.mxu2 }
 0x147   :  { %v1109_v31 = vpop.f32.mrf.mxu1  ;;  %v851_v33 = vadd.f32 %v3921_v34, %v850_v30  ;;  %v3274_v34 = vld [vmem:[%s4989_s0 + $0x134] sm:$0xf]  ;;  %v961_v4 = vadd.f32 %v4319_v62, %v960_v2  ;;  %v3110_v2 = vld [vmem:[%s4989_s0 + $0x2a0] sm:$0xf] }
 0x148   :  { %v2644_v37 = vadd.f32 %v2643_v9, %v2545_v29  ;;  %v2931_v52 = vor.u32 %v3274_v34, %v2928_v47  ;;  %v1219_v7 = vpop.f32.mrf.mxu3  ;;  %v3102_v9 = vld [vmem:[%s4989_s0 + $0x290] sm:$0xf]  ;;  %v2939_v47 = vor.u32 %v3276_v38, %v2936_v40 }
 0x149   :  { %v1110_v42 = vadd.f32 %v1109_v31, %v851_v33  ;;  %v1220_v12 = vadd.f32 %v1219_v7, %v961_v4  ;;  %v3103_v13 = vor.u32 %v3319_v10, %v3102_v9  ;;  %v3320_v10 = vld [vmem:[%s4989_s0 + $0x2a4] sm:$0xf] }
 0x14b   :  { %vm1328_vm3 = vcmp.ge.f32.partialorder %v1110_v42, 0.0  ;;  %v1428_v49 = vmul.f32 0.2, %v1110_v42  ;;  %v1472_v17 = vmul.f32 0.2, %v1220_v12  ;;  %1002 = vmatmul.bf16.gmra.mxu2 %v3103_v13  ;;  %vm1372_vm6 = vcmp.ge.f32.partialorder %v1220_v12, 0.0 }
 0x14c   :  { %v3112_v13 = vld [vmem:[%s4989_s0 + $0x2a8] sm:$0xf0] }
 0x14d   :  { %v1528_v50 = vsel %vm1328_vm3, %v1110_v42, %v1428_v49  ;;  %v4342_v27 = vsel %vm1372_vm6, %v1220_v12, %v1472_v17 }
 0x14e   :  { %v3405_v53 = vpack.c.bf16 %v1528_v50, %v1527_v25  ;;  %v2437_v54 = vadd.f32 %v2436_v28, %v1528_v50  ;;  %v2546_v56 = vmul.f32 %v1528_v50, %v1528_v50  ;;  %v853_v59 = vpop.f32.mrf.mxu0  ;;  %v4339_v25 = vsel %vm1371_vm5, %v1218_v5, %v1471_v14  ;;  %v963_v31 = vpop.f32.mrf.mxu2 }
 0x14f   :  { %v1112_v61 = vpop.f32.mrf.mxu1  ;;  %v854_v63 = vadd.f32 %v4319_v62, %v853_v59  ;;  %v3107_v28 = vor.u32 %v3318_v15, %v3104_v18  ;;  %v3515_v30 = vpack.c.bf16 %v4342_v27, %v4339_v25 }
 0x150   :  { %3611 = vst [vmem:[%s4990_s3 + $0x50] sm:$0xff] %v3405_v53   ;;  %v2645_v0 = vadd.f32 %v2644_v37, %v2546_v56  ;;  %v3277_v37 = vld [vmem:[%s4989_s0 + $0x144] sm:$0xf0]  ;;  %v1222_v42 = vpop.f32.mrf.mxu3  ;;  %v964_v56 = vadd.f32 %v4319_v62, %v963_v31  ;;  %v3279_v31 = vld [vmem:[%s4989_s0 + $0x154] sm:$0xf0] }
 0x151   :  { %v1113_v3 = vadd.f32 %v1112_v61, %v854_v63  ;;  %892 = vmatmul.bf16.gmra.mxu0 %v2927_v51  ;;  %1261 = vmatmul.bf16.gmra.mxu3 %v3107_v28  ;;  %3633 = vst [vmem:[%s4990_s3 + $0x100] sm:$0xff] %v3515_v30   ;;  %v2935_v34 = vor.u32 %v3277_v37, %v2934_v36  ;;  %v2942_v30 = vld [vmem:[%s4989_s0 + $0x150] sm:$0xf]  ;;  %v2944_v36 = vld [vmem:[%s4989_s0 + $0x158] sm:$0xf0] }
 0x152   :  { %1151 = vmatmul.bf16.gmra.mxu1 %v2931_v52 }
 0x153   :  { %vm1329_vm4 = vcmp.ge.f32.partialorder %v1113_v3, 0.0  ;;  %v1429_v11 = vmul.f32 0.2, %v1113_v3 }
 0x155   :  { %v1529_v16 = vsel %vm1329_vm4, %v1113_v3, %v1429_v11  ;;  %v3321_v3 = vld [vmem:[%s4989_s0 + $0x2a4] sm:$0xf0] }
 0x156   :  { %v2438_v19 = vadd.f32 %v2437_v54, %v1529_v16  ;;  %v2547_v20 = vmul.f32 %v1529_v16, %v1529_v16  ;;  %v855_v22 = vpop.f32.mrf.mxu0  ;;  %v965_v59 = vpop.f32.mrf.mxu2  ;;  %v3111_v7 = vor.u32 %v3321_v3, %v3110_v2 }
 0x157   :  { %v1114_v24 = vpop.f32.mrf.mxu1  ;;  %v856_v26 = vadd.f32 %v4319_v62, %v855_v22  ;;  %v966_v63 = vadd.f32 %v4319_v62, %v965_v59  ;;  %v3115_v22 = vor.u32 %v3320_v10, %v3112_v13 }
 0x158   :  { %v2646_v29 = vadd.f32 %v2645_v0, %v2547_v20  ;;  %v1223_v0 = vadd.f32 %v1222_v42, %v964_v56  ;;  %v1224_v1 = vpop.f32.mrf.mxu3  ;;  %v2943_v42 = vor.u32 %v3279_v31, %v2942_v30  ;;  %v3280_v30 = vld [vmem:[%s4989_s0 + $0x164] sm:$0xf]  ;;  %v2952_v31 = vld [vmem:[%s4989_s0 + $0x168] sm:$0xf0] }
 0x159   :  { %v1115_v33 = vadd.f32 %v1114_v24, %v856_v26  ;;  %v1225_v5 = vadd.f32 %v1224_v1, %v966_v63  ;;  %v3323_v63 = vld [vmem:[%s4989_s0 + $0x2b4] sm:$0xf0] }
 0x15a   :  { %vm1373_vm9 = vcmp.ge.f32.partialorder %v1223_v0, 0.0  ;;  %v1473_v9 = vmul.f32 0.2, %v1223_v0 }
 0x15b   :  { %vm1330_vm7 = vcmp.ge.f32.partialorder %v1115_v33, 0.0  ;;  %v1430_v43 = vmul.f32 0.2, %v1115_v33  ;;  %v1474_v12 = vmul.f32 0.2, %v1225_v5  ;;  %1007 = vmatmul.bf16.gmra.mxu2 %v3111_v7  ;;  %vm1374_vm10 = vcmp.ge.f32.partialorder %v1225_v5, 0.0 }
 0x15c   :  { %v4379_v18 = vsel %vm1373_vm9, %v1223_v0, %v1473_v9  ;;  %v3120_v9 = vld [vmem:[%s4989_s0 + $0x2b8] sm:$0xf0] }
 0x15d   :  { %v1530_v45 = vsel %vm1330_vm7, %v1115_v33, %v1430_v43  ;;  %v4382_v20 = vsel %vm1374_vm10, %v1225_v5, %v1474_v12  ;;  %v3278_v33 = vld [vmem:[%s4989_s0 + $0x154] sm:$0xf] }
 0x15e   :  { %v3410_v48 = vpack.c.bf16 %v1530_v45, %v1529_v16  ;;  %v2439_v49 = vadd.f32 %v2438_v19, %v1530_v45  ;;  %v2548_v50 = vmul.f32 %v1530_v45, %v1530_v45  ;;  %v858_v51 = vpop.f32.mrf.mxu0  ;;  %v3520_v26 = vpack.c.bf16 %v4382_v20, %v4379_v18  ;;  %v968_v28 = vpop.f32.mrf.mxu2 }
 0x15f   :  { %v1117_v52 = vpop.f32.mrf.mxu1  ;;  %v859_v53 = vadd.f32 %v4319_v62, %v858_v51  ;;  %v2947_v43 = vor.u32 %v3278_v33, %v2944_v36 }
 0x160   :  { %3612 = vst [vmem:[%s4990_s3 + $0x58] sm:$0xff] %v3410_v48   ;;  %v2647_v54 = vadd.f32 %v2646_v29, %v2548_v50  ;;  %v1227_v38 = vpop.f32.mrf.mxu3 }
 0x161   :  { %v1118_v61 = vadd.f32 %v1117_v52, %v859_v53  ;;  %897 = vmatmul.bf16.gmra.mxu0 %v2935_v34  ;;  %1266 = vmatmul.bf16.gmra.mxu3 %v3115_v22  ;;  %3634 = vst [vmem:[%s4990_s3 + $0x108] sm:$0xff] %v3520_v26   ;;  %v969_v52 = vadd.f32 %v4319_v62, %v968_v28  ;;  %v2950_v26 = vld [vmem:[%s4989_s0 + $0x160] sm:$0xf] }
 0x162   :  { %1156 = vmatmul.bf16.gmra.mxu1 %v2939_v47 }
 0x163   :  { %vm1331_vm8 = vcmp.ge.f32.partialorder %v1118_v61, 0.0  ;;  %v1431_v4 = vmul.f32 0.2, %v1118_v61  ;;  %v1228_v59 = vadd.f32 %v1227_v38, %v969_v52 }
 0x165   :  { %v1531_v11 = vsel %vm1331_vm8, %v1118_v61, %v1431_v4  ;;  %v3118_v61 = vld [vmem:[%s4989_s0 + $0x2b0] sm:$0xf]  ;;  %vm1375_vm13 = vcmp.ge.f32.partialorder %v1228_v59, 0.0  ;;  %v1475_v2 = vmul.f32 0.2, %v1228_v59 }
 0x166   :  { %v2440_v14 = vadd.f32 %v2439_v49, %v1531_v11  ;;  %v2549_v15 = vmul.f32 %v1531_v11, %v1531_v11  ;;  %v860_v16 = vpop.f32.mrf.mxu0  ;;  %v970_v53 = vpop.f32.mrf.mxu2  ;;  %v3119_v1 = vor.u32 %v3323_v63, %v3118_v61  ;;  %v3322_v4 = vld [vmem:[%s4989_s0 + $0x2b4] sm:$0xf]  ;;  %v3325_v61 = vld [vmem:[%s4989_s0 + $0x2c4] sm:$0xf0] }
 0x167   :  { %v1119_v17 = vpop.f32.mrf.mxu1  ;;  %v861_v19 = vadd.f32 %v4319_v62, %v860_v16  ;;  %v971_v56 = vadd.f32 %v4319_v62, %v970_v53  ;;  %v4420_v16 = vsel %vm1375_vm13, %v1228_v59, %v1475_v2  ;;  %v3126_v59 = vld [vmem:[%s4989_s0 + $0x2c0] sm:$0xf] }
 0x168   :  { %v2648_v24 = vadd.f32 %v2647_v54, %v2549_v15  ;;  %v1229_v3 = vpop.f32.mrf.mxu3 }
 0x169   :  { %v1120_v29 = vadd.f32 %v1119_v17, %v861_v19  ;;  %v1230_v7 = vadd.f32 %v1229_v3, %v971_v56  ;;  %v3324_v3 = vld [vmem:[%s4989_s0 + $0x2c4] sm:$0xf] }
 0x16b   :  { %vm1332_vm11 = vcmp.ge.f32.partialorder %v1120_v29, 0.0  ;;  %v1432_v37 = vmul.f32 0.2, %v1120_v29  ;;  %1012 = vmatmul.bf16.gmra.mxu2 %v3119_v1  ;;  %vm1376_vm14 = vcmp.ge.f32.partialorder %v1230_v7, 0.0  ;;  %v1476_v17 = vmul.f32 0.2, %v1230_v7 }
 0x16d   :  { %v1532_v40 = vsel %vm1332_vm11, %v1120_v29, %v1432_v37  ;;  %v4425_v28 = vsel %vm1376_vm14, %v1230_v7, %v1476_v17  ;;  %v3281_v29 = vld [vmem:[%s4989_s0 + $0x164] sm:$0xf0]  ;;  %v3128_v7 = vld [vmem:[%s4989_s0 + $0x2c8] sm:$0xf0] }
 0x16e   :  { %v3415_v45 = vpack.c.bf16 %v1532_v40, %v1531_v11  ;;  %v2441_v34 = vadd.f32 %v2440_v14, %v1532_v40  ;;  %v2550_v47 = vmul.f32 %v1532_v40, %v1532_v40  ;;  %v863_v48 = vpop.f32.mrf.mxu0  ;;  %v3123_v14 = vor.u32 %v3322_v4, %v3120_v9  ;;  %v973_v22 = vpop.f32.mrf.mxu2 }
 0x16f   :  { %v1122_v49 = vpop.f32.mrf.mxu1  ;;  %v864_v50 = vadd.f32 %v4319_v62, %v863_v48  ;;  %v3525_v33 = vpack.c.bf16 %v4425_v28, %v4420_v16  ;;  %v2951_v40 = vor.u32 %v3281_v29, %v2950_v26  ;;  %v2958_v26 = vld [vmem:[%s4989_s0 + $0x170] sm:$0xf] }
 0x170   :  { %3613 = vst [vmem:[%s4990_s3 + $0x60] sm:$0xff] %v3415_v45   ;;  %v2649_v51 = vadd.f32 %v2648_v24, %v2550_v47  ;;  %v1232_v37 = vpop.f32.mrf.mxu3 }
 0x171   :  { %v1123_v54 = vadd.f32 %v1122_v49, %v864_v50  ;;  %902 = vmatmul.bf16.gmra.mxu0 %v2943_v42  ;;  %1271 = vmatmul.bf16.gmra.mxu3 %v3123_v14  ;;  %3635 = vst [vmem:[%s4990_s3 + $0x110] sm:$0xff] %v3525_v33   ;;  %v2955_v42 = vor.u32 %v3280_v30, %v2952_v31  ;;  %v3283_v30 = vld [vmem:[%s4989_s0 + $0x174] sm:$0xf0]  ;;  %v3282_v31 = vld [vmem:[%s4989_s0 + $0x174] sm:$0xf] }
 0x172   :  { %1161 = vmatmul.bf16.gmra.mxu1 %v2947_v43  ;;  %v2960_v33 = vld [vmem:[%s4989_s0 + $0x178] sm:$0xf0] }
 0x173   :  { %vm1333_vm12 = vcmp.ge.f32.partialorder %v1123_v54, 0.0  ;;  %v1433_v0 = vmul.f32 0.2, %v1123_v54 }
 0x175   :  { %v1533_v5 = vsel %vm1333_vm12, %v1123_v54, %v1433_v0  ;;  %v3127_v0 = vor.u32 %v3325_v61, %v3126_v59  ;;  %v3134_v61 = vld [vmem:[%s4989_s0 + $0x2d0] sm:$0xf] }
 0x176   :  { %v2442_v10 = vadd.f32 %v2441_v34, %v1533_v5  ;;  %v2551_v11 = vmul.f32 %v1533_v5, %v1533_v5  ;;  %v865_v12 = vpop.f32.mrf.mxu0  ;;  %v975_v52 = vpop.f32.mrf.mxu2 }
 0x177   :  { %v1124_v13 = vpop.f32.mrf.mxu1  ;;  %v866_v15 = vadd.f32 %v4319_v62, %v865_v12  ;;  %v976_v54 = vadd.f32 %v4319_v62, %v975_v52 }
 0x178   :  { %v2650_v19 = vadd.f32 %v2649_v51, %v2551_v11  ;;  %v974_v51 = vadd.f32 %v4319_v62, %v973_v22  ;;  %v1234_v2 = vpop.f32.mrf.mxu3 }
 0x179   :  { %v1125_v24 = vadd.f32 %v1124_v13, %v866_v15  ;;  %v3131_v13 = vor.u32 %v3324_v3, %v3128_v7 }
 0x17a   :  { %v1233_v56 = vadd.f32 %v1232_v37, %v974_v51 }
 0x17b   :  { %vm1334_vm15 = vcmp.ge.f32.partialorder %v1125_v24, 0.0  ;;  %v1434_v36 = vmul.f32 0.2, %v1125_v24  ;;  %1017 = vmatmul.bf16.gmra.mxu2 %v3127_v0 }
 0x17c   :  { %vm1377_vm1 = vcmp.ge.f32.partialorder %v1233_v56, 0.0  ;;  %v1477_v1 = vmul.f32 0.2, %v1233_v56 }
 0x17d   :  { %v1534_v38 = vsel %vm1334_vm15, %v1125_v24, %v1434_v36 }
 0x17e   :  { %v3420_v43 = vpack.c.bf16 %v1534_v38, %v1533_v5  ;;  %v2443_v45 = vadd.f32 %v2442_v10, %v1534_v38  ;;  %v2552_v34 = vmul.f32 %v1534_v38, %v1534_v38  ;;  %v868_v47 = vpop.f32.mrf.mxu0  ;;  %v1235_v5 = vadd.f32 %v1234_v2, %v976_v54  ;;  %v978_v22 = vpop.f32.mrf.mxu2 }
 0x17f   :  { %v1127_v48 = vpop.f32.mrf.mxu1  ;;  %v869_v49 = vadd.f32 %v4319_v62, %v868_v47  ;;  %v4460_v15 = vsel %vm1377_vm1, %v1233_v56, %v1477_v1  ;;  %v979_v52 = vadd.f32 %v4319_v62, %v978_v22 }
 0x180   :  { %3614 = vst [vmem:[%s4990_s3 + $0x68] sm:$0xff] %v3420_v43   ;;  %v2651_v50 = vadd.f32 %v2650_v19, %v2552_v34  ;;  %vm1378_vm2 = vcmp.ge.f32.partialorder %v1235_v5, 0.0  ;;  %v1478_v17 = vmul.f32 0.2, %v1235_v5  ;;  %v1237_v38 = vpop.f32.mrf.mxu3  ;;  %v2963_v43 = vor.u32 %v3282_v31, %v2960_v33  ;;  %v2966_v31 = vld [vmem:[%s4989_s0 + $0x180] sm:$0xf] }
 0x181   :  { %v1128_v53 = vadd.f32 %v1127_v48, %v869_v49  ;;  %907 = vmatmul.bf16.gmra.mxu0 %v2951_v40  ;;  %1276 = vmatmul.bf16.gmra.mxu3 %v3131_v13  ;;  %v1238_v59 = vadd.f32 %v1237_v38, %v979_v52  ;;  %v2968_v38 = vld [vmem:[%s4989_s0 + $0x188] sm:$0xf0] }
 0x182   :  { %1166 = vmatmul.bf16.gmra.mxu1 %v2955_v42  ;;  %v4465_v29 = vsel %vm1378_vm2, %v1235_v5, %v1478_v17  ;;  %v2959_v42 = vor.u32 %v3283_v30, %v2958_v26 }
 0x183   :  { %vm1335_vm0 = vcmp.ge.f32.partialorder %v1128_v53, 0.0  ;;  %v1435_v63 = vmul.f32 0.2, %v1128_v53  ;;  %v3530_v36 = vpack.c.bf16 %v4465_v29, %v4460_v15  ;;  %vm1379_vm5 = vcmp.ge.f32.partialorder %v1238_v59, 0.0 }
 0x184   :  { %v1479_v2 = vmul.f32 0.2, %v1238_v59 }
 0x185   :  { %v1535_v4 = vsel %vm1335_vm0, %v1128_v53, %v1435_v63  ;;  %3636 = vst [vmem:[%s4990_s3 + $0x118] sm:$0xff] %v3530_v36   ;;  %v3327_v63 = vld [vmem:[%s4989_s0 + $0x2d4] sm:$0xf0]  ;;  %v3285_v36 = vld [vmem:[%s4989_s0 + $0x184] sm:$0xf0] }
 0x186   :  { %v2444_v9 = vadd.f32 %v2443_v45, %v1535_v4  ;;  %v2553_v10 = vmul.f32 %v1535_v4, %v1535_v4  ;;  %v870_v11 = vpop.f32.mrf.mxu0  ;;  %v980_v53 = vpop.f32.mrf.mxu2  ;;  %v3135_v1 = vor.u32 %v3327_v63, %v3134_v61 }
 0x187   :  { %v1129_v12 = vpop.f32.mrf.mxu1  ;;  %v871_v14 = vadd.f32 %v4319_v62, %v870_v11  ;;  %v981_v56 = vadd.f32 %v4319_v62, %v980_v53 }
 0x188   :  { %v2652_v19 = vadd.f32 %v2651_v50, %v2553_v10  ;;  %v1239_v3 = vpop.f32.mrf.mxu3 }
 0x189   :  { %v1130_v24 = vadd.f32 %v1129_v12, %v871_v14  ;;  %v1240_v7 = vadd.f32 %v1239_v3, %v981_v56 }
 0x18b   :  { %vm1336_vm3 = vcmp.ge.f32.partialorder %v1130_v24, 0.0  ;;  %v1436_v37 = vmul.f32 0.2, %v1130_v24  ;;  %1022 = vmatmul.bf16.gmra.mxu2 %v3135_v1  ;;  %vm1380_vm6 = vcmp.ge.f32.partialorder %v1240_v7, 0.0  ;;  %v1480_v22 = vmul.f32 0.2, %v1240_v7 }
 0x18c   :  { %v3142_v1 = vld [vmem:[%s4989_s0 + $0x2e0] sm:$0xf] }
 0x18d   :  { %v1536_v40 = vsel %vm1336_vm3, %v1130_v24, %v1436_v37  ;;  %v4505_v33 = vsel %vm1380_vm6, %v1240_v7, %v1480_v22  ;;  %v3284_v37 = vld [vmem:[%s4989_s0 + $0x184] sm:$0xf] }
 0x18e   :  { %v3425_v45 = vpack.c.bf16 %v1536_v40, %v1535_v4  ;;  %v2445_v34 = vadd.f32 %v2444_v9, %v1536_v40  ;;  %v2554_v47 = vmul.f32 %v1536_v40, %v1536_v40  ;;  %v873_v48 = vpop.f32.mrf.mxu0  ;;  %v3326_v4 = vld [vmem:[%s4989_s0 + $0x2d4] sm:$0xf]  ;;  %v3136_v9 = vld [vmem:[%s4989_s0 + $0x2d8] sm:$0xf0]  ;;  %v983_v26 = vpop.f32.mrf.mxu2 }
 0x18f   :  { %v1132_v49 = vpop.f32.mrf.mxu1  ;;  %v874_v50 = vadd.f32 %v4319_v62, %v873_v48  ;;  %v3139_v14 = vor.u32 %v3326_v4, %v3136_v9  ;;  %v984_v56 = vadd.f32 %v4319_v62, %v983_v26  ;;  %v3328_v9 = vld [vmem:[%s4989_s0 + $0x2e4] sm:$0xf] }
 0x190   :  { %3615 = vst [vmem:[%s4990_s3 + $0x70] sm:$0xff] %v3425_v45   ;;  %v2653_v51 = vadd.f32 %v2652_v19, %v2554_v47  ;;  %v4500_v19 = vsel %vm1379_vm5, %v1238_v59, %v1479_v2  ;;  %v2971_v47 = vor.u32 %v3284_v37, %v2968_v38  ;;  %v3329_v2 = vld [vmem:[%s4989_s0 + $0x2e4] sm:$0xf0] }
 0x191   :  { %v1133_v54 = vadd.f32 %v1132_v49, %v874_v50  ;;  %912 = vmatmul.bf16.gmra.mxu0 %v2959_v42  ;;  %1281 = vmatmul.bf16.gmra.mxu3 %v3139_v14  ;;  %v3535_v40 = vpack.c.bf16 %v4505_v33, %v4500_v19  ;;  %v3143_v4 = vor.u32 %v3329_v2, %v3142_v1  ;;  %v3331_v1 = vld [vmem:[%s4989_s0 + $0x2f4] sm:$0xf0] }
 0x192   :  { %1171 = vmatmul.bf16.gmra.mxu1 %v2963_v43  ;;  %v1242_v43 = vpop.f32.mrf.mxu3 }
 0x193   :  { %vm1337_vm4 = vcmp.ge.f32.partialorder %v1133_v54, 0.0  ;;  %v1437_v0 = vmul.f32 0.2, %v1133_v54  ;;  %3637 = vst [vmem:[%s4990_s3 + $0x120] sm:$0xff] %v3535_v40  }
 0x195   :  { %v1537_v5 = vsel %vm1337_vm4, %v1133_v54, %v1437_v0  ;;  %v1243_v0 = vadd.f32 %v1242_v43, %v984_v56 }
 0x196   :  { %v2446_v10 = vadd.f32 %v2445_v34, %v1537_v5  ;;  %v2555_v11 = vmul.f32 %v1537_v5, %v1537_v5  ;;  %v875_v12 = vpop.f32.mrf.mxu0  ;;  %v2967_v34 = vor.u32 %v3285_v36, %v2966_v31  ;;  %v985_v59 = vpop.f32.mrf.mxu2 }
 0x197   :  { %v1134_v13 = vpop.f32.mrf.mxu1  ;;  %v876_v17 = vadd.f32 %v4319_v62, %v875_v12  ;;  %v986_v63 = vadd.f32 %v4319_v62, %v985_v59  ;;  %vm1381_vm9 = vcmp.ge.f32.partialorder %v1243_v0, 0.0  ;;  %v3144_v12 = vld [vmem:[%s4989_s0 + $0x2e8] sm:$0xf0] }
 0x198   :  { %v2654_v24 = vadd.f32 %v2653_v51, %v2555_v11 }
 0x199   :  { %v1135_v30 = vadd.f32 %v1134_v13, %v876_v17 }
 0x19a   :  { %v1244_v7 = vpop.f32.mrf.mxu3 }
 0x19b   :  { %vm1338_vm7 = vcmp.ge.f32.partialorder %v1135_v30, 0.0  ;;  %v1438_v42 = vmul.f32 0.2, %v1135_v30  ;;  %v1245_v11 = vadd.f32 %v1244_v7, %v986_v63  ;;  %1027 = vmatmul.bf16.gmra.mxu2 %v3143_v4  ;;  %v3330_v7 = vld [vmem:[%s4989_s0 + $0x2f4] sm:$0xf] }
 0x19d   :  { %v1538_v45 = vsel %vm1338_vm7, %v1135_v30, %v1438_v42  ;;  %vm1382_vm10 = vcmp.ge.f32.partialorder %v1245_v11, 0.0  ;;  %v1482_v31 = vmul.f32 0.2, %v1245_v11 }
 0x19e   :  { %v3430_v48 = vpack.c.bf16 %v1538_v45, %v1537_v5  ;;  %v2447_v49 = vadd.f32 %v2446_v10, %v1538_v45  ;;  %v2556_v50 = vmul.f32 %v1538_v45, %v1538_v45  ;;  %v878_v51 = vpop.f32.mrf.mxu0  ;;  %v1481_v5 = vmul.f32 0.2, %v1243_v0  ;;  %v988_v37 = vpop.f32.mrf.mxu2 }
 0x19f   :  { %v1137_v52 = vpop.f32.mrf.mxu1  ;;  %v879_v53 = vadd.f32 %v4319_v62, %v878_v51  ;;  %v4542_v40 = vsel %vm1382_vm10, %v1245_v11, %v1482_v31  ;;  %v3152_v11 = vld [vmem:[%s4989_s0 + $0x2f8] sm:$0xf0] }
 0x1a0   :  { %3616 = vst [vmem:[%s4990_s3 + $0x78] sm:$0xff] %v3430_v48   ;;  %v2655_v54 = vadd.f32 %v2654_v24, %v2556_v50  ;;  %v3147_v24 = vor.u32 %v3328_v9, %v3144_v12  ;;  %v4540_v30 = vsel %vm1381_vm9, %v1243_v0, %v1481_v5  ;;  %v3150_v0 = vld [vmem:[%s4989_s0 + $0x2f0] sm:$0xf] }
 0x1a1   :  { %v1138_v61 = vadd.f32 %v1137_v52, %v879_v53  ;;  %917 = vmatmul.bf16.gmra.mxu0 %v2967_v34  ;;  %v3540_v42 = vpack.c.bf16 %v4542_v40, %v4540_v30 }
 0x1a2   :  { %1176 = vmatmul.bf16.gmra.mxu1 %v2971_v47  ;;  %1286 = vmatmul.bf16.gmra.mxu3 %v3147_v24  ;;  %v1247_v45 = vpop.f32.mrf.mxu3 }
 0x1a3   :  { %vm1339_vm8 = vcmp.ge.f32.partialorder %v1138_v61, 0.0  ;;  %v1439_v3 = vmul.f32 0.2, %v1138_v61  ;;  %3638 = vst [vmem:[%s4990_s3 + $0x128] sm:$0xff] %v3540_v42  }
 0x1a5   :  { %v1539_v10 = vsel %vm1339_vm8, %v1138_v61, %v1439_v3  ;;  %v3151_v3 = vor.u32 %v3331_v1, %v3150_v0  ;;  %v3158_v1 = vld [vmem:[%s4989_s0 + $0x300] sm:$0xf] }
 0x1a6   :  { %v2448_v13 = vadd.f32 %v2447_v49, %v1539_v10  ;;  %v2557_v14 = vmul.f32 %v1539_v10, %v1539_v10  ;;  %v880_v17 = vpop.f32.mrf.mxu0  ;;  %v990_v56 = vpop.f32.mrf.mxu2 }
 0x1a7   :  { %v1139_v22 = vpop.f32.mrf.mxu1  ;;  %v881_v26 = vadd.f32 %v4319_v62, %v880_v17  ;;  %v991_v61 = vadd.f32 %v4319_v62, %v990_v56 }
 0x1a8   :  { %v2656_v36 = vadd.f32 %v2655_v54, %v2557_v14  ;;  %v989_v54 = vadd.f32 %v4319_v62, %v988_v37 }
 0x1a9   :  { %v1140_v38 = vadd.f32 %v1139_v22, %v881_v26  ;;  %v3155_v22 = vor.u32 %v3330_v7, %v3152_v11 }
 0x1aa   :  { %v1248_v63 = vadd.f32 %v1247_v45, %v989_v54  ;;  %v1249_v5 = vpop.f32.mrf.mxu3 }
 0x1ab   :  { %vm1340_vm11 = vcmp.ge.f32.partialorder %v1140_v38, 0.0  ;;  %v1440_v43 = vmul.f32 0.2, %v1140_v38  ;;  %1032 = vmatmul.bf16.gmra.mxu2 %v3151_v3 }
 0x1ac   :  { %vm1383_vm13 = vcmp.ge.f32.partialorder %v1248_v63, 0.0  ;;  %v1483_v4 = vmul.f32 0.2, %v1248_v63 }
 0x1ad   :  { %v1540_v34 = vsel %vm1340_vm11, %v1140_v38, %v1440_v43 }
 0x1ae   :  { %v3435_v47 = vpack.c.bf16 %v1540_v34, %v1539_v10  ;;  %v2449_v48 = vadd.f32 %v2448_v13, %v1540_v34  ;;  %v2558_v49 = vmul.f32 %v1540_v34, %v1540_v34  ;;  %v883_v50 = vpop.f32.mrf.mxu0  ;;  %v1250_v10 = vadd.f32 %v1249_v5, %v991_v61  ;;  %v993_v37 = vpop.f32.mrf.mxu2 }
 0x1af   :  { %v1142_v51 = vpop.f32.mrf.mxu1  ;;  %v884_v52 = vadd.f32 %v4319_v62, %v883_v50  ;;  %v4568_v26 = vsel %vm1383_vm13, %v1248_v63, %v1483_v4  ;;  %v994_v56 = vadd.f32 %v4319_v62, %v993_v37 }
 0x1b0   :  { %3617 = vst [vmem:[%s4990_s3 + $0x80] sm:$0xff] %v3435_v47   ;;  %v2657_v53 = vadd.f32 %v2656_v36, %v2558_v49  ;;  %vm1384_vm14 = vcmp.ge.f32.partialorder %v1250_v10, 0.0  ;;  %v1484_v31 = vmul.f32 0.2, %v1250_v10 }
 0x1b1   :  { %v1143_v59 = vadd.f32 %v1142_v51, %v884_v52 }
 0x1b2   :  { %v4570_v42 = vsel %vm1384_vm14, %v1250_v10, %v1484_v31  ;;  %1291 = vmatmul.bf16.gmra.mxu3 %v3155_v22  ;;  %v1252_v34 = vpop.f32.mrf.mxu3 }
 0x1b3   :  { %vm1341_vm12 = vcmp.ge.f32.partialorder %v1143_v59, 0.0  ;;  %v1441_v2 = vmul.f32 0.2, %v1143_v59  ;;  %v3545_v43 = vpack.c.bf16 %v4570_v42, %v4568_v26  ;;  %v1253_v0 = vadd.f32 %v1252_v34, %v994_v56 }
 0x1b5   :  { %v1541_v9 = vsel %vm1341_vm12, %v1143_v59, %v1441_v2  ;;  %3639 = vst [vmem:[%s4990_s3 + $0x130] sm:$0xff] %v3545_v43   ;;  %v3333_v2 = vld [vmem:[%s4989_s0 + $0x304] sm:$0xf0]  ;;  %vm1385_vm1 = vcmp.ge.f32.partialorder %v1253_v0, 0.0  ;;  %v1485_v5 = vmul.f32 0.2, %v1253_v0 }
 0x1b6   :  { %v2450_v12 = vadd.f32 %v2449_v48, %v1541_v9  ;;  %v2559_v13 = vmul.f32 %v1541_v9, %v1541_v9  ;;  %v885_v14 = vpop.f32.mrf.mxu0  ;;  %v995_v59 = vpop.f32.mrf.mxu2  ;;  %v3159_v4 = vor.u32 %v3333_v2, %v3158_v1 }
 0x1b7   :  { %v1144_v17 = vpop.f32.mrf.mxu1  ;;  %v886_v24 = vadd.f32 %v4319_v62, %v885_v14  ;;  %v996_v63 = vadd.f32 %v4319_v62, %v995_v59 }
 0x1b8   :  { %v2658_v36 = vadd.f32 %v2657_v53, %v2559_v13 }
 0x1b9   :  { %v1145_v38 = vadd.f32 %v1144_v17, %v886_v24 }
 0x1ba   :  { %v1254_v7 = vpop.f32.mrf.mxu3 }
 0x1bb   :  { %vm1342_vm15 = vcmp.ge.f32.partialorder %v1145_v38, 0.0  ;;  %v1442_v45 = vmul.f32 0.2, %v1145_v38  ;;  %v1255_v11 = vadd.f32 %v1254_v7, %v996_v63  ;;  %1037 = vmatmul.bf16.gmra.mxu2 %v3159_v4  ;;  %v3335_v4 = vld [vmem:[%s4989_s0 + $0x314] sm:$0xf0] }
 0x1bd   :  { %v1542_v47 = vsel %vm1342_vm15, %v1145_v38, %v1442_v45  ;;  %vm1386_vm2 = vcmp.ge.f32.partialorder %v1255_v11, 0.0  ;;  %v1486_v37 = vmul.f32 0.2, %v1255_v11 }
 0x1be   :  { %v3440_v48 = vpack.c.bf16 %v1542_v47, %v1541_v9  ;;  %v2451_v49 = vadd.f32 %v2450_v12, %v1542_v47  ;;  %v2560_v50 = vmul.f32 %v1542_v47, %v1542_v47  ;;  %v888_v51 = vpop.f32.mrf.mxu0  ;;  %v3332_v9 = vld [vmem:[%s4989_s0 + $0x304] sm:$0xf]  ;;  %v3160_v12 = vld [vmem:[%s4989_s0 + $0x308] sm:$0xf0]  ;;  %v998_v43 = vpop.f32.mrf.mxu2 }
 0x1bf   :  { %v1147_v52 = vpop.f32.mrf.mxu1  ;;  %v889_v53 = vadd.f32 %v4319_v62, %v888_v51  ;;  %v3163_v24 = vor.u32 %v3332_v9, %v3160_v12  ;;  %v4598_v34 = vsel %vm1386_vm2, %v1255_v11, %v1486_v37 }
 0x1c0   :  { %3618 = vst [vmem:[%s4990_s3 + $0x88] sm:$0xff] %v3440_v48   ;;  %v2659_v54 = vadd.f32 %v2658_v36, %v2560_v50  ;;  %v4596_v36 = vsel %vm1385_vm1, %v1253_v0, %v1485_v5 }
 0x1c1   :  { %v1148_v61 = vadd.f32 %v1147_v52, %v889_v53  ;;  %v3550_v47 = vpack.c.bf16 %v4598_v34, %v4596_v36 }
 0x1c2   :  { %1296 = vmatmul.bf16.gmra.mxu3 %v3163_v24 }
 0x1c3   :  { %vm1343_vm0 = vcmp.ge.f32.partialorder %v1148_v61, 0.0  ;;  %v1443_v3 = vmul.f32 0.2, %v1148_v61  ;;  %3640 = vst [vmem:[%s4990_s3 + $0x138] sm:$0xff] %v3550_v47  }
 0x1c5   :  { %v1543_v10 = vsel %vm1343_vm0, %v1148_v61, %v1443_v3  ;;  %v999_v61 = vadd.f32 %v4319_v62, %v998_v43  ;;  %v3166_v3 = vld [vmem:[%s4989_s0 + $0x310] sm:$0xf] }
 0x1c6   :  { %v2452_v13 = vadd.f32 %v2451_v49, %v1543_v10  ;;  %v2561_v14 = vmul.f32 %v1543_v10, %v1543_v10  ;;  %v890_v17 = vpop.f32.mrf.mxu0  ;;  %v1257_v49 = vpop.f32.mrf.mxu3  ;;  %v3167_v5 = vor.u32 %v3335_v4, %v3166_v3 }
 0x1c7   :  { %v1149_v22 = vpop.f32.mrf.mxu1  ;;  %v891_v31 = vadd.f32 %v4319_v62, %v890_v17  ;;  %v1000_v63 = vpop.f32.mrf.mxu2  ;;  %v1258_v2 = vadd.f32 %v1257_v49, %v999_v61 }
 0x1c8   :  { %v2660_v38 = vadd.f32 %v2659_v54, %v2561_v14  ;;  %v1001_v1 = vadd.f32 %v4319_v62, %v1000_v63 }
 0x1c9   :  { %v1150_v45 = vadd.f32 %v1149_v22, %v891_v31  ;;  %vm1387_vm4 = vcmp.ge.f32.partialorder %v1258_v2, 0.0  ;;  %v1487_v7 = vmul.f32 0.2, %v1258_v2 }
 0x1cb   :  { %vm1344_vm3 = vcmp.ge.f32.partialorder %v1150_v45, 0.0  ;;  %v1444_v48 = vmul.f32 0.2, %v1150_v45  ;;  %1042 = vmatmul.bf16.gmra.mxu2 %v3167_v5  ;;  %v4628_v31 = vsel %vm1387_vm4, %v1258_v2, %v1487_v7 }
 0x1cd   :  { %v1544_v50 = vsel %vm1344_vm3, %v1150_v45, %v1444_v48 }
 0x1ce   :  { %v3445_v51 = vpack.c.bf16 %v1544_v50, %v1543_v10  ;;  %v4605_v52 = vadd.f32 %v2452_v13, %v1544_v50  ;;  %v2562_v53 = vmul.f32 %v1544_v50, %v1544_v50  ;;  %v893_v54 = vpop.f32.mrf.mxu0  ;;  %v1259_v9 = vpop.f32.mrf.mxu3  ;;  %v3334_v10 = vld [vmem:[%s4989_s0 + $0x314] sm:$0xf]  ;;  %v3168_v13 = vld [vmem:[%s4989_s0 + $0x318] sm:$0xf0] }
 0x1cf   :  { %v1152_v56 = vpop.f32.mrf.mxu1  ;;  %v894_v0 = vadd.f32 %v4319_v62, %v893_v54  ;;  %v1260_v12 = vadd.f32 %v1259_v9, %v1001_v1  ;;  %v3171_v22 = vor.u32 %v3334_v10, %v3168_v13 }
 0x1d0   :  { %3619 = vst [vmem:[%s4990_s3 + $0x90] sm:$0xff] %v3445_v51   ;;  %v4610_v59 = vadd.f32 %v2660_v38, %v2562_v53  ;;  %v1003_v38 = vpop.f32.mrf.mxu2 }
 0x1d1   :  { %v1153_v11 = vadd.f32 %v1152_v56, %v894_v0  ;;  %vm1388_vm5 = vcmp.ge.f32.partialorder %v1260_v12, 0.0  ;;  %v1488_v37 = vmul.f32 0.2, %v1260_v12  ;;  %v1004_v63 = vadd.f32 %v4319_v62, %v1003_v38 }
 0x1d2   :  { %1301 = vmatmul.bf16.gmra.mxu3 %v3171_v22 }
 0x1d3   :  { %v1445_v43 = vmul.f32 0.2, %v1153_v11  ;;  %v4630_v47 = vsel %vm1388_vm5, %v1260_v12, %v1488_v37  ;;  %vm1345_vm6 = vcmp.ge.f32.partialorder %v1153_v11, 0.0 }
 0x1d4   :  { %v3555_v48 = vpack.c.bf16 %v4630_v47, %v4628_v31 }
 0x1d5   :  { %v4637_v51 = vsel %vm1345_vm6, %v1153_v11, %v1445_v43 }
 0x1d6   :  { %v895_v14 = vpop.f32.mrf.mxu0  ;;  %3641 = vst [vmem:[%s4990_s3 + $0x140] sm:$0xff] %v3555_v48   ;;  %v1262_v50 = vpop.f32.mrf.mxu3 }
 0x1d7   :  { %v1154_v17 = vpop.f32.mrf.mxu1  ;;  %v896_v24 = vadd.f32 %v4319_v62, %v895_v14  ;;  %v1263_v3 = vadd.f32 %v1262_v50, %v1004_v63 }
 0x1d8   :  { %v1005_v0 = vpop.f32.mrf.mxu2 }
 0x1d9   :  { %v1155_v45 = vadd.f32 %v1154_v17, %v896_v24  ;;  %v1006_v2 = vadd.f32 %v4319_v62, %v1005_v0  ;;  %vm1389_vm8 = vcmp.ge.f32.partialorder %v1263_v3, 0.0  ;;  %v1489_v4 = vmul.f32 0.2, %v1263_v3 }
 0x1db   :  { %vm1346_vm7 = vcmp.ge.f32.partialorder %v1155_v45, 0.0  ;;  %v1446_v49 = vmul.f32 0.2, %v1155_v45  ;;  %v4650_v13 = vsel %vm1389_vm8, %v1263_v3, %v1489_v4 }
 0x1dd   :  { %v4639_v53 = vsel %vm1346_vm7, %v1155_v45, %v1446_v49 }
 0x1de   :  { %v3450_v54 = vpack.c.bf16 %v4639_v53, %v4637_v51  ;;  %v898_v56 = vpop.f32.mrf.mxu0  ;;  %v1264_v5 = vpop.f32.mrf.mxu3 }
 0x1df   :  { %v1157_v61 = vpop.f32.mrf.mxu1  ;;  %v899_v1 = vadd.f32 %v4319_v62, %v898_v56  ;;  %v1265_v9 = vadd.f32 %v1264_v5, %v1006_v2 }
 0x1e0   :  { %3620 = vst [vmem:[%s4990_s3 + $0x98] sm:$0xff] %v3450_v54   ;;  %v1008_v17 = vpop.f32.mrf.mxu2 }
 0x1e1   :  { %v1158_v7 = vadd.f32 %v1157_v61, %v899_v1  ;;  %vm1390_vm9 = vcmp.ge.f32.partialorder %v1265_v9, 0.0  ;;  %v1490_v14 = vmul.f32 0.2, %v1265_v9  ;;  %v1009_v61 = vadd.f32 %v4319_v62, %v1008_v17 }
 0x1e3   :  { %v1447_v22 = vmul.f32 0.2, %v1158_v7  ;;  %v4652_v37 = vsel %vm1390_vm9, %v1265_v9, %v1490_v14  ;;  %vm1347_vm10 = vcmp.ge.f32.partialorder %v1158_v7, 0.0 }
 0x1e4   :  { %v3560_v38 = vpack.c.bf16 %v4652_v37, %v4650_v13 }
 0x1e5   :  { %v4659_v48 = vsel %vm1347_vm10, %v1158_v7, %v1447_v22 }
 0x1e6   :  { %v900_v10 = vpop.f32.mrf.mxu0  ;;  %3642 = vst [vmem:[%s4990_s3 + $0x148] sm:$0xff] %v3560_v38   ;;  %v1267_v45 = vpop.f32.mrf.mxu3 }
 0x1e7   :  { %v1159_v11 = vpop.f32.mrf.mxu1  ;;  %v901_v12 = vadd.f32 %v4319_v62, %v900_v10  ;;  %v1268_v2 = vadd.f32 %v1267_v45, %v1009_v61 }
 0x1e8   :  { %v1010_v63 = vpop.f32.mrf.mxu2 }
 0x1e9   :  { %v1160_v24 = vadd.f32 %v1159_v11, %v901_v12  ;;  %v1011_v1 = vadd.f32 %v4319_v62, %v1010_v63  ;;  %vm1391_vm12 = vcmp.ge.f32.partialorder %v1268_v2, 0.0  ;;  %v1491_v3 = vmul.f32 0.2, %v1268_v2 }
 0x1eb   :  { %vm1348_vm11 = vcmp.ge.f32.partialorder %v1160_v24, 0.0  ;;  %v1448_v43 = vmul.f32 0.2, %v1160_v24  ;;  %v4672_v12 = vsel %vm1391_vm12, %v1268_v2, %v1491_v3 }
 0x1ed   :  { %v4661_v49 = vsel %vm1348_vm11, %v1160_v24, %v1448_v43 }
 0x1ee   :  { %v3455_v50 = vpack.c.bf16 %v4661_v49, %v4659_v48  ;;  %v903_v54 = vpop.f32.mrf.mxu0  ;;  %v1269_v4 = vpop.f32.mrf.mxu3 }
 0x1ef   :  { %v1162_v56 = vpop.f32.mrf.mxu1  ;;  %v904_v0 = vadd.f32 %v4319_v62, %v903_v54  ;;  %v1270_v7 = vadd.f32 %v1269_v4, %v1011_v1 }
 0x1f0   :  { %3621 = vst [vmem:[%s4990_s3 + $0xa0] sm:$0xff] %v3455_v50   ;;  %v1013_v17 = vpop.f32.mrf.mxu2 }
 0x1f1   :  { %v1163_v5 = vadd.f32 %v1162_v56, %v904_v0  ;;  %vm1392_vm13 = vcmp.ge.f32.partialorder %v1270_v7, 0.0  ;;  %v1492_v14 = vmul.f32 0.2, %v1270_v7  ;;  %v4693_v0 = vld [vmem:[%s4988_s2] ss:$0 sm:$0xff] }
 0x1f2   :  { %v1014_v1 = vadd.f32 %v4693_v0, %v1013_v17 }
 0x1f3   :  { %v1449_v22 = vmul.f32 0.2, %v1163_v5  ;;  %v4674_v38 = vsel %vm1392_vm13, %v1270_v7, %v1492_v14  ;;  %vm1349_vm14 = vcmp.ge.f32.partialorder %v1163_v5, 0.0 }
 0x1f4   :  { %5001 = vst [vmem:[#allocation2_spill] sm:$0xff] %v4674_v38  ;;  %v3565_v43 = vpack.c.bf16 %v4674_v38, %v4672_v12 }
 0x1f5   :  { %v4681_v50 = vsel %vm1349_vm14, %v1163_v5, %v1449_v22 }
 0x1f6   :  { %v905_v9 = vpop.f32.mrf.mxu0  ;;  %3643 = vst [vmem:[%s4990_s3 + $0x150] sm:$0xff] %v3565_v43  }
 0x1f7   :  { %v1164_v10 = vpop.f32.mrf.mxu1  ;;  %v906_v11 = vadd.f32 %v4319_v62, %v905_v9  ;;  %v1272_v62 = vpop.f32.mrf.mxu3 }
 0x1f8   :  { %v1015_v2 = vpop.f32.mrf.mxu2  ;;  %v1273_v5 = vadd.f32 %v1272_v62, %v1014_v1 }
 0x1f9   :  { %v1165_v24 = vadd.f32 %v1164_v10, %v906_v11  ;;  %v1016_v4 = vadd.f32 %v4693_v0, %v1015_v2 }
 0x1fa   :  { %vm1393_vm0 = vcmp.ge.f32.partialorder %v1273_v5, 0.0  ;;  %v1493_v7 = vmul.f32 0.2, %v1273_v5 }
 0x1fb   :  { %vm1350_vm15 = vcmp.ge.f32.partialorder %v1165_v24, 0.0  ;;  %v1450_v45 = vmul.f32 0.2, %v1165_v24 }
 0x1fc   :  { %v4699_v43 = vsel %vm1393_vm0, %v1273_v5, %v1493_v7 }
 0x1fd   :  { %v4683_v54 = vsel %vm1350_vm15, %v1165_v24, %v1450_v45  ;;  %5002 = vst [vmem:[#allocation3_spill] sm:$0xff] %v4699_v43 }
 0x1fe   :  { %v3460_v56 = vpack.c.bf16 %v4683_v54, %v4681_v50  ;;  %v908_v61 = vpop.f32.mrf.mxu0 }
 0x1ff   :  { %v1167_v63 = vpop.f32.mrf.mxu1  ;;  %v909_v3 = vadd.f32 %v4693_v0, %v908_v61  ;;  %v1274_v9 = vpop.f32.mrf.mxu3 }
 0x200   :  { %3622 = vst [vmem:[%s4990_s3 + $0xa8] sm:$0xff] %v3460_v56   ;;  %v1275_v11 = vadd.f32 %v1274_v9, %v1016_v4  ;;  %v1018_v17 = vpop.f32.mrf.mxu2 }
 0x201   :  { %v1168_v10 = vadd.f32 %v1167_v63, %v909_v3 }
 0x202   :  { %vm1394_vm1 = vcmp.ge.f32.partialorder %v1275_v11, 0.0  ;;  %v1494_v45 = vmul.f32 0.2, %v1275_v11 }
 0x203   :  { %v1451_v56 = vmul.f32 0.2, %v1168_v10  ;;  %vm1351_vm2 = vcmp.ge.f32.partialorder %v1168_v10, 0.0 }
 0x204   :  { %v4701_v61 = vsel %vm1394_vm1, %v1275_v11, %v1494_v45 }
 0x205   :  { %5003 = vst [vmem:[#allocation4_spill] sm:$0xff] %v4701_v61  ;;  %v3570_v62 = vpack.c.bf16 %v4701_v61, %v4699_v43  ;;  %v4708_v2 = vsel %vm1351_vm2, %v1168_v10, %v1451_v56 }
 0x206   :  { %v910_v14 = vpop.f32.mrf.mxu0 }
 0x207   :  { %v1169_v22 = vpop.f32.mrf.mxu1  ;;  %v911_v24 = vadd.f32 %v4693_v0, %v910_v14  ;;  %3644 = vst [vmem:[%s4990_s3 + $0x158] sm:$0xff] %v3570_v62   ;;  %v1277_v1 = vpop.f32.mrf.mxu3  ;;  %v1019_v14 = vadd.f32 %v4693_v0, %v1018_v17 }
 0x208   :  { %v1020_v9 = vpop.f32.mrf.mxu2 }
 0x209   :  { %v1170_v38 = vadd.f32 %v1169_v22, %v911_v24  ;;  %v1021_v22 = vadd.f32 %v4693_v0, %v1020_v9  ;;  %v1278_v10 = vadd.f32 %v1277_v1, %v1019_v14 }
 0x20b   :  { %vm1352_vm3 = vcmp.ge.f32.partialorder %v1170_v38, 0.0  ;;  %v1452_v63 = vmul.f32 0.2, %v1170_v38  ;;  %v1495_v56 = vmul.f32 0.2, %v1278_v10  ;;  %vm1395_vm4 = vcmp.ge.f32.partialorder %v1278_v10, 0.0 }
 0x20d   :  { %v4710_v3 = vsel %vm1352_vm3, %v1170_v38, %v1452_v63  ;;  %v2563_v38 = vmul.f32 %v4637_v51, %v4637_v51  ;;  %v2454_v63 = vadd.f32 %v4605_v52, %v4637_v51  ;;  %v4727_v9 = vsel %vm1395_vm4, %v1278_v10, %v1495_v56 }
 0x20e   :  { %v3465_v4 = vpack.c.bf16 %v4710_v3, %v4708_v2  ;;  %v913_v5 = vpop.f32.mrf.mxu0 }
 0x20f   :  { %v1172_v7 = vpop.f32.mrf.mxu1  ;;  %v914_v11 = vadd.f32 %v4693_v0, %v913_v5  ;;  %v1279_v24 = vpop.f32.mrf.mxu3  ;;  %v2662_v14 = vadd.f32 %v4610_v59, %v2563_v38  ;;  %v2455_v52 = vadd.f32 %v2454_v63, %v4639_v53 }
 0x210   :  { %3623 = vst [vmem:[%s4990_s3 + $0xb0] sm:$0xff] %v3465_v4   ;;  %v1280_v62 = vadd.f32 %v1279_v24, %v1021_v22  ;;  %v2564_v4 = vmul.f32 %v4639_v53, %v4639_v53  ;;  %v2567_v53 = vmul.f32 %v4681_v50, %v4681_v50 }
 0x211   :  { %v1173_v45 = vadd.f32 %v1172_v7, %v914_v11  ;;  %v2565_v7 = vmul.f32 %v4659_v48, %v4659_v48  ;;  %v1023_v11 = vpop.f32.mrf.mxu2  ;;  %v2456_v38 = vadd.f32 %v2455_v52, %v4659_v48  ;;  %v2568_v48 = vmul.f32 %v4683_v54, %v4683_v54 }
 0x212   :  { %vm1396_vm5 = vcmp.ge.f32.partialorder %v1280_v62, 0.0  ;;  %v1496_v1 = vmul.f32 0.2, %v1280_v62  ;;  %v2663_v43 = vadd.f32 %v2662_v14, %v2564_v4 }
 0x213   :  { %v1453_v51 = vmul.f32 0.2, %v1173_v45  ;;  %vm1353_vm6 = vcmp.ge.f32.partialorder %v1173_v45, 0.0 }
 0x214   :  { %v4733_v24 = vsel %vm1396_vm5, %v1280_v62, %v1496_v1  ;;  %v2664_v56 = vadd.f32 %v2663_v43, %v2565_v7 }
 0x215   :  { %5004 = vst [vmem:[#allocation5_spill] sm:$0xff] %v4733_v24  ;;  %v3575_v10 = vpack.c.bf16 %v4733_v24, %v4727_v9  ;;  %v1553_v63 = vsel %vm1353_vm6, %v1173_v45, %v1453_v51 }
 0x216   :  { %v915_v61 = vpop.f32.mrf.mxu0 }
 0x217   :  { %v1174_v5 = vpop.f32.mrf.mxu1  ;;  %v916_v17 = vadd.f32 %v4693_v0, %v915_v61  ;;  %v2566_v61 = vmul.f32 %v4661_v49, %v4661_v49  ;;  %3645 = vst [vmem:[%s4990_s3 + $0x160] sm:$0xff] %v3575_v10   ;;  %v1282_v62 = vpop.f32.mrf.mxu3 }
 0x219   :  { %v1175_v22 = vadd.f32 %v1174_v5, %v916_v17  ;;  %v2457_v5 = vadd.f32 %v2456_v38, %v4661_v49  ;;  %v2665_v17 = vadd.f32 %v2664_v56, %v2566_v61  ;;  %v1025_v45 = vpop.f32.mrf.mxu2  ;;  %v2569_v49 = vmul.f32 %v4708_v2, %v4708_v2 }
 0x21a   :  { %v1026_v61 = vadd.f32 %v4693_v0, %v1025_v45 }
 0x21b   :  { %vm1354_vm7 = vcmp.ge.f32.partialorder %v1175_v22, 0.0  ;;  %v1454_v59 = vmul.f32 0.2, %v1175_v22  ;;  %v2458_v7 = vadd.f32 %v2457_v5, %v4681_v50  ;;  %v2666_v52 = vadd.f32 %v2665_v17, %v2567_v53 }
 0x21c   :  { %v2570_v53 = vmul.f32 %v4710_v3, %v4710_v3 }
 0x21d   :  { %v1554_v4 = vsel %vm1354_vm7, %v1175_v22, %v1454_v59  ;;  %v1024_v22 = vadd.f32 %v4693_v0, %v1023_v11  ;;  %v2459_v10 = vadd.f32 %v2458_v7, %v4683_v54  ;;  %v2667_v59 = vadd.f32 %v2666_v52, %v2568_v48 }
 0x21e   :  { %v3470_v1 = vpack.c.bf16 %v1554_v4, %v1553_v63  ;;  %v918_v14 = vpop.f32.mrf.mxu0  ;;  %v2571_v11 = vmul.f32 %v1553_v63, %v1553_v63  ;;  %v2572_v52 = vmul.f32 %v1554_v4, %v1554_v4 }
 0x21f   :  { %v1177_v24 = vpop.f32.mrf.mxu1  ;;  %v919_v43 = vadd.f32 %v4693_v0, %v918_v14  ;;  %v1283_v50 = vadd.f32 %v1282_v62, %v1024_v22  ;;  %v2460_v56 = vadd.f32 %v2459_v10, %v4708_v2  ;;  %v1284_v5 = vpop.f32.mrf.mxu3  ;;  %v2668_v17 = vadd.f32 %v2667_v59, %v2569_v49 }
 0x220   :  { %3624 = vst [vmem:[%s4990_s3 + $0xb8] sm:$0xff] %v3470_v1   ;;  %v1285_v14 = vadd.f32 %v1284_v5, %v1026_v61 }
 0x221   :  { %v1178_v51 = vadd.f32 %v1177_v24, %v919_v43  ;;  %v1497_v1 = vmul.f32 0.2, %v1283_v50  ;;  %v2461_v24 = vadd.f32 %v2460_v56, %v4710_v3  ;;  %vm1397_vm9 = vcmp.ge.f32.partialorder %v1283_v50, 0.0  ;;  %v1028_v10 = vpop.f32.mrf.mxu2 }
 0x222   :  { %vm1398_vm10 = vcmp.ge.f32.partialorder %v1285_v14, 0.0  ;;  %v1498_v62 = vmul.f32 0.2, %v1285_v14  ;;  %v2669_v2 = vadd.f32 %v2668_v17, %v2570_v53 }
 0x223   :  { %vm1355_vm8 = vcmp.ge.f32.partialorder %v1178_v51, 0.0  ;;  %v1455_v38 = vmul.f32 0.2, %v1178_v51  ;;  %v4763_v48 = vsel %vm1397_vm9, %v1283_v50, %v1497_v1  ;;  %v2462_v7 = vadd.f32 %v2461_v24, %v1553_v63 }
 0x224   :  { %v4765_v59 = vsel %vm1398_vm10, %v1285_v14, %v1498_v62  ;;  %v2670_v61 = vadd.f32 %v2669_v2, %v2571_v11  ;;  %v1029_v62 = vadd.f32 %v4693_v0, %v1028_v10  ;;  %v2578_v10 = vmul.f32 %v4097_v41, %v4097_v41 }
 0x225   :  { %v1555_v43 = vsel %vm1355_vm8, %v1178_v51, %v1455_v38  ;;  %v2463_v3 = vadd.f32 %v2462_v7, %v1554_v4  ;;  %v3580_v51 = vpack.c.bf16 %v4765_v59, %v4763_v48  ;;  %v2575_v4 = vmul.f32 %v4054_v58, %v4054_v58 }
 0x226   :  { %v920_v45 = vpop.f32.mrf.mxu0  ;;  %v2573_v56 = vmul.f32 %v1555_v43, %v1555_v43  ;;  %v2671_v50 = vadd.f32 %v2670_v61, %v2572_v52 }
 0x227   :  { %v921_v54 = vadd.f32 %v4693_v0, %v920_v45  ;;  %v1179_v22 = vpop.f32.mrf.mxu1  ;;  %v2464_v5 = vadd.f32 %v2463_v3, %v1555_v43  ;;  %3646 = vst [vmem:[%s4990_s3 + $0x168] sm:$0xff] %v3580_v51   ;;  %v1287_v63 = vpop.f32.mrf.mxu3 }
 0x228   :  { %v2672_v17 = vadd.f32 %v2671_v50, %v2573_v56 }
 0x229   :  { %v1180_v49 = vadd.f32 %v1179_v22, %v921_v54  ;;  %v1030_v54 = vpop.f32.mrf.mxu2  ;;  %v1288_v22 = vadd.f32 %v1287_v63, %v1029_v62  ;;  %v2579_v63 = vmul.f32 %v4134_v21, %v4134_v21  ;;  %v2582_v62 = vmul.f32 %v4177_v8, %v4177_v8 }
 0x22a   :  { %v1031_v2 = vadd.f32 %v4693_v0, %v1030_v54 }
 0x22b   :  { %vm1356_vm11 = vcmp.ge.f32.partialorder %v1180_v49, 0.0  ;;  %v1456_v38 = vmul.f32 0.2, %v1180_v49  ;;  %v1499_v56 = vmul.f32 0.2, %v1288_v22  ;;  %vm1399_vm12 = vcmp.ge.f32.partialorder %v1288_v22, 0.0 }
 0x22d   :  { %v1556_v53 = vsel %vm1356_vm11, %v1180_v49, %v1456_v38  ;;  %v2577_v49 = vmul.f32 %v4094_v39, %v4094_v39 }
 0x22e   :  { %v3475_v1 = vpack.c.bf16 %v1556_v53, %v1555_v43  ;;  %v2465_v14 = vadd.f32 %v2464_v5, %v1556_v53  ;;  %v2574_v24 = vmul.f32 %v1556_v53, %v1556_v53  ;;  %v2576_v43 = vmul.f32 %v4057_v60, %v4057_v60 }
 0x22f   :  { %v4789_v5 = vsel %vm1399_vm12, %v1288_v22, %v1499_v56 }
 0x230   :  { %3625 = vst [vmem:[%s4990_s3 + $0xc0] sm:$0xff] %v3475_v1   ;;  %v2466_v11 = vadd.f32 %v2465_v14, %v4054_v58  ;;  %v2673_v45 = vadd.f32 %v2672_v17, %v2574_v24  ;;  %v1289_v58 = vpop.f32.mrf.mxu3  ;;  %v2580_v14 = vmul.f32 %v4137_v23, %v4137_v23 }
 0x231   :  { %v1290_v51 = vadd.f32 %v1289_v58, %v1031_v2  ;;  %v1033_v17 = vpop.f32.mrf.mxu2 }
 0x232   :  { %v2467_v7 = vadd.f32 %v2466_v11, %v4057_v60  ;;  %v2674_v52 = vadd.f32 %v2673_v45, %v2575_v4  ;;  %v2581_v11 = vmul.f32 %v4174_v6, %v4174_v6 }
 0x233   :  { %vm1400_vm13 = vcmp.ge.f32.partialorder %v1290_v51, 0.0  ;;  %v1500_v60 = vmul.f32 0.2, %v1290_v51 }
 0x234   :  { %v2468_v61 = vadd.f32 %v2467_v7, %v4094_v39  ;;  %v2675_v3 = vadd.f32 %v2674_v52, %v2576_v43  ;;  %v2583_v43 = vmul.f32 %v4214_v55, %v4214_v55 }
 0x235   :  { %v4794_v1 = vsel %vm1400_vm13, %v1290_v51, %v1500_v60  ;;  %v2586_v60 = vmul.f32 %v4257_v46, %v4257_v46 }
 0x236   :  { %v2469_v38 = vadd.f32 %v2468_v61, %v4097_v41  ;;  %v2676_v50 = vadd.f32 %v2675_v3, %v2577_v49  ;;  %v3585_v4 = vpack.c.bf16 %v4794_v1, %v4789_v5  ;;  %v2584_v61 = vmul.f32 %v4217_v57, %v4217_v57 }
 0x238   :  { %v2470_v39 = vadd.f32 %v2469_v38, %v4134_v21  ;;  %v2677_v53 = vadd.f32 %v2676_v50, %v2578_v10  ;;  %3647 = vst [vmem:[%s4990_s3 + $0x170] sm:$0xff] %v3585_v4   ;;  %v1292_v21 = vpop.f32.mrf.mxu3  ;;  %v2588_v4 = vmul.f32 %v4297_v35, %v4297_v35 }
 0x239   :  { %v1035_v22 = vpop.f32.mrf.mxu2 }
 0x23a   :  { %v2471_v41 = vadd.f32 %v2470_v39, %v4137_v23  ;;  %v2678_v24 = vadd.f32 %v2677_v53, %v2579_v63  ;;  %v1036_v49 = vadd.f32 %v4693_v0, %v1035_v22 }
 0x23c   :  { %v2472_v45 = vadd.f32 %v2471_v41, %v4174_v6  ;;  %v2679_v54 = vadd.f32 %v2678_v24, %v2580_v14  ;;  %v1034_v6 = vadd.f32 %v4693_v0, %v1033_v17  ;;  %v2587_v17 = vmul.f32 %v4294_v32, %v4294_v32 }
 0x23e   :  { %v2473_v23 = vadd.f32 %v2472_v45, %v4177_v8  ;;  %v2680_v2 = vadd.f32 %v2679_v54, %v2581_v11  ;;  %v1293_v56 = vadd.f32 %v1292_v21, %v1034_v6  ;;  %v2585_v8 = vmul.f32 %v4254_v44, %v4254_v44 }
 0x23f   :  { %v2589_v54 = vmul.f32 %v4339_v25, %v4339_v25 }
 0x240   :  { %v2474_v7 = vadd.f32 %v2473_v23, %v4214_v55  ;;  %v2681_v52 = vadd.f32 %v2680_v2, %v2582_v62  ;;  %v1294_v55 = vpop.f32.mrf.mxu3  ;;  %v1501_v38 = vmul.f32 0.2, %v1293_v56  ;;  %vm1401_vm14 = vcmp.ge.f32.partialorder %v1293_v56, 0.0 }
 0x241   :  { %v1295_v50 = vadd.f32 %v1294_v55, %v1036_v49  ;;  %v1038_v41 = vpop.f32.mrf.mxu2  ;;  %v2590_v23 = vmul.f32 %v4342_v27, %v4342_v27  ;;  %v2592_v49 = vmul.f32 %v4382_v20, %v4382_v20  ;;  %v2594_v55 = vmul.f32 %v4425_v28, %v4425_v28 }
 0x242   :  { %v2475_v3 = vadd.f32 %v2474_v7, %v4217_v57  ;;  %v2682_v58 = vadd.f32 %v2681_v52, %v2583_v43  ;;  %v4824_v53 = vsel %vm1401_vm14, %v1293_v56, %v1501_v38  ;;  %v2591_v43 = vmul.f32 %v4379_v18, %v4379_v18 }
 0x243   :  { %vm1402_vm15 = vcmp.ge.f32.partialorder %v1295_v50, 0.0  ;;  %v1502_v57 = vmul.f32 0.2, %v1295_v50 }
 0x244   :  { %v2476_v51 = vadd.f32 %v2475_v3, %v4254_v44  ;;  %v2683_v10 = vadd.f32 %v2682_v58, %v2584_v61 }
 0x245   :  { %v4829_v24 = vsel %vm1402_vm15, %v1295_v50, %v1502_v57 }
 0x246   :  { %v2477_v63 = vadd.f32 %v2476_v51, %v4257_v46  ;;  %v2684_v39 = vadd.f32 %v2683_v10, %v2585_v8  ;;  %v3590_v45 = vpack.c.bf16 %v4829_v24, %v4824_v53 }
 0x248   :  { %v2478_v44 = vadd.f32 %v2477_v63, %v4294_v32  ;;  %v2685_v14 = vadd.f32 %v2684_v39, %v2586_v60  ;;  %3648 = vst [vmem:[%s4990_s3 + $0x178] sm:$0xff] %v3590_v45   ;;  %v1297_v32 = vpop.f32.mrf.mxu3  ;;  %v2595_v63 = vmul.f32 %v4460_v15, %v4460_v15  ;;  %v2598_v45 = vmul.f32 %v4505_v33, %v4505_v33 }
 0x249   :  { %v1040_v22 = vpop.f32.mrf.mxu2 }
 0x24a   :  { %v2479_v46 = vadd.f32 %v2478_v44, %v4297_v35  ;;  %v2686_v11 = vadd.f32 %v2685_v14, %v2587_v17  ;;  %v1041_v6 = vadd.f32 %v4693_v0, %v1040_v22  ;;  %v2596_v44 = vmul.f32 %v4465_v29, %v4465_v29 }
 0x24c   :  { %v2480_v21 = vadd.f32 %v2479_v46, %v4339_v25  ;;  %v2687_v62 = vadd.f32 %v2686_v11, %v2588_v4  ;;  %v1039_v25 = vadd.f32 %v4693_v0, %v1038_v41  ;;  %v2597_v4 = vmul.f32 %v4500_v19, %v4500_v19 }
 0x24e   :  { %v2481_v35 = vadd.f32 %v2480_v21, %v4342_v27  ;;  %v2688_v2 = vadd.f32 %v2687_v62, %v2589_v54  ;;  %v1298_v58 = vadd.f32 %v1297_v32, %v1039_v25  ;;  %v2593_v27 = vmul.f32 %v4420_v16, %v4420_v16 }
 0x24f   :  { %v2599_v21 = vmul.f32 %v4540_v30, %v4540_v30 }
 0x250   :  { %v2482_v7 = vadd.f32 %v2481_v35, %v4379_v18  ;;  %v2689_v52 = vadd.f32 %v2688_v2, %v2590_v23  ;;  %v1299_v18 = vpop.f32.mrf.mxu3  ;;  %v1503_v51 = vmul.f32 0.2, %v1298_v58  ;;  %vm1403_vm0 = vcmp.ge.f32.partialorder %v1298_v58, 0.0 }
 0x251   :  { %v1300_v10 = vadd.f32 %v1299_v18, %v1041_v6  ;;  %v1043_v57 = vpop.f32.mrf.mxu2  ;;  %v2600_v2 = vmul.f32 %v4542_v40, %v4542_v40  ;;  %v2604_v18 = vmul.f32 %v4598_v34, %v4598_v34 }
 0x252   :  { %v2483_v61 = vadd.f32 %v2482_v7, %v4382_v20  ;;  %v2690_v3 = vadd.f32 %v2689_v52, %v2591_v43  ;;  %v4859_v60 = vsel %vm1403_vm0, %v1298_v58, %v1503_v51 }
 0x253   :  { %vm1404_vm1 = vcmp.ge.f32.partialorder %v1300_v10, 0.0  ;;  %v1504_v20 = vmul.f32 0.2, %v1300_v10 }
 0x254   :  { %v2484_v56 = vadd.f32 %v2483_v61, %v4420_v16  ;;  %v2691_v8 = vadd.f32 %v2690_v3, %v2592_v49  ;;  %v2602_v61 = vmul.f32 %v4570_v42, %v4570_v42 }
 0x255   :  { %v4864_v17 = vsel %vm1404_vm1, %v1300_v10, %v1504_v20 }
 0x256   :  { %v2692_v38 = vadd.f32 %v2691_v8, %v2593_v27  ;;  %v2485_v50 = vadd.f32 %v2484_v56, %v4425_v28  ;;  %v3595_v41 = vpack.c.bf16 %v4864_v17, %v4859_v60  ;;  %v2603_v27 = vmul.f32 %v4596_v36, %v4596_v36 }
 0x258   :  { %v2486_v16 = vadd.f32 %v2485_v50, %v4460_v15  ;;  %v2693_v39 = vadd.f32 %v2692_v38, %v2594_v55  ;;  %3649 = vst [vmem:[%s4990_s3 + $0x180] sm:$0xff] %v3595_v41   ;;  %v1302_v15 = vpop.f32.mrf.mxu3  ;;  %v2605_v55 = vmul.f32 %v4628_v31, %v4628_v31 }
 0x259   :  { %v1045_v23 = vpop.f32.mrf.mxu2 }
 0x25a   :  { %v2487_v14 = vadd.f32 %v2486_v16, %v4465_v29  ;;  %v2694_v28 = vadd.f32 %v2693_v39, %v2595_v63  ;;  %v1046_v35 = vadd.f32 %v4693_v0, %v1045_v23  ;;  %v2607_v63 = vmul.f32 %v4650_v13, %v4650_v13 }
 0x25b   :  { %v2613_v23 = vmul.f32 %v4727_v9, %v4727_v9 }
 0x25c   :  { %v2488_v46 = vadd.f32 %v2487_v14, %v4500_v19  ;;  %v2695_v11 = vadd.f32 %v2694_v28, %v2596_v44  ;;  %v1044_v19 = vadd.f32 %v4693_v0, %v1043_v57  ;;  %v3671_v14 = vmov 0.0  }
 0x25d   :  { %2414 = vst [vmem:[%s4991_s4] sm:$0x1] %v3671_v14 }
 0x25e   :  { %v2489_v29 = vadd.f32 %v2488_v46, %v4505_v33  ;;  %v2696_v54 = vadd.f32 %v2695_v11, %v2597_v4  ;;  %v1303_v52 = vadd.f32 %v1302_v15, %v1044_v19  ;;  %v2601_v33 = vmul.f32 %v4568_v26, %v4568_v26  ;;  %2415 = vst [vmem:[%s4992_s5] sm:$0x1] %v3671_v14  ;;  %v5006_v11 = vld [vmem:[#allocation3_spill] sm:$0xff] }
 0x25f   :  { %v2611_v15 = vmul.f32 %v5006_v11, %v5006_v11 }
 0x260   :  { %v2490_v62 = vadd.f32 %v2489_v29, %v4540_v30  ;;  %v2697_v32 = vadd.f32 %v2696_v54, %v2598_v45  ;;  %v1304_v30 = vpop.f32.mrf.mxu3  ;;  %v1505_v6 = vmul.f32 0.2, %v1303_v52  ;;  %vm1405_vm2 = vcmp.ge.f32.partialorder %v1303_v52, 0.0  ;;  %v5007_v54 = vld [vmem:[#allocation4_spill] sm:$0xff] }
 0x261   :  { %v1305_v49 = vadd.f32 %v1304_v30, %v1046_v35 }
 0x262   :  { %v2491_v43 = vadd.f32 %v2490_v62, %v4542_v40  ;;  %v2698_v7 = vadd.f32 %v2697_v32, %v2599_v21  ;;  %v4894_v58 = vsel %vm1405_vm2, %v1303_v52, %v1505_v6  ;;  %v2616_v6 = vmul.f32 %v4765_v59, %v4765_v59 }
 0x263   :  { %vm1406_vm3 = vcmp.ge.f32.partialorder %v1305_v49, 0.0  ;;  %v1506_v40 = vmul.f32 0.2, %v1305_v49 }
 0x264   :  { %v2492_v22 = vadd.f32 %v2491_v43, %v4568_v26  ;;  %v2699_v25 = vadd.f32 %v2698_v7, %v2600_v2  ;;  %v5008_v2 = vld [vmem:[#allocation5_spill] sm:$0xff] }
 0x265   :  { %v4899_v8 = vsel %vm1406_vm3, %v1305_v49, %v1506_v40  ;;  %v2614_v7 = vmul.f32 %v5008_v2, %v5008_v2  ;;  %v2618_v40 = vmul.f32 %v4794_v1, %v4794_v1 }
 0x266   :  { %v2493_v0 = vadd.f32 %v2492_v22, %v4570_v42  ;;  %v2700_v3 = vadd.f32 %v2699_v25, %v2601_v33  ;;  %v3600_v10 = vpack.c.bf16 %v4899_v8, %v4894_v58  ;;  %v2615_v22 = vmul.f32 %v4763_v48, %v4763_v48 }
 0x268   :  { %v2494_v26 = vadd.f32 %v2493_v0, %v4596_v36  ;;  %v2701_v56 = vadd.f32 %v2700_v3, %v2602_v61  ;;  %3650 = vst [vmem:[%s4990_s3 + $0x188] sm:$0xff] %v3600_v10   ;;  %v2606_v36 = vmul.f32 %v4630_v47, %v4630_v47  ;;  %v2617_v61 = vmul.f32 %v4789_v5, %v4789_v5 }
 0x26a   :  { %v2495_v51 = vadd.f32 %v2494_v26, %v4598_v34  ;;  %v2702_v42 = vadd.f32 %v2701_v56, %v2603_v27  ;;  %v2619_v26 = vmul.f32 %v4824_v53, %v4824_v53 }
 0x26c   :  { %v2496_v38 = vadd.f32 %v2495_v51, %v4628_v31  ;;  %v2703_v50 = vadd.f32 %v2702_v42, %v2604_v18  ;;  %v2608_v31 = vmul.f32 %v4652_v37, %v4652_v37  ;;  %v2620_v18 = vmul.f32 %v4829_v24, %v4829_v24 }
 0x26d   :  { %v2621_v42 = vmul.f32 %v4859_v60, %v4859_v60 }
 0x26e   :  { %v2497_v20 = vadd.f32 %v2496_v38, %v4630_v47  ;;  %v2704_v34 = vadd.f32 %v2703_v50, %v2605_v55  ;;  %v2609_v47 = vmul.f32 %v4672_v12, %v4672_v12  ;;  %v2622_v55 = vmul.f32 %v4864_v17, %v4864_v17 }
 0x26f   :  { %v2623_v50 = vmul.f32 %v4894_v58, %v4894_v58 }
 0x270   :  { %v2498_v16 = vadd.f32 %v2497_v20, %v4650_v13  ;;  %v2705_v39 = vadd.f32 %v2704_v34, %v2606_v36  ;;  %v5005_v13 = vld [vmem:[#allocation2_spill] sm:$0xff]  ;;  %v2624_v20 = vmul.f32 %v4899_v8, %v4899_v8 }
 0x271   :  { %v2610_v4 = vmul.f32 %v5005_v13, %v5005_v13 }
 0x272   :  { %v2499_v57 = vadd.f32 %v2498_v16, %v4652_v37  ;;  %v2706_v44 = vadd.f32 %v2705_v39, %v2607_v63 }
 0x274   :  { %v2500_v28 = vadd.f32 %v2499_v57, %v4672_v12  ;;  %v2707_v41 = vadd.f32 %v2706_v44, %v2608_v31  ;;  %v2612_v12 = vmul.f32 %v5007_v54, %v5007_v54 }
 0x276   :  { %v2501_v37 = vadd.f32 %v2500_v28, %v5005_v13  ;;  %v2708_v46 = vadd.f32 %v2707_v41, %v2609_v47 }
 0x278   :  { %v2502_v45 = vadd.f32 %v2501_v37, %v5006_v11  ;;  %v2709_v29 = vadd.f32 %v2708_v46, %v2610_v4 }
 0x27a   :  { %v2503_v21 = vadd.f32 %v2502_v45, %v5007_v54  ;;  %v2710_v62 = vadd.f32 %v2709_v29, %v2611_v15 }
 0x27c   :  { %v2504_v32 = vadd.f32 %v2503_v21, %v4727_v9  ;;  %v2711_v19 = vadd.f32 %v2710_v62, %v2612_v12 }
 0x27e   :  { %v2712_v35 = vadd.f32 %v2711_v19, %v2613_v23  ;;  %v2505_v43 = vadd.f32 %v2504_v32, %v5008_v2 }
 0x280   :  { %v2713_v52 = vadd.f32 %v2712_v35, %v2614_v7  ;;  %v2506_v33 = vadd.f32 %v2505_v43, %v4763_v48 }
 0x282   :  { %v2714_v25 = vadd.f32 %v2713_v52, %v2615_v22  ;;  %v2507_v30 = vadd.f32 %v2506_v33, %v4765_v59 }
 0x284   :  { %v2715_v9 = vadd.f32 %v2714_v25, %v2616_v6  ;;  %v2508_v49 = vadd.f32 %v2507_v30, %v4789_v5 }
 0x286   :  { %v2716_v0 = vadd.f32 %v2715_v9, %v2617_v61  ;;  %v2509_v3 = vadd.f32 %v2508_v49, %v4794_v1 }
 0x288   :  { %v2717_v27 = vadd.f32 %v2716_v0, %v2618_v40  ;;  %v2510_v48 = vadd.f32 %v2509_v3, %v4824_v53 }
 0x28a   :  { %v2718_v56 = vadd.f32 %v2717_v27, %v2619_v26  ;;  %v2511_v59 = vadd.f32 %v2510_v48, %v4829_v24 }
 0x28c   :  { %v2719_v51 = vadd.f32 %v2718_v56, %v2620_v18  ;;  %v2512_v5 = vadd.f32 %v2511_v59, %v4859_v60 }
 0x28e   :  { %v2720_v10 = vadd.f32 %v2719_v51, %v2621_v42  ;;  %v2513_v1 = vadd.f32 %v2512_v5, %v4864_v17 }
 0x290   :  { %v2721_v38 = vadd.f32 %v2720_v10, %v2622_v55  ;;  %v2514_v53 = vadd.f32 %v2513_v1, %v4894_v58  ;;  %v2416_v58 = vld [vmem:[%s4991_s4] sm:$0x1] }
 0x292   :  { %v2722_v36 = vadd.f32 %v2721_v38, %v2623_v50  ;;  %v2515_v24 = vadd.f32 %v2514_v53, %v4899_v8  ;;  %v2524_v8 = vld [vmem:[%s4992_s5] sm:$0x1] }
 0x294   :  { %v2516_v34 = vrot.slane %v2515_v24, 4  ;;  %v2723_v60 = vadd.f32 %v2722_v36, %v2624_v20 }
 0x296   :  { %v2517_v63 = vadd.f32 %v2516_v34, %v2515_v24  ;;  %v2724_v16 = vrot.slane %v2723_v60, 4 }
 0x298   :  { %v2518_v39 = vrot.slane %v2517_v63, 2  ;;  %v2725_v31 = vadd.f32 %v2724_v16, %v2723_v60 }
 0x29a   :  { %v2519_v57 = vadd.f32 %v2518_v39, %v2517_v63  ;;  %v2726_v17 = vrot.slane %v2725_v31, 2 }
 0x29c   :  { %v2520_v44 = vrot.slane %v2519_v57, 1  ;;  %v2727_v14 = vadd.f32 %v2726_v17, %v2725_v31 }
 0x29e   :  { %v2521_v47 = vadd.f32 %v2520_v44, %v2519_v57  ;;  %v2728_v28 = vrot.slane %v2727_v14, 1 }
 0x2a0   :  { %v2522_v41 = vadd.f32 %v2521_v47, %v2416_v58  ;;  %v2729_v13 = vadd.f32 %v2728_v28, %v2727_v14 }
 0x2a2   :  { %2523 = vst [vmem:[%s4991_s4] sm:$0x1] %v2522_v41  ;;  %v2730_v4 = vadd.f32 %v2729_v13, %v2524_v8 }
 0x2a4   :  { %2731 = vst [vmem:[%s4992_s5] sm:$0x1] %v2730_v4 }

// kernel: cnn_base_forward.6
= control target key start
LH: loop header
LB: loop body
LE: loop exit
PB: predicated region body
PF: predicated region fallthrough
CT: control target
= control target key end

     0   :  { %s2138_s3 = inlined_call_operand.vmem [shape: bf16[512,128], index: 3, kind: input, shape index: {}]   ;;  %s2139_s0 = inlined_call_operand.vmem [shape: bf16[176,512], index: 0, kind: input, shape index: {}]   ;;  %s2140_s1 = inlined_call_operand.vmem [shape: f32[1,512], index: 1, kind: input, shape index: {}]   ;;  %s2141_s2 = inlined_call_operand.vmem [shape: f32[1,512], index: 2, kind: input, shape index: {}]   ;;  %s2142_s4 = inlined_call_operand.vmem [shape: f32[1,128], index: 4, kind: input, shape index: {}]   ;;  %s2143_s5 = inlined_call_operand.vmem [shape: bf16[176,128], index: 5, kind: output, shape index: {0}]   ;;  %s2144_s6 = inlined_call_operand.vmem [shape: f32[1,1,128], index: 6, kind: output, shape index: {1}]   ;;  %s2145_s7 = inlined_call_operand.vmem [shape: f32[1,1,128], index: 7, kind: output, shape index: {2}]  }
   0x1   :  { %v1459_v0 = vld [vmem:[%s2138_s3 + $0x38] sm:$0xff]  ;;  %v1458_v4 = vld [vmem:[%s2138_s3 + $0x30] sm:$0xff]  ;;  %v1457_v8 = vld [vmem:[%s2138_s3 + $0x28] sm:$0xff] }
   0x2   :  { %v1467_v1 = vld [vmem:[%s2138_s3 + $0x78] sm:$0xff]  ;;  %695 = vmatpush.bf16.msra.mxu0 %v1459_v0  ;;  %v1466_v5 = vld [vmem:[%s2138_s3 + $0x70] sm:$0xff]  ;;  %v1465_v9 = vld [vmem:[%s2138_s3 + $0x68] sm:$0xff] }
   0x3   :  { %v1475_v2 = vld [vmem:[%s2138_s3 + $0xb8] sm:$0xff]  ;;  %759 = vmatpush.bf16.msra.mxu1 %v1467_v1  ;;  %v1474_v6 = vld [vmem:[%s2138_s3 + $0xb0] sm:$0xff]  ;;  %v1473_v10 = vld [vmem:[%s2138_s3 + $0xa8] sm:$0xff] }
   0x4   :  { %v1483_v3 = vld [vmem:[%s2138_s3 + $0xf8] sm:$0xff]  ;;  %823 = vmatpush.bf16.msra.mxu2 %v1475_v2  ;;  %v1482_v7 = vld [vmem:[%s2138_s3 + $0xf0] sm:$0xff]  ;;  %v1481_v11 = vld [vmem:[%s2138_s3 + $0xe8] sm:$0xff] }
   0x5   :  { %887 = vmatpush.bf16.msra.mxu3 %v1483_v3  ;;  %v1456_v12 = vld [vmem:[%s2138_s3 + $0x20] sm:$0xff]  ;;  %v65_v17 = vld [vmem:[%s2139_s0 + $0x10] sm:$0xff]  ;;  %v1455_v19 = vld [vmem:[%s2138_s3 + $0x18] sm:$0xff] }
   0x6   :  { %696 = vmatpush.bf16.msra.mxu0 %v1458_v4  ;;  %v1464_v13 = vld [vmem:[%s2138_s3 + $0x60] sm:$0xff]  ;;  %v1463_v20 = vld [vmem:[%s2138_s3 + $0x58] sm:$0xff]  ;;  %v64_v21 = vld [vmem:[%s2139_s0 + $0x8] sm:$0xff]  ;;  %v111_v26 = vunpack.c.l.bf16 %v65_v17  ;;  %v112_v30 = vunpack.c.h.bf16 %v65_v17 }
   0x7   :  { %760 = vmatpush.bf16.msra.mxu1 %v1466_v5  ;;  %v1472_v14 = vld [vmem:[%s2138_s3 + $0xa0] sm:$0xff]  ;;  %v1471_v22 = vld [vmem:[%s2138_s3 + $0x98] sm:$0xff]  ;;  %v109_v32 = vunpack.c.l.bf16 %v64_v21  ;;  %v1454_v34 = vld [vmem:[%s2138_s3 + $0x10] sm:$0xff]  ;;  %v110_v37 = vunpack.c.h.bf16 %v64_v21 }
   0x8   :  { %824 = vmatpush.bf16.msra.mxu2 %v1474_v6  ;;  %v1480_v15 = vld [vmem:[%s2138_s3 + $0xe0] sm:$0xff]  ;;  %v1479_v23 = vld [vmem:[%s2138_s3 + $0xd8] sm:$0xff]  ;;  %v1462_v35 = vld [vmem:[%s2138_s3 + $0x50] sm:$0xff] }
   0x9   :  { %888 = vmatpush.bf16.msra.mxu3 %v1482_v7  ;;  %v63_v16 = vld [vmem:[%s2139_s0] sm:$0xff]  ;;  %v66_v24 = vld [vmem:[%s2139_s0 + $0x18] sm:$0xff]  ;;  %v1470_v40 = vld [vmem:[%s2138_s3 + $0x90] sm:$0xff] }
   0xa   :  { %697 = vmatpush.bf16.msra.mxu0 %v1457_v8  ;;  %v195_v18 = vld [vmem:[%s2140_s1] sm:$0xf]  ;;  %v107_v25 = vunpack.c.l.bf16 %v63_v16  ;;  %v108_v28 = vunpack.c.h.bf16 %v63_v16  ;;  %v113_v36 = vunpack.c.l.bf16 %v66_v24  ;;  %v114_v38 = vunpack.c.h.bf16 %v66_v24  ;;  %v1478_v41 = vld [vmem:[%s2138_s3 + $0xd0] sm:$0xff]  ;;  %v1453_v50 = vld [vmem:[%s2138_s3 + $0x8] sm:$0xff] }
   0xb   :  { %761 = vmatpush.bf16.msra.mxu1 %v1465_v9  ;;  %v1667_v27 = vperm.slane %v195_v18, 0  ;;  %v293_v29 = vld [vmem:[%s2141_s2] sm:$0xf]  ;;  %v1672_v31 = vperm.slane %v195_v18, 1  ;;  %v1674_v33 = vperm.slane %v195_v18, 2  ;;  %v1682_v39 = vperm.slane %v195_v18, 3 }
   0xc   :  { %825 = vmatpush.bf16.msra.mxu2 %v1473_v10  ;;  %v1692_v44 = vperm.slane %v293_v29, 0  ;;  %v1694_v45 = vperm.slane %v293_v29, 1  ;;  %v1699_v49 = vperm.slane %v293_v29, 2  ;;  %v1461_v51 = vld [vmem:[%s2138_s3 + $0x48] sm:$0xff]  ;;  %v1710_v55 = vperm.slane %v293_v29, 3  ;;  %v1452_v63 = vld [vmem:[%s2138_s3] sm:$0xff] }
   0xd   :  { %889 = vmatpush.bf16.msra.mxu3 %v1481_v11  ;;  %v205_v42 = vmul.f32 %v1667_v27, %v107_v25  ;;  %v209_v43 = vmul.f32 %v1667_v27, %v111_v26  ;;  %v206_v46 = vmul.f32 %v1672_v31, %v108_v28  ;;  %v210_v47 = vmul.f32 %v1672_v31, %v112_v30  ;;  %v1469_v56 = vld [vmem:[%s2138_s3 + $0x88] sm:$0xff]  ;;  %v1460_v0 = vld [vmem:[%s2138_s3 + $0x40] sm:$0xff]  ;;  %v69_v11 = vld [vmem:[%s2139_s0 + $0x30] sm:$0xff] }
   0xe   :  { %698 = vmatpush.bf16.msra.mxu0 %v1456_v12  ;;  %v207_v48 = vmul.f32 %v1674_v33, %v109_v32  ;;  %v211_v52 = vmul.f32 %v1674_v33, %v113_v36  ;;  %v208_v53 = vmul.f32 %v1682_v39, %v110_v37  ;;  %v212_v54 = vmul.f32 %v1682_v39, %v114_v38  ;;  %v1477_v57 = vld [vmem:[%s2138_s3 + $0xc8] sm:$0xff]  ;;  %v1468_v4 = vld [vmem:[%s2138_s3 + $0x80] sm:$0xff] }
   0xf   :  { %762 = vmatpush.bf16.msra.mxu1 %v1464_v13  ;;  %v303_v58 = vadd.f32 %v1692_v44, %v205_v42  ;;  %v307_v59 = vadd.f32 %v1692_v44, %v209_v43  ;;  %v304_v60 = vadd.f32 %v1694_v45, %v206_v46  ;;  %v308_v61 = vadd.f32 %v1694_v45, %v210_v47  ;;  %v1476_v5 = vld [vmem:[%s2138_s3 + $0xc0] sm:$0xff]  ;;  %v68_v12 = vld [vmem:[%s2139_s0 + $0x28] sm:$0xff]  ;;  %v70_v13 = vld [vmem:[%s2139_s0 + $0x38] sm:$0xff] }
  0x10   :  { %826 = vmatpush.bf16.msra.mxu2 %v1472_v14  ;;  %v305_v62 = vadd.f32 %v1699_v49, %v207_v48  ;;  %v309_v1 = vadd.f32 %v1699_v49, %v211_v52  ;;  %v306_v2 = vadd.f32 %v1710_v55, %v208_v53  ;;  %v310_v3 = vadd.f32 %v1710_v55, %v212_v54  ;;  %v67_v10 = vld [vmem:[%s2139_s0 + $0x20] sm:$0xff]  ;;  %v74_v52 = vld [vmem:[%s2139_s0 + $0x58] sm:$0xff] }
  0x11   :  { %890 = vmatpush.bf16.msra.mxu3 %v1480_v15  ;;  %v391_v6 = vpack.c.bf16 %v307_v59, %v303_v58  ;;  %v392_v7 = vpack.c.bf16 %v308_v61, %v304_v60  ;;  %v115_v14 = vunpack.c.l.bf16 %v67_v10  ;;  %v119_v15 = vunpack.c.l.bf16 %v69_v11  ;;  %v71_v48 = vld [vmem:[%s2139_s0 + $0x40] sm:$0xff] }
  0x12   :  { %699 = vmatpush.bf16.msra.mxu0 %v1455_v19  ;;  %v393_v8 = vpack.c.bf16 %v309_v1, %v305_v62  ;;  %v394_v9 = vpack.c.bf16 %v310_v3, %v306_v2  ;;  %v116_v16 = vunpack.c.h.bf16 %v67_v10  ;;  %v120_v17 = vunpack.c.h.bf16 %v69_v11 }
  0x13   :  { %763 = vmatpush.bf16.msra.mxu1 %v1463_v20  ;;  %v117_v18 = vunpack.c.l.bf16 %v68_v12  ;;  %v121_v19 = vunpack.c.l.bf16 %v70_v13  ;;  %v118_v20 = vunpack.c.h.bf16 %v68_v12  ;;  %v122_v21 = vunpack.c.h.bf16 %v70_v13 }
  0x14   :  { %827 = vmatpush.bf16.msra.mxu2 %v1471_v22  ;;  %v213_v22 = vmul.f32 %v1667_v27, %v115_v14  ;;  %v214_v24 = vmul.f32 %v1672_v31, %v116_v16  ;;  %v218_v25 = vmul.f32 %v1672_v31, %v120_v17  ;;  %v123_v53 = vunpack.c.l.bf16 %v71_v48 }
  0x15   :  { %891 = vmatpush.bf16.msra.mxu3 %v1479_v23  ;;  %v217_v23 = vmul.f32 %v1667_v27, %v119_v15  ;;  %v215_v26 = vmul.f32 %v1674_v33, %v117_v18  ;;  %v219_v28 = vmul.f32 %v1674_v33, %v121_v19  ;;  %v216_v29 = vmul.f32 %v1682_v39, %v118_v20  ;;  %v75_v18 = vld [vmem:[%s2139_s0 + $0x60] sm:$0xff]  ;;  %v77_v19 = vld [vmem:[%s2139_s0 + $0x70] sm:$0xff]  ;;  %v76_v20 = vld [vmem:[%s2139_s0 + $0x68] sm:$0xff] }
  0x16   :  { %700 = vmatpush.bf16.msra.mxu0 %v1454_v34  ;;  %v220_v30 = vmul.f32 %v1682_v39, %v122_v21  ;;  %v311_v32 = vadd.f32 %v1692_v44, %v213_v22  ;;  %v316_v36 = vadd.f32 %v1694_v45, %v218_v25  ;;  %v129_v59 = vunpack.c.l.bf16 %v74_v52  ;;  %v78_v21 = vld [vmem:[%s2139_s0 + $0x78] sm:$0xff] }
  0x17   :  { %764 = vmatpush.bf16.msra.mxu1 %v1462_v35  ;;  %v315_v34 = vadd.f32 %v1692_v44, %v217_v23  ;;  %v312_v35 = vadd.f32 %v1694_v45, %v214_v24  ;;  %v313_v37 = vadd.f32 %v1699_v49, %v215_v26  ;;  %v317_v38 = vadd.f32 %v1699_v49, %v219_v28 }
  0x18   :  { %828 = vmatpush.bf16.msra.mxu2 %v1470_v40  ;;  %v314_v40 = vadd.f32 %v1710_v55, %v216_v29  ;;  %v130_v61 = vunpack.c.h.bf16 %v74_v52  ;;  %v221_v62 = vmul.f32 %v1667_v27, %v123_v53  ;;  %v227_v3 = vmul.f32 %v1674_v33, %v129_v59  ;;  %v81_v59 = vld [vmem:[%s2139_s0 + $0x90] sm:$0xff] }
  0x19   :  { %892 = vmatpush.bf16.msra.mxu3 %v1478_v41  ;;  %v318_v41 = vadd.f32 %v1710_v55, %v220_v30  ;;  %v395_v42 = vpack.c.bf16 %v315_v34, %v311_v32  ;;  %v396_v43 = vpack.c.bf16 %v316_v36, %v312_v35  ;;  %v397_v46 = vpack.c.bf16 %v317_v38, %v313_v37 }
  0x1a   :  { %701 = vmatpush.bf16.msra.mxu0 %v1453_v50  ;;  %v73_v50 = vld [vmem:[%s2139_s0 + $0x50] sm:$0xff]  ;;  %v325_v11 = vadd.f32 %v1699_v49, %v227_v3  ;;  %v131_v22 = vunpack.c.l.bf16 %v75_v18  ;;  %v135_v23 = vunpack.c.l.bf16 %v77_v19  ;;  %v132_v24 = vunpack.c.h.bf16 %v75_v18 }
  0x1b   :  { %765 = vmatpush.bf16.msra.mxu1 %v1461_v51  ;;  %v398_v47 = vpack.c.bf16 %v318_v41, %v314_v40  ;;  %v72_v51 = vld [vmem:[%s2139_s0 + $0x48] sm:$0xff]  ;;  %v127_v54 = vunpack.c.l.bf16 %v73_v50  ;;  %v136_v25 = vunpack.c.h.bf16 %v77_v19  ;;  %v133_v26 = vunpack.c.l.bf16 %v76_v20 }
  0x1c   :  { %829 = vmatpush.bf16.msra.mxu2 %v1469_v56  ;;  %v124_v56 = vunpack.c.h.bf16 %v71_v48  ;;  %v125_v58 = vunpack.c.l.bf16 %v72_v51  ;;  %v126_v60 = vunpack.c.h.bf16 %v72_v51  ;;  %v137_v28 = vunpack.c.l.bf16 %v78_v21 }
  0x1d   :  { %893 = vmatpush.bf16.msra.mxu3 %v1477_v57  ;;  %v128_v57 = vunpack.c.h.bf16 %v73_v50  ;;  %v134_v29 = vunpack.c.h.bf16 %v76_v20  ;;  %v138_v30 = vunpack.c.h.bf16 %v78_v21  ;;  %v229_v32 = vmul.f32 %v1667_v27, %v131_v22 }
  0x1e   :  { %702 = vmatpush.bf16.msra.mxu0 %v1452_v63  ;;  %v225_v63 = vmul.f32 %v1667_v27, %v127_v54  ;;  %v223_v2 = vmul.f32 %v1674_v33, %v125_v58  ;;  %v233_v34 = vmul.f32 %v1667_v27, %v135_v23  ;;  %v230_v35 = vmul.f32 %v1672_v31, %v132_v24  ;;  %v79_v58 = vld [vmem:[%s2139_s0 + $0x80] sm:$0xff] }
  0x1f   :  { %766 = vmatpush.bf16.msra.mxu1 %v1460_v0  ;;  %v222_v0 = vmul.f32 %v1672_v31, %v124_v56  ;;  %v226_v1 = vmul.f32 %v1672_v31, %v128_v57  ;;  %v234_v36 = vmul.f32 %v1672_v31, %v136_v25  ;;  %v231_v37 = vmul.f32 %v1674_v33, %v133_v26  ;;  %v83_v26 = vld [vmem:[%s2139_s0 + $0xa0] sm:$0xff] }
  0x20   :  { %830 = vmatpush.bf16.msra.mxu2 %v1468_v4  ;;  %v224_v4 = vmul.f32 %v1682_v39, %v126_v60  ;;  %v321_v10 = vadd.f32 %v1699_v49, %v223_v2  ;;  %v235_v38 = vmul.f32 %v1674_v33, %v137_v28  ;;  %v232_v40 = vmul.f32 %v1682_v39, %v134_v29  ;;  %v80_v60 = vld [vmem:[%s2139_s0 + $0x88] sm:$0xff]  ;;  %v85_v28 = vld [vmem:[%s2139_s0 + $0xb0] sm:$0xff] }
  0x21   :  { %894 = vmatpush.bf16.msra.mxu3 %v1476_v5  ;;  %703 = vmatmul.bf16.vlgmr.msra.gmra.mxu0 %v391_v6  ;;  %v228_v5 = vmul.f32 %v1682_v39, %v130_v61  ;;  %v319_v6 = vadd.f32 %v1692_v44, %v221_v62  ;;  %v236_v41 = vmul.f32 %v1682_v39, %v138_v30  ;;  %v82_v61 = vld [vmem:[%s2139_s0 + $0x98] sm:$0xff]  ;;  %v139_v62 = vunpack.c.l.bf16 %v79_v58  ;;  %v84_v29 = vld [vmem:[%s2139_s0 + $0xa8] sm:$0xff] }
  0x22   :  { %767 = vmatmul.bf16.vlgmr.msra.gmra.mxu1 %v392_v7  ;;  %v323_v7 = vadd.f32 %v1692_v44, %v225_v63  ;;  %v322_v12 = vadd.f32 %v1710_v55, %v224_v4  ;;  %v401_v16 = vpack.c.bf16 %v325_v11, %v321_v10  ;;  %v329_v48 = vadd.f32 %v1699_v49, %v231_v37  ;;  %v86_v30 = vld [vmem:[%s2139_s0 + $0xb8] sm:$0xff] }
  0x23   :  { %831 = vmatmul.bf16.vlgmr.msra.gmra.mxu2 %v393_v8  ;;  %v320_v8 = vadd.f32 %v1694_v45, %v222_v0  ;;  %v326_v13 = vadd.f32 %v1710_v55, %v228_v5  ;;  %v333_v50 = vadd.f32 %v1699_v49, %v235_v38  ;;  %v330_v51 = vadd.f32 %v1710_v55, %v232_v40 }
  0x24   :  { %895 = vmatmul.bf16.vlgmr.msra.gmra.mxu3 %v394_v9  ;;  %v324_v9 = vadd.f32 %v1694_v45, %v226_v1  ;;  %v399_v14 = vpack.c.bf16 %v323_v7, %v319_v6  ;;  %v334_v52 = vadd.f32 %v1710_v55, %v236_v41  ;;  %v143_v63 = vunpack.c.l.bf16 %v81_v59 }
  0x25   :  { %v402_v17 = vpack.c.bf16 %v326_v13, %v322_v12  ;;  %v405_v56 = vpack.c.bf16 %v333_v50, %v329_v48  ;;  %v140_v0 = vunpack.c.h.bf16 %v79_v58  ;;  %v144_v1 = vunpack.c.h.bf16 %v81_v59 }
  0x26   :  { %v400_v15 = vpack.c.bf16 %v324_v9, %v320_v8  ;;  %v406_v57 = vpack.c.bf16 %v334_v52, %v330_v51  ;;  %v141_v2 = vunpack.c.l.bf16 %v80_v60  ;;  %v145_v3 = vunpack.c.l.bf16 %v82_v61 }
  0x27   :  { %v142_v4 = vunpack.c.h.bf16 %v80_v60  ;;  %v146_v5 = vunpack.c.h.bf16 %v82_v61  ;;  %v237_v6 = vmul.f32 %v1667_v27, %v139_v62  ;;  %v241_v7 = vmul.f32 %v1667_v27, %v143_v63 }
  0x28   :  { %v238_v8 = vmul.f32 %v1672_v31, %v140_v0  ;;  %v242_v9 = vmul.f32 %v1672_v31, %v144_v1  ;;  %v239_v10 = vmul.f32 %v1674_v33, %v141_v2  ;;  %v243_v11 = vmul.f32 %v1674_v33, %v145_v3  ;;  %v87_v2 = vld [vmem:[%s2139_s0 + $0xc0] sm:$0xff]  ;;  %v89_v3 = vld [vmem:[%s2139_s0 + $0xd0] sm:$0xff] }
  0x29   :  { %v240_v12 = vmul.f32 %v1682_v39, %v142_v4  ;;  %v244_v13 = vmul.f32 %v1682_v39, %v146_v5  ;;  %v149_v37 = vunpack.c.l.bf16 %v84_v29  ;;  %v153_v38 = vunpack.c.l.bf16 %v86_v30  ;;  %v88_v4 = vld [vmem:[%s2139_s0 + $0xc8] sm:$0xff]  ;;  %v90_v5 = vld [vmem:[%s2139_s0 + $0xd8] sm:$0xff] }
  0x2a   :  { %v337_v18 = vadd.f32 %v1699_v49, %v239_v10  ;;  %v341_v19 = vadd.f32 %v1699_v49, %v243_v11  ;;  %v150_v40 = vunpack.c.h.bf16 %v84_v29  ;;  %v154_v41 = vunpack.c.h.bf16 %v86_v30 }
  0x2b   :  { %v338_v20 = vadd.f32 %v1710_v55, %v240_v12  ;;  %v342_v21 = vadd.f32 %v1710_v55, %v244_v13  ;;  %v247_v48 = vmul.f32 %v1674_v33, %v149_v37  ;;  %v251_v50 = vmul.f32 %v1674_v33, %v153_v38  ;;  %v91_v37 = vld [vmem:[%s2139_s0 + $0xe0] sm:$0xff]  ;;  %v93_v38 = vld [vmem:[%s2139_s0 + $0xf0] sm:$0xff] }
  0x2c   :  { %v409_v24 = vpack.c.bf16 %v341_v19, %v337_v18  ;;  %v248_v51 = vmul.f32 %v1682_v39, %v150_v40  ;;  %v252_v52 = vmul.f32 %v1682_v39, %v154_v41  ;;  %v157_v10 = vunpack.c.l.bf16 %v88_v4  ;;  %v92_v40 = vld [vmem:[%s2139_s0 + $0xe8] sm:$0xff]  ;;  %v94_v41 = vld [vmem:[%s2139_s0 + $0xf8] sm:$0xff] }
  0x2d   :  { %v410_v25 = vpack.c.bf16 %v342_v21, %v338_v20  ;;  %v345_v58 = vadd.f32 %v1699_v49, %v247_v48  ;;  %v349_v59 = vadd.f32 %v1699_v49, %v251_v50  ;;  %v161_v11 = vunpack.c.l.bf16 %v90_v5 }
  0x2e   :  { %v346_v60 = vadd.f32 %v1710_v55, %v248_v51  ;;  %v350_v61 = vadd.f32 %v1710_v55, %v252_v52  ;;  %v158_v12 = vunpack.c.h.bf16 %v88_v4  ;;  %v162_v13 = vunpack.c.h.bf16 %v90_v5 }
  0x2f   :  { %v413_v0 = vpack.c.bf16 %v349_v59, %v345_v58  ;;  %v255_v18 = vmul.f32 %v1674_v33, %v157_v10  ;;  %v259_v19 = vmul.f32 %v1674_v33, %v161_v11  ;;  %v165_v48 = vunpack.c.l.bf16 %v92_v40  ;;  %v95_v10 = vld [vmem:[%s2139_s0 + $0x100] sm:$0xff]  ;;  %v97_v11 = vld [vmem:[%s2139_s0 + $0x110] sm:$0xff] }
  0x30   :  { %v414_v1 = vpack.c.bf16 %v350_v61, %v346_v60  ;;  %v256_v20 = vmul.f32 %v1682_v39, %v158_v12  ;;  %v260_v21 = vmul.f32 %v1682_v39, %v162_v13  ;;  %v169_v50 = vunpack.c.l.bf16 %v94_v41  ;;  %v96_v12 = vld [vmem:[%s2139_s0 + $0x108] sm:$0xff]  ;;  %v98_v13 = vld [vmem:[%s2139_s0 + $0x118] sm:$0xff] }
  0x31   :  { %708 = vmatmul.bf16.gmra.mxu0 %v395_v42  ;;  %v327_v42 = vadd.f32 %v1692_v44, %v229_v32  ;;  %v147_v32 = vunpack.c.l.bf16 %v83_v26  ;;  %v166_v51 = vunpack.c.h.bf16 %v92_v40  ;;  %v170_v52 = vunpack.c.h.bf16 %v94_v41 }
  0x32   :  { %772 = vmatmul.bf16.gmra.mxu1 %v396_v43  ;;  %v331_v43 = vadd.f32 %v1692_v44, %v233_v34  ;;  %v151_v34 = vunpack.c.l.bf16 %v85_v28  ;;  %v354_v29 = vadd.f32 %v1710_v55, %v256_v20  ;;  %v358_v30 = vadd.f32 %v1710_v55, %v260_v21 }
  0x33   :  { %836 = vmatmul.bf16.gmra.mxu2 %v397_v46  ;;  %v328_v46 = vadd.f32 %v1694_v45, %v230_v35  ;;  %v148_v35 = vunpack.c.h.bf16 %v83_v26  ;;  %v353_v26 = vadd.f32 %v1699_v49, %v255_v18  ;;  %v263_v58 = vmul.f32 %v1674_v33, %v165_v48  ;;  %v101_v48 = vld [vmem:[%s2139_s0 + $0x130] sm:$0xff] }
  0x34   :  { %900 = vmatmul.bf16.gmra.mxu3 %v398_v47  ;;  %v332_v47 = vadd.f32 %v1694_v45, %v234_v36  ;;  %v403_v53 = vpack.c.bf16 %v331_v43, %v327_v42  ;;  %v152_v36 = vunpack.c.h.bf16 %v85_v28  ;;  %v245_v42 = vmul.f32 %v1667_v27, %v147_v32 }
  0x35   :  { %v249_v43 = vmul.f32 %v1667_v27, %v151_v34  ;;  %v357_v28 = vadd.f32 %v1699_v49, %v259_v19  ;;  %v267_v59 = vmul.f32 %v1674_v33, %v169_v50  ;;  %v264_v60 = vmul.f32 %v1682_v39, %v166_v51 }
  0x36   :  { %v404_v54 = vpack.c.bf16 %v332_v47, %v328_v46  ;;  %v246_v46 = vmul.f32 %v1672_v31, %v148_v35  ;;  %v250_v47 = vmul.f32 %v1672_v31, %v152_v36  ;;  %v418_v36 = vpack.c.bf16 %v358_v30, %v354_v29 }
  0x37   :  { %v417_v35 = vpack.c.bf16 %v357_v28, %v353_v26  ;;  %v268_v61 = vmul.f32 %v1682_v39, %v170_v52  ;;  %v362_v4 = vadd.f32 %v1710_v55, %v264_v60  ;;  %v173_v18 = vunpack.c.l.bf16 %v96_v12 }
  0x38   :  { %v177_v19 = vunpack.c.l.bf16 %v98_v13  ;;  %v174_v20 = vunpack.c.h.bf16 %v96_v12  ;;  %v178_v21 = vunpack.c.h.bf16 %v98_v13 }
  0x39   :  { %v366_v5 = vadd.f32 %v1710_v55, %v268_v61  ;;  %v271_v26 = vmul.f32 %v1674_v33, %v173_v18  ;;  %v184_v61 = vunpack.c.h.bf16 %v101_v48 }
  0x3a   :  { %v275_v28 = vmul.f32 %v1674_v33, %v177_v19  ;;  %v272_v29 = vmul.f32 %v1682_v39, %v174_v20  ;;  %v276_v30 = vmul.f32 %v1682_v39, %v178_v21 }
  0x3c   :  { %v370_v40 = vadd.f32 %v1710_v55, %v272_v29  ;;  %v374_v41 = vadd.f32 %v1710_v55, %v276_v30  ;;  %v105_v29 = vld [vmem:[%s2139_s0 + $0x150] sm:$0xff] }
  0x41   :  { %713 = vmatmul.bf16.gmra.mxu0 %v399_v14  ;;  %v335_v14 = vadd.f32 %v1692_v44, %v237_v6  ;;  %v155_v6 = vunpack.c.l.bf16 %v87_v2 }
  0x42   :  { %777 = vmatmul.bf16.gmra.mxu1 %v400_v15  ;;  %v339_v15 = vadd.f32 %v1692_v44, %v241_v7  ;;  %v159_v7 = vunpack.c.l.bf16 %v89_v3 }
  0x43   :  { %841 = vmatmul.bf16.gmra.mxu2 %v401_v16  ;;  %v336_v16 = vadd.f32 %v1694_v45, %v238_v8  ;;  %v156_v8 = vunpack.c.h.bf16 %v87_v2  ;;  %v361_v2 = vadd.f32 %v1699_v49, %v263_v58 }
  0x44   :  { %905 = vmatmul.bf16.gmra.mxu3 %v402_v17  ;;  %v340_v17 = vadd.f32 %v1694_v45, %v242_v9  ;;  %v407_v22 = vpack.c.bf16 %v339_v15, %v335_v14  ;;  %v160_v9 = vunpack.c.h.bf16 %v89_v3  ;;  %v253_v14 = vmul.f32 %v1667_v27, %v155_v6 }
  0x45   :  { %v257_v15 = vmul.f32 %v1667_v27, %v159_v7  ;;  %v365_v3 = vadd.f32 %v1699_v49, %v267_v59  ;;  %v183_v59 = vunpack.c.l.bf16 %v101_v48 }
  0x46   :  { %v408_v23 = vpack.c.bf16 %v340_v17, %v336_v16  ;;  %v254_v16 = vmul.f32 %v1672_v31, %v156_v8  ;;  %v258_v17 = vmul.f32 %v1672_v31, %v160_v9  ;;  %v422_v9 = vpack.c.bf16 %v366_v5, %v362_v4 }
  0x47   :  { %v421_v8 = vpack.c.bf16 %v365_v3, %v361_v2  ;;  %v281_v4 = vmul.f32 %v1667_v27, %v183_v59 }
  0x49   :  { %v379_v18 = vadd.f32 %v1692_v44, %v281_v4 }
  0x51   :  { %718 = vmatmul.bf16.gmra.mxu0 %v403_v53  ;;  %v343_v53 = vadd.f32 %v1692_v44, %v245_v42  ;;  %v163_v42 = vunpack.c.l.bf16 %v91_v37 }
  0x52   :  { %782 = vmatmul.bf16.gmra.mxu1 %v404_v54  ;;  %v347_v54 = vadd.f32 %v1692_v44, %v249_v43  ;;  %v167_v43 = vunpack.c.l.bf16 %v93_v38 }
  0x53   :  { %846 = vmatmul.bf16.gmra.mxu2 %v405_v56  ;;  %v344_v56 = vadd.f32 %v1694_v45, %v246_v46  ;;  %v164_v46 = vunpack.c.h.bf16 %v91_v37  ;;  %v369_v37 = vadd.f32 %v1699_v49, %v271_v26  ;;  %v103_v26 = vld [vmem:[%s2139_s0 + $0x140] sm:$0xff] }
  0x54   :  { %910 = vmatmul.bf16.gmra.mxu3 %v406_v57  ;;  %v348_v57 = vadd.f32 %v1694_v45, %v250_v47  ;;  %v411_v62 = vpack.c.bf16 %v347_v54, %v343_v53  ;;  %v168_v47 = vunpack.c.h.bf16 %v93_v38  ;;  %v261_v53 = vmul.f32 %v1667_v27, %v163_v42  ;;  %v1965_v42 = vld [vmem:[%s2142_s4] ss:$0 sm:$0xff] }
  0x55   :  { %v265_v54 = vmul.f32 %v1667_v27, %v167_v43  ;;  %v373_v38 = vadd.f32 %v1699_v49, %v275_v28  ;;  %v187_v48 = vunpack.c.l.bf16 %v103_v26 }
  0x56   :  { %v412_v63 = vpack.c.bf16 %v348_v57, %v344_v56  ;;  %v262_v56 = vmul.f32 %v1672_v31, %v164_v46  ;;  %v266_v57 = vmul.f32 %v1672_v31, %v168_v47  ;;  %v99_v47 = vld [vmem:[%s2139_s0 + $0x120] sm:$0xff] }
  0x57   :  { %v425_v52 = vpack.c.bf16 %v373_v38, %v369_v37  ;;  %v179_v58 = vunpack.c.l.bf16 %v99_v47  ;;  %v180_v60 = vunpack.c.h.bf16 %v99_v47  ;;  %v104_v37 = vld [vmem:[%s2139_s0 + $0x148] sm:$0xff]  ;;  %v106_v38 = vld [vmem:[%s2139_s0 + $0x158] sm:$0xff] }
  0x58   :  { %v194_v59 = vunpack.c.h.bf16 %v106_v38 }
  0x59   :  { %v277_v3 = vmul.f32 %v1667_v27, %v179_v58  ;;  %v190_v58 = vunpack.c.h.bf16 %v104_v37 }
  0x61   :  { %723 = vmatmul.bf16.gmra.mxu0 %v407_v22  ;;  %v351_v22 = vadd.f32 %v1692_v44, %v253_v14  ;;  %v171_v14 = vunpack.c.l.bf16 %v95_v10 }
  0x62   :  { %787 = vmatmul.bf16.gmra.mxu1 %v408_v23  ;;  %v355_v23 = vadd.f32 %v1692_v44, %v257_v15  ;;  %v175_v15 = vunpack.c.l.bf16 %v97_v11 }
  0x63   :  { %851 = vmatmul.bf16.gmra.mxu2 %v409_v24  ;;  %v352_v24 = vadd.f32 %v1694_v45, %v254_v16  ;;  %v172_v16 = vunpack.c.h.bf16 %v95_v10 }
  0x64   :  { %915 = vmatmul.bf16.gmra.mxu3 %v410_v25  ;;  %v356_v25 = vadd.f32 %v1694_v45, %v258_v17  ;;  %v415_v32 = vpack.c.bf16 %v355_v23, %v351_v22  ;;  %v176_v17 = vunpack.c.h.bf16 %v97_v11  ;;  %v269_v22 = vmul.f32 %v1667_v27, %v171_v14 }
  0x65   :  { %v273_v23 = vmul.f32 %v1667_v27, %v175_v15 }
  0x66   :  { %v416_v34 = vpack.c.bf16 %v356_v25, %v352_v24  ;;  %v270_v24 = vmul.f32 %v1672_v31, %v172_v16  ;;  %v274_v25 = vmul.f32 %v1672_v31, %v176_v17  ;;  %v375_v17 = vadd.f32 %v1692_v44, %v277_v3 }
  0x71   :  { %728 = vmatmul.bf16.gmra.mxu0 %v411_v62  ;;  %v359_v62 = vadd.f32 %v1692_v44, %v261_v53  ;;  %v426_v53 = vpack.c.bf16 %v374_v41, %v370_v40 }
  0x72   :  { %792 = vmatmul.bf16.gmra.mxu1 %v412_v63  ;;  %v363_v63 = vadd.f32 %v1692_v44, %v265_v54  ;;  %v100_v54 = vld [vmem:[%s2139_s0 + $0x128] sm:$0xff] }
  0x73   :  { %856 = vmatmul.bf16.gmra.mxu2 %v413_v0  ;;  %v360_v0 = vadd.f32 %v1694_v45, %v262_v56  ;;  %v102_v56 = vld [vmem:[%s2139_s0 + $0x138] sm:$0xff] }
  0x74   :  { %920 = vmatmul.bf16.gmra.mxu3 %v414_v1  ;;  %v364_v1 = vadd.f32 %v1694_v45, %v266_v57  ;;  %v419_v6 = vpack.c.bf16 %v363_v63, %v359_v62  ;;  %v181_v62 = vunpack.c.l.bf16 %v100_v54  ;;  %v185_v63 = vunpack.c.l.bf16 %v102_v56 }
  0x75   :  { %v186_v2 = vunpack.c.h.bf16 %v102_v56  ;;  %v189_v56 = vunpack.c.l.bf16 %v104_v37 }
  0x76   :  { %v420_v7 = vpack.c.bf16 %v364_v1, %v360_v0  ;;  %v182_v1 = vunpack.c.h.bf16 %v100_v54  ;;  %v283_v10 = vmul.f32 %v1674_v33, %v185_v63  ;;  %v192_v54 = vunpack.c.h.bf16 %v105_v29 }
  0x77   :  { %v284_v15 = vmul.f32 %v1682_v39, %v186_v2  ;;  %v285_v63 = vmul.f32 %v1667_v27, %v187_v48  ;;  %v287_v4 = vmul.f32 %v1674_v33, %v189_v56 }
  0x78   :  { %v280_v14 = vmul.f32 %v1682_v39, %v182_v1  ;;  %v290_v3 = vmul.f32 %v1672_v31, %v192_v54 }
  0x81   :  { %733 = vmatmul.bf16.gmra.mxu0 %v415_v32  ;;  %v367_v32 = vadd.f32 %v1692_v44, %v269_v22  ;;  %v381_v22 = vadd.f32 %v1699_v49, %v283_v10 }
  0x82   :  { %797 = vmatmul.bf16.gmra.mxu1 %v416_v34  ;;  %v371_v34 = vadd.f32 %v1692_v44, %v273_v23 }
  0x83   :  { %861 = vmatmul.bf16.gmra.mxu2 %v417_v35  ;;  %v368_v35 = vadd.f32 %v1694_v45, %v270_v24  ;;  %v378_v24 = vadd.f32 %v1710_v55, %v280_v14 }
  0x84   :  { %925 = vmatmul.bf16.gmra.mxu3 %v418_v36  ;;  %v372_v36 = vadd.f32 %v1694_v45, %v274_v25  ;;  %v423_v43 = vpack.c.bf16 %v371_v34, %v367_v32  ;;  %v382_v25 = vadd.f32 %v1710_v55, %v284_v15  ;;  %v427_v34 = vpack.c.bf16 %v379_v18, %v375_v17 }
  0x85   :  { %v292_v15 = vmul.f32 %v1682_v39, %v194_v59  ;;  %v383_v17 = vadd.f32 %v1692_v44, %v285_v63 }
  0x86   :  { %v424_v46 = vpack.c.bf16 %v372_v36, %v368_v35  ;;  %v430_v47 = vpack.c.bf16 %v382_v25, %v378_v24 }
  0x87   :  { %v390_v24 = vadd.f32 %v1710_v55, %v292_v15 }
  0x91   :  { %738 = vmatmul.bf16.gmra.mxu0 %v419_v6 }
  0x92   :  { %802 = vmatmul.bf16.gmra.mxu1 %v420_v7  ;;  %v278_v7 = vmul.f32 %v1672_v31, %v180_v60 }
  0x93   :  { %866 = vmatmul.bf16.gmra.mxu2 %v421_v8  ;;  %v282_v8 = vmul.f32 %v1672_v31, %v184_v61 }
  0x94   :  { %930 = vmatmul.bf16.gmra.mxu3 %v422_v9  ;;  %v279_v9 = vmul.f32 %v1674_v33, %v181_v62  ;;  %v376_v19 = vadd.f32 %v1694_v45, %v278_v7 }
  0x95   :  { %v380_v20 = vadd.f32 %v1694_v45, %v282_v8 }
  0x96   :  { %v377_v21 = vadd.f32 %v1699_v49, %v279_v9 }
  0x97   :  { %v428_v35 = vpack.c.bf16 %v380_v20, %v376_v19  ;;  %v388_v20 = vadd.f32 %v1694_v45, %v290_v3 }
  0x98   :  { %v429_v36 = vpack.c.bf16 %v381_v22, %v377_v21  ;;  %v385_v21 = vadd.f32 %v1699_v49, %v287_v4 }
  0x9e   :  { %v704_v50 = vpop.f32.mrf.mxu0 }
  0x9f   :  { %v768_v51 = vpop.f32.mrf.mxu1  ;;  %v705_v57 = vadd.f32 %v1965_v42, %v704_v50 }
  0xa1   :  { %743 = vmatmul.bf16.gmra.mxu0 %v423_v43  ;;  %v769_v0 = vadd.f32 %v768_v51, %v705_v57  ;;  %v191_v51 = vunpack.c.l.bf16 %v105_v29  ;;  %v193_v57 = vunpack.c.l.bf16 %v106_v38 }
  0xa2   :  { %807 = vmatmul.bf16.gmra.mxu1 %v424_v46 }
  0xa3   :  { %871 = vmatmul.bf16.gmra.mxu2 %v425_v52  ;;  %v188_v52 = vunpack.c.h.bf16 %v103_v26 }
  0xa4   :  { %935 = vmatmul.bf16.gmra.mxu3 %v426_v53 }
  0xa5   :  { %v286_v1 = vmul.f32 %v1672_v31, %v188_v52 }
  0xa6   :  { %v832_v5 = vpop.f32.mrf.mxu2  ;;  %v706_v12 = vpop.f32.mrf.mxu0 }
  0xa7   :  { %v896_v6 = vpop.f32.mrf.mxu3  ;;  %v833_v11 = vadd.f32 %v832_v5, %v769_v0  ;;  %v770_v13 = vpop.f32.mrf.mxu1  ;;  %v707_v16 = vadd.f32 %v1965_v42, %v706_v12  ;;  %v289_v0 = vmul.f32 %v1667_v27, %v191_v51  ;;  %v291_v5 = vmul.f32 %v1674_v33, %v193_v57 }
  0xa8   :  { %v288_v27 = vmul.f32 %v1682_v39, %v190_v58  ;;  %v384_v19 = vadd.f32 %v1694_v45, %v286_v1 }
  0xa9   :  { %v897_v23 = vadd.f32 %v896_v6, %v833_v11  ;;  %v771_v28 = vadd.f32 %v770_v13, %v707_v16  ;;  %v387_v18 = vadd.f32 %v1692_v44, %v289_v0  ;;  %v389_v39 = vadd.f32 %v1699_v49, %v291_v5 }
  0xab   :  { %v973_v40 = vmul.f32 0.2, %v897_v23  ;;  %vm951_vm0 = vcmp.ge.f32.partialorder %v897_v23, 0.0  ;;  %v433_v37 = vpack.c.bf16 %v389_v39, %v385_v21 }
  0xad   :  { %v995_v60 = vsel %vm951_vm0, %v897_v23, %v973_v40  ;;  %v386_v23 = vadd.f32 %v1710_v55, %v288_v27 }
  0xae   :  { %v834_v30 = vpop.f32.mrf.mxu2  ;;  %v709_v43 = vpop.f32.mrf.mxu0  ;;  %v1233_v6 = vmul.f32 %v995_v60, %v995_v60 }
  0xaf   :  { %v898_v32 = vpop.f32.mrf.mxu3  ;;  %v835_v41 = vadd.f32 %v834_v30, %v771_v28  ;;  %v773_v46 = vpop.f32.mrf.mxu1  ;;  %v710_v50 = vadd.f32 %v1965_v42, %v709_v43  ;;  %v434_v38 = vpack.c.bf16 %v390_v24, %v386_v23 }
  0xb1   :  { %v899_v53 = vadd.f32 %v898_v32, %v835_v41  ;;  %748 = vmatmul.bf16.gmra.mxu0 %v427_v34  ;;  %v774_v62 = vadd.f32 %v773_v46, %v710_v50  ;;  %v431_v32 = vpack.c.bf16 %v387_v18, %v383_v17  ;;  %v432_v34 = vpack.c.bf16 %v388_v20, %v384_v19 }
  0xb2   :  { %812 = vmatmul.bf16.gmra.mxu1 %v428_v35 }
  0xb3   :  { %vm952_vm1 = vcmp.ge.f32.partialorder %v899_v53, 0.0  ;;  %v974_v61 = vmul.f32 0.2, %v899_v53  ;;  %876 = vmatmul.bf16.gmra.mxu2 %v429_v36 }
  0xb4   :  { %940 = vmatmul.bf16.gmra.mxu3 %v430_v47 }
  0xb5   :  { %v996_v2 = vsel %vm952_vm1, %v899_v53, %v974_v61 }
  0xb6   :  { %v1487_v7 = vpack.c.bf16 %v996_v2, %v995_v60  ;;  %v1203_v8 = vadd.f32 %v996_v2, %v995_v60  ;;  %v1234_v9 = vmul.f32 %v996_v2, %v996_v2  ;;  %v837_v10 = vpop.f32.mrf.mxu2  ;;  %v711_v13 = vpop.f32.mrf.mxu0 }
  0xb7   :  { %v901_v11 = vpop.f32.mrf.mxu3  ;;  %v838_v12 = vadd.f32 %v837_v10, %v774_v62  ;;  %v775_v14 = vpop.f32.mrf.mxu1  ;;  %v712_v33 = vadd.f32 %v1965_v42, %v711_v13 }
  0xb8   :  { %1488 = vst [vmem:[%s2143_s5] sm:$0xff] %v1487_v7   ;;  %v1255_v31 = vadd.f32 %v1234_v9, %v1233_v6 }
  0xb9   :  { %v902_v16 = vadd.f32 %v901_v11, %v838_v12  ;;  %v776_v26 = vadd.f32 %v775_v14, %v712_v33 }
  0xbb   :  { %vm953_vm2 = vcmp.ge.f32.partialorder %v902_v16, 0.0  ;;  %v975_v22 = vmul.f32 0.2, %v902_v16 }
  0xbd   :  { %v997_v25 = vsel %vm953_vm2, %v902_v16, %v975_v22 }
  0xbe   :  { %v1204_v28 = vadd.f32 %v1203_v8, %v997_v25  ;;  %v1235_v29 = vmul.f32 %v997_v25, %v997_v25  ;;  %v839_v30 = vpop.f32.mrf.mxu2  ;;  %v714_v45 = vpop.f32.mrf.mxu0 }
  0xbf   :  { %v903_v44 = vpop.f32.mrf.mxu3  ;;  %v840_v35 = vadd.f32 %v839_v30, %v776_v26  ;;  %v778_v36 = vpop.f32.mrf.mxu1  ;;  %v715_v40 = vadd.f32 %v1965_v42, %v714_v45 }
  0xc0   :  { %v1256_v49 = vadd.f32 %v1255_v31, %v1235_v29 }
  0xc1   :  { %v904_v41 = vadd.f32 %v903_v44, %v840_v35  ;;  %753 = vmatmul.bf16.gmra.mxu0 %v431_v32  ;;  %v779_v43 = vadd.f32 %v778_v36, %v715_v40 }
  0xc2   :  { %817 = vmatmul.bf16.gmra.mxu1 %v432_v34 }
  0xc3   :  { %vm954_vm3 = vcmp.ge.f32.partialorder %v904_v41, 0.0  ;;  %v976_v55 = vmul.f32 0.2, %v904_v41  ;;  %881 = vmatmul.bf16.gmra.mxu2 %v433_v37 }
  0xc4   :  { %945 = vmatmul.bf16.gmra.mxu3 %v434_v38 }
  0xc5   :  { %v998_v46 = vsel %vm954_vm3, %v904_v41, %v976_v55 }
  0xc6   :  { %v1492_v47 = vpack.c.bf16 %v998_v46, %v997_v25  ;;  %v1205_v48 = vadd.f32 %v1204_v28, %v998_v46  ;;  %v1236_v50 = vmul.f32 %v998_v46, %v998_v46  ;;  %v842_v51 = vpop.f32.mrf.mxu2  ;;  %v716_v54 = vpop.f32.mrf.mxu0 }
  0xc7   :  { %v906_v52 = vpop.f32.mrf.mxu3  ;;  %v843_v53 = vadd.f32 %v842_v51, %v779_v43  ;;  %v780_v56 = vpop.f32.mrf.mxu1  ;;  %v717_v59 = vadd.f32 %v1965_v42, %v716_v54 }
  0xc8   :  { %1539 = vst [vmem:[%s2143_s5 + $0x8] sm:$0xff] %v1492_v47   ;;  %v1257_v57 = vadd.f32 %v1256_v49, %v1236_v50 }
  0xc9   :  { %v907_v58 = vadd.f32 %v906_v52, %v843_v53  ;;  %v781_v62 = vadd.f32 %v780_v56, %v717_v59 }
  0xcb   :  { %vm955_vm4 = vcmp.ge.f32.partialorder %v907_v58, 0.0  ;;  %v977_v60 = vmul.f32 0.2, %v907_v58 }
  0xcd   :  { %v999_v61 = vsel %vm955_vm4, %v907_v58, %v977_v60 }
  0xce   :  { %v1206_v63 = vadd.f32 %v1205_v48, %v999_v61  ;;  %v1237_v0 = vmul.f32 %v999_v61, %v999_v61  ;;  %v844_v1 = vpop.f32.mrf.mxu2  ;;  %v719_v4 = vpop.f32.mrf.mxu0 }
  0xcf   :  { %v908_v2 = vpop.f32.mrf.mxu3  ;;  %v845_v3 = vadd.f32 %v844_v1, %v781_v62  ;;  %v783_v5 = vpop.f32.mrf.mxu1  ;;  %v720_v7 = vadd.f32 %v1965_v42, %v719_v4 }
  0xd0   :  { %v1258_v6 = vadd.f32 %v1257_v57, %v1237_v0 }
  0xd1   :  { %v909_v8 = vadd.f32 %v908_v2, %v845_v3  ;;  %v784_v10 = vadd.f32 %v783_v5, %v720_v7 }
  0xd3   :  { %vm956_vm5 = vcmp.ge.f32.partialorder %v909_v8, 0.0  ;;  %v978_v9 = vmul.f32 0.2, %v909_v8 }
  0xd5   :  { %v1000_v11 = vsel %vm956_vm5, %v909_v8, %v978_v9 }
  0xd6   :  { %v1497_v12 = vpack.c.bf16 %v1000_v11, %v999_v61  ;;  %v1207_v13 = vadd.f32 %v1206_v63, %v1000_v11  ;;  %v1238_v14 = vmul.f32 %v1000_v11, %v1000_v11  ;;  %v847_v27 = vpop.f32.mrf.mxu2  ;;  %v721_v16 = vpop.f32.mrf.mxu0 }
  0xd7   :  { %v911_v15 = vpop.f32.mrf.mxu3  ;;  %v848_v31 = vadd.f32 %v847_v27, %v784_v10  ;;  %v785_v33 = vpop.f32.mrf.mxu1  ;;  %v722_v19 = vadd.f32 %v1965_v42, %v721_v16 }
  0xd8   :  { %1540 = vst [vmem:[%s2143_s5 + $0x10] sm:$0xff] %v1497_v12   ;;  %v1259_v17 = vadd.f32 %v1258_v6, %v1238_v14 }
  0xd9   :  { %v912_v18 = vadd.f32 %v911_v15, %v848_v31  ;;  %v786_v39 = vadd.f32 %v785_v33, %v722_v19 }
  0xdb   :  { %vm957_vm6 = vcmp.ge.f32.partialorder %v912_v18, 0.0  ;;  %v979_v20 = vmul.f32 0.2, %v912_v18 }
  0xdd   :  { %v1001_v21 = vsel %vm957_vm6, %v912_v18, %v979_v20 }
  0xde   :  { %v1208_v22 = vadd.f32 %v1207_v13, %v1001_v21  ;;  %v1239_v23 = vmul.f32 %v1001_v21, %v1001_v21  ;;  %v849_v24 = vpop.f32.mrf.mxu2  ;;  %v724_v28 = vpop.f32.mrf.mxu0 }
  0xdf   :  { %v913_v25 = vpop.f32.mrf.mxu3  ;;  %v850_v26 = vadd.f32 %v849_v24, %v786_v39  ;;  %v788_v29 = vpop.f32.mrf.mxu1  ;;  %v725_v44 = vadd.f32 %v1965_v42, %v724_v28 }
  0xe0   :  { %v1260_v30 = vadd.f32 %v1259_v17, %v1239_v23 }
  0xe1   :  { %v914_v32 = vadd.f32 %v913_v25, %v850_v26  ;;  %v789_v35 = vadd.f32 %v788_v29, %v725_v44 }
  0xe3   :  { %vm958_vm7 = vcmp.ge.f32.partialorder %v914_v32, 0.0  ;;  %v980_v34 = vmul.f32 0.2, %v914_v32 }
  0xe5   :  { %v1002_v45 = vsel %vm958_vm7, %v914_v32, %v980_v34 }
  0xe6   :  { %v1502_v36 = vpack.c.bf16 %v1002_v45, %v1001_v21  ;;  %v1209_v37 = vadd.f32 %v1208_v22, %v1002_v45  ;;  %v1240_v38 = vmul.f32 %v1002_v45, %v1002_v45  ;;  %v852_v49 = vpop.f32.mrf.mxu2  ;;  %v726_v55 = vpop.f32.mrf.mxu0 }
  0xe7   :  { %v916_v40 = vpop.f32.mrf.mxu3  ;;  %v853_v41 = vadd.f32 %v852_v49, %v789_v35  ;;  %v790_v43 = vpop.f32.mrf.mxu1  ;;  %v727_v48 = vadd.f32 %v1965_v42, %v726_v55 }
  0xe8   :  { %1541 = vst [vmem:[%s2143_s5 + $0x18] sm:$0xff] %v1502_v36   ;;  %v1261_v46 = vadd.f32 %v1260_v30, %v1240_v38 }
  0xe9   :  { %v917_v47 = vadd.f32 %v916_v40, %v853_v41  ;;  %v791_v52 = vadd.f32 %v790_v43, %v727_v48 }
  0xeb   :  { %vm959_vm8 = vcmp.ge.f32.partialorder %v917_v47, 0.0  ;;  %v981_v50 = vmul.f32 0.2, %v917_v47 }
  0xed   :  { %v1003_v51 = vsel %vm959_vm8, %v917_v47, %v981_v50 }
  0xee   :  { %v1210_v53 = vadd.f32 %v1209_v37, %v1003_v51  ;;  %v1241_v54 = vmul.f32 %v1003_v51, %v1003_v51  ;;  %v854_v56 = vpop.f32.mrf.mxu2  ;;  %v729_v59 = vpop.f32.mrf.mxu0 }
  0xef   :  { %v918_v57 = vpop.f32.mrf.mxu3  ;;  %v855_v58 = vadd.f32 %v854_v56, %v791_v52  ;;  %v793_v60 = vpop.f32.mrf.mxu1  ;;  %v730_v63 = vadd.f32 %v1965_v42, %v729_v59 }
  0xf0   :  { %v1262_v61 = vadd.f32 %v1261_v46, %v1241_v54 }
  0xf1   :  { %v919_v62 = vadd.f32 %v918_v57, %v855_v58  ;;  %v794_v2 = vadd.f32 %v793_v60, %v730_v63 }
  0xf3   :  { %vm960_vm9 = vcmp.ge.f32.partialorder %v919_v62, 0.0  ;;  %v982_v0 = vmul.f32 0.2, %v919_v62 }
  0xf5   :  { %v1004_v1 = vsel %vm960_vm9, %v919_v62, %v982_v0 }
  0xf6   :  { %v1507_v3 = vpack.c.bf16 %v1004_v1, %v1003_v51  ;;  %v2046_v4 = vadd.f32 %v1210_v53, %v1004_v1  ;;  %v1242_v5 = vmul.f32 %v1004_v1, %v1004_v1  ;;  %v857_v6 = vpop.f32.mrf.mxu2  ;;  %v731_v8 = vpop.f32.mrf.mxu0 }
  0xf7   :  { %v921_v7 = vpop.f32.mrf.mxu3  ;;  %v795_v9 = vpop.f32.mrf.mxu1  ;;  %v858_v11 = vadd.f32 %v857_v6, %v794_v2  ;;  %v732_v12 = vadd.f32 %v1965_v42, %v731_v8 }
  0xf8   :  { %1542 = vst [vmem:[%s2143_s5 + $0x20] sm:$0xff] %v1507_v3   ;;  %v2051_v10 = vadd.f32 %v1262_v61, %v1242_v5 }
  0xf9   :  { %v922_v13 = vadd.f32 %v921_v7, %v858_v11  ;;  %v796_v14 = vadd.f32 %v795_v9, %v732_v12 }
  0xfb   :  { %v983_v17 = vmul.f32 0.2, %v922_v13  ;;  %vm961_vm10 = vcmp.ge.f32.partialorder %v922_v13, 0.0 }
  0xfd   :  { %v2055_v21 = vsel %vm961_vm10, %v922_v13, %v983_v17 }
  0xfe   :  { %v859_v27 = vpop.f32.mrf.mxu2  ;;  %v734_v16 = vpop.f32.mrf.mxu0 }
  0xff   :  { %v923_v15 = vpop.f32.mrf.mxu3  ;;  %v860_v31 = vadd.f32 %v859_v27, %v796_v14  ;;  %v798_v33 = vpop.f32.mrf.mxu1  ;;  %v735_v19 = vadd.f32 %v1965_v42, %v734_v16 }
 0x101   :  { %v924_v18 = vadd.f32 %v923_v15, %v860_v31  ;;  %v799_v22 = vadd.f32 %v798_v33, %v735_v19  ;;  %v1551_v19 = vmov 0.0  }
 0x102   :  { %1200 = vst [vmem:[%s2144_s6] sm:$0x1] %v1551_v19 }
 0x103   :  { %vm962_vm11 = vcmp.ge.f32.partialorder %v924_v18, 0.0  ;;  %v984_v20 = vmul.f32 0.2, %v924_v18  ;;  %1201 = vst [vmem:[%s2145_s7] sm:$0x1] %v1551_v19 }
 0x105   :  { %v2057_v39 = vsel %vm962_vm11, %v924_v18, %v984_v20 }
 0x106   :  { %v1512_v23 = vpack.c.bf16 %v2057_v39, %v2055_v21  ;;  %v862_v24 = vpop.f32.mrf.mxu2  ;;  %v736_v26 = vpop.f32.mrf.mxu0 }
 0x107   :  { %v926_v25 = vpop.f32.mrf.mxu3  ;;  %v800_v28 = vpop.f32.mrf.mxu1  ;;  %v863_v29 = vadd.f32 %v862_v24, %v799_v22  ;;  %v737_v30 = vadd.f32 %v1965_v42, %v736_v26 }
 0x108   :  { %1543 = vst [vmem:[%s2143_s5 + $0x28] sm:$0xff] %v1512_v23  }
 0x109   :  { %v927_v44 = vadd.f32 %v926_v25, %v863_v29  ;;  %v801_v32 = vadd.f32 %v800_v28, %v737_v30 }
 0x10b   :  { %v985_v38 = vmul.f32 0.2, %v927_v44  ;;  %vm963_vm12 = vcmp.ge.f32.partialorder %v927_v44, 0.0 }
 0x10d   :  { %v2066_v55 = vsel %vm963_vm12, %v927_v44, %v985_v38  ;;  %v1212_v38 = vadd.f32 %v2046_v4, %v2055_v21 }
 0x10e   :  { %v864_v34 = vpop.f32.mrf.mxu2  ;;  %v739_v36 = vpop.f32.mrf.mxu0 }
 0x10f   :  { %v928_v35 = vpop.f32.mrf.mxu3  ;;  %v865_v45 = vadd.f32 %v864_v34, %v801_v32  ;;  %v803_v37 = vpop.f32.mrf.mxu1  ;;  %v740_v40 = vadd.f32 %v1965_v42, %v739_v36  ;;  %v1243_v34 = vmul.f32 %v2055_v21, %v2055_v21 }
 0x111   :  { %v929_v49 = vadd.f32 %v928_v35, %v865_v45  ;;  %v804_v46 = vadd.f32 %v803_v37, %v740_v40  ;;  %v1244_v37 = vmul.f32 %v2057_v39, %v2057_v39  ;;  %v1245_v40 = vmul.f32 %v2066_v55, %v2066_v55 }
 0x113   :  { %vm964_vm13 = vcmp.ge.f32.partialorder %v929_v49, 0.0  ;;  %v986_v41 = vmul.f32 0.2, %v929_v49 }
 0x115   :  { %v2068_v43 = vsel %vm964_vm13, %v929_v49, %v986_v41  ;;  %v1264_v49 = vadd.f32 %v2051_v10, %v1243_v34  ;;  %v1213_v41 = vadd.f32 %v1212_v38, %v2057_v39 }
 0x116   :  { %v1517_v47 = vpack.c.bf16 %v2068_v43, %v2066_v55  ;;  %v867_v48 = vpop.f32.mrf.mxu2  ;;  %v741_v51 = vpop.f32.mrf.mxu0 }
 0x117   :  { %v931_v50 = vpop.f32.mrf.mxu3  ;;  %v805_v52 = vpop.f32.mrf.mxu1  ;;  %v868_v53 = vadd.f32 %v867_v48, %v804_v46  ;;  %v742_v54 = vadd.f32 %v1965_v42, %v741_v51  ;;  %v1265_v48 = vadd.f32 %v1264_v49, %v1244_v37 }
 0x118   :  { %1544 = vst [vmem:[%s2143_s5 + $0x30] sm:$0xff] %v1517_v47  }
 0x119   :  { %v932_v56 = vadd.f32 %v931_v50, %v868_v53  ;;  %v806_v57 = vadd.f32 %v805_v52, %v742_v54  ;;  %v1246_v50 = vmul.f32 %v2068_v43, %v2068_v43  ;;  %v1062_v53 = vlaneseq }
 0x11a   :  { %v1214_v54 = vadd.f32 %v1213_v41, %v2066_v55  ;;  %v1266_v21 = vadd.f32 %v1265_v48, %v1245_v40 }
 0x11b   :  { %v987_v63 = vmul.f32 0.2, %v932_v56  ;;  %vm965_vm14 = vcmp.ge.f32.partialorder %v932_v56, 0.0 }
 0x11c   :  { %v1215_v39 = vadd.f32 %v1214_v54, %v2068_v43 }
 0x11d   :  { %v2077_v3 = vsel %vm965_vm14, %v932_v56, %v987_v63  ;;  %v1063_v63 = vshrl.u32 %v1062_v53, 7 }
 0x11e   :  { %v869_v58 = vpop.f32.mrf.mxu2  ;;  %v744_v61 = vpop.f32.mrf.mxu0  ;;  %v1247_v10 = vmul.f32 %v2077_v3, %v2077_v3  ;;  %v1216_v55 = vadd.f32 %v1215_v39, %v2077_v3 }
 0x11f   :  { %v933_v59 = vpop.f32.mrf.mxu3  ;;  %v870_v60 = vadd.f32 %v869_v58, %v806_v57  ;;  %v808_v62 = vpop.f32.mrf.mxu1  ;;  %v745_v1 = vadd.f32 %v1965_v42, %v744_v61 }
 0x121   :  { %v934_v0 = vadd.f32 %v933_v59, %v870_v60  ;;  %v809_v6 = vadd.f32 %v808_v62, %v745_v1  ;;  %v1267_v60 = vadd.f32 %v1266_v21, %v1246_v50 }
 0x123   :  { %vm966_vm15 = vcmp.ge.f32.partialorder %v934_v0, 0.0  ;;  %v988_v2 = vmul.f32 0.2, %v934_v0 }
 0x125   :  { %v2079_v5 = vsel %vm966_vm15, %v934_v0, %v988_v2  ;;  %v1268_v2 = vadd.f32 %v1267_v60, %v1247_v10  ;;  %v1232_v10 = vld [vmem:[%s2145_s7] sm:$0x1] }
 0x126   :  { %v1522_v7 = vpack.c.bf16 %v2079_v5, %v2077_v3  ;;  %v872_v8 = vpop.f32.mrf.mxu2  ;;  %v746_v11 = vpop.f32.mrf.mxu0  ;;  %v1248_v61 = vmul.f32 %v2079_v5, %v2079_v5 }
 0x127   :  { %v936_v9 = vpop.f32.mrf.mxu3  ;;  %v810_v12 = vpop.f32.mrf.mxu1  ;;  %v873_v13 = vadd.f32 %v872_v8, %v809_v6  ;;  %v747_v14 = vadd.f32 %v1965_v42, %v746_v11 }
 0x128   :  { %1545 = vst [vmem:[%s2143_s5 + $0x38] sm:$0xff] %v1522_v7   ;;  %v1217_v7 = vadd.f32 %v1216_v55, %v2079_v5 }
 0x129   :  { %v937_v27 = vadd.f32 %v936_v9, %v873_v13  ;;  %v811_v15 = vadd.f32 %v810_v12, %v747_v14  ;;  %v1269_v9 = vadd.f32 %v1268_v2, %v1248_v61 }
 0x12b   :  { %v989_v20 = vmul.f32 0.2, %v937_v27  ;;  %vm967_vm0 = vcmp.ge.f32.partialorder %v937_v27, 0.0 }
 0x12d   :  { %v1011_v25 = vsel %vm967_vm0, %v937_v27, %v989_v20  ;;  %v1083_v27 = vadd.s32 160, %v1063_v63 }
 0x12e   :  { %v874_v31 = vpop.f32.mrf.mxu2  ;;  %v749_v17 = vpop.f32.mrf.mxu0  ;;  %v1249_v6 = vmul.f32 %v1011_v25, %v1011_v25 }
 0x12f   :  { %v938_v16 = vpop.f32.mrf.mxu3  ;;  %v875_v33 = vadd.f32 %v874_v31, %v811_v15  ;;  %v813_v18 = vpop.f32.mrf.mxu1  ;;  %v750_v23 = vadd.f32 %v1965_v42, %v749_v17  ;;  %v1218_v15 = vadd.f32 %v1217_v7, %v1011_v25  ;;  %vm1128_vm4 = vcmp.lt.s32.totalorder %v1083_v27, 162 }
 0x131   :  { %v939_v22 = vadd.f32 %v938_v16, %v875_v33  ;;  %v814_v28 = vadd.f32 %v813_v18, %v750_v23  ;;  %v1270_v33 = vadd.f32 %v1269_v9, %v1249_v6 }
 0x133   :  { %vm968_vm1 = vcmp.ge.f32.partialorder %v939_v22, 0.0  ;;  %v990_v24 = vmul.f32 0.2, %v939_v22 }
 0x135   :  { %v1012_v26 = vsel %vm968_vm1, %v939_v22, %v990_v24 }
 0x136   :  { %v1527_v29 = vpack.c.bf16 %v1012_v26, %v1011_v25  ;;  %v877_v30 = vpop.f32.mrf.mxu2  ;;  %v751_v32 = vpop.f32.mrf.mxu0  ;;  %v1250_v11 = vmul.f32 %v1012_v26, %v1012_v26  ;;  %v1219_v3 = vadd.f32 %v1218_v15, %v1012_v26 }
 0x137   :  { %v941_v44 = vpop.f32.mrf.mxu3  ;;  %v815_v35 = vpop.f32.mrf.mxu1  ;;  %v878_v45 = vadd.f32 %v877_v30, %v814_v28  ;;  %v752_v36 = vadd.f32 %v1965_v42, %v751_v32 }
 0x138   :  { %1546 = vst [vmem:[%s2143_s5 + $0x40] sm:$0xff] %v1527_v29   ;;  %v1271_v19 = vadd.f32 %v1270_v33, %v1250_v11 }
 0x139   :  { %v942_v46 = vadd.f32 %v941_v44, %v878_v45  ;;  %v816_v47 = vadd.f32 %v815_v35, %v752_v36 }
 0x13b   :  { %v991_v58 = vmul.f32 0.2, %v942_v46  ;;  %vm969_vm2 = vcmp.ge.f32.partialorder %v942_v46, 0.0 }
 0x13d   :  { %v1013_v8 = vsel %vm969_vm2, %v942_v46, %v991_v58 }
 0x13e   :  { %v879_v51 = vpop.f32.mrf.mxu2  ;;  %v754_v4 = vpop.f32.mrf.mxu0  ;;  %v1251_v17 = vmul.f32 %v1013_v8, %v1013_v8  ;;  %v1220_v20 = vadd.f32 %v1219_v3, %v1013_v8 }
 0x13f   :  { %v943_v52 = vpop.f32.mrf.mxu3  ;;  %v880_v56 = vadd.f32 %v879_v51, %v816_v47  ;;  %v755_v57 = vadd.f32 %v1965_v42, %v754_v4  ;;  %v818_v62 = vpop.f32.mrf.mxu1 }
 0x140   :  { %v1272_v25 = vadd.f32 %v1271_v19, %v1251_v17 }
 0x141   :  { %v944_v59 = vadd.f32 %v943_v52, %v880_v56  ;;  %v819_v1 = vadd.f32 %v818_v62, %v755_v57  ;;  %v1202_v56 = vld [vmem:[%s2144_s6] sm:$0x1] }
 0x143   :  { %vm970_vm3 = vcmp.ge.f32.partialorder %v944_v59, 0.0  ;;  %v992_v0 = vmul.f32 0.2, %v944_v59 }
 0x145   :  { %v1014_v43 = vsel %vm970_vm3, %v944_v59, %v992_v0 }
 0x146   :  { %v1532_v12 = vpack.c.bf16 %v1014_v43, %v1013_v8  ;;  %v882_v13 = vpop.f32.mrf.mxu2  ;;  %v756_v16 = vpop.f32.mrf.mxu0  ;;  %v1252_v22 = vmul.f32 %v1014_v43, %v1014_v43  ;;  %v1221_v28 = vadd.f32 %v1220_v20, %v1014_v43 }
 0x147   :  { %v946_v14 = vpop.f32.mrf.mxu3  ;;  %v883_v31 = vadd.f32 %v882_v13, %v819_v1  ;;  %v757_v5 = vadd.f32 %v1965_v42, %v756_v16  ;;  %v820_v24 = vpop.f32.mrf.mxu1 }
 0x148   :  { %1547 = vst [vmem:[%s2143_s5 + $0x48] sm:$0xff] %v1532_v12   ;;  %v1273_v34 = vadd.f32 %v1272_v25, %v1252_v22 }
 0x149   :  { %v947_v18 = vadd.f32 %v946_v14, %v883_v31  ;;  %v821_v30 = vadd.f32 %v820_v24, %v757_v5 }
 0x14b   :  { %vm971_vm5 = vcmp.ge.f32.partialorder %v947_v18, 0.0  ;;  %v993_v23 = vmul.f32 0.2, %v947_v18 }
 0x14d   :  { %v1015_v29 = vsel %vm971_vm5, %v947_v18, %v993_v23 }
 0x14e   :  { %v1194_v44 = vsel %vm1128_vm4, %v1015_v29, 0.0  ;;  %v884_v32 = vpop.f32.mrf.mxu2 }
 0x14f   :  { %v1222_v35 = vadd.f32 %v1221_v28, %v1194_v44  ;;  %v1253_v26 = vmul.f32 %v1194_v44, %v1194_v44  ;;  %v885_v45 = vadd.f32 %v884_v32, %v821_v30  ;;  %v948_v36 = vpop.f32.mrf.mxu3 }
 0x151   :  { %v1224_v37 = vrot.slane %v1222_v35, 4  ;;  %v1274_v42 = vadd.f32 %v1273_v34, %v1253_v26  ;;  %v949_v38 = vadd.f32 %v948_v36, %v885_v45 }
 0x153   :  { %v1225_v49 = vadd.f32 %v1224_v37, %v1222_v35  ;;  %v1276_v40 = vrot.slane %v1274_v42, 4  ;;  %vm972_vm6 = vcmp.ge.f32.partialorder %v949_v38, 0.0  ;;  %v994_v41 = vmul.f32 0.2, %v949_v38 }
 0x155   :  { %v1226_v46 = vrot.slane %v1225_v49, 2  ;;  %v1277_v47 = vadd.f32 %v1276_v40, %v1274_v42  ;;  %v1016_v48 = vsel %vm972_vm6, %v949_v38, %v994_v41 }
 0x156   :  { %v1537_v50 = vpack.c.bf16 %v1016_v48, %v1015_v29 }
 0x157   :  { %v1227_v51 = vadd.f32 %v1226_v46, %v1225_v49  ;;  %v1278_v52 = vrot.slane %v1277_v47, 2 }
 0x158   :  { %1548 = vst [vmem:[%s2143_s5 + $0x50] sm:$0xff] %v1537_v50  }
 0x159   :  { %v1228_v53 = vrot.slane %v1227_v51, 1  ;;  %v1279_v54 = vadd.f32 %v1278_v52, %v1277_v47 }
 0x15b   :  { %v1229_v4 = vadd.f32 %v1228_v53, %v1227_v51  ;;  %v1280_v21 = vrot.slane %v1279_v54, 1 }
 0x15d   :  { %v1230_v57 = vadd.f32 %v1229_v4, %v1202_v56  ;;  %v1281_v39 = vadd.f32 %v1280_v21, %v1279_v54 }
 0x15f   :  { %1231 = vst [vmem:[%s2144_s6] sm:$0x1] %v1230_v57  ;;  %v1282_v58 = vadd.f32 %v1281_v39, %v1232_v10 }
 0x161   :  { %1283 = vst [vmem:[%s2145_s7] sm:$0x1] %v1282_v58 }

// kernel: cnn_base_forward.7
= control target key start
LH: loop header
LB: loop body
LE: loop exit
PB: predicated region body
PF: predicated region fallthrough
CT: control target
= control target key end

     0   :  { %s2072_s3 = inlined_call_operand.vmem [shape: bf16[640,128], index: 3, kind: input, shape index: {}]   ;;  %s2073_s0 = inlined_call_operand.vmem [shape: bf16[112,640], index: 0, kind: input, shape index: {}]   ;;  %s2074_s1 = inlined_call_operand.vmem [shape: f32[1,640], index: 1, kind: input, shape index: {}]   ;;  %s2075_s2 = inlined_call_operand.vmem [shape: f32[1,640], index: 2, kind: input, shape index: {}]   ;;  %s2076_s4 = inlined_call_operand.vmem [shape: f32[1,128], index: 4, kind: input, shape index: {}]   ;;  %s2077_s5 = inlined_call_operand.vmem [shape: bf16[112,128], index: 5, kind: output, shape index: {0}]   ;;  %s2078_s6 = inlined_call_operand.vmem [shape: f32[1,1,128], index: 6, kind: output, shape index: {1}]   ;;  %s2079_s7 = inlined_call_operand.vmem [shape: f32[1,1,128], index: 7, kind: output, shape index: {2}]  }
   0x1   :  { %v1346_v0 = vld [vmem:[%s2072_s3 + $0x38] sm:$0xff]  ;;  %v1345_v1 = vld [vmem:[%s2072_s3 + $0x30] sm:$0xff]  ;;  %v1344_v2 = vld [vmem:[%s2072_s3 + $0x28] sm:$0xff] }
   0x2   :  { %1420 = vmatpush.bf16.msra.mxu1 %v1346_v0  ;;  %1421 = vmatpush.bf16.msra.mxu2 %v1346_v0  ;;  %v1343_v3 = vld [vmem:[%s2072_s3 + $0x20] sm:$0xff]  ;;  %v1342_v4 = vld [vmem:[%s2072_s3 + $0x18] sm:$0xff]  ;;  %v1505_v5 = vld [vmem:[%s2073_s0 + $0x50] sm:$0xff] }
   0x3   :  { %1422 = vmatpush.bf16.msra.mxu3 %v1346_v0  ;;  %698 = vmatpush.bf16.msra.mxu0 %v1346_v0  ;;  %v1510_v6 = vld [vmem:[%s2073_s0 + $0x64] sm:$0xff]  ;;  %v1525_v9 = vld [vmem:[%s2073_s0 + $0xb4] sm:$0xff]  ;;  %v125_v12 = vunpack.c.l.bf16 %v1505_v5  ;;  %v1608_v51 = vld [vmem:[%s2073_s0 + $0x8c] sm:$0xff] }
   0x4   :  { %v1515_v7 = vld [vmem:[%s2074_s1] sm:$0x1f]  ;;  %v1535_v11 = vld [vmem:[%s2073_s0 + $0x14] sm:$0xff]  ;;  %v130_v15 = vunpack.c.l.bf16 %v1510_v6  ;;  %v150_v19 = vunpack.c.l.bf16 %v1525_v9  ;;  %v1340_v30 = vld [vmem:[%s2072_s3 + $0x8] sm:$0xff]  ;;  %v140_v61 = vunpack.c.l.bf16 %v1608_v51 }
   0x5   :  { %v1520_v8 = vld [vmem:[%s2073_s0 + $0xa0] sm:$0xff]  ;;  %v1541_v13 = vld [vmem:[%s2073_s0 + $0xf0] sm:$0xff]  ;;  %v1550_v16 = vperm.slane %v1515_v7, 0  ;;  %v110_v22 = vunpack.c.l.bf16 %v1535_v11  ;;  %v1370_v44 = vld [vmem:[%s2072_s3 + $0xf8] sm:$0xff] }
   0x6   :  { %1423 = vmatpush.bf16.msra.mxu1 %v1345_v1  ;;  %1424 = vmatpush.bf16.msra.mxu2 %v1345_v1  ;;  %v1530_v10 = vld [vmem:[%s2073_s0] sm:$0xff]  ;;  %v145_v18 = vunpack.c.l.bf16 %v1520_v8  ;;  %v1341_v20 = vld [vmem:[%s2072_s3 + $0x10] sm:$0xff]  ;;  %v165_v23 = vunpack.c.l.bf16 %v1541_v13  ;;  %v1362_v45 = vld [vmem:[%s2072_s3 + $0xb8] sm:$0xff] }
   0x7   :  { %1425 = vmatpush.bf16.msra.mxu3 %v1345_v1  ;;  %699 = vmatpush.bf16.msra.mxu0 %v1345_v1  ;;  %v1546_v14 = vld [vmem:[%s2073_s0 + $0x104] sm:$0xff]  ;;  %v105_v21 = vunpack.c.l.bf16 %v1530_v10  ;;  %v207_v26 = vmul.f32 %v1550_v16, %v125_v12  ;;  %v212_v27 = vmul.f32 %v1550_v16, %v130_v15  ;;  %v232_v29 = vmul.f32 %v1550_v16, %v150_v19  ;;  %v1354_v48 = vld [vmem:[%s2072_s3 + $0x78] sm:$0xff]  ;;  %v1369_v58 = vld [vmem:[%s2072_s3 + $0xf0] sm:$0xff] }
   0x8   :  { %v1555_v17 = vld [vmem:[%s2075_s2] sm:$0x1f]  ;;  %v170_v24 = vunpack.c.l.bf16 %v1546_v14  ;;  %v227_v28 = vmul.f32 %v1550_v16, %v145_v18  ;;  %v192_v32 = vmul.f32 %v1550_v16, %v110_v22  ;;  %v247_v33 = vmul.f32 %v1550_v16, %v165_v23  ;;  %v1603_v49 = vld [vmem:[%s2073_s0 + $0x78] sm:$0xff]  ;;  %v1613_v52 = vld [vmem:[%s2073_s0 + $0xc8] sm:$0xff] }
   0x9   :  { %v1567_v25 = vperm.slane %v1555_v17, 0  ;;  %v187_v31 = vmul.f32 %v1550_v16, %v105_v21  ;;  %v1339_v39 = vld [vmem:[%s2072_s3] sm:$0xff]  ;;  %v1378_v54 = vld [vmem:[%s2072_s3 + $0x138] sm:$0xff]  ;;  %v1626_v56 = vld [vmem:[%s2073_s0 + $0x28] sm:$0xff]  ;;  %v135_v60 = vunpack.c.l.bf16 %v1603_v49  ;;  %v155_v62 = vunpack.c.l.bf16 %v1613_v52 }
   0xa   :  { %1426 = vmatpush.bf16.msra.mxu1 %v1344_v2  ;;  %1427 = vmatpush.bf16.msra.mxu2 %v1344_v2  ;;  %v252_v34 = vmul.f32 %v1550_v16, %v170_v24  ;;  %v1618_v53 = vld [vmem:[%s2073_s0 + $0xdc] sm:$0xff]  ;;  %v1361_v59 = vld [vmem:[%s2072_s3 + $0xb0] sm:$0xff]  ;;  %v115_v1 = vunpack.c.l.bf16 %v1626_v56  ;;  %v1360_v12 = vld [vmem:[%s2072_s3 + $0xa8] sm:$0xff]  ;;  %v222_v18 = vmul.f32 %v1550_v16, %v140_v61 }
   0xb   :  { %1428 = vmatpush.bf16.msra.mxu3 %v1344_v2  ;;  %700 = vmatpush.bf16.msra.mxu0 %v1344_v2  ;;  %v289_v35 = vadd.f32 %v1567_v25, %v207_v26  ;;  %v294_v36 = vadd.f32 %v1567_v25, %v212_v27  ;;  %v309_v37 = vadd.f32 %v1567_v25, %v227_v28  ;;  %v1631_v57 = vld [vmem:[%s2073_s0 + $0x3c] sm:$0xff]  ;;  %v160_v63 = vunpack.c.l.bf16 %v1618_v53  ;;  %v1353_v0 = vld [vmem:[%s2072_s3 + $0x70] sm:$0xff]  ;;  %v1352_v21 = vld [vmem:[%s2072_s3 + $0x68] sm:$0xff] }
   0xc   :  { %v314_v38 = vadd.f32 %v1567_v25, %v232_v29  ;;  %v269_v40 = vadd.f32 %v1567_v25, %v187_v31  ;;  %v274_v41 = vadd.f32 %v1567_v25, %v192_v32  ;;  %v329_v42 = vadd.f32 %v1567_v25, %v247_v33  ;;  %v1376_v24 = vld [vmem:[%s2072_s3 + $0x128] sm:$0xff]  ;;  %v1367_v26 = vld [vmem:[%s2072_s3 + $0xe0] sm:$0xff] }
   0xd   :  { %v334_v43 = vadd.f32 %v1567_v25, %v252_v34  ;;  %v349_v46 = vpack.c.bf16 %v294_v36, %v289_v35  ;;  %v120_v2 = vunpack.c.l.bf16 %v1631_v57  ;;  %v217_v15 = vmul.f32 %v1550_v16, %v135_v60  ;;  %v1359_v27 = vld [vmem:[%s2072_s3 + $0xa0] sm:$0xff]  ;;  %v1366_v34 = vld [vmem:[%s2072_s3 + $0xd8] sm:$0xff] }
   0xe   :  { %1429 = vmatpush.bf16.msra.mxu1 %v1343_v3  ;;  %1430 = vmatpush.bf16.msra.mxu2 %v1343_v3  ;;  %v359_v47 = vpack.c.bf16 %v314_v38, %v309_v37  ;;  %v339_v50 = vpack.c.bf16 %v274_v41, %v269_v40  ;;  %v237_v19 = vmul.f32 %v1550_v16, %v155_v62  ;;  %v1351_v31 = vld [vmem:[%s2072_s3 + $0x60] sm:$0xff]  ;;  %v1358_v36 = vld [vmem:[%s2072_s3 + $0x98] sm:$0xff]  ;;  %v64_v37 = vld [vmem:[%s2073_s0 + $0x8] sm:$0xff] }
   0xf   :  { %1431 = vmatpush.bf16.msra.mxu3 %v1343_v3  ;;  %701 = vmatpush.bf16.msra.mxu0 %v1343_v3  ;;  %v369_v55 = vpack.c.bf16 %v334_v43, %v329_v42  ;;  %v1377_v3 = vld [vmem:[%s2072_s3 + $0x130] sm:$0xff]  ;;  %v197_v22 = vmul.f32 %v1550_v16, %v115_v1  ;;  %v202_v23 = vmul.f32 %v1550_v16, %v120_v2  ;;  %v1375_v35 = vld [vmem:[%s2072_s3 + $0x120] sm:$0xff]  ;;  %v1350_v40 = vld [vmem:[%s2072_s3 + $0x58] sm:$0xff]  ;;  %v108_v43 = vunpack.c.h.bf16 %v64_v37 }
  0x10   :  { %v299_v28 = vadd.f32 %v1567_v25, %v217_v15  ;;  %v304_v29 = vadd.f32 %v1567_v25, %v222_v18  ;;  %v1374_v42 = vld [vmem:[%s2072_s3 + $0x118] sm:$0xff]  ;;  %v1751_v18 = vperm.slane %v1555_v17, 1 }
  0x11   :  { %v279_v32 = vadd.f32 %v1567_v25, %v197_v22  ;;  %v284_v33 = vadd.f32 %v1567_v25, %v202_v23  ;;  %v1348_v22 = vld [vmem:[%s2072_s3 + $0x48] sm:$0xff] }
  0x12   :  { %1432 = vmatpush.bf16.msra.mxu1 %v1342_v4  ;;  %1433 = vmatpush.bf16.msra.mxu2 %v1342_v4  ;;  %v354_v38 = vpack.c.bf16 %v304_v29, %v299_v28 }
  0x13   :  { %1434 = vmatpush.bf16.msra.mxu3 %v1342_v4  ;;  %702 = vmatpush.bf16.msra.mxu0 %v1342_v4  ;;  %v1368_v4 = vld [vmem:[%s2072_s3 + $0xe8] sm:$0xff]  ;;  %v344_v41 = vpack.c.bf16 %v284_v33, %v279_v32 }
  0x16   :  { %1435 = vmatpush.bf16.msra.mxu1 %v1341_v20  ;;  %1436 = vmatpush.bf16.msra.mxu2 %v1341_v20 }
  0x17   :  { %1437 = vmatpush.bf16.msra.mxu3 %v1341_v20  ;;  %703 = vmatpush.bf16.msra.mxu0 %v1341_v20  ;;  %v242_v20 = vmul.f32 %v1550_v16, %v160_v63  ;;  %v319_v16 = vadd.f32 %v1567_v25, %v237_v19  ;;  %v1732_v63 = vperm.slane %v1515_v7, 4 }
  0x1a   :  { %1438 = vmatpush.bf16.msra.mxu1 %v1340_v30  ;;  %1439 = vmatpush.bf16.msra.mxu2 %v1340_v30 }
  0x1b   :  { %1440 = vmatpush.bf16.msra.mxu3 %v1340_v30  ;;  %704 = vmatpush.bf16.msra.mxu0 %v1340_v30  ;;  %v324_v30 = vadd.f32 %v1567_v25, %v242_v20  ;;  %v67_v25 = vld [vmem:[%s2073_s0 + $0x1c] sm:$0xff] }
  0x1c   :  { %v112_v60 = vunpack.c.l.bf16 %v67_v25 }
  0x1e   :  { %1441 = vmatpush.bf16.msra.mxu1 %v1339_v39  ;;  %1442 = vmatpush.bf16.msra.mxu2 %v1339_v39 }
  0x1f   :  { %1443 = vmatpush.bf16.msra.mxu3 %v1339_v39  ;;  %705 = vmatpush.bf16.msra.mxu0 %v1339_v39  ;;  %v364_v39 = vpack.c.bf16 %v324_v30, %v319_v16  ;;  %v1363_v16 = vld [vmem:[%s2072_s3 + $0xc0] sm:$0xff] }
  0x21   :  { %716 = vmatmul.bf16.vlgmr.msra.gmra.mxu1 %v349_v46  ;;  %726 = vmatmul.bf16.vlgmr.msra.gmra.mxu2 %v359_v47  ;;  %v65_v46 = vld [vmem:[%s2073_s0 + $0x10] sm:$0xf]  ;;  %v68_v47 = vld [vmem:[%s2073_s0 + $0x24] sm:$0xf] }
  0x22   :  { %786 = vmatpush.bf16.msrb.mxu2 %v1362_v45  ;;  %742 = vmatpush.bf16.msrb.mxu1 %v1354_v48  ;;  %v1706_v45 = vperm.slane %v1515_v7, 3  ;;  %v106_v48 = vunpack.c.h.bf16 %v1530_v10  ;;  %v1726_v10 = vperm.slane %v1515_v7, 2  ;;  %v109_v61 = vunpack.c.l.bf16 %v65_v46 }
  0x23   :  { %830 = vmatpush.bf16.msrb.mxu3 %v1370_v44  ;;  %706 = vmatmul.bf16.vlgmr.msra.gmra.mxu0 %v339_v50  ;;  %v113_v44 = vunpack.c.h.bf16 %v67_v25  ;;  %v111_v50 = vunpack.c.h.bf16 %v1535_v11  ;;  %v1349_v11 = vld [vmem:[%s2072_s3 + $0x50] sm:$0xff]  ;;  %v114_v62 = vunpack.c.l.bf16 %v68_v47  ;;  %v131_v25 = vunpack.c.h.bf16 %v1510_v6 }
  0x24   :  { %874 = vmatpush.bf16.msrb.mxu0 %v1378_v54  ;;  %736 = vmatmul.bf16.vlgmr.msra.gmra.mxu3 %v369_v55  ;;  %v1365_v54 = vld [vmem:[%s2072_s3 + $0xd0] sm:$0xff]  ;;  %v190_v1 = vmul.f32 %v1706_v45, %v108_v43  ;;  %v194_v20 = vmul.f32 %v1726_v10, %v112_v60  ;;  %v191_v23 = vmul.f32 %v1732_v63, %v109_v61  ;;  %v116_v60 = vunpack.c.h.bf16 %v1626_v56 }
  0x25   :  { %v1357_v55 = vld [vmem:[%s2072_s3 + $0x90] sm:$0xff]  ;;  %v195_v2 = vmul.f32 %v1706_v45, %v113_v44 }
  0x26   :  { %787 = vmatpush.bf16.msrb.mxu2 %v1361_v59  ;;  %743 = vmatpush.bf16.msrb.mxu1 %v1353_v0  ;;  %v107_v59 = vunpack.c.l.bf16 %v64_v37  ;;  %v1373_v0 = vld [vmem:[%s2072_s3 + $0x110] sm:$0xff]  ;;  %v126_v37 = vunpack.c.h.bf16 %v1505_v5 }
  0x27   :  { %831 = vmatpush.bf16.msrb.mxu3 %v1369_v58  ;;  %v1723_v58 = vperm.slane %v1515_v7, 1  ;;  %v1356_v7 = vld [vmem:[%s2072_s3 + $0x88] sm:$0xff] }
  0x28   :  { %875 = vmatpush.bf16.msrb.mxu0 %v1377_v3  ;;  %v1740_v3 = vperm.slane %v1555_v17, 3  ;;  %v189_v19 = vmul.f32 %v1726_v10, %v107_v59 }
  0x29   :  { %v193_v15 = vmul.f32 %v1723_v58, %v111_v50  ;;  %v208_v5 = vmul.f32 %v1723_v58, %v126_v37  ;;  %v213_v6 = vmul.f32 %v1723_v58, %v131_v25 }
  0x2a   :  { %788 = vmatpush.bf16.msrb.mxu2 %v1360_v12  ;;  %744 = vmatpush.bf16.msrb.mxu1 %v1352_v21  ;;  %v188_v12 = vmul.f32 %v1723_v58, %v106_v48  ;;  %v1756_v21 = vperm.slane %v1555_v17, 2  ;;  %v272_v28 = vadd.f32 %v1740_v3, %v190_v1  ;;  %v277_v29 = vadd.f32 %v1740_v3, %v195_v2 }
  0x2b   :  { %832 = vmatpush.bf16.msrb.mxu3 %v1368_v4  ;;  %v1364_v4 = vld [vmem:[%s2072_s3 + $0xc8] sm:$0xff]  ;;  %v1800_v46 = vadd.f32 %v1751_v18, %v208_v5  ;;  %v1803_v47 = vadd.f32 %v1751_v18, %v213_v6 }
  0x2c   :  { %876 = vmatpush.bf16.msrb.mxu0 %v1376_v24  ;;  %v196_v24 = vmul.f32 %v1732_v63, %v114_v62  ;;  %v270_v30 = vadd.f32 %v1751_v18, %v188_v12  ;;  %v271_v32 = vadd.f32 %v1756_v21, %v189_v19  ;;  %v276_v33 = vadd.f32 %v1756_v21, %v194_v20 }
  0x2d   :  { %v350_v59 = vpack.c.bf16 %v1803_v47, %v1800_v46 }
  0x2e   :  { %789 = vmatpush.bf16.msrb.mxu2 %v1359_v27  ;;  %745 = vmatpush.bf16.msrb.mxu1 %v1351_v31  ;;  %v1372_v27 = vld [vmem:[%s2072_s3 + $0x108] sm:$0xff]  ;;  %v275_v31 = vadd.f32 %v1751_v18, %v193_v15  ;;  %v341_v43 = vpack.c.bf16 %v276_v33, %v271_v32  ;;  %v76_v32 = vld [vmem:[%s2073_s0 + $0x58] sm:$0xff] }
  0x2f   :  { %833 = vmatpush.bf16.msrb.mxu3 %v1367_v26  ;;  %v1764_v26 = vperm.slane %v1555_v17, 4  ;;  %v1355_v17 = vld [vmem:[%s2072_s3 + $0x80] sm:$0xff]  ;;  %v79_v33 = vld [vmem:[%s2073_s0 + $0x6c] sm:$0xff]  ;;  %v127_v6 = vunpack.c.l.bf16 %v76_v32 }
  0x30   :  { %877 = vmatpush.bf16.msrb.mxu0 %v1375_v35 }
  0x31   :  { %721 = vmatmul.bf16.gmra.mxu1 %v354_v38  ;;  %731 = vmatmul.bf16.gmra.mxu2 %v364_v39  ;;  %v273_v35 = vadd.f32 %v1764_v26, %v191_v23  ;;  %v342_v38 = vpack.c.bf16 %v277_v29, %v272_v28  ;;  %v1371_v39 = vld [vmem:[%s2072_s3 + $0x100] sm:$0xff] }
  0x32   :  { %790 = vmatpush.bf16.msrb.mxu2 %v1358_v36  ;;  %746 = vmatpush.bf16.msrb.mxu1 %v1350_v40  ;;  %v278_v36 = vadd.f32 %v1764_v26, %v196_v24  ;;  %v70_v40 = vld [vmem:[%s2073_s0 + $0x30] sm:$0xff] }
  0x33   :  { %834 = vmatpush.bf16.msrb.mxu3 %v1366_v34  ;;  %711 = vmatmul.bf16.gmra.mxu0 %v344_v41  ;;  %v1347_v34 = vld [vmem:[%s2072_s3 + $0x40] sm:$0xff]  ;;  %v118_v48 = vunpack.c.h.bf16 %v70_v40  ;;  %v117_v61 = vunpack.c.l.bf16 %v70_v40 }
  0x34   :  { %878 = vmatpush.bf16.msrb.mxu0 %v1374_v42  ;;  %v73_v41 = vld [vmem:[%s2073_s0 + $0x44] sm:$0xff]  ;;  %v340_v42 = vpack.c.bf16 %v275_v31, %v270_v30  ;;  %v343_v44 = vpack.c.bf16 %v278_v36, %v273_v35  ;;  %v141_v30 = vunpack.c.h.bf16 %v1608_v51  ;;  %v77_v40 = vld [vmem:[%s2073_s0 + $0x60] sm:$0xf] }
  0x35   :  { %v123_v50 = vunpack.c.h.bf16 %v73_v41  ;;  %v122_v62 = vunpack.c.l.bf16 %v73_v41  ;;  %v200_v2 = vmul.f32 %v1706_v45, %v118_v48  ;;  %v199_v15 = vmul.f32 %v1726_v10, %v117_v61  ;;  %v80_v41 = vld [vmem:[%s2073_s0 + $0x74] sm:$0xf] }
  0x36   :  { %791 = vmatpush.bf16.msrb.mxu2 %v1357_v55  ;;  %747 = vmatpush.bf16.msrb.mxu1 %v1349_v11  ;;  %v74_v55 = vld [vmem:[%s2073_s0 + $0x4c] sm:$0xf]  ;;  %v121_v11 = vunpack.c.h.bf16 %v1631_v57  ;;  %v223_v35 = vmul.f32 %v1723_v58, %v141_v30 }
  0x37   :  { %835 = vmatpush.bf16.msrb.mxu3 %v1365_v54  ;;  %v71_v54 = vld [vmem:[%s2073_s0 + $0x38] sm:$0xf]  ;;  %v124_v1 = vunpack.c.l.bf16 %v74_v55  ;;  %v204_v19 = vmul.f32 %v1726_v10, %v122_v62  ;;  %v282_v20 = vadd.f32 %v1740_v3, %v200_v2 }
  0x38   :  { %879 = vmatpush.bf16.msrb.mxu0 %v1373_v0  ;;  %v119_v0 = vunpack.c.l.bf16 %v71_v54  ;;  %v203_v12 = vmul.f32 %v1723_v58, %v121_v11  ;;  %v1845_v51 = vadd.f32 %v1751_v18, %v223_v35  ;;  %v209_v54 = vmul.f32 %v1726_v10, %v127_v6  ;;  %v92_v6 = vld [vmem:[%s2073_s0 + $0xc4] sm:$0xf] }
  0x39   :  { %v206_v57 = vmul.f32 %v1732_v63, %v124_v1  ;;  %v286_v28 = vadd.f32 %v1756_v21, %v204_v19 }
  0x3a   :  { %792 = vmatpush.bf16.msrb.mxu2 %v1356_v7  ;;  %748 = vmatpush.bf16.msrb.mxu1 %v1348_v22  ;;  %v198_v7 = vmul.f32 %v1723_v58, %v116_v60  ;;  %v201_v56 = vmul.f32 %v1732_v63, %v119_v0  ;;  %v285_v24 = vadd.f32 %v1751_v18, %v203_v12  ;;  %v82_v12 = vld [vmem:[%s2073_s0 + $0x80] sm:$0xff] }
  0x3b   :  { %836 = vmatpush.bf16.msrb.mxu3 %v1364_v4  ;;  %v205_v4 = vmul.f32 %v1706_v45, %v123_v50  ;;  %v291_v0 = vadd.f32 %v1756_v21, %v209_v54  ;;  %v154_v54 = vunpack.c.l.bf16 %v92_v6 }
  0x3c   :  { %880 = vmatpush.bf16.msrb.mxu0 %v1372_v27  ;;  %v280_v23 = vadd.f32 %v1751_v18, %v198_v7  ;;  %v281_v27 = vadd.f32 %v1756_v21, %v199_v15  ;;  %v283_v29 = vadd.f32 %v1764_v26, %v201_v56  ;;  %v85_v15 = vld [vmem:[%s2073_s0 + $0x94] sm:$0xff] }
  0x3d   :  { %v287_v22 = vadd.f32 %v1740_v3, %v205_v4 }
  0x3e   :  { %793 = vmatpush.bf16.msrb.mxu2 %v1355_v17  ;;  %749 = vmatpush.bf16.msrb.mxu1 %v1347_v34  ;;  %v136_v17 = vunpack.c.h.bf16 %v1603_v49  ;;  %v345_v36 = vpack.c.bf16 %v285_v24, %v280_v23  ;;  %v346_v37 = vpack.c.bf16 %v286_v28, %v281_v27  ;;  %v86_v23 = vld [vmem:[%s2073_s0 + $0x9c] sm:$0xf]  ;;  %v137_v24 = vunpack.c.l.bf16 %v82_v12 }
  0x3f   :  { %837 = vmatpush.bf16.msrb.mxu3 %v1363_v16  ;;  %v288_v16 = vadd.f32 %v1764_v26, %v206_v57  ;;  %v347_v31 = vpack.c.bf16 %v287_v22, %v282_v20  ;;  %v138_v57 = vunpack.c.h.bf16 %v82_v12  ;;  %v143_v20 = vunpack.c.h.bf16 %v85_v15  ;;  %v83_v22 = vld [vmem:[%s2073_s0 + $0x88] sm:$0xf] }
  0x40   :  { %881 = vmatpush.bf16.msrb.mxu0 %v1371_v39  ;;  %v218_v34 = vmul.f32 %v1723_v58, %v136_v17  ;;  %v133_v39 = vunpack.c.h.bf16 %v79_v33  ;;  %v142_v27 = vunpack.c.l.bf16 %v85_v15  ;;  %v139_v28 = vunpack.c.l.bf16 %v83_v22 }
  0x41   :  { %750 = vmatmul.bf16.vlgmr.msrb.gmra.mxu1 %v340_v42  ;;  %794 = vmatmul.bf16.vlgmr.msrb.gmra.mxu2 %v341_v43  ;;  %v348_v25 = vpack.c.bf16 %v288_v16, %v283_v29  ;;  %v132_v42 = vunpack.c.l.bf16 %v79_v33  ;;  %v129_v43 = vunpack.c.l.bf16 %v77_v40  ;;  %v144_v29 = vunpack.c.l.bf16 %v86_v23 }
  0x42   :  { %838 = vmatmul.bf16.vlgmr.msrb.gmra.mxu3 %v342_v38  ;;  %v1842_v49 = vadd.f32 %v1751_v18, %v218_v34  ;;  %v128_v38 = vunpack.c.h.bf16 %v76_v32  ;;  %v215_v50 = vmul.f32 %v1706_v45, %v133_v39  ;;  %v220_v16 = vmul.f32 %v1706_v45, %v138_v57  ;;  %v94_v57 = vld [vmem:[%s2073_s0 + $0xd0] sm:$0xff] }
  0x43   :  { %882 = vmatmul.bf16.vlgmr.msrb.gmra.mxu0 %v343_v44  ;;  %v134_v44 = vunpack.c.l.bf16 %v80_v41  ;;  %v214_v55 = vmul.f32 %v1726_v10, %v132_v42  ;;  %v211_v60 = vmul.f32 %v1732_v63, %v129_v43  ;;  %v225_v17 = vmul.f32 %v1706_v45, %v143_v20  ;;  %v89_v41 = vld [vmem:[%s2073_s0 + $0xb0] sm:$0xf]  ;;  %v97_v20 = vld [vmem:[%s2073_s0 + $0xe4] sm:$0xff] }
  0x44   :  { %v355_v5 = vpack.c.bf16 %v1845_v51, %v1842_v49  ;;  %v210_v48 = vmul.f32 %v1706_v45, %v128_v38  ;;  %v297_v62 = vadd.f32 %v1740_v3, %v215_v50  ;;  %v219_v30 = vmul.f32 %v1726_v10, %v137_v24  ;;  %v91_v49 = vld [vmem:[%s2073_s0 + $0xbc] sm:$0xff] }
  0x45   :  { %v216_v11 = vmul.f32 %v1732_v63, %v134_v44  ;;  %v296_v1 = vadd.f32 %v1756_v21, %v214_v55  ;;  %v293_v2 = vadd.f32 %v1764_v26, %v211_v60  ;;  %v221_v32 = vmul.f32 %v1732_v63, %v139_v28 }
  0x46   :  { %v292_v61 = vadd.f32 %v1740_v3, %v210_v48  ;;  %v226_v33 = vmul.f32 %v1732_v63, %v144_v29  ;;  %v302_v46 = vadd.f32 %v1740_v3, %v220_v16  ;;  %v307_v47 = vadd.f32 %v1740_v3, %v225_v17  ;;  %v95_v29 = vld [vmem:[%s2073_s0 + $0xd8] sm:$0xf]  ;;  %v98_v16 = vld [vmem:[%s2073_s0 + $0xec] sm:$0xf] }
  0x47   :  { %v298_v4 = vadd.f32 %v1764_v26, %v216_v11  ;;  %v351_v19 = vpack.c.bf16 %v296_v1, %v291_v0  ;;  %v303_v35 = vadd.f32 %v1764_v26, %v221_v32  ;;  %v153_v40 = vunpack.c.h.bf16 %v91_v49 }
  0x48   :  { %v352_v7 = vpack.c.bf16 %v297_v62, %v292_v61  ;;  %v146_v42 = vunpack.c.h.bf16 %v1520_v8  ;;  %v151_v43 = vunpack.c.h.bf16 %v1525_v9  ;;  %v152_v48 = vunpack.c.l.bf16 %v91_v49 }
  0x49   :  { %v353_v56 = vpack.c.bf16 %v298_v4, %v293_v2  ;;  %v149_v50 = vunpack.c.l.bf16 %v89_v41  ;;  %v235_v60 = vmul.f32 %v1706_v45, %v153_v40  ;;  %v236_v9 = vmul.f32 %v1732_v63, %v154_v54 }
  0x4a   :  { %v228_v11 = vmul.f32 %v1723_v58, %v146_v42  ;;  %v233_v61 = vmul.f32 %v1723_v58, %v151_v43  ;;  %v234_v62 = vmul.f32 %v1726_v10, %v152_v48  ;;  %v163_v28 = vunpack.c.h.bf16 %v97_v20  ;;  %v100_v43 = vld [vmem:[%s2073_s0 + $0xf8] sm:$0xff] }
  0x4b   :  { %v231_v8 = vmul.f32 %v1732_v63, %v149_v50  ;;  %v317_v1 = vadd.f32 %v1740_v3, %v235_v60  ;;  %v156_v17 = vunpack.c.h.bf16 %v1613_v52  ;;  %v162_v32 = vunpack.c.l.bf16 %v97_v20 }
  0x4c   :  { %v310_v2 = vadd.f32 %v1751_v18, %v228_v11  ;;  %v315_v4 = vadd.f32 %v1751_v18, %v233_v61  ;;  %v316_v12 = vadd.f32 %v1756_v21, %v234_v62  ;;  %v101_v11 = vld [vmem:[%s2073_s0 + $0x100] sm:$0xf]  ;;  %v104_v61 = vld [vmem:[%s2073_s0 + $0x114] sm:$0xf]  ;;  %v171_v62 = vunpack.c.h.bf16 %v1546_v14 }
  0x4d   :  { %v313_v15 = vadd.f32 %v1764_v26, %v231_v8  ;;  %v167_v8 = vunpack.c.l.bf16 %v100_v43 }
  0x4e   :  { %v360_v22 = vpack.c.bf16 %v315_v4, %v310_v2 }
  0x51   :  { %755 = vmatmul.bf16.gmra.mxu1 %v345_v36  ;;  %799 = vmatmul.bf16.gmra.mxu2 %v346_v37  ;;  %v308_v36 = vadd.f32 %v1764_v26, %v226_v33  ;;  %v357_v37 = vpack.c.bf16 %v307_v47, %v302_v46  ;;  %v159_v33 = vunpack.c.l.bf16 %v95_v29  ;;  %v164_v46 = vunpack.c.l.bf16 %v98_v16 }
  0x52   :  { %843 = vmatmul.bf16.gmra.mxu3 %v347_v31  ;;  %v224_v31 = vmul.f32 %v1726_v10, %v142_v27  ;;  %v158_v27 = vunpack.c.h.bf16 %v94_v57 }
  0x53   :  { %887 = vmatmul.bf16.gmra.mxu0 %v348_v25  ;;  %v88_v25 = vld [vmem:[%s2073_s0 + $0xa8] sm:$0xff]  ;;  %v358_v38 = vpack.c.bf16 %v308_v36, %v303_v35  ;;  %v241_v52 = vmul.f32 %v1732_v63, %v159_v33 }
  0x54   :  { %v306_v34 = vadd.f32 %v1756_v21, %v224_v31  ;;  %v148_v39 = vunpack.c.h.bf16 %v88_v25  ;;  %v147_v44 = vunpack.c.l.bf16 %v88_v25  ;;  %v157_v31 = vunpack.c.l.bf16 %v94_v57 }
  0x55   :  { %v240_v47 = vmul.f32 %v1706_v45, %v158_v27  ;;  %v323_v41 = vadd.f32 %v1764_v26, %v241_v52 }
  0x56   :  { %v230_v55 = vmul.f32 %v1706_v45, %v148_v39  ;;  %v239_v36 = vmul.f32 %v1726_v10, %v157_v31 }
  0x57   :  { %v322_v25 = vadd.f32 %v1740_v3, %v240_v47 }
  0x58   :  { %v312_v0 = vadd.f32 %v1740_v3, %v230_v55  ;;  %v321_v39 = vadd.f32 %v1756_v21, %v239_v36  ;;  %v168_v55 = vunpack.c.h.bf16 %v100_v43 }
  0x5a   :  { %v250_v2 = vmul.f32 %v1706_v45, %v168_v55 }
  0x61   :  { %760 = vmatmul.bf16.gmra.mxu1 %v350_v59  ;;  %804 = vmatmul.bf16.gmra.mxu2 %v351_v19  ;;  %v301_v59 = vadd.f32 %v1756_v21, %v219_v30  ;;  %v318_v19 = vadd.f32 %v1764_v26, %v236_v9  ;;  %v161_v30 = vunpack.c.h.bf16 %v1618_v53  ;;  %v246_v53 = vmul.f32 %v1732_v63, %v164_v46 }
  0x62   :  { %848 = vmatmul.bf16.gmra.mxu3 %v352_v7 }
  0x63   :  { %892 = vmatmul.bf16.gmra.mxu0 %v353_v56  ;;  %v356_v51 = vpack.c.bf16 %v306_v34, %v301_v59  ;;  %v362_v56 = vpack.c.bf16 %v317_v1, %v312_v0  ;;  %v363_v24 = vpack.c.bf16 %v318_v19, %v313_v15  ;;  %v245_v59 = vmul.f32 %v1706_v45, %v163_v28 }
  0x64   :  { %v238_v34 = vmul.f32 %v1723_v58, %v156_v17  ;;  %v243_v35 = vmul.f32 %v1723_v58, %v161_v30  ;;  %v328_v6 = vadd.f32 %v1764_v26, %v246_v53  ;;  %v169_v0 = vunpack.c.l.bf16 %v101_v11 }
  0x65   :  { %v327_v49 = vadd.f32 %v1740_v3, %v245_v59  ;;  %v174_v1 = vunpack.c.l.bf16 %v104_v61  ;;  %v249_v15 = vmul.f32 %v1726_v10, %v167_v8 }
  0x66   :  { %v368_v54 = vpack.c.bf16 %v328_v6, %v323_v41 }
  0x67   :  { %v367_v42 = vpack.c.bf16 %v327_v49, %v322_v25  ;;  %v256_v14 = vmul.f32 %v1732_v63, %v174_v1 }
  0x71   :  { %765 = vmatmul.bf16.gmra.mxu1 %v355_v5  ;;  %809 = vmatmul.bf16.gmra.mxu2 %v356_v51  ;;  %v229_v5 = vmul.f32 %v1726_v10, %v147_v44  ;;  %v320_v51 = vadd.f32 %v1751_v18, %v238_v34  ;;  %v103_v44 = vld [vmem:[%s2073_s0 + $0x10c] sm:$0xff] }
  0x72   :  { %853 = vmatmul.bf16.gmra.mxu3 %v357_v37  ;;  %v244_v37 = vmul.f32 %v1726_v10, %v162_v32  ;;  %v173_v60 = vunpack.c.h.bf16 %v103_v44  ;;  %v172_v9 = vunpack.c.l.bf16 %v103_v44 }
  0x73   :  { %897 = vmatmul.bf16.gmra.mxu0 %v358_v38  ;;  %v311_v7 = vadd.f32 %v1756_v21, %v229_v5  ;;  %v325_v38 = vadd.f32 %v1751_v18, %v243_v35  ;;  %v166_v5 = vunpack.c.h.bf16 %v1541_v13  ;;  %v251_v13 = vmul.f32 %v1732_v63, %v169_v0 }
  0x74   :  { %v326_v40 = vadd.f32 %v1756_v21, %v244_v37  ;;  %v255_v4 = vmul.f32 %v1706_v45, %v173_v60  ;;  %v254_v19 = vmul.f32 %v1726_v10, %v172_v9  ;;  %v338_v10 = vadd.f32 %v1764_v26, %v256_v14 }
  0x75   :  { %v361_v23 = vpack.c.bf16 %v316_v12, %v311_v7  ;;  %v365_v48 = vpack.c.bf16 %v325_v38, %v320_v51  ;;  %v248_v7 = vmul.f32 %v1723_v58, %v166_v5  ;;  %v253_v12 = vmul.f32 %v1723_v58, %v171_v62 }
  0x76   :  { %v366_v50 = vpack.c.bf16 %v326_v40, %v321_v39  ;;  %v337_v57 = vadd.f32 %v1740_v3, %v255_v4  ;;  %v336_v58 = vadd.f32 %v1756_v21, %v254_v19 }
  0x77   :  { %v330_v20 = vadd.f32 %v1751_v18, %v248_v7  ;;  %v335_v45 = vadd.f32 %v1751_v18, %v253_v12  ;;  %v1989_v18 = vld [vmem:[%s2076_s4] ss:$0 sm:$0xff] }
  0x79   :  { %v370_v27 = vpack.c.bf16 %v335_v45, %v330_v20 }
  0x81   :  { %770 = vmatmul.bf16.gmra.mxu1 %v360_v22  ;;  %814 = vmatmul.bf16.gmra.mxu2 %v361_v23  ;;  %v331_v22 = vadd.f32 %v1756_v21, %v249_v15  ;;  %v333_v23 = vadd.f32 %v1764_v26, %v251_v13 }
  0x82   :  { %858 = vmatmul.bf16.gmra.mxu3 %v362_v56  ;;  %v332_v56 = vadd.f32 %v1740_v3, %v250_v2 }
  0x83   :  { %902 = vmatmul.bf16.gmra.mxu0 %v363_v24  ;;  %v371_v28 = vpack.c.bf16 %v336_v58, %v331_v22  ;;  %v373_v29 = vpack.c.bf16 %v338_v10, %v333_v23 }
  0x84   :  { %v372_v24 = vpack.c.bf16 %v337_v57, %v332_v56 }
  0x91   :  { %775 = vmatmul.bf16.gmra.mxu1 %v365_v48  ;;  %819 = vmatmul.bf16.gmra.mxu2 %v366_v50 }
  0x92   :  { %863 = vmatmul.bf16.gmra.mxu3 %v367_v42 }
  0x93   :  { %907 = vmatmul.bf16.gmra.mxu0 %v368_v54 }
  0x9e   :  { %v1984_v63 = vpop.f32.mrf.mxu1 }
  0xa0   :  { %v707_v3 = vpop.f32.mrf.mxu0 }
  0xa1   :  { %780 = vmatmul.bf16.gmra.mxu1 %v370_v27  ;;  %824 = vmatmul.bf16.gmra.mxu2 %v371_v28  ;;  %v708_v38 = vadd.f32 %v1989_v18, %v707_v3 }
  0xa2   :  { %868 = vmatmul.bf16.gmra.mxu3 %v372_v24 }
  0xa3   :  { %912 = vmatmul.bf16.gmra.mxu0 %v373_v29 }
  0xa4   :  { %v727_v21 = vpop.f32.mrf.mxu2 }
  0xa5   :  { %v1992_v16 = vadd.f32 %v1989_v18, %v727_v21 }
  0xa6   :  { %v1994_v26 = vpop.f32.mrf.mxu1 }
  0xa7   :  { %v737_v17 = vpop.f32.mrf.mxu3 }
  0xa8   :  { %v709_v30 = vpop.f32.mrf.mxu0  ;;  %v1997_v31 = vadd.f32 %v1989_v18, %v737_v17 }
  0xa9   :  { %v710_v48 = vadd.f32 %v1989_v18, %v709_v30  ;;  %v718_v30 = vadd.f32 %v1989_v18, %v1984_v63  ;;  %v720_v63 = vadd.f32 %v1989_v18, %v1994_v26 }
  0xac   :  { %v729_v32 = vpop.f32.mrf.mxu2 }
  0xad   :  { %v2000_v33 = vadd.f32 %v1989_v18, %v729_v32 }
  0xae   :  { %v2002_v46 = vpop.f32.mrf.mxu1 }
  0xaf   :  { %v739_v47 = vpop.f32.mrf.mxu3  ;;  %v723_v26 = vadd.f32 %v1989_v18, %v2002_v46 }
  0xb0   :  { %v712_v59 = vpop.f32.mrf.mxu0  ;;  %v2005_v34 = vadd.f32 %v1989_v18, %v739_v47 }
  0xb1   :  { %v713_v9 = vadd.f32 %v1989_v18, %v712_v59 }
  0xb4   :  { %v732_v35 = vpop.f32.mrf.mxu2 }
  0xb5   :  { %v2008_v36 = vadd.f32 %v1989_v18, %v732_v35 }
  0xb6   :  { %v2010_v37 = vpop.f32.mrf.mxu1 }
  0xb8   :  { %v714_v52 = vpop.f32.mrf.mxu0 }
  0xb9   :  { %v715_v58 = vadd.f32 %v1989_v18, %v714_v52 }
  0xbc   :  { %v734_v53 = vpop.f32.mrf.mxu2 }
  0xbd   :  { %v2013_v25 = vadd.f32 %v1989_v18, %v734_v53 }
  0xbe   :  { %v751_v49 = vpop.f32.mrf.mxu1 }
  0xbf   :  { %v752_v40 = vadd.f32 %v751_v49, %v708_v38 }
  0xc0   :  { %v883_v51 = vpop.f32.mrf.mxu0 }
  0xc4   :  { %v795_v41 = vpop.f32.mrf.mxu2 }
  0xc5   :  { %v839_v39 = vpop.f32.mrf.mxu3  ;;  %v796_v6 = vadd.f32 %v795_v41, %v752_v40 }
  0xc6   :  { %v753_v42 = vpop.f32.mrf.mxu1 }
  0xc7   :  { %v840_v43 = vadd.f32 %v839_v39, %v796_v6  ;;  %v754_v55 = vadd.f32 %v753_v42, %v710_v48 }
  0xc8   :  { %v885_v44 = vpop.f32.mrf.mxu0 }
  0xc9   :  { %v884_v54 = vadd.f32 %v883_v51, %v840_v43 }
  0xcb   :  { %v932_v5 = vmul.f32 0.2, %v884_v54  ;;  %vm918_vm0 = vcmp.ge.f32.partialorder %v884_v54, 0.0 }
  0xcc   :  { %v797_v60 = vpop.f32.mrf.mxu2 }
  0xcd   :  { %v841_v50 = vpop.f32.mrf.mxu3  ;;  %v798_v11 = vadd.f32 %v797_v60, %v754_v55  ;;  %v946_v2 = vsel %vm918_vm0, %v884_v54, %v932_v5 }
  0xce   :  { %v756_v61 = vpop.f32.mrf.mxu1  ;;  %v1104_v13 = vmul.f32 %v946_v2, %v946_v2 }
  0xcf   :  { %v842_v62 = vadd.f32 %v841_v50, %v798_v11  ;;  %v757_v7 = vadd.f32 %v756_v61, %v713_v9 }
  0xd0   :  { %v888_v8 = vpop.f32.mrf.mxu0 }
  0xd1   :  { %v886_v0 = vadd.f32 %v885_v44, %v842_v62 }
  0xd3   :  { %vm919_vm1 = vcmp.ge.f32.partialorder %v886_v0, 0.0  ;;  %v933_v4 = vmul.f32 0.2, %v886_v0 }
  0xd4   :  { %v800_v12 = vpop.f32.mrf.mxu2 }
  0xd5   :  { %v844_v1 = vpop.f32.mrf.mxu3  ;;  %v947_v15 = vsel %vm919_vm1, %v886_v0, %v933_v4  ;;  %v801_v19 = vadd.f32 %v800_v12, %v757_v7 }
  0xd6   :  { %v1382_v14 = vpack.c.bf16 %v947_v15, %v946_v2  ;;  %v1082_v56 = vadd.f32 %v947_v15, %v946_v2  ;;  %v1105_v57 = vmul.f32 %v947_v15, %v947_v15  ;;  %v758_v20 = vpop.f32.mrf.mxu1 }
  0xd7   :  { %v845_v23 = vadd.f32 %v844_v1, %v801_v19  ;;  %v759_v24 = vadd.f32 %v758_v20, %v715_v58 }
  0xd8   :  { %v890_v45 = vpop.f32.mrf.mxu0  ;;  %1383 = vst [vmem:[%s2077_s5] sm:$0xff] %v1382_v14   ;;  %v1118_v22 = vadd.f32 %v1105_v57, %v1104_v13 }
  0xd9   :  { %v889_v28 = vadd.f32 %v888_v8, %v845_v23  ;;  %v725_v23 = vadd.f32 %v1989_v18, %v2010_v37 }
  0xdb   :  { %v934_v32 = vmul.f32 0.2, %v889_v28  ;;  %vm920_vm2 = vcmp.ge.f32.partialorder %v889_v28, 0.0 }
  0xdc   :  { %v802_v27 = vpop.f32.mrf.mxu2 }
  0xdd   :  { %v846_v10 = vpop.f32.mrf.mxu3  ;;  %v803_v29 = vadd.f32 %v802_v27, %v759_v24  ;;  %v948_v49 = vsel %vm920_vm2, %v889_v28, %v934_v32 }
  0xde   :  { %v761_v3 = vpop.f32.mrf.mxu1  ;;  %v1106_v42 = vmul.f32 %v948_v49, %v948_v49  ;;  %v1083_v44 = vadd.f32 %v1082_v56, %v948_v49 }
  0xdf   :  { %v847_v21 = vadd.f32 %v846_v10, %v803_v29  ;;  %v762_v53 = vadd.f32 %v761_v3, %v718_v30 }
  0xe0   :  { %v893_v17 = vpop.f32.mrf.mxu0  ;;  %v1119_v60 = vadd.f32 %v1118_v22, %v1106_v42 }
  0xe1   :  { %v891_v47 = vadd.f32 %v890_v45, %v847_v21 }
  0xe3   :  { %vm921_vm3 = vcmp.ge.f32.partialorder %v891_v47, 0.0  ;;  %v935_v35 = vmul.f32 0.2, %v891_v47 }
  0xe4   :  { %v805_v52 = vpop.f32.mrf.mxu2 }
  0xe5   :  { %v849_v59 = vpop.f32.mrf.mxu3  ;;  %v949_v51 = vsel %vm921_vm3, %v891_v47, %v935_v35  ;;  %v806_v38 = vadd.f32 %v805_v52, %v762_v53 }
  0xe6   :  { %v1387_v39 = vpack.c.bf16 %v949_v51, %v948_v49  ;;  %v763_v40 = vpop.f32.mrf.mxu1  ;;  %v1107_v48 = vmul.f32 %v949_v51, %v949_v51  ;;  %v1084_v11 = vadd.f32 %v1083_v44, %v949_v51 }
  0xe7   :  { %v850_v41 = vadd.f32 %v849_v59, %v806_v38  ;;  %v764_v55 = vadd.f32 %v763_v40, %v720_v63 }
  0xe8   :  { %v895_v6 = vpop.f32.mrf.mxu0  ;;  %1414 = vst [vmem:[%s2077_s5 + $0x8] sm:$0xff] %v1387_v39   ;;  %v1120_v8 = vadd.f32 %v1119_v60, %v1107_v48 }
  0xe9   :  { %v894_v43 = vadd.f32 %v893_v17, %v850_v41 }
  0xeb   :  { %vm922_vm4 = vcmp.ge.f32.partialorder %v894_v43, 0.0  ;;  %v936_v54 = vmul.f32 0.2, %v894_v43 }
  0xec   :  { %v807_v61 = vpop.f32.mrf.mxu2 }
  0xed   :  { %v851_v50 = vpop.f32.mrf.mxu3  ;;  %v950_v5 = vsel %vm922_vm4, %v894_v43, %v936_v54  ;;  %v808_v62 = vadd.f32 %v807_v61, %v764_v55 }
  0xee   :  { %v1085_v9 = vadd.f32 %v1084_v11, %v950_v5  ;;  %v1108_v0 = vmul.f32 %v950_v5, %v950_v5  ;;  %v766_v1 = vpop.f32.mrf.mxu1 }
  0xef   :  { %v852_v2 = vadd.f32 %v851_v50, %v808_v62  ;;  %v767_v13 = vadd.f32 %v766_v1, %v723_v26 }
  0xf0   :  { %v898_v4 = vpop.f32.mrf.mxu0  ;;  %v1121_v7 = vadd.f32 %v1120_v8, %v1108_v0  ;;  %v1446_v0 = vmov 0.0  }
  0xf1   :  { %v896_v12 = vadd.f32 %v895_v6, %v852_v2  ;;  %1079 = vst [vmem:[%s2078_s6] sm:$0x1] %v1446_v0 }
  0xf2   :  { %1080 = vst [vmem:[%s2079_s7] sm:$0x1] %v1446_v0 }
  0xf3   :  { %vm923_vm5 = vcmp.ge.f32.partialorder %v896_v12, 0.0  ;;  %v937_v19 = vmul.f32 0.2, %v896_v12 }
  0xf4   :  { %v810_v14 = vpop.f32.mrf.mxu2 }
  0xf5   :  { %v854_v15 = vpop.f32.mrf.mxu3  ;;  %v951_v56 = vsel %vm923_vm5, %v896_v12, %v937_v19  ;;  %v811_v57 = vadd.f32 %v810_v14, %v767_v13 }
  0xf6   :  { %v1392_v20 = vpack.c.bf16 %v951_v56, %v950_v5  ;;  %v768_v45 = vpop.f32.mrf.mxu1  ;;  %v1109_v10 = vmul.f32 %v951_v56, %v951_v56  ;;  %v1086_v29 = vadd.f32 %v1085_v9, %v951_v56 }
  0xf7   :  { %v855_v22 = vadd.f32 %v854_v15, %v811_v57  ;;  %v769_v28 = vadd.f32 %v768_v45, %v725_v23 }
  0xf8   :  { %v900_v58 = vpop.f32.mrf.mxu0  ;;  %1415 = vst [vmem:[%s2077_s5 + $0x10] sm:$0xff] %v1392_v20   ;;  %v1122_v30 = vadd.f32 %v1121_v7, %v1109_v10 }
  0xf9   :  { %v899_v46 = vadd.f32 %v898_v4, %v855_v22 }
  0xfb   :  { %vm924_vm6 = vcmp.ge.f32.partialorder %v899_v46, 0.0  ;;  %v938_v27 = vmul.f32 0.2, %v899_v46 }
  0xfc   :  { %v812_v3 = vpop.f32.mrf.mxu2 }
  0xfd   :  { %v856_v24 = vpop.f32.mrf.mxu3  ;;  %v952_v21 = vsel %vm924_vm6, %v899_v46, %v938_v27  ;;  %v813_v17 = vadd.f32 %v812_v3, %v769_v28 }
  0xfe   :  { %v1087_v32 = vadd.f32 %v1086_v29, %v952_v21  ;;  %v1110_v47 = vmul.f32 %v952_v21, %v952_v21  ;;  %v771_v59 = vpop.f32.mrf.mxu1 }
  0xff   :  { %v857_v35 = vadd.f32 %v856_v24, %v813_v17  ;;  %v772_v37 = vadd.f32 %v771_v59, %v1992_v16  ;;  %v989_v17 = vlaneseq }
 0x100   :  { %v903_v53 = vpop.f32.mrf.mxu0  ;;  %v1123_v52 = vadd.f32 %v1122_v30, %v1110_v47 }
 0x101   :  { %v901_v49 = vadd.f32 %v900_v58, %v857_v35  ;;  %v990_v35 = vshrl.u32 %v989_v17, 7 }
 0x103   :  { %vm925_vm7 = vcmp.ge.f32.partialorder %v901_v49, 0.0  ;;  %v939_v18 = vmul.f32 0.2, %v901_v49 }
 0x104   :  { %v815_v38 = vpop.f32.mrf.mxu2 }
 0x105   :  { %v859_v51 = vpop.f32.mrf.mxu3  ;;  %v953_v39 = vsel %vm925_vm7, %v901_v49, %v939_v18  ;;  %v816_v40 = vadd.f32 %v815_v38, %v772_v37 }
 0x106   :  { %v1397_v41 = vpack.c.bf16 %v953_v39, %v952_v21  ;;  %v773_v6 = vpop.f32.mrf.mxu1  ;;  %v1111_v44 = vmul.f32 %v953_v39, %v953_v39  ;;  %v1088_v55 = vadd.f32 %v1087_v32, %v953_v39 }
 0x107   :  { %v860_v42 = vadd.f32 %v859_v51, %v816_v40  ;;  %v774_v54 = vadd.f32 %v773_v6, %v2000_v33  ;;  %v1002_v40 = vadd.s32 96, %v990_v35 }
 0x108   :  { %1416 = vst [vmem:[%s2077_s5 + $0x18] sm:$0xff] %v1397_v41   ;;  %v905_v63 = vpop.f32.mrf.mxu0  ;;  %v1124_v61 = vadd.f32 %v1123_v52, %v1111_v44 }
 0x109   :  { %v904_v43 = vadd.f32 %v903_v53, %v860_v42  ;;  %vm1031_vm13 = vcmp.lt.s32.totalorder %v1002_v40, 98 }
 0x10b   :  { %vm926_vm8 = vcmp.ge.f32.partialorder %v904_v43, 0.0  ;;  %v940_v50 = vmul.f32 0.2, %v904_v43 }
 0x10c   :  { %v817_v16 = vpop.f32.mrf.mxu2 }
 0x10d   :  { %v861_v48 = vpop.f32.mrf.mxu3  ;;  %v954_v60 = vsel %vm926_vm8, %v904_v43, %v940_v50  ;;  %v818_v11 = vadd.f32 %v817_v16, %v774_v54 }
 0x10e   :  { %v1089_v5 = vadd.f32 %v1088_v55, %v954_v60  ;;  %v1112_v62 = vmul.f32 %v954_v60, %v954_v60  ;;  %v776_v8 = vpop.f32.mrf.mxu1 }
 0x10f   :  { %v862_v9 = vadd.f32 %v861_v48, %v818_v11  ;;  %v777_v26 = vadd.f32 %v776_v8, %v2008_v36 }
 0x110   :  { %v1125_v1 = vadd.f32 %v1124_v61, %v1112_v62  ;;  %v908_v2 = vpop.f32.mrf.mxu0 }
 0x111   :  { %v906_v33 = vadd.f32 %v905_v63, %v862_v9 }
 0x113   :  { %vm927_vm9 = vcmp.ge.f32.partialorder %v906_v33, 0.0  ;;  %v941_v7 = vmul.f32 0.2, %v906_v33 }
 0x114   :  { %v820_v12 = vpop.f32.mrf.mxu2 }
 0x115   :  { %v864_v4 = vpop.f32.mrf.mxu3  ;;  %v955_v15 = vsel %vm927_vm9, %v906_v33, %v941_v7  ;;  %v821_v19 = vadd.f32 %v820_v12, %v777_v26 }
 0x116   :  { %v1402_v13 = vpack.c.bf16 %v955_v15, %v954_v60  ;;  %v1090_v14 = vadd.f32 %v1089_v5, %v955_v15  ;;  %v1113_v56 = vmul.f32 %v955_v15, %v955_v15  ;;  %v778_v57 = vpop.f32.mrf.mxu1  ;;  %v1081_v15 = vld [vmem:[%s2078_s6] sm:$0x1] }
 0x117   :  { %v865_v20 = vadd.f32 %v864_v4, %v821_v19  ;;  %v779_v46 = vadd.f32 %v778_v57, %v2013_v25 }
 0x118   :  { %1417 = vst [vmem:[%s2077_s5 + $0x20] sm:$0xff] %v1402_v13   ;;  %v1126_v45 = vadd.f32 %v1125_v1, %v1113_v56  ;;  %v910_v36 = vpop.f32.mrf.mxu0 }
 0x119   :  { %v909_v22 = vadd.f32 %v908_v2, %v865_v20 }
 0x11b   :  { %vm928_vm10 = vcmp.ge.f32.partialorder %v909_v22, 0.0  ;;  %v942_v23 = vmul.f32 0.2, %v909_v22 }
 0x11c   :  { %v822_v10 = vpop.f32.mrf.mxu2 }
 0x11d   :  { %v866_v58 = vpop.f32.mrf.mxu3  ;;  %v956_v24 = vsel %vm928_vm10, %v909_v22, %v942_v23  ;;  %v823_v27 = vadd.f32 %v822_v10, %v779_v46 }
 0x11e   :  { %v1091_v28 = vadd.f32 %v1090_v14, %v956_v24  ;;  %v1114_v29 = vmul.f32 %v956_v24, %v956_v24  ;;  %v781_v3 = vpop.f32.mrf.mxu1  ;;  %v1103_v14 = vld [vmem:[%s2079_s7] sm:$0x1] }
 0x11f   :  { %v867_v21 = vadd.f32 %v866_v58, %v823_v27  ;;  %v782_v59 = vadd.f32 %v781_v3, %v1997_v31 }
 0x120   :  { %v1127_v30 = vadd.f32 %v1126_v45, %v1114_v29  ;;  %v913_v38 = vpop.f32.mrf.mxu0 }
 0x121   :  { %v911_v32 = vadd.f32 %v910_v36, %v867_v21 }
 0x123   :  { %vm929_vm11 = vcmp.ge.f32.partialorder %v911_v32, 0.0  ;;  %v943_v47 = vmul.f32 0.2, %v911_v32 }
 0x124   :  { %v825_v52 = vpop.f32.mrf.mxu2 }
 0x125   :  { %v869_v53 = vpop.f32.mrf.mxu3  ;;  %v957_v49 = vsel %vm929_vm11, %v911_v32, %v943_v47  ;;  %v826_v25 = vadd.f32 %v825_v52, %v782_v59 }
 0x126   :  { %v1407_v51 = vpack.c.bf16 %v957_v49, %v956_v24  ;;  %v1092_v18 = vadd.f32 %v1091_v28, %v957_v49  ;;  %v1115_v37 = vmul.f32 %v957_v49, %v957_v49  ;;  %v783_v6 = vpop.f32.mrf.mxu1 }
 0x127   :  { %v870_v39 = vadd.f32 %v869_v53, %v826_v25  ;;  %v784_v63 = vadd.f32 %v783_v6, %v2005_v34 }
 0x128   :  { %1418 = vst [vmem:[%s2077_s5 + $0x28] sm:$0xff] %v1407_v51   ;;  %v1128_v41 = vadd.f32 %v1127_v30, %v1115_v37  ;;  %v915_v11 = vpop.f32.mrf.mxu0 }
 0x129   :  { %v914_v42 = vadd.f32 %v913_v38, %v870_v39 }
 0x12b   :  { %vm930_vm12 = vcmp.ge.f32.partialorder %v914_v42, 0.0  ;;  %v944_v31 = vmul.f32 0.2, %v914_v42 }
 0x12c   :  { %v827_v43 = vpop.f32.mrf.mxu2 }
 0x12d   :  { %v958_v44 = vsel %vm930_vm12, %v914_v42, %v944_v31  ;;  %v828_v48 = vadd.f32 %v827_v43, %v784_v63  ;;  %v871_v54 = vpop.f32.mrf.mxu3 }
 0x12e   :  { %v1073_v50 = vsel %vm1031_vm13, %v958_v44, 0.0 }
 0x12f   :  { %v1093_v55 = vadd.f32 %v1092_v18, %v1073_v50  ;;  %v1116_v16 = vmul.f32 %v1073_v50, %v1073_v50  ;;  %v872_v60 = vadd.f32 %v871_v54, %v828_v48 }
 0x131   :  { %v1095_v61 = vrot.slane %v1093_v55, 4  ;;  %v1129_v5 = vadd.f32 %v1128_v41, %v1116_v16  ;;  %v916_v62 = vadd.f32 %v915_v11, %v872_v60 }
 0x133   :  { %v1096_v8 = vadd.f32 %v1095_v61, %v1093_v55  ;;  %v1131_v9 = vrot.slane %v1129_v5, 4  ;;  %vm931_vm14 = vcmp.ge.f32.partialorder %v916_v62, 0.0  ;;  %v945_v0 = vmul.f32 0.2, %v916_v62 }
 0x135   :  { %v1097_v1 = vrot.slane %v1096_v8, 2  ;;  %v1132_v33 = vadd.f32 %v1131_v9, %v1129_v5  ;;  %v959_v2 = vsel %vm931_vm14, %v916_v62, %v945_v0 }
 0x136   :  { %v1412_v34 = vpack.c.bf16 %v959_v2, %v958_v44 }
 0x137   :  { %v1098_v4 = vadd.f32 %v1097_v1, %v1096_v8  ;;  %v1133_v7 = vrot.slane %v1132_v33, 2 }
 0x138   :  { %1419 = vst [vmem:[%s2077_s5 + $0x30] sm:$0xff] %v1412_v34  }
 0x139   :  { %v1099_v26 = vrot.slane %v1098_v4, 1  ;;  %v1134_v12 = vadd.f32 %v1133_v7, %v1132_v33 }
 0x13b   :  { %v1100_v19 = vadd.f32 %v1099_v26, %v1098_v4  ;;  %v1135_v13 = vrot.slane %v1134_v12, 1 }
 0x13d   :  { %v1101_v56 = vadd.f32 %v1100_v19, %v1081_v15  ;;  %v1136_v57 = vadd.f32 %v1135_v13, %v1134_v12 }
 0x13f   :  { %1102 = vst [vmem:[%s2078_s6] sm:$0x1] %v1101_v56  ;;  %v1137_v20 = vadd.f32 %v1136_v57, %v1103_v14 }
 0x141   :  { %1138 = vst [vmem:[%s2079_s7] sm:$0x1] %v1137_v20 }

// kernel: cnn_base_forward.9
= control target key start
LH: loop header
LB: loop body
LE: loop exit
PB: predicated region body
PF: predicated region fallthrough
CT: control target
= control target key end

     0   :  { %vm110_vm0 = vcmask 7168   ;;  %s223_s0 = inlined_call_operand.vmem [shape: f32[16,512], index: 0, kind: input, shape index: {}]   ;;  %s224_s1 = inlined_call_operand.vmem [shape: f32[1,512], index: 1, kind: input, shape index: {}]   ;;  %s225_s2 = inlined_call_operand.vmem [shape: f32[1,512], index: 2, kind: input, shape index: {}]   ;;  %s226_s3 = inlined_call_operand.vmem [shape: f32[1,512], index: 3, kind: input, shape index: {}]   ;;  %s227_s4 = inlined_call_operand.<no memory space> [shape: f32[1,1], index: 4, kind: input, shape index: {}]   ;;  %s228_s5 = inlined_call_operand.vmem [shape: f32[16,512], index: 5, kind: output, shape index: {0}]   ;;  %s229_s6 = inlined_call_operand.vmem [shape: f32[16,1], index: 6, kind: output, shape index: {1}]  }
   0x1   :  { %v24_v0 = vld [vmem:[%s223_s0] sm:$0xff]  ;;  %v25_v1 = vld [vmem:[%s223_s0 + $0x8] sm:$0xff]  ;;  %v26_v2 = vld [vmem:[%s223_s0 + $0x10] sm:$0xff]  ;;  %v12_v6 = vstv %s227_s4 }
   0x2   :  { %v27_v3 = vld [vmem:[%s223_s0 + $0x18] sm:$0xff]  ;;  %v32_v4 = vld [vmem:[%s224_s1] sm:$0xf]  ;;  %v29_v21 = vld [vmem:[%s223_s0 + $0x28] sm:$0xff]  ;;  %13 = vst [vmem:[#allocation2] sm:$0x1] %v12_v6 }
   0x3   :  { %v50_v5 = vld [vmem:[%s225_s2] sm:$0xf]  ;;  %v34_v7 = vperm.slane %v32_v4, 0  ;;  %v35_v8 = vperm.slane %v32_v4, 1  ;;  %v36_v9 = vperm.slane %v32_v4, 2  ;;  %v37_v10 = vperm.slane %v32_v4, 3 }
   0x4   :  { %v76_v11 = vld [vmem:[%s226_s3] sm:$0xf]  ;;  %v52_v12 = vperm.slane %v50_v5, 0  ;;  %v53_v13 = vperm.slane %v50_v5, 1  ;;  %v54_v14 = vperm.slane %v50_v5, 2  ;;  %v55_v15 = vperm.slane %v50_v5, 3 }
   0x5   :  { %v42_v16 = vmul.f32 %v34_v7, %v24_v0  ;;  %v43_v17 = vmul.f32 %v35_v8, %v25_v1  ;;  %v44_v18 = vmul.f32 %v36_v9, %v26_v2  ;;  %v45_v19 = vmul.f32 %v37_v10, %v27_v3  ;;  %v28_v20 = vld [vmem:[%s223_s0 + $0x20] sm:$0xff]  ;;  %v30_v22 = vld [vmem:[%s223_s0 + $0x30] sm:$0xff]  ;;  %v31_v27 = vld [vmem:[%s223_s0 + $0x38] sm:$0xff] }
   0x6   :  { %v78_v23 = vperm.slane %v76_v11, 0  ;;  %v79_v24 = vperm.slane %v76_v11, 1  ;;  %v80_v25 = vperm.slane %v76_v11, 2  ;;  %v81_v26 = vperm.slane %v76_v11, 3 }
   0x7   :  { %v60_v28 = vadd.f32 %v52_v12, %v42_v16  ;;  %v61_v29 = vadd.f32 %v53_v13, %v43_v17  ;;  %v62_v30 = vadd.f32 %v54_v14, %v44_v18  ;;  %v63_v31 = vadd.f32 %v55_v15, %v45_v19 }
   0x8   :  { %v46_v32 = vmul.f32 %v34_v7, %v28_v20  ;;  %v47_v33 = vmul.f32 %v35_v8, %v29_v21  ;;  %v48_v34 = vmul.f32 %v36_v9, %v30_v22  ;;  %v49_v38 = vmul.f32 %v37_v10, %v31_v27 }
   0x9   :  { %69 = vst [vmem:[%s228_s5 + $0x8] sm:$0xff] %v61_v29  ;;  %v86_v35 = vmul.f32 %v78_v23, %v60_v28  ;;  %v87_v36 = vmul.f32 %v79_v24, %v61_v29  ;;  %v88_v37 = vmul.f32 %v80_v25, %v62_v30  ;;  %v89_v42 = vmul.f32 %v81_v26, %v63_v31  ;;  %v121_v54 = vld [vmem:[#allocation2] ss:$0 sm:$0xff] }
   0xa   :  { %70 = vst [vmem:[%s228_s5 + $0x10] sm:$0xff] %v62_v30  ;;  %v64_v39 = vadd.f32 %v52_v12, %v46_v32  ;;  %v65_v40 = vadd.f32 %v53_v13, %v47_v33  ;;  %v66_v41 = vadd.f32 %v54_v14, %v48_v34  ;;  %v67_v47 = vadd.f32 %v55_v15, %v49_v38 }
   0xb   :  { %71 = vst [vmem:[%s228_s5 + $0x18] sm:$0xff] %v63_v31  ;;  %v94_v43 = vadd.f32 %v87_v36, %v86_v35 }
   0xc   :  { %68 = vst [vmem:[%s228_s5] sm:$0xff] %v60_v28  ;;  %v90_v44 = vmul.f32 %v78_v23, %v64_v39  ;;  %v91_v45 = vmul.f32 %v79_v24, %v65_v40  ;;  %v92_v48 = vmul.f32 %v80_v25, %v66_v41  ;;  %v93_v51 = vmul.f32 %v81_v26, %v67_v47 }
   0xd   :  { %v95_v46 = vadd.f32 %v94_v43, %v88_v37  ;;  %72 = vst [vmem:[%s228_s5 + $0x20] sm:$0xff] %v64_v39 }
   0xe   :  { %73 = vst [vmem:[%s228_s5 + $0x28] sm:$0xff] %v65_v40  ;;  %v99_v49 = vadd.f32 %v91_v45, %v90_v44 }
   0xf   :  { %v96_v50 = vadd.f32 %v95_v46, %v89_v42  ;;  %74 = vst [vmem:[%s228_s5 + $0x30] sm:$0xff] %v66_v41 }
  0x10   :  { %75 = vst [vmem:[%s228_s5 + $0x38] sm:$0xff] %v67_v47  ;;  %v100_v52 = vadd.f32 %v99_v49, %v92_v48 }
  0x11   :  { %97 = vadd.xlane.f32.xlu0 %v96_v50 }
  0x12   :  { %v101_v53 = vadd.f32 %v100_v52, %v93_v51 }
  0x19   :  { %102 = vadd.xlane.f32.xlu0 %v101_v53 }
  0x84   :  { %v98_v55 = vpop.xlane.xlu0 %97 }
  0x85   :  { %v108_v56 = vadd.f32 %v121_v54, %v98_v55 }
  0x87   :  { %111 = vst.msk [vmem:[%s229_s6] sm:$0xff] %vm110_vm0, %v108_v56 }
  0x8c   :  { %v103_v57 = vpop.xlane.xlu0 %102 }
  0x8d   :  { %v109_v58 = vadd.f32 %v121_v54, %v103_v57 }
  0x8f   :  { %112 = vst.msk [vmem:[%s229_s6 + $0x8] sm:$0xff] %vm110_vm0, %v109_v58 }

// kernel: cnn_base_forward.8
= control target key start
LH: loop header
LB: loop body
LE: loop exit
PB: predicated region body
PF: predicated region fallthrough
CT: control target
= control target key end

     0   :  { %vm6667_vm2 = vcmask 1040384   ;;  %vm6669_vm3 = vcmask 1042434   ;;  %vm6671_vm4 = vcmask 1041408   ;;  %s16446_s3 = inlined_call_operand.vmem [shape: bf16[3200,512], index: 3, kind: input, shape index: {}]   ;;  %s16447_s0 = inlined_call_operand.vmem [shape: bf16[16,3200], index: 0, kind: input, shape index: {}]   ;;  %s16448_s1 = inlined_call_operand.vmem [shape: f32[1,3200], index: 1, kind: input, shape index: {}]   ;;  %s16449_s2 = inlined_call_operand.vmem [shape: f32[1,3200], index: 2, kind: input, shape index: {}]   ;;  %s16450_s4 = inlined_call_operand.vmem [shape: f32[1,512], index: 4, kind: input, shape index: {}]   ;;  %s16451_s6 = inlined_call_operand.vmem [shape: f32[1,1,512], index: 6, kind: output, shape index: {1}]   ;;  %s16452_s7 = inlined_call_operand.vmem [shape: f32[1,1,512], index: 7, kind: output, shape index: {2}]   ;;  %s16453_s5 = inlined_call_operand.vmem [shape: f32[16,512], index: 5, kind: output, shape index: {0}]  }
   0x1   :  { %v6886_v0 = vld [vmem:[%s16446_s3 + $0xe0] sm:$0xf]  ;;  %v10002_v1 = vld [vmem:[%s16446_s3 + $0xec] sm:$0xf0] }
   0x2   :  { %v7014_v2 = vld [vmem:[%s16446_s3 + $0x1e0] sm:$0xf]  ;;  %v6887_v3 = vor.u32 %v10002_v1, %v6886_v0  ;;  %v10034_v4 = vld [vmem:[%s16446_s3 + $0x1ec] sm:$0xf0] }
   0x3   :  { %v7142_v5 = vld [vmem:[%s16446_s3 + $0x2e0] sm:$0xf]  ;;  %v10066_v6 = vld [vmem:[%s16446_s3 + $0x2ec] sm:$0xf0]  ;;  %v7015_v7 = vor.u32 %v10034_v4, %v7014_v2 }
   0x4   :  { %v7143_v8 = vor.u32 %v10066_v6, %v7142_v5  ;;  %v7270_v9 = vld [vmem:[%s16446_s3 + $0x3e0] sm:$0xf]  ;;  %v10098_v10 = vld [vmem:[%s16446_s3 + $0x3ec] sm:$0xf0]  ;;  %5192 = vmatpush.bf16.msra.mxu0 %v6887_v3 }
   0x5   :  { %v6870_v11 = vld [vmem:[%s16446_s3 + $0xc0] sm:$0xf]  ;;  %v7271_v12 = vor.u32 %v10098_v10, %v7270_v9  ;;  %v9998_v13 = vld [vmem:[%s16446_s3 + $0xcc] sm:$0xf0]  ;;  %5206 = vmatpush.bf16.msra.mxu1 %v7015_v7 }
   0x6   :  { %v6998_v14 = vld [vmem:[%s16446_s3 + $0x1c0] sm:$0xf]  ;;  %v10030_v15 = vld [vmem:[%s16446_s3 + $0x1cc] sm:$0xf0]  ;;  %5220 = vmatpush.bf16.msra.mxu2 %v7143_v8  ;;  %v6871_v16 = vor.u32 %v9998_v13, %v6870_v11 }
   0x7   :  { %v6999_v17 = vor.u32 %v10030_v15, %v6998_v14  ;;  %v7126_v18 = vld [vmem:[%s16446_s3 + $0x2c0] sm:$0xf]  ;;  %v10062_v19 = vld [vmem:[%s16446_s3 + $0x2cc] sm:$0xf0]  ;;  %5234 = vmatpush.bf16.msra.mxu3 %v7271_v12 }
   0x8   :  { %v7254_v20 = vld [vmem:[%s16446_s3 + $0x3c0] sm:$0xf]  ;;  %v7127_v21 = vor.u32 %v10062_v19, %v7126_v18  ;;  %v10094_v22 = vld [vmem:[%s16446_s3 + $0x3cc] sm:$0xf0]  ;;  %5193 = vmatpush.bf16.msra.mxu0 %v6871_v16 }
   0x9   :  { %v6854_v23 = vld [vmem:[%s16446_s3 + $0xa0] sm:$0xf]  ;;  %v9994_v24 = vld [vmem:[%s16446_s3 + $0xac] sm:$0xf0]  ;;  %v7255_v25 = vor.u32 %v10094_v22, %v7254_v20  ;;  %5207 = vmatpush.bf16.msra.mxu1 %v6999_v17 }
   0xa   :  { %v6982_v26 = vld [vmem:[%s16446_s3 + $0x1a0] sm:$0xf]  ;;  %v10026_v27 = vld [vmem:[%s16446_s3 + $0x1ac] sm:$0xf0]  ;;  %v6855_v29 = vor.u32 %v9994_v24, %v6854_v23  ;;  %5221 = vmatpush.bf16.msra.mxu2 %v7127_v21 }
   0xb   :  { %v7110_v28 = vld [vmem:[%s16446_s3 + $0x2a0] sm:$0xf]  ;;  %v10058_v30 = vld [vmem:[%s16446_s3 + $0x2ac] sm:$0xf0]  ;;  %v6983_v33 = vor.u32 %v10026_v27, %v6982_v26  ;;  %5235 = vmatpush.bf16.msra.mxu3 %v7255_v25 }
   0xc   :  { %v7238_v31 = vld [vmem:[%s16446_s3 + $0x3a0] sm:$0xf]  ;;  %v10090_v32 = vld [vmem:[%s16446_s3 + $0x3ac] sm:$0xf0]  ;;  %v7111_v34 = vor.u32 %v10058_v30, %v7110_v28  ;;  %5194 = vmatpush.bf16.msra.mxu0 %v6855_v29 }
   0xd   :  { %v6838_v35 = vld [vmem:[%s16446_s3 + $0x80] sm:$0xf]  ;;  %v9990_v36 = vld [vmem:[%s16446_s3 + $0x8c] sm:$0xf0]  ;;  %v7239_v38 = vor.u32 %v10090_v32, %v7238_v31  ;;  %5208 = vmatpush.bf16.msra.mxu1 %v6983_v33 }
   0xe   :  { %v6966_v37 = vld [vmem:[%s16446_s3 + $0x180] sm:$0xf]  ;;  %v10022_v39 = vld [vmem:[%s16446_s3 + $0x18c] sm:$0xf0]  ;;  %v6839_v44 = vor.u32 %v9990_v36, %v6838_v35  ;;  %5222 = vmatpush.bf16.msra.mxu2 %v7111_v34 }
   0xf   :  { %v7094_v40 = vld [vmem:[%s16446_s3 + $0x280] sm:$0xf]  ;;  %v10054_v41 = vld [vmem:[%s16446_s3 + $0x28c] sm:$0xf0]  ;;  %v6967_v45 = vor.u32 %v10022_v39, %v6966_v37  ;;  %5236 = vmatpush.bf16.msra.mxu3 %v7239_v38 }
  0x10   :  { %v7222_v42 = vld [vmem:[%s16446_s3 + $0x380] sm:$0xf]  ;;  %v10086_v43 = vld [vmem:[%s16446_s3 + $0x38c] sm:$0xf0]  ;;  %v7095_v46 = vor.u32 %v10054_v41, %v7094_v40  ;;  %5195 = vmatpush.bf16.msra.mxu0 %v6839_v44 }
  0x11   :  { %v6822_v47 = vld [vmem:[%s16446_s3 + $0x60] sm:$0xf]  ;;  %v9986_v48 = vld [vmem:[%s16446_s3 + $0x6c] sm:$0xf0]  ;;  %v7223_v50 = vor.u32 %v10086_v43, %v7222_v42  ;;  %5209 = vmatpush.bf16.msra.mxu1 %v6967_v45 }
  0x12   :  { %v6950_v49 = vld [vmem:[%s16446_s3 + $0x160] sm:$0xf]  ;;  %v10018_v51 = vld [vmem:[%s16446_s3 + $0x16c] sm:$0xf0]  ;;  %v6823_v56 = vor.u32 %v9986_v48, %v6822_v47  ;;  %5223 = vmatpush.bf16.msra.mxu2 %v7095_v46 }
  0x13   :  { %v7078_v52 = vld [vmem:[%s16446_s3 + $0x260] sm:$0xf]  ;;  %v10050_v53 = vld [vmem:[%s16446_s3 + $0x26c] sm:$0xf0]  ;;  %v6951_v57 = vor.u32 %v10018_v51, %v6950_v49  ;;  %5237 = vmatpush.bf16.msra.mxu3 %v7223_v50 }
  0x14   :  { %v7206_v54 = vld [vmem:[%s16446_s3 + $0x360] sm:$0xf]  ;;  %v10082_v55 = vld [vmem:[%s16446_s3 + $0x36c] sm:$0xf0]  ;;  %v7079_v58 = vor.u32 %v10050_v53, %v7078_v52  ;;  %5196 = vmatpush.bf16.msra.mxu0 %v6823_v56 }
  0x15   :  { %v6806_v59 = vld [vmem:[%s16446_s3 + $0x40] sm:$0xf]  ;;  %v9982_v60 = vld [vmem:[%s16446_s3 + $0x4c] sm:$0xf0]  ;;  %v7207_v62 = vor.u32 %v10082_v55, %v7206_v54  ;;  %5210 = vmatpush.bf16.msra.mxu1 %v6951_v57 }
  0x16   :  { %v6934_v61 = vld [vmem:[%s16446_s3 + $0x140] sm:$0xf]  ;;  %v10014_v63 = vld [vmem:[%s16446_s3 + $0x14c] sm:$0xf0]  ;;  %v6807_v4 = vor.u32 %v9982_v60, %v6806_v59  ;;  %5224 = vmatpush.bf16.msra.mxu2 %v7079_v58 }
  0x17   :  { %v7062_v0 = vld [vmem:[%s16446_s3 + $0x240] sm:$0xf]  ;;  %v10046_v1 = vld [vmem:[%s16446_s3 + $0x24c] sm:$0xf0]  ;;  %v6935_v6 = vor.u32 %v10014_v63, %v6934_v61  ;;  %5238 = vmatpush.bf16.msra.mxu3 %v7207_v62  ;;  %v78_v63 = vld [vmem:[%s16447_s0 + $0x64] sm:$0xff] }
  0x18   :  { %v7190_v2 = vld [vmem:[%s16446_s3 + $0x340] sm:$0xf]  ;;  %v10078_v3 = vld [vmem:[%s16446_s3 + $0x34c] sm:$0xf0]  ;;  %v7063_v7 = vor.u32 %v10046_v1, %v7062_v0  ;;  %5197 = vmatpush.bf16.msra.mxu0 %v6807_v4 }
  0x19   :  { %v6790_v5 = vld [vmem:[%s16446_s3 + $0x20] sm:$0xf]  ;;  %v9978_v8 = vld [vmem:[%s16446_s3 + $0x2c] sm:$0xf0]  ;;  %v7191_v11 = vor.u32 %v10078_v3, %v7190_v2  ;;  %5211 = vmatpush.bf16.msra.mxu1 %v6935_v6  ;;  %v116_v2 = vunpack.c.l.bf16 %v78_v63 }
  0x1a   :  { %v6918_v9 = vld [vmem:[%s16446_s3 + $0x120] sm:$0xf]  ;;  %v10010_v10 = vld [vmem:[%s16446_s3 + $0x12c] sm:$0xf0]  ;;  %v6791_v18 = vor.u32 %v9978_v8, %v6790_v5  ;;  %5225 = vmatpush.bf16.msra.mxu2 %v7063_v7  ;;  %v66_v5 = vld [vmem:[%s16447_s0 + $0x8] sm:$0xff] }
  0x1b   :  { %v7046_v12 = vld [vmem:[%s16446_s3 + $0x220] sm:$0xf]  ;;  %v10042_v13 = vld [vmem:[%s16446_s3 + $0x22c] sm:$0xf0]  ;;  %v6919_v23 = vor.u32 %v10010_v10, %v6918_v9  ;;  %5239 = vmatpush.bf16.msra.mxu3 %v7191_v11  ;;  %v93_v11 = vunpack.c.l.bf16 %v66_v5 }
  0x1c   :  { %v7174_v14 = vld [vmem:[%s16446_s3 + $0x320] sm:$0xf]  ;;  %v10074_v15 = vld [vmem:[%s16446_s3 + $0x32c] sm:$0xf0]  ;;  %v7047_v24 = vor.u32 %v10042_v13, %v7046_v12  ;;  %5198 = vmatpush.bf16.msra.mxu0 %v6791_v18 }
  0x1d   :  { %v6774_v16 = vld [vmem:[%s16446_s3] sm:$0xf]  ;;  %v9974_v17 = vld [vmem:[%s16446_s3 + $0xc] sm:$0xf0]  ;;  %v7175_v28 = vor.u32 %v10074_v15, %v7174_v14  ;;  %5212 = vmatpush.bf16.msra.mxu1 %v6919_v23 }
  0x1e   :  { %v6902_v19 = vld [vmem:[%s16446_s3 + $0x100] sm:$0xf]  ;;  %v10006_v20 = vld [vmem:[%s16446_s3 + $0x10c] sm:$0xf0]  ;;  %v6775_v35 = vor.u32 %v9974_v17, %v6774_v16  ;;  %5226 = vmatpush.bf16.msra.mxu2 %v7047_v24 }
  0x1f   :  { %v7030_v21 = vld [vmem:[%s16446_s3 + $0x200] sm:$0xf]  ;;  %v10038_v22 = vld [vmem:[%s16446_s3 + $0x20c] sm:$0xf0]  ;;  %v6903_v39 = vor.u32 %v10006_v20, %v6902_v19  ;;  %5240 = vmatpush.bf16.msra.mxu3 %v7175_v28 }
  0x20   :  { %v7158_v25 = vld [vmem:[%s16446_s3 + $0x300] sm:$0xf]  ;;  %v10070_v26 = vld [vmem:[%s16446_s3 + $0x30c] sm:$0xf0]  ;;  %v7031_v40 = vor.u32 %v10038_v22, %v7030_v21  ;;  %5199 = vmatpush.bf16.msra.mxu0 %v6775_v35  ;;  %v117_v21 = vunpack.c.h.bf16 %v78_v63 }
  0x21   :  { %v7398_v27 = vld [vmem:[%s16446_s3 + $0x4e0] sm:$0xf]  ;;  %v10130_v29 = vld [vmem:[%s16446_s3 + $0x4ec] sm:$0xf0]  ;;  %v7159_v44 = vor.u32 %v10070_v26, %v7158_v25  ;;  %5213 = vmatpush.bf16.msra.mxu1 %v6903_v39 }
  0x22   :  { %v7526_v30 = vld [vmem:[%s16446_s3 + $0x5e0] sm:$0xf]  ;;  %v10162_v31 = vld [vmem:[%s16446_s3 + $0x5ec] sm:$0xf0]  ;;  %v7399_v45 = vor.u32 %v10130_v29, %v7398_v27  ;;  %5227 = vmatpush.bf16.msra.mxu2 %v7031_v40 }
  0x23   :  { %v7654_v32 = vld [vmem:[%s16446_s3 + $0x6e0] sm:$0xf]  ;;  %v10194_v33 = vld [vmem:[%s16446_s3 + $0x6ec] sm:$0xf0]  ;;  %v7527_v49 = vor.u32 %v10162_v31, %v7526_v30  ;;  %5241 = vmatpush.bf16.msra.mxu3 %v7159_v44 }
  0x24   :  { %v7782_v34 = vld [vmem:[%s16446_s3 + $0x7e0] sm:$0xf]  ;;  %v10226_v36 = vld [vmem:[%s16446_s3 + $0x7ec] sm:$0xf0]  ;;  %v7655_v50 = vor.u32 %v10194_v33, %v7654_v32  ;;  %5248 = vmatpush.bf16.msrb.mxu0 %v7399_v45 }
  0x25   :  { %v11038_v37 = vld [vmem:[%s16446_s3 + $0x4c0] sm:$0xf]  ;;  %v10126_v38 = vld [vmem:[%s16446_s3 + $0x4cc] sm:$0xf0]  ;;  %v7783_v52 = vor.u32 %v10226_v36, %v7782_v34  ;;  %5262 = vmatpush.bf16.msrb.mxu1 %v7527_v49 }
  0x26   :  { %v11046_v41 = vld [vmem:[%s16446_s3 + $0x5c0] sm:$0xf]  ;;  %v11051_v42 = vld [vmem:[%s16446_s3 + $0x5cc] sm:$0xf0]  ;;  %v7383_v53 = vor.u32 %v10126_v38, %v11038_v37  ;;  %5276 = vmatpush.bf16.msrb.mxu2 %v7655_v50  ;;  %v94_v37 = vunpack.c.h.bf16 %v66_v5 }
  0x27   :  { %v11056_v43 = vld [vmem:[%s16446_s3 + $0x6c0] sm:$0xf]  ;;  %v10190_v46 = vld [vmem:[%s16446_s3 + $0x6cc] sm:$0xf0]  ;;  %v7511_v57 = vor.u32 %v11051_v42, %v11046_v41  ;;  %5290 = vmatpush.bf16.msrb.mxu3 %v7783_v52 }
  0x28   :  { %v11064_v47 = vld [vmem:[%s16446_s3 + $0x7c0] sm:$0xf]  ;;  %v11069_v48 = vld [vmem:[%s16446_s3 + $0x7cc] sm:$0xf0]  ;;  %v7639_v58 = vor.u32 %v10190_v46, %v11056_v43  ;;  %5249 = vmatpush.bf16.msrb.mxu0 %v7383_v53 }
  0x29   :  { %v11074_v51 = vld [vmem:[%s16446_s3 + $0x4a0] sm:$0xf]  ;;  %v11080_v54 = vld [vmem:[%s16446_s3 + $0x4ac] sm:$0xf0]  ;;  %v7767_v59 = vor.u32 %v11069_v48, %v11064_v47  ;;  %5263 = vmatpush.bf16.msrb.mxu1 %v7511_v57 }
  0x2a   :  { %v11085_v55 = vld [vmem:[%s16446_s3 + $0x5a0] sm:$0xf]  ;;  %v11090_v56 = vld [vmem:[%s16446_s3 + $0x5ac] sm:$0xf0]  ;;  %v7367_v14 = vor.u32 %v11080_v54, %v11074_v51  ;;  %5277 = vmatpush.bf16.msrb.mxu2 %v7639_v58 }
  0x2b   :  { %v11100_v60 = vld [vmem:[%s16446_s3 + $0x6a0] sm:$0xf]  ;;  %v11105_v61 = vld [vmem:[%s16446_s3 + $0x6ac] sm:$0xf0]  ;;  %v7495_v15 = vor.u32 %v11090_v56, %v11085_v55  ;;  %5291 = vmatpush.bf16.msrb.mxu3 %v7767_v59 }
  0x2c   :  { %v65_v62 = vld [vmem:[%s16447_s0] sm:$0xff]  ;;  %v79_v6 = vld [vmem:[%s16447_s0 + $0x6c] sm:$0xff]  ;;  %v7623_v22 = vor.u32 %v11105_v61, %v11100_v60  ;;  %5250 = vmatpush.bf16.msrb.mxu0 %v7367_v14 }
  0x2d   :  { %v11116_v0 = vld [vmem:[%s16448_s1] sm:$0xff]  ;;  %v91_v1 = vunpack.c.l.bf16 %v65_v62  ;;  %v10218_v9 = vld [vmem:[%s16446_s3 + $0x7ac] sm:$0xf0]  ;;  %v118_v12 = vunpack.c.l.bf16 %v79_v6  ;;  %v92_v20 = vunpack.c.h.bf16 %v65_v62  ;;  %v119_v38 = vunpack.c.h.bf16 %v79_v6  ;;  %5264 = vmatpush.bf16.msrb.mxu1 %v7495_v15 }
  0x2e   :  { %v149_v3 = vperm.slane %v11116_v0, 0  ;;  %v11122_v4 = vld [vmem:[%s16449_s2] sm:$0xff]  ;;  %v151_v7 = vperm.slane %v11116_v0, 2  ;;  %v10118_v25 = vld [vmem:[%s16446_s3 + $0x48c] sm:$0xf0]  ;;  %v150_v32 = vperm.slane %v11116_v0, 1  ;;  %5278 = vmatpush.bf16.msrb.mxu2 %v7623_v22 }
  0x2f   :  { %v7750_v8 = vld [vmem:[%s16446_s3 + $0x7a0] sm:$0xf]  ;;  %v257_v10 = vperm.slane %v11122_v4, 0  ;;  %v259_v13 = vperm.slane %v11122_v4, 2  ;;  %v10150_v29 = vld [vmem:[%s16446_s3 + $0x58c] sm:$0xf0] }
  0x30   :  { %v199_v16 = vmul.f32 %v149_v3, %v91_v1  ;;  %v224_v17 = vmul.f32 %v149_v3, %v116_v2  ;;  %v201_v18 = vmul.f32 %v151_v7, %v93_v11  ;;  %v226_v19 = vmul.f32 %v151_v7, %v118_v12  ;;  %v7350_v24 = vld [vmem:[%s16446_s3 + $0x480] sm:$0xf]  ;;  %v10182_v35 = vld [vmem:[%s16446_s3 + $0x68c] sm:$0xf0]  ;;  %v11228_v11 = vld [vmem:[%s16447_s0 + $0x74] sm:$0xff] }
  0x31   :  { %v7751_v23 = vor.u32 %v10218_v9, %v7750_v8  ;;  %v7478_v28 = vld [vmem:[%s16446_s3 + $0x580] sm:$0xf]  ;;  %v258_v33 = vperm.slane %v11122_v4, 1  ;;  %v152_v39 = vperm.slane %v11116_v0, 3  ;;  %v10214_v41 = vld [vmem:[%s16446_s3 + $0x78c] sm:$0xf0]  ;;  %v200_v43 = vmul.f32 %v150_v32, %v92_v20 }
  0x32   :  { %v307_v26 = vadd.f32 %v257_v10, %v199_v16  ;;  %v332_v27 = vadd.f32 %v257_v10, %v224_v17  ;;  %v309_v30 = vadd.f32 %v259_v13, %v201_v18  ;;  %v334_v31 = vadd.f32 %v259_v13, %v226_v19  ;;  %v7606_v34 = vld [vmem:[%s16446_s3 + $0x680] sm:$0xf]  ;;  %v10114_v49 = vld [vmem:[%s16446_s3 + $0x46c] sm:$0xf0] }
  0x33   :  { %v7734_v40 = vld [vmem:[%s16446_s3 + $0x780] sm:$0xf]  ;;  %v225_v44 = vmul.f32 %v150_v32, %v117_v21  ;;  %v260_v45 = vperm.slane %v11122_v4, 3  ;;  %v7351_v46 = vor.u32 %v10118_v25, %v7350_v24  ;;  %v7479_v47 = vor.u32 %v10150_v29, %v7478_v28  ;;  %v10146_v54 = vld [vmem:[%s16446_s3 + $0x56c] sm:$0xf0]  ;;  %5292 = vmatpush.bf16.msrb.mxu3 %v7751_v23 }
  0x34   :  { %v11165_v36 = vpack.c.bf16 %v332_v27, %v307_v26  ;;  %v11174_v42 = vpack.c.bf16 %v334_v31, %v309_v30  ;;  %v7334_v48 = vld [vmem:[%s16446_s3 + $0x460] sm:$0xf]  ;;  %v202_v51 = vmul.f32 %v152_v39, %v94_v37  ;;  %v227_v52 = vmul.f32 %v152_v39, %v119_v38  ;;  %v10178_v56 = vld [vmem:[%s16446_s3 + $0x66c] sm:$0xf0]  ;;  %v68_v30 = vld [vmem:[%s16447_s0 + $0x18] sm:$0xff] }
  0x35   :  { %v7462_v50 = vld [vmem:[%s16446_s3 + $0x560] sm:$0xf]  ;;  %v7607_v53 = vor.u32 %v10182_v35, %v7606_v34  ;;  %v308_v57 = vadd.f32 %v258_v33, %v200_v43  ;;  %v333_v58 = vadd.f32 %v258_v33, %v225_v44  ;;  %v7735_v59 = vor.u32 %v10214_v41, %v7734_v40  ;;  %v10210_v61 = vld [vmem:[%s16446_s3 + $0x76c] sm:$0xf0]  ;;  %5251 = vmatpush.bf16.msrb.mxu0 %v7351_v46 }
  0x36   :  { %v7590_v55 = vld [vmem:[%s16446_s3 + $0x660] sm:$0xf]  ;;  %5200 = vmatmul.bf16.vlgmr.msra.gmra.mxu0 %v11165_v36  ;;  %v310_v62 = vadd.f32 %v260_v45, %v202_v51  ;;  %v335_v63 = vadd.f32 %v260_v45, %v227_v52  ;;  %5228 = vmatmul.bf16.vlgmr.msra.gmra.mxu2 %v11174_v42  ;;  %v10110_v3 = vld [vmem:[%s16446_s3 + $0x44c] sm:$0xf0]  ;;  %v7335_v7 = vor.u32 %v10114_v49, %v7334_v48  ;;  %v120_v25 = vunpack.c.l.bf16 %v11228_v11 }
  0x37   :  { %v7718_v60 = vld [vmem:[%s16446_s3 + $0x760] sm:$0xf]  ;;  %v11206_v2 = vpack.c.bf16 %v333_v58, %v308_v57  ;;  %v10142_v6 = vld [vmem:[%s16446_s3 + $0x54c] sm:$0xf0]  ;;  %5265 = vmatpush.bf16.msrb.mxu1 %v7479_v47  ;;  %5279 = vmatpush.bf16.msrb.mxu2 %v7607_v53  ;;  %v7463_v12 = vor.u32 %v10146_v54, %v7462_v50  ;;  %v7591_v13 = vor.u32 %v10178_v56, %v7590_v55  ;;  %v153_v26 = vperm.slane %v11116_v0, 4 }
  0x38   :  { %v7318_v1 = vld [vmem:[%s16446_s3 + $0x440] sm:$0xf]  ;;  %v11217_v8 = vpack.c.bf16 %v335_v63, %v310_v62  ;;  %v67_v10 = vld [vmem:[%s16447_s0 + $0x10] sm:$0xff]  ;;  %5293 = vmatpush.bf16.msrb.mxu3 %v7735_v59  ;;  %v7719_v17 = vor.u32 %v10210_v61, %v7718_v60  ;;  %v154_v33 = vperm.slane %v11116_v0, 5  ;;  %v97_v34 = vunpack.c.l.bf16 %v68_v30 }
  0x39   :  { %v7446_v5 = vld [vmem:[%s16446_s3 + $0x540] sm:$0xf]  ;;  %v10174_v14 = vld [vmem:[%s16446_s3 + $0x64c] sm:$0xf0]  ;;  %5214 = vmatmul.bf16.vlgmr.msra.gmra.mxu1 %v11206_v2  ;;  %v7319_v21 = vor.u32 %v10110_v3, %v7318_v1  ;;  %v95_v24 = vunpack.c.l.bf16 %v67_v10  ;;  %5252 = vmatpush.bf16.msrb.mxu0 %v7335_v7  ;;  %v96_v32 = vunpack.c.h.bf16 %v67_v10  ;;  %v155_v37 = vperm.slane %v11116_v0, 6 }
  0x3a   :  { %v7574_v9 = vld [vmem:[%s16446_s3 + $0x640] sm:$0xf]  ;;  %v10206_v16 = vld [vmem:[%s16446_s3 + $0x74c] sm:$0xf0]  ;;  %5242 = vmatmul.bf16.vlgmr.msra.gmra.mxu3 %v11217_v8  ;;  %v7447_v27 = vor.u32 %v10142_v6, %v7446_v5  ;;  %v121_v38 = vunpack.c.h.bf16 %v11228_v11  ;;  %v98_v45 = vunpack.c.h.bf16 %v68_v30  ;;  %v228_v50 = vmul.f32 %v153_v26, %v120_v25 }
  0x3b   :  { %v7702_v15 = vld [vmem:[%s16446_s3 + $0x740] sm:$0xf]  ;;  %v11248_v19 = vld [vmem:[%s16446_s3 + $0x42c] sm:$0xf0]  ;;  %v7575_v28 = vor.u32 %v10174_v14, %v7574_v9  ;;  %5266 = vmatpush.bf16.msrb.mxu1 %v7463_v12  ;;  %5280 = vmatpush.bf16.msrb.mxu2 %v7591_v13  ;;  %v203_v49 = vmul.f32 %v153_v26, %v95_v24  ;;  %v261_v51 = vperm.slane %v11122_v4, 4  ;;  %v204_v54 = vmul.f32 %v154_v33, %v96_v32 }
  0x3c   :  { %v11243_v18 = vld [vmem:[%s16446_s3 + $0x420] sm:$0xf]  ;;  %v11259_v22 = vld [vmem:[%s16446_s3 + $0x52c] sm:$0xf0]  ;;  %5294 = vmatpush.bf16.msrb.mxu3 %v7719_v17  ;;  %v7703_v39 = vor.u32 %v10206_v16, %v7702_v15  ;;  %v262_v55 = vperm.slane %v11122_v4, 5  ;;  %v156_v57 = vperm.slane %v11116_v0, 7  ;;  %v205_v60 = vmul.f32 %v155_v37, %v97_v34 }
  0x3d   :  { %v11253_v20 = vld [vmem:[%s16446_s3 + $0x520] sm:$0xf]  ;;  %v10170_v29 = vld [vmem:[%s16446_s3 + $0x62c] sm:$0xf0]  ;;  %v7303_v40 = vor.u32 %v11248_v19, %v11243_v18  ;;  %5253 = vmatpush.bf16.msrb.mxu0 %v7319_v21  ;;  %v263_v62 = vperm.slane %v11122_v4, 6  ;;  %v229_v63 = vmul.f32 %v154_v33, %v121_v38  ;;  %v264_v7 = vperm.slane %v11122_v4, 7 }
  0x3e   :  { %v11264_v23 = vld [vmem:[%s16446_s3 + $0x620] sm:$0xf]  ;;  %v7431_v41 = vor.u32 %v11259_v22, %v11253_v20  ;;  %v10202_v44 = vld [vmem:[%s16446_s3 + $0x72c] sm:$0xf0]  ;;  %v206_v5 = vmul.f32 %v156_v57, %v98_v45  ;;  %v311_v17 = vadd.f32 %v261_v51, %v203_v49  ;;  %v336_v18 = vadd.f32 %v261_v51, %v228_v50 }
  0x3f   :  { %v81_v31 = vld [vmem:[%s16447_s0 + $0x7c] sm:$0xff]  ;;  %v7559_v46 = vor.u32 %v10170_v29, %v11264_v23  ;;  %v10102_v48 = vld [vmem:[%s16446_s3 + $0x40c] sm:$0xf0]  ;;  %5267 = vmatpush.bf16.msrb.mxu1 %v7447_v27  ;;  %5281 = vmatpush.bf16.msrb.mxu2 %v7575_v28  ;;  %v312_v19 = vadd.f32 %v262_v55, %v204_v54  ;;  %v313_v22 = vadd.f32 %v263_v62, %v205_v60 }
  0x40   :  { %v122_v35 = vunpack.c.l.bf16 %v81_v31  ;;  %v7686_v43 = vld [vmem:[%s16446_s3 + $0x720] sm:$0xf]  ;;  %v10134_v53 = vld [vmem:[%s16446_s3 + $0x50c] sm:$0xf0]  ;;  %v123_v56 = vunpack.c.h.bf16 %v81_v31  ;;  %5295 = vmatpush.bf16.msrb.mxu3 %v7703_v39  ;;  %v337_v24 = vadd.f32 %v262_v55, %v229_v63  ;;  %v314_v27 = vadd.f32 %v264_v7, %v206_v5 }
  0x41   :  { %v7286_v47 = vld [vmem:[%s16446_s3 + $0x400] sm:$0xf]  ;;  %v10166_v59 = vld [vmem:[%s16446_s3 + $0x60c] sm:$0xf0]  ;;  %v7687_v1 = vor.u32 %v10202_v44, %v7686_v43  ;;  %5254 = vmatpush.bf16.msrb.mxu0 %v7303_v40 }
  0x42   :  { %v7414_v52 = vld [vmem:[%s16446_s3 + $0x500] sm:$0xf]  ;;  %v230_v61 = vmul.f32 %v155_v37, %v122_v35  ;;  %v10198_v3 = vld [vmem:[%s16446_s3 + $0x70c] sm:$0xf0]  ;;  %v231_v6 = vmul.f32 %v156_v57, %v123_v56  ;;  %v7287_v9 = vor.u32 %v10102_v48, %v7286_v47  ;;  %v11353_v35 = vpack.c.bf16 %v336_v18, %v311_v17 }
  0x43   :  { %v7542_v58 = vld [vmem:[%s16446_s3 + $0x600] sm:$0xf]  ;;  %v7415_v10 = vor.u32 %v10134_v53, %v7414_v52  ;;  %v10258_v12 = vld [vmem:[%s16446_s3 + $0x8ec] sm:$0xf0]  ;;  %5268 = vmatpush.bf16.msrb.mxu1 %v7431_v41  ;;  %5282 = vmatpush.bf16.msrb.mxu2 %v7559_v46  ;;  %v11366_v41 = vpack.c.bf16 %v337_v24, %v312_v19 }
  0x44   :  { %v7670_v0 = vld [vmem:[%s16446_s3 + $0x700] sm:$0xf]  ;;  %v7543_v14 = vor.u32 %v10166_v59, %v7542_v58  ;;  %v10290_v4 = vld [vmem:[%s16446_s3 + $0x9ec] sm:$0xf0]  ;;  %v338_v23 = vadd.f32 %v263_v62, %v230_v61  ;;  %5296 = vmatpush.bf16.msrb.mxu3 %v7687_v1  ;;  %v339_v28 = vadd.f32 %v264_v7, %v231_v6  ;;  %16463 = vst [vmem:[#allocation2_spill] sm:$0xff] %v11353_v35 }
  0x45   :  { %v7910_v11 = vld [vmem:[%s16446_s3 + $0x8e0] sm:$0xf]  ;;  %v10322_v16 = vld [vmem:[%s16446_s3 + $0xaec] sm:$0xf0]  ;;  %v7671_v25 = vor.u32 %v10198_v3, %v7670_v0  ;;  %5255 = vmatpush.bf16.msrb.mxu0 %v7287_v9  ;;  %16465 = vst [vmem:[#allocation4_spill] sm:$0xff] %v11366_v41 }
  0x46   :  { %v8038_v13 = vld [vmem:[%s16446_s3 + $0x9e0] sm:$0xf]  ;;  %v10354_v21 = vld [vmem:[%s16446_s3 + $0xbec] sm:$0xf0]  ;;  %v7911_v26 = vor.u32 %v10258_v12, %v7910_v11  ;;  %v11364_v40 = vpack.c.bf16 %v338_v23, %v313_v22  ;;  %v11374_v45 = vpack.c.bf16 %v339_v28, %v314_v27 }
  0x47   :  { %v8166_v15 = vld [vmem:[%s16446_s3 + $0xae0] sm:$0xf]  ;;  %v8039_v29 = vor.u32 %v10290_v4, %v8038_v13  ;;  %v10254_v32 = vld [vmem:[%s16446_s3 + $0x8cc] sm:$0xf0]  ;;  %5269 = vmatpush.bf16.msrb.mxu1 %v7415_v10  ;;  %5283 = vmatpush.bf16.msrb.mxu2 %v7543_v14 }
  0x48   :  { %v8294_v20 = vld [vmem:[%s16446_s3 + $0xbe0] sm:$0xf]  ;;  %v8167_v30 = vor.u32 %v10322_v16, %v8166_v15  ;;  %v10286_v37 = vld [vmem:[%s16446_s3 + $0x9cc] sm:$0xf0]  ;;  %16464 = vst [vmem:[#allocation3_spill] sm:$0xff] %v11364_v40  ;;  %5297 = vmatpush.bf16.msrb.mxu3 %v7671_v25  ;;  %5256 = vmatmul.bf16.vlgmr.msrb.gmra.mxu0 %v11353_v35 }
  0x49   :  { %v7894_v31 = vld [vmem:[%s16446_s3 + $0x8c0] sm:$0xf]  ;;  %v8295_v34 = vor.u32 %v10354_v21, %v8294_v20  ;;  %v10318_v39 = vld [vmem:[%s16446_s3 + $0xacc] sm:$0xf0]  ;;  %5304 = vmatpush.bf16.msra.mxu0 %v7911_v26 }
  0x4a   :  { %v8022_v33 = vld [vmem:[%s16446_s3 + $0x9c0] sm:$0xf]  ;;  %v10350_v44 = vld [vmem:[%s16446_s3 + $0xbcc] sm:$0xf0]  ;;  %v7895_v46 = vor.u32 %v10254_v32, %v7894_v31  ;;  %5284 = vmatmul.bf16.vlgmr.msrb.gmra.mxu2 %v11364_v40  ;;  %5270 = vmatmul.bf16.vlgmr.msrb.gmra.mxu1 %v11366_v41  ;;  %v82_v32 = vld [vmem:[%s16447_s0 + $0x84] sm:$0xff] }
  0x4b   :  { %v8150_v38 = vld [vmem:[%s16446_s3 + $0xac0] sm:$0xf]  ;;  %5318 = vmatpush.bf16.msra.mxu1 %v8039_v29  ;;  %5332 = vmatpush.bf16.msra.mxu2 %v8167_v30  ;;  %v8023_v47 = vor.u32 %v10286_v37, %v8022_v33  ;;  %v10250_v50 = vld [vmem:[%s16446_s3 + $0x8ac] sm:$0xf0]  ;;  %v11485_v33 = vld [vmem:[%s16448_s1 + $0x8] sm:$0xff] }
  0x4c   :  { %v8278_v43 = vld [vmem:[%s16446_s3 + $0xbc0] sm:$0xf]  ;;  %v8151_v48 = vor.u32 %v10318_v39, %v8150_v38  ;;  %5346 = vmatpush.bf16.msra.mxu3 %v8295_v34  ;;  %v10282_v53 = vld [vmem:[%s16446_s3 + $0x9ac] sm:$0xf0]  ;;  %v70_v34 = vld [vmem:[%s16447_s0 + $0x28] sm:$0xff] }
  0x4d   :  { %v7878_v49 = vld [vmem:[%s16446_s3 + $0x8a0] sm:$0xf]  ;;  %v8279_v52 = vor.u32 %v10350_v44, %v8278_v43  ;;  %v10314_v55 = vld [vmem:[%s16446_s3 + $0xaac] sm:$0xf0]  ;;  %5298 = vmatmul.bf16.vlgmr.msrb.gmra.mxu3 %v11374_v45  ;;  %5305 = vmatpush.bf16.msra.mxu0 %v7895_v46 }
  0x4e   :  { %v8006_v51 = vld [vmem:[%s16446_s3 + $0x9a0] sm:$0xf]  ;;  %v10346_v57 = vld [vmem:[%s16446_s3 + $0xbac] sm:$0xf0]  ;;  %v7879_v58 = vor.u32 %v10250_v50, %v7878_v49 }
  0x4f   :  { %v8134_v54 = vld [vmem:[%s16446_s3 + $0xaa0] sm:$0xf]  ;;  %5319 = vmatpush.bf16.msra.mxu1 %v8023_v47  ;;  %5333 = vmatpush.bf16.msra.mxu2 %v8151_v48  ;;  %v8007_v59 = vor.u32 %v10282_v53, %v8006_v51  ;;  %v10246_v62 = vld [vmem:[%s16446_s3 + $0x88c] sm:$0xf0]  ;;  %v124_v53 = vunpack.c.l.bf16 %v82_v32 }
  0x50   :  { %v8262_v56 = vld [vmem:[%s16446_s3 + $0xba0] sm:$0xf]  ;;  %v8135_v60 = vor.u32 %v10314_v55, %v8134_v54  ;;  %5347 = vmatpush.bf16.msra.mxu3 %v8279_v52  ;;  %v10278_v0 = vld [vmem:[%s16446_s3 + $0x98c] sm:$0xf0]  ;;  %v157_v54 = vperm.slane %v11485_v33, 0  ;;  %v11523_v55 = vld [vmem:[%s16449_s2 + $0x8] sm:$0xff] }
  0x51   :  { %v7862_v61 = vld [vmem:[%s16446_s3 + $0x880] sm:$0xf]  ;;  %v8263_v1 = vor.u32 %v10346_v57, %v8262_v56  ;;  %v10310_v5 = vld [vmem:[%s16446_s3 + $0xa8c] sm:$0xf0]  ;;  %5306 = vmatpush.bf16.msra.mxu0 %v7879_v58  ;;  %v101_v56 = vunpack.c.l.bf16 %v70_v34  ;;  %v159_v57 = vperm.slane %v11485_v33, 2 }
  0x52   :  { %v7990_v63 = vld [vmem:[%s16446_s3 + $0x980] sm:$0xf]  ;;  %v10342_v7 = vld [vmem:[%s16446_s3 + $0xb8c] sm:$0xf0]  ;;  %v7863_v9 = vor.u32 %v10246_v62, %v7862_v61  ;;  %v158_v61 = vperm.slane %v11485_v33, 1 }
  0x53   :  { %v8118_v3 = vld [vmem:[%s16446_s3 + $0xa80] sm:$0xf]  ;;  %v10242_v11 = vld [vmem:[%s16446_s3 + $0x86c] sm:$0xf0]  ;;  %5320 = vmatpush.bf16.msra.mxu1 %v8007_v59  ;;  %5334 = vmatpush.bf16.msra.mxu2 %v8135_v60  ;;  %v7991_v13 = vor.u32 %v10278_v0, %v7990_v63  ;;  %v125_v60 = vunpack.c.h.bf16 %v82_v32  ;;  %v102_v0 = vunpack.c.h.bf16 %v70_v34 }
  0x54   :  { %v8246_v6 = vld [vmem:[%s16446_s3 + $0xb80] sm:$0xf]  ;;  %v8119_v14 = vor.u32 %v10310_v5, %v8118_v3  ;;  %v10274_v4 = vld [vmem:[%s16446_s3 + $0x96c] sm:$0xf0]  ;;  %5348 = vmatpush.bf16.msra.mxu3 %v8263_v1  ;;  %v160_v5 = vperm.slane %v11485_v33, 3 }
  0x55   :  { %v7846_v10 = vld [vmem:[%s16446_s3 + $0x860] sm:$0xf]  ;;  %v10306_v16 = vld [vmem:[%s16446_s3 + $0xa6c] sm:$0xf0]  ;;  %v8247_v17 = vor.u32 %v10342_v7, %v8246_v6  ;;  %5307 = vmatpush.bf16.msra.mxu0 %v7863_v9 }
  0x56   :  { %v7974_v12 = vld [vmem:[%s16446_s3 + $0x960] sm:$0xf]  ;;  %v10338_v19 = vld [vmem:[%s16446_s3 + $0xb6c] sm:$0xf0]  ;;  %v7847_v24 = vor.u32 %v10242_v11, %v7846_v10 }
  0x57   :  { %v8102_v15 = vld [vmem:[%s16446_s3 + $0xa60] sm:$0xf]  ;;  %v10238_v21 = vld [vmem:[%s16446_s3 + $0x84c] sm:$0xf0]  ;;  %5321 = vmatpush.bf16.msra.mxu1 %v7991_v13  ;;  %5335 = vmatpush.bf16.msra.mxu2 %v8119_v14  ;;  %v7975_v28 = vor.u32 %v10274_v4, %v7974_v12  ;;  %v265_v12 = vperm.slane %v11523_v55, 0 }
  0x58   :  { %v8230_v18 = vld [vmem:[%s16446_s3 + $0xb60] sm:$0xf]  ;;  %v10270_v23 = vld [vmem:[%s16446_s3 + $0x94c] sm:$0xf0]  ;;  %v8103_v29 = vor.u32 %v10306_v16, %v8102_v15  ;;  %5349 = vmatpush.bf16.msra.mxu3 %v8247_v17  ;;  %v232_v15 = vmul.f32 %v157_v54, %v124_v53  ;;  %v209_v16 = vmul.f32 %v159_v57, %v101_v56  ;;  %v267_v17 = vperm.slane %v11523_v55, 2 }
  0x59   :  { %v7830_v20 = vld [vmem:[%s16446_s3 + $0x840] sm:$0xf]  ;;  %v10302_v26 = vld [vmem:[%s16446_s3 + $0xa4c] sm:$0xf0]  ;;  %v8231_v37 = vor.u32 %v10338_v19, %v8230_v18  ;;  %5308 = vmatpush.bf16.msra.mxu0 %v7847_v24 }
  0x5a   :  { %v7958_v22 = vld [vmem:[%s16446_s3 + $0x940] sm:$0xf]  ;;  %v10334_v31 = vld [vmem:[%s16446_s3 + $0xb4c] sm:$0xf0]  ;;  %v7831_v44 = vor.u32 %v10238_v21, %v7830_v20 }
  0x5b   :  { %v8086_v25 = vld [vmem:[%s16446_s3 + $0xa40] sm:$0xf]  ;;  %v10234_v39 = vld [vmem:[%s16446_s3 + $0x82c] sm:$0xf0]  ;;  %v7959_v46 = vor.u32 %v10270_v23, %v7958_v22  ;;  %5322 = vmatpush.bf16.msra.mxu1 %v7975_v28  ;;  %5336 = vmatpush.bf16.msra.mxu2 %v8103_v29  ;;  %v233_v22 = vmul.f32 %v158_v61, %v125_v60  ;;  %v266_v23 = vperm.slane %v11523_v55, 1  ;;  %v268_v29 = vperm.slane %v11523_v55, 3 }
  0x5c   :  { %v69_v27 = vld [vmem:[%s16447_s0 + $0x20] sm:$0xff]  ;;  %v83_v43 = vld [vmem:[%s16447_s0 + $0x8c] sm:$0xff]  ;;  %v8087_v47 = vor.u32 %v10302_v26, %v8086_v25  ;;  %5350 = vmatpush.bf16.msra.mxu3 %v8231_v37 }
  0x5d   :  { %v8214_v30 = vld [vmem:[%s16446_s3 + $0xb40] sm:$0xf]  ;;  %v11509_v49 = vld [vmem:[%s16446_s3 + $0x92c] sm:$0xf0]  ;;  %v99_v51 = vunpack.c.l.bf16 %v69_v27  ;;  %v126_v58 = vunpack.c.l.bf16 %v83_v43  ;;  %v100_v59 = vunpack.c.h.bf16 %v69_v27  ;;  %v127_v3 = vunpack.c.h.bf16 %v83_v43  ;;  %5309 = vmatpush.bf16.msra.mxu0 %v7831_v44 }
  0x5e   :  { %v11493_v38 = vld [vmem:[%s16446_s3 + $0x820] sm:$0xf]  ;;  %v10298_v52 = vld [vmem:[%s16446_s3 + $0xa2c] sm:$0xf0]  ;;  %v8215_v62 = vor.u32 %v10334_v31, %v8214_v30  ;;  %v210_v27 = vmul.f32 %v160_v5, %v102_v0  ;;  %v341_v53 = vadd.f32 %v266_v23, %v233_v22 }
  0x5f   :  { %v11504_v48 = vld [vmem:[%s16446_s3 + $0x920] sm:$0xf]  ;;  %v10330_v1 = vld [vmem:[%s16446_s3 + $0xb2c] sm:$0xf0]  ;;  %v7815_v6 = vor.u32 %v10234_v39, %v11493_v38  ;;  %v207_v4 = vmul.f32 %v157_v54, %v99_v51  ;;  %5323 = vmatpush.bf16.msra.mxu1 %v7959_v46  ;;  %5337 = vmatpush.bf16.msra.mxu2 %v8087_v47  ;;  %v234_v20 = vmul.f32 %v159_v57, %v126_v58 }
  0x60   :  { %v11514_v50 = vld [vmem:[%s16446_s3 + $0xa20] sm:$0xf]  ;;  %v7943_v7 = vor.u32 %v11509_v49, %v11504_v48  ;;  %v10230_v11 = vld [vmem:[%s16446_s3 + $0x80c] sm:$0xf0]  ;;  %v208_v21 = vmul.f32 %v158_v61, %v100_v59  ;;  %5351 = vmatpush.bf16.msra.mxu3 %v8215_v62  ;;  %v235_v28 = vmul.f32 %v160_v5, %v127_v3  ;;  %v340_v47 = vadd.f32 %v265_v12, %v232_v15 }
  0x61   :  { %v8198_v63 = vld [vmem:[%s16446_s3 + $0xb20] sm:$0xf]  ;;  %v8071_v9 = vor.u32 %v10298_v52, %v11514_v50  ;;  %v10262_v14 = vld [vmem:[%s16446_s3 + $0x90c] sm:$0xf0]  ;;  %5310 = vmatpush.bf16.msra.mxu0 %v7815_v6  ;;  %v315_v46 = vadd.f32 %v265_v12, %v207_v4  ;;  %v317_v48 = vadd.f32 %v267_v17, %v209_v16  ;;  %v342_v51 = vadd.f32 %v267_v17, %v234_v20 }
  0x62   :  { %v7798_v10 = vld [vmem:[%s16446_s3 + $0x800] sm:$0xf]  ;;  %v10294_v19 = vld [vmem:[%s16446_s3 + $0xa0c] sm:$0xf0]  ;;  %v8199_v24 = vor.u32 %v10330_v1, %v8198_v63  ;;  %v316_v52 = vadd.f32 %v266_v23, %v208_v21  ;;  %v318_v57 = vadd.f32 %v268_v29, %v210_v27  ;;  %v343_v58 = vadd.f32 %v268_v29, %v235_v28 }
  0x63   :  { %v7926_v13 = vld [vmem:[%s16446_s3 + $0x900] sm:$0xf]  ;;  %v10326_v26 = vld [vmem:[%s16446_s3 + $0xb0c] sm:$0xf0]  ;;  %v7799_v30 = vor.u32 %v10230_v11, %v7798_v10  ;;  %5324 = vmatpush.bf16.msra.mxu1 %v7943_v7  ;;  %5338 = vmatpush.bf16.msra.mxu2 %v8071_v9  ;;  %v11599_v0 = vpack.c.bf16 %v340_v47, %v315_v46  ;;  %v11610_v7 = vpack.c.bf16 %v342_v51, %v317_v48 }
  0x64   :  { %v8054_v18 = vld [vmem:[%s16446_s3 + $0xa00] sm:$0xf]  ;;  %v7927_v31 = vor.u32 %v10262_v14, %v7926_v13  ;;  %v10386_v34 = vld [vmem:[%s16446_s3 + $0xcec] sm:$0xf0]  ;;  %5352 = vmatpush.bf16.msra.mxu3 %v8199_v24  ;;  %v11612_v9 = vpack.c.bf16 %v341_v53, %v316_v52  ;;  %v11620_v12 = vpack.c.bf16 %v343_v58, %v318_v57 }
  0x65   :  { %v8182_v25 = vld [vmem:[%s16446_s3 + $0xb00] sm:$0xf]  ;;  %v8055_v38 = vor.u32 %v10294_v19, %v8054_v18  ;;  %v10418_v39 = vld [vmem:[%s16446_s3 + $0xdec] sm:$0xf0]  ;;  %5311 = vmatpush.bf16.msra.mxu0 %v7799_v30 }
  0x66   :  { %v8422_v32 = vld [vmem:[%s16446_s3 + $0xce0] sm:$0xf]  ;;  %v10450_v44 = vld [vmem:[%s16446_s3 + $0xeec] sm:$0xf0]  ;;  %v8183_v54 = vor.u32 %v10326_v26, %v8182_v25  ;;  %16466 = vst [vmem:[#allocation5_spill] sm:$0xff] %v11612_v9 }
  0x67   :  { %v8550_v37 = vld [vmem:[%s16446_s3 + $0xde0] sm:$0xf]  ;;  %v10482_v50 = vld [vmem:[%s16446_s3 + $0xfec] sm:$0xf0]  ;;  %v8423_v56 = vor.u32 %v10386_v34, %v8422_v32  ;;  %5325 = vmatpush.bf16.msra.mxu1 %v7927_v31  ;;  %5339 = vmatpush.bf16.msra.mxu2 %v8055_v38 }
  0x68   :  { %v8678_v43 = vld [vmem:[%s16446_s3 + $0xee0] sm:$0xf]  ;;  %v8551_v59 = vor.u32 %v10418_v39, %v8550_v37  ;;  %v10382_v62 = vld [vmem:[%s16446_s3 + $0xccc] sm:$0xf0]  ;;  %5353 = vmatpush.bf16.msra.mxu3 %v8183_v54  ;;  %5312 = vmatmul.bf16.vlgmr.msra.gmra.mxu0 %v11599_v0 }
  0x69   :  { %v8806_v49 = vld [vmem:[%s16446_s3 + $0xfe0] sm:$0xf]  ;;  %v8679_v60 = vor.u32 %v10450_v44, %v8678_v43  ;;  %v10414_v3 = vld [vmem:[%s16446_s3 + $0xdcc] sm:$0xf0]  ;;  %5360 = vmatpush.bf16.msrb.mxu0 %v8423_v56 }
  0x6a   :  { %v8406_v61 = vld [vmem:[%s16446_s3 + $0xcc0] sm:$0xf]  ;;  %v8807_v1 = vor.u32 %v10482_v50, %v8806_v49  ;;  %v10446_v6 = vld [vmem:[%s16446_s3 + $0xecc] sm:$0xf0]  ;;  %5340 = vmatmul.bf16.vlgmr.msra.gmra.mxu2 %v11610_v7  ;;  %5326 = vmatmul.bf16.vlgmr.msra.gmra.mxu1 %v11612_v9 }
  0x6b   :  { %v8534_v63 = vld [vmem:[%s16446_s3 + $0xdc0] sm:$0xf]  ;;  %v10478_v11 = vld [vmem:[%s16446_s3 + $0xfcc] sm:$0xf0]  ;;  %v8407_v13 = vor.u32 %v10382_v62, %v8406_v61  ;;  %5374 = vmatpush.bf16.msrb.mxu1 %v8551_v59  ;;  %5388 = vmatpush.bf16.msrb.mxu2 %v8679_v60 }
  0x6c   :  { %v8662_v5 = vld [vmem:[%s16446_s3 + $0xec0] sm:$0xf]  ;;  %v8535_v14 = vor.u32 %v10414_v3, %v8534_v63  ;;  %v10378_v16 = vld [vmem:[%s16446_s3 + $0xcac] sm:$0xf0]  ;;  %5402 = vmatpush.bf16.msrb.mxu3 %v8807_v1 }
  0x6d   :  { %v8790_v10 = vld [vmem:[%s16446_s3 + $0xfc0] sm:$0xf]  ;;  %v8663_v4 = vor.u32 %v10446_v6, %v8662_v5  ;;  %v10410_v19 = vld [vmem:[%s16446_s3 + $0xdac] sm:$0xf0]  ;;  %5354 = vmatmul.bf16.vlgmr.msra.gmra.mxu3 %v11620_v12  ;;  %5361 = vmatpush.bf16.msrb.mxu0 %v8407_v13 }
  0x6e   :  { %v8390_v15 = vld [vmem:[%s16446_s3 + $0xca0] sm:$0xf]  ;;  %v8791_v18 = vor.u32 %v10478_v11, %v8790_v10  ;;  %v10442_v21 = vld [vmem:[%s16446_s3 + $0xeac] sm:$0xf0]  ;;  %v84_v10 = vld [vmem:[%s16447_s0 + $0x94] sm:$0xff] }
  0x6f   :  { %v8518_v17 = vld [vmem:[%s16446_s3 + $0xda0] sm:$0xf]  ;;  %v10474_v23 = vld [vmem:[%s16446_s3 + $0xfac] sm:$0xf0]  ;;  %v8391_v24 = vor.u32 %v10378_v16, %v8390_v15  ;;  %5375 = vmatpush.bf16.msrb.mxu1 %v8535_v14  ;;  %5389 = vmatpush.bf16.msrb.mxu2 %v8663_v4  ;;  %v72_v11 = vld [vmem:[%s16447_s0 + $0x38] sm:$0xff] }
  0x70   :  { %v8646_v20 = vld [vmem:[%s16446_s3 + $0xea0] sm:$0xf]  ;;  %v8519_v25 = vor.u32 %v10410_v19, %v8518_v17  ;;  %v10374_v28 = vld [vmem:[%s16446_s3 + $0xc8c] sm:$0xf0]  ;;  %5403 = vmatpush.bf16.msrb.mxu3 %v8791_v18 }
  0x71   :  { %v8774_v22 = vld [vmem:[%s16446_s3 + $0xfa0] sm:$0xf]  ;;  %v8647_v26 = vor.u32 %v10442_v21, %v8646_v20  ;;  %v10406_v31 = vld [vmem:[%s16446_s3 + $0xd8c] sm:$0xf0]  ;;  %5362 = vmatpush.bf16.msrb.mxu0 %v8391_v24  ;;  %v161_v21 = vperm.slane %v11485_v33, 4 }
  0x72   :  { %v8374_v27 = vld [vmem:[%s16446_s3 + $0xc80] sm:$0xf]  ;;  %v8775_v30 = vor.u32 %v10474_v23, %v8774_v22  ;;  %v10438_v34 = vld [vmem:[%s16446_s3 + $0xe8c] sm:$0xf0] }
  0x73   :  { %v8502_v29 = vld [vmem:[%s16446_s3 + $0xd80] sm:$0xf]  ;;  %v10470_v38 = vld [vmem:[%s16446_s3 + $0xf8c] sm:$0xf0]  ;;  %v8375_v39 = vor.u32 %v10374_v28, %v8374_v27  ;;  %5376 = vmatpush.bf16.msrb.mxu1 %v8519_v25  ;;  %5390 = vmatpush.bf16.msrb.mxu2 %v8647_v26  ;;  %v128_v25 = vunpack.c.l.bf16 %v84_v10  ;;  %v105_v26 = vunpack.c.l.bf16 %v72_v11  ;;  %v163_v27 = vperm.slane %v11485_v33, 6 }
  0x74   :  { %v8630_v32 = vld [vmem:[%s16446_s3 + $0xe80] sm:$0xf]  ;;  %v10370_v44 = vld [vmem:[%s16446_s3 + $0xc6c] sm:$0xf0]  ;;  %v8503_v46 = vor.u32 %v10406_v31, %v8502_v29  ;;  %5404 = vmatpush.bf16.msrb.mxu3 %v8775_v30  ;;  %v129_v30 = vunpack.c.h.bf16 %v84_v10  ;;  %v162_v31 = vperm.slane %v11485_v33, 5  ;;  %v272_v10 = vperm.slane %v11523_v55, 7 }
  0x75   :  { %v8758_v37 = vld [vmem:[%s16446_s3 + $0xf80] sm:$0xf]  ;;  %v8631_v47 = vor.u32 %v10438_v34, %v8630_v32  ;;  %v10402_v49 = vld [vmem:[%s16446_s3 + $0xd6c] sm:$0xf0]  ;;  %5363 = vmatpush.bf16.msrb.mxu0 %v8375_v39 }
  0x76   :  { %v8358_v43 = vld [vmem:[%s16446_s3 + $0xc60] sm:$0xf]  ;;  %v8759_v51 = vor.u32 %v10470_v38, %v8758_v37  ;;  %v10434_v52 = vld [vmem:[%s16446_s3 + $0xe6c] sm:$0xf0]  ;;  %v106_v38 = vunpack.c.h.bf16 %v72_v11 }
  0x77   :  { %v8486_v48 = vld [vmem:[%s16446_s3 + $0xd60] sm:$0xf]  ;;  %v10466_v54 = vld [vmem:[%s16446_s3 + $0xf6c] sm:$0xf0]  ;;  %v8359_v59 = vor.u32 %v10370_v44, %v8358_v43  ;;  %5377 = vmatpush.bf16.msrb.mxu1 %v8503_v46  ;;  %5391 = vmatpush.bf16.msrb.mxu2 %v8631_v47  ;;  %v164_v43 = vperm.slane %v11485_v33, 7 }
  0x78   :  { %v8614_v50 = vld [vmem:[%s16446_s3 + $0xe60] sm:$0xf]  ;;  %v10366_v57 = vld [vmem:[%s16446_s3 + $0xc4c] sm:$0xf0]  ;;  %v8487_v63 = vor.u32 %v10402_v49, %v8486_v48  ;;  %5405 = vmatpush.bf16.msrb.mxu3 %v8759_v51 }
  0x79   :  { %v8742_v53 = vld [vmem:[%s16446_s3 + $0xf60] sm:$0xf]  ;;  %v10398_v60 = vld [vmem:[%s16446_s3 + $0xd4c] sm:$0xf0]  ;;  %v8615_v1 = vor.u32 %v10434_v52, %v8614_v50  ;;  %5364 = vmatpush.bf16.msrb.mxu0 %v8359_v59  ;;  %v269_v50 = vperm.slane %v11523_v55, 4 }
  0x7a   :  { %v8342_v56 = vld [vmem:[%s16446_s3 + $0xc40] sm:$0xf]  ;;  %v10430_v62 = vld [vmem:[%s16446_s3 + $0xe4c] sm:$0xf0]  ;;  %v8743_v13 = vor.u32 %v10466_v54, %v8742_v53  ;;  %v236_v53 = vmul.f32 %v161_v21, %v128_v25  ;;  %v213_v54 = vmul.f32 %v163_v27, %v105_v26 }
  0x7b   :  { %v8470_v58 = vld [vmem:[%s16446_s3 + $0xd40] sm:$0xf]  ;;  %v10462_v5 = vld [vmem:[%s16446_s3 + $0xf4c] sm:$0xf0]  ;;  %v8343_v16 = vor.u32 %v10366_v57, %v8342_v56  ;;  %5378 = vmatpush.bf16.msrb.mxu1 %v8487_v63  ;;  %5392 = vmatpush.bf16.msrb.mxu2 %v8615_v1  ;;  %v271_v56 = vperm.slane %v11523_v55, 6 }
  0x7c   :  { %v8598_v61 = vld [vmem:[%s16446_s3 + $0xe40] sm:$0xf]  ;;  %v71_v6 = vld [vmem:[%s16447_s0 + $0x30] sm:$0xff]  ;;  %v8471_v17 = vor.u32 %v10398_v60, %v8470_v58  ;;  %5406 = vmatpush.bf16.msrb.mxu3 %v8743_v13 }
  0x7d   :  { %v8726_v3 = vld [vmem:[%s16446_s3 + $0xf40] sm:$0xf]  ;;  %v10362_v4 = vld [vmem:[%s16446_s3 + $0xc2c] sm:$0xf0]  ;;  %v8599_v18 = vor.u32 %v10430_v62, %v8598_v61  ;;  %v103_v24 = vunpack.c.l.bf16 %v71_v6  ;;  %v104_v29 = vunpack.c.h.bf16 %v71_v6  ;;  %5365 = vmatpush.bf16.msrb.mxu0 %v8343_v16  ;;  %v237_v61 = vmul.f32 %v162_v31, %v129_v30 }
  0x7e   :  { %v8326_v14 = vld [vmem:[%s16446_s3 + $0xc20] sm:$0xf]  ;;  %v11748_v20 = vld [vmem:[%s16446_s3 + $0xd2c] sm:$0xf0]  ;;  %v8727_v32 = vor.u32 %v10462_v5, %v8726_v3  ;;  %v270_v62 = vperm.slane %v11523_v55, 5  ;;  %v214_v5 = vmul.f32 %v164_v43, %v106_v38 }
  0x7f   :  { %v85_v15 = vld [vmem:[%s16447_s0 + $0x9c] sm:$0xff]  ;;  %v10426_v23 = vld [vmem:[%s16446_s3 + $0xe2c] sm:$0xf0]  ;;  %v8327_v44 = vor.u32 %v10362_v4, %v8326_v14  ;;  %v211_v52 = vmul.f32 %v161_v21, %v103_v24  ;;  %5379 = vmatpush.bf16.msrb.mxu1 %v8471_v17  ;;  %5393 = vmatpush.bf16.msrb.mxu2 %v8599_v18  ;;  %v212_v60 = vmul.f32 %v162_v31, %v104_v29 }
  0x80   :  { %v11743_v19 = vld [vmem:[%s16446_s3 + $0xd20] sm:$0xf]  ;;  %v130_v28 = vunpack.c.l.bf16 %v85_v15  ;;  %v10458_v37 = vld [vmem:[%s16446_s3 + $0xf2c] sm:$0xf0]  ;;  %v131_v39 = vunpack.c.h.bf16 %v85_v15  ;;  %5407 = vmatpush.bf16.msrb.mxu3 %v8727_v32  ;;  %v321_v21 = vadd.f32 %v271_v56, %v213_v54  ;;  %v345_v26 = vadd.f32 %v270_v62, %v237_v61 }
  0x81   :  { %v8582_v22 = vld [vmem:[%s16446_s3 + $0xe20] sm:$0xf]  ;;  %v8455_v46 = vor.u32 %v11748_v20, %v11743_v19  ;;  %v10358_v49 = vld [vmem:[%s16446_s3 + $0xc0c] sm:$0xf0]  ;;  %5366 = vmatpush.bf16.msrb.mxu0 %v8327_v44  ;;  %v319_v19 = vadd.f32 %v269_v50, %v211_v52  ;;  %v344_v20 = vadd.f32 %v269_v50, %v236_v53  ;;  %v320_v25 = vadd.f32 %v270_v62, %v212_v60 }
  0x82   :  { %v8710_v34 = vld [vmem:[%s16446_s3 + $0xf20] sm:$0xf]  ;;  %v8583_v47 = vor.u32 %v10426_v23, %v8582_v22  ;;  %v10390_v51 = vld [vmem:[%s16446_s3 + $0xd0c] sm:$0xf0]  ;;  %v238_v59 = vmul.f32 %v163_v27, %v130_v28  ;;  %v239_v6 = vmul.f32 %v164_v43, %v131_v39  ;;  %v322_v29 = vadd.f32 %v272_v10, %v214_v5 }
  0x83   :  { %v8310_v48 = vld [vmem:[%s16446_s3 + $0xc00] sm:$0xf]  ;;  %v10422_v58 = vld [vmem:[%s16446_s3 + $0xe0c] sm:$0xf0]  ;;  %v8711_v63 = vor.u32 %v10458_v37, %v8710_v34  ;;  %5380 = vmatpush.bf16.msrb.mxu1 %v8455_v46  ;;  %v11829_v43 = vpack.c.bf16 %v344_v20, %v319_v19 }
  0x84   :  { %v8438_v33 = vld [vmem:[%s16446_s3 + $0xd00] sm:$0xf]  ;;  %v10454_v3 = vld [vmem:[%s16446_s3 + $0xf0c] sm:$0xf0]  ;;  %v8311_v11 = vor.u32 %v10358_v49, %v8310_v48  ;;  %5394 = vmatpush.bf16.msrb.mxu2 %v8583_v47  ;;  %v346_v24 = vadd.f32 %v271_v56, %v238_v59  ;;  %v347_v30 = vadd.f32 %v272_v10, %v239_v6  ;;  %v11842_v49 = vpack.c.bf16 %v345_v26, %v320_v25 }
  0x85   :  { %v8566_v57 = vld [vmem:[%s16446_s3 + $0xe00] sm:$0xf]  ;;  %v8439_v13 = vor.u32 %v10390_v51, %v8438_v33  ;;  %v10514_v4 = vld [vmem:[%s16446_s3 + $0x10ec] sm:$0xf0]  ;;  %5408 = vmatpush.bf16.msrb.mxu3 %v8711_v63 }
  0x86   :  { %v8694_v1 = vld [vmem:[%s16446_s3 + $0xf00] sm:$0xf]  ;;  %v8567_v16 = vor.u32 %v10422_v58, %v8566_v57  ;;  %v10546_v55 = vld [vmem:[%s16446_s3 + $0x11ec] sm:$0xf0]  ;;  %5367 = vmatpush.bf16.msrb.mxu0 %v8311_v11  ;;  %v11840_v48 = vpack.c.bf16 %v346_v24, %v321_v21  ;;  %v11850_v51 = vpack.c.bf16 %v347_v30, %v322_v29 }
  0x87   :  { %v8934_v14 = vld [vmem:[%s16446_s3 + $0x10e0] sm:$0xf]  ;;  %v10578_v18 = vld [vmem:[%s16446_s3 + $0x12ec] sm:$0xf0]  ;;  %v8695_v27 = vor.u32 %v10454_v3, %v8694_v1  ;;  %5381 = vmatpush.bf16.msrb.mxu1 %v8439_v13 }
  0x88   :  { %v9062_v15 = vld [vmem:[%s16446_s3 + $0x11e0] sm:$0xf]  ;;  %v10610_v23 = vld [vmem:[%s16446_s3 + $0x13ec] sm:$0xf0]  ;;  %v8935_v28 = vor.u32 %v10514_v4, %v8934_v14  ;;  %5395 = vmatpush.bf16.msrb.mxu2 %v8567_v16 }
  0x89   :  { %v9190_v17 = vld [vmem:[%s16446_s3 + $0x12e0] sm:$0xf]  ;;  %v9063_v31 = vor.u32 %v10546_v55, %v9062_v15  ;;  %v10510_v37 = vld [vmem:[%s16446_s3 + $0x10cc] sm:$0xf0]  ;;  %5409 = vmatpush.bf16.msrb.mxu3 %v8695_v27  ;;  %5368 = vmatmul.bf16.vlgmr.msrb.gmra.mxu0 %v11829_v43 }
  0x8a   :  { %v9318_v22 = vld [vmem:[%s16446_s3 + $0x13e0] sm:$0xf]  ;;  %v9191_v32 = vor.u32 %v10578_v18, %v9190_v17  ;;  %v10542_v44 = vld [vmem:[%s16446_s3 + $0x11cc] sm:$0xf0]  ;;  %5416 = vmatpush.bf16.msra.mxu0 %v8935_v28  ;;  %5382 = vmatmul.bf16.vlgmr.msrb.gmra.mxu1 %v11842_v49 }
  0x8b   :  { %v8918_v34 = vld [vmem:[%s16446_s3 + $0x10c0] sm:$0xf]  ;;  %v9319_v39 = vor.u32 %v10610_v23, %v9318_v22  ;;  %v10574_v47 = vld [vmem:[%s16446_s3 + $0x12cc] sm:$0xf0]  ;;  %5430 = vmatpush.bf16.msra.mxu1 %v9063_v31  ;;  %5396 = vmatmul.bf16.vlgmr.msrb.gmra.mxu2 %v11840_v48 }
  0x8c   :  { %v9046_v38 = vld [vmem:[%s16446_s3 + $0x11c0] sm:$0xf]  ;;  %v10606_v33 = vld [vmem:[%s16446_s3 + $0x13cc] sm:$0xf0]  ;;  %v8919_v52 = vor.u32 %v10510_v37, %v8918_v34  ;;  %5444 = vmatpush.bf16.msra.mxu2 %v9191_v32  ;;  %5410 = vmatmul.bf16.vlgmr.msrb.gmra.mxu3 %v11850_v51 }
  0x8d   :  { %v9174_v46 = vld [vmem:[%s16446_s3 + $0x12c0] sm:$0xf]  ;;  %v9047_v53 = vor.u32 %v10542_v44, %v9046_v38  ;;  %v10506_v57 = vld [vmem:[%s16446_s3 + $0x10ac] sm:$0xf0]  ;;  %5458 = vmatpush.bf16.msra.mxu3 %v9319_v39 }
  0x8e   :  { %v9302_v50 = vld [vmem:[%s16446_s3 + $0x13c0] sm:$0xf]  ;;  %v9175_v54 = vor.u32 %v10574_v47, %v9174_v46  ;;  %v10538_v60 = vld [vmem:[%s16446_s3 + $0x11ac] sm:$0xf0]  ;;  %5417 = vmatpush.bf16.msra.mxu0 %v8919_v52  ;;  %v86_v52 = vld [vmem:[%s16447_s0 + $0xa4] sm:$0xff] }
  0x8f   :  { %v8902_v56 = vld [vmem:[%s16446_s3 + $0x10a0] sm:$0xf]  ;;  %v9303_v59 = vor.u32 %v10606_v33, %v9302_v50  ;;  %v10570_v62 = vld [vmem:[%s16446_s3 + $0x12ac] sm:$0xf0]  ;;  %5431 = vmatpush.bf16.msra.mxu1 %v9047_v53 }
  0x90   :  { %v9030_v58 = vld [vmem:[%s16446_s3 + $0x11a0] sm:$0xf]  ;;  %v10602_v1 = vld [vmem:[%s16446_s3 + $0x13ac] sm:$0xf0]  ;;  %v8903_v3 = vor.u32 %v10506_v57, %v8902_v56  ;;  %5445 = vmatpush.bf16.msra.mxu2 %v9175_v54  ;;  %v74_v54 = vld [vmem:[%s16447_s0 + $0x48] sm:$0xff] }
  0x91   :  { %v9158_v61 = vld [vmem:[%s16446_s3 + $0x12a0] sm:$0xf]  ;;  %v9031_v6 = vor.u32 %v10538_v60, %v9030_v58  ;;  %v10502_v11 = vld [vmem:[%s16446_s3 + $0x108c] sm:$0xf0]  ;;  %5459 = vmatpush.bf16.msra.mxu3 %v9303_v59 }
  0x92   :  { %v9286_v63 = vld [vmem:[%s16446_s3 + $0x13a0] sm:$0xf]  ;;  %v9159_v10 = vor.u32 %v10570_v62, %v9158_v61  ;;  %v10534_v14 = vld [vmem:[%s16446_s3 + $0x118c] sm:$0xf0]  ;;  %5418 = vmatpush.bf16.msra.mxu0 %v8903_v3 }
  0x93   :  { %v8886_v5 = vld [vmem:[%s16446_s3 + $0x1080] sm:$0xf]  ;;  %v9287_v4 = vor.u32 %v10602_v1, %v9286_v63  ;;  %v10566_v16 = vld [vmem:[%s16446_s3 + $0x128c] sm:$0xf0]  ;;  %5432 = vmatpush.bf16.msra.mxu1 %v9031_v6 }
  0x94   :  { %v9014_v13 = vld [vmem:[%s16446_s3 + $0x1180] sm:$0xf]  ;;  %v10598_v17 = vld [vmem:[%s16446_s3 + $0x138c] sm:$0xf0]  ;;  %v8887_v18 = vor.u32 %v10502_v11, %v8886_v5  ;;  %5446 = vmatpush.bf16.msra.mxu2 %v9159_v10  ;;  %v132_v10 = vunpack.c.l.bf16 %v86_v52 }
  0x95   :  { %v9142_v15 = vld [vmem:[%s16446_s3 + $0x1280] sm:$0xf]  ;;  %v10498_v20 = vld [vmem:[%s16446_s3 + $0x106c] sm:$0xf0]  ;;  %v9015_v22 = vor.u32 %v10534_v14, %v9014_v13  ;;  %5460 = vmatpush.bf16.msra.mxu3 %v9287_v4  ;;  %v109_v14 = vunpack.c.l.bf16 %v74_v54 }
  0x96   :  { %v9270_v55 = vld [vmem:[%s16446_s3 + $0x1380] sm:$0xf]  ;;  %v9143_v23 = vor.u32 %v10566_v16, %v9142_v15  ;;  %v10530_v24 = vld [vmem:[%s16446_s3 + $0x116c] sm:$0xf0]  ;;  %5419 = vmatpush.bf16.msra.mxu0 %v8887_v18 }
  0x97   :  { %v8870_v19 = vld [vmem:[%s16446_s3 + $0x1060] sm:$0xf]  ;;  %v10562_v26 = vld [vmem:[%s16446_s3 + $0x126c] sm:$0xf0]  ;;  %v9271_v27 = vor.u32 %v10598_v17, %v9270_v55  ;;  %5433 = vmatpush.bf16.msra.mxu1 %v9015_v22  ;;  %v133_v55 = vunpack.c.h.bf16 %v86_v52 }
  0x98   :  { %v8998_v21 = vld [vmem:[%s16446_s3 + $0x1160] sm:$0xf]  ;;  %v10594_v29 = vld [vmem:[%s16446_s3 + $0x136c] sm:$0xf0]  ;;  %v8871_v37 = vor.u32 %v10498_v20, %v8870_v19  ;;  %5447 = vmatpush.bf16.msra.mxu2 %v9143_v23 }
  0x99   :  { %v9126_v25 = vld [vmem:[%s16446_s3 + $0x1260] sm:$0xf]  ;;  %v10494_v31 = vld [vmem:[%s16446_s3 + $0x104c] sm:$0xf0]  ;;  %v8999_v46 = vor.u32 %v10530_v24, %v8998_v21  ;;  %5461 = vmatpush.bf16.msra.mxu3 %v9271_v27  ;;  %v110_v21 = vunpack.c.h.bf16 %v74_v54 }
  0x9a   :  { %v9254_v28 = vld [vmem:[%s16446_s3 + $0x1360] sm:$0xf]  ;;  %v10526_v34 = vld [vmem:[%s16446_s3 + $0x114c] sm:$0xf0]  ;;  %v9127_v47 = vor.u32 %v10562_v26, %v9126_v25  ;;  %5420 = vmatpush.bf16.msra.mxu0 %v8871_v37 }
  0x9b   :  { %v8854_v30 = vld [vmem:[%s16446_s3 + $0x1040] sm:$0xf]  ;;  %v10558_v39 = vld [vmem:[%s16446_s3 + $0x124c] sm:$0xf0]  ;;  %v9255_v56 = vor.u32 %v10594_v29, %v9254_v28  ;;  %5434 = vmatpush.bf16.msra.mxu1 %v8999_v46 }
  0x9c   :  { %v8982_v32 = vld [vmem:[%s16446_s3 + $0x1140] sm:$0xf]  ;;  %v10590_v33 = vld [vmem:[%s16446_s3 + $0x134c] sm:$0xf0]  ;;  %v8855_v60 = vor.u32 %v10494_v31, %v8854_v30  ;;  %5448 = vmatpush.bf16.msra.mxu2 %v9127_v47 }
  0x9d   :  { %v9110_v38 = vld [vmem:[%s16446_s3 + $0x1240] sm:$0xf]  ;;  %v11961_v53 = vld [vmem:[%s16448_s1 + $0x10] sm:$0xff]  ;;  %v8983_v61 = vor.u32 %v10526_v34, %v8982_v32  ;;  %5462 = vmatpush.bf16.msra.mxu3 %v9255_v56 }
  0x9e   :  { %v73_v44 = vld [vmem:[%s16447_s0 + $0x40] sm:$0xff]  ;;  %v10490_v58 = vld [vmem:[%s16446_s3 + $0x102c] sm:$0xf0]  ;;  %v9111_v62 = vor.u32 %v10558_v39, %v9110_v38  ;;  %v165_v11 = vperm.slane %v11961_v53, 0  ;;  %v167_v4 = vperm.slane %v11961_v53, 2  ;;  %v166_v17 = vperm.slane %v11961_v53, 1  ;;  %5421 = vmatpush.bf16.msra.mxu0 %v8855_v60 }
  0x9f   :  { %v9238_v50 = vld [vmem:[%s16446_s3 + $0x1340] sm:$0xf]  ;;  %v87_v59 = vld [vmem:[%s16447_s0 + $0xac] sm:$0xff]  ;;  %v107_v5 = vunpack.c.l.bf16 %v73_v44  ;;  %v108_v16 = vunpack.c.h.bf16 %v73_v44  ;;  %v168_v23 = vperm.slane %v11961_v53, 3  ;;  %5435 = vmatpush.bf16.msra.mxu1 %v8983_v61 }
  0xa0   :  { %v11969_v57 = vld [vmem:[%s16446_s3 + $0x1020] sm:$0xf]  ;;  %v11985_v1 = vld [vmem:[%s16446_s3 + $0x112c] sm:$0xf0]  ;;  %v134_v15 = vunpack.c.l.bf16 %v87_v59  ;;  %v9239_v18 = vor.u32 %v10590_v33, %v9238_v50  ;;  %v135_v22 = vunpack.c.h.bf16 %v87_v59  ;;  %v240_v34 = vmul.f32 %v165_v11, %v132_v10  ;;  %5449 = vmatpush.bf16.msra.mxu2 %v9111_v62 }
  0xa1   :  { %v11980_v63 = vld [vmem:[%s16446_s3 + $0x1120] sm:$0xf]  ;;  %v10554_v6 = vld [vmem:[%s16446_s3 + $0x122c] sm:$0xf0]  ;;  %v8839_v24 = vor.u32 %v10490_v58, %v11969_v57  ;;  %v215_v32 = vmul.f32 %v165_v11, %v107_v5  ;;  %v217_v37 = vmul.f32 %v167_v4, %v109_v14  ;;  %v216_v47 = vmul.f32 %v166_v17, %v108_v16 }
  0xa2   :  { %v11990_v3 = vld [vmem:[%s16446_s3 + $0x1220] sm:$0xf]  ;;  %v11999_v13 = vld [vmem:[%s16449_s2 + $0x10] sm:$0xff]  ;;  %v8967_v25 = vor.u32 %v11985_v1, %v11980_v63  ;;  %v242_v46 = vmul.f32 %v167_v4, %v134_v15  ;;  %v241_v50 = vmul.f32 %v166_v17, %v133_v55  ;;  %5463 = vmatpush.bf16.msra.mxu3 %v9239_v18  ;;  %v218_v57 = vmul.f32 %v168_v23, %v110_v21 }
  0xa3   :  { %v9222_v19 = vld [vmem:[%s16446_s3 + $0x1320] sm:$0xf]  ;;  %v10586_v20 = vld [vmem:[%s16446_s3 + $0x132c] sm:$0xf0]  ;;  %v9095_v26 = vor.u32 %v10554_v6, %v11990_v3  ;;  %v273_v29 = vperm.slane %v11999_v13, 0  ;;  %v275_v38 = vperm.slane %v11999_v13, 2  ;;  %v243_v58 = vmul.f32 %v168_v23, %v135_v22  ;;  %5422 = vmatpush.bf16.msra.mxu0 %v8839_v24 }
  0xa4   :  { %v8822_v27 = vld [vmem:[%s16446_s3 + $0x1000] sm:$0xf]  ;;  %v10486_v28 = vld [vmem:[%s16446_s3 + $0x100c] sm:$0xf0]  ;;  %v274_v33 = vperm.slane %v11999_v13, 1  ;;  %v9223_v52 = vor.u32 %v10586_v20, %v9222_v19  ;;  %v276_v59 = vperm.slane %v11999_v13, 3  ;;  %5436 = vmatpush.bf16.msra.mxu1 %v8967_v25 }
  0xa5   :  { %v8950_v30 = vld [vmem:[%s16446_s3 + $0x1100] sm:$0xf]  ;;  %v10518_v31 = vld [vmem:[%s16446_s3 + $0x110c] sm:$0xf0]  ;;  %v8823_v60 = vor.u32 %v10486_v28, %v8822_v27  ;;  %v323_v11 = vadd.f32 %v273_v29, %v215_v32  ;;  %v348_v14 = vadd.f32 %v273_v29, %v240_v34  ;;  %v325_v4 = vadd.f32 %v275_v38, %v217_v37  ;;  %5450 = vmatpush.bf16.msra.mxu2 %v9095_v26 }
  0xa6   :  { %v9078_v39 = vld [vmem:[%s16446_s3 + $0x1200] sm:$0xf]  ;;  %v10550_v44 = vld [vmem:[%s16446_s3 + $0x120c] sm:$0xf0]  ;;  %v8951_v61 = vor.u32 %v10518_v31, %v8950_v30  ;;  %v350_v55 = vadd.f32 %v275_v38, %v242_v46  ;;  %v324_v17 = vadd.f32 %v274_v33, %v216_v47  ;;  %v349_v18 = vadd.f32 %v274_v33, %v241_v50  ;;  %5464 = vmatpush.bf16.msra.mxu3 %v9223_v52 }
  0xa7   :  { %v9206_v54 = vld [vmem:[%s16446_s3 + $0x1300] sm:$0xf]  ;;  %v10582_v56 = vld [vmem:[%s16446_s3 + $0x130c] sm:$0xf0]  ;;  %v9079_v3 = vor.u32 %v10550_v44, %v9078_v39  ;;  %v326_v21 = vadd.f32 %v276_v59, %v218_v57  ;;  %v351_v22 = vadd.f32 %v276_v59, %v243_v58  ;;  %5423 = vmatpush.bf16.msra.mxu0 %v8823_v60  ;;  %v12075_v29 = vpack.c.bf16 %v348_v14, %v323_v11 }
  0xa8   :  { %v9446_v62 = vld [vmem:[%s16446_s3 + $0x14e0] sm:$0xf]  ;;  %v10642_v63 = vld [vmem:[%s16446_s3 + $0x14ec] sm:$0xf0]  ;;  %v9207_v19 = vor.u32 %v10582_v56, %v9206_v54  ;;  %5437 = vmatpush.bf16.msra.mxu1 %v8951_v61  ;;  %v12086_v34 = vpack.c.bf16 %v350_v55, %v325_v4  ;;  %v12088_v37 = vpack.c.bf16 %v349_v18, %v324_v17 }
  0xa9   :  { %v9574_v1 = vld [vmem:[%s16446_s3 + $0x15e0] sm:$0xf]  ;;  %v10674_v5 = vld [vmem:[%s16446_s3 + $0x15ec] sm:$0xf0]  ;;  %v9447_v20 = vor.u32 %v10642_v63, %v9446_v62  ;;  %5451 = vmatpush.bf16.msra.mxu2 %v9079_v3  ;;  %v12096_v44 = vpack.c.bf16 %v351_v22, %v326_v21 }
  0xaa   :  { %v9702_v6 = vld [vmem:[%s16446_s3 + $0x16e0] sm:$0xf]  ;;  %v10706_v10 = vld [vmem:[%s16446_s3 + $0x16ec] sm:$0xf0]  ;;  %v9575_v23 = vor.u32 %v10674_v5, %v9574_v1  ;;  %5465 = vmatpush.bf16.msra.mxu3 %v9207_v19  ;;  %5424 = vmatmul.bf16.vlgmr.msra.gmra.mxu0 %v12075_v29 }
  0xab   :  { %v9830_v15 = vld [vmem:[%s16446_s3 + $0x17e0] sm:$0xf]  ;;  %v10738_v16 = vld [vmem:[%s16446_s3 + $0x17ec] sm:$0xf0]  ;;  %v9703_v24 = vor.u32 %v10706_v10, %v9702_v6  ;;  %5472 = vmatpush.bf16.msrb.mxu0 %v9447_v20  ;;  %5438 = vmatmul.bf16.vlgmr.msra.gmra.mxu1 %v12088_v37 }
  0xac   :  { %v9430_v25 = vld [vmem:[%s16446_s3 + $0x14c0] sm:$0xf]  ;;  %v10638_v26 = vld [vmem:[%s16446_s3 + $0x14cc] sm:$0xf0]  ;;  %v9831_v28 = vor.u32 %v10738_v16, %v9830_v15  ;;  %5486 = vmatpush.bf16.msrb.mxu1 %v9575_v23  ;;  %5452 = vmatmul.bf16.vlgmr.msra.gmra.mxu2 %v12086_v34 }
  0xad   :  { %v9558_v27 = vld [vmem:[%s16446_s3 + $0x15c0] sm:$0xf]  ;;  %v10670_v30 = vld [vmem:[%s16446_s3 + $0x15cc] sm:$0xf0]  ;;  %v9431_v46 = vor.u32 %v10638_v26, %v9430_v25  ;;  %5500 = vmatpush.bf16.msrb.mxu2 %v9703_v24  ;;  %5466 = vmatmul.bf16.vlgmr.msra.gmra.mxu3 %v12096_v44 }
  0xae   :  { %v9686_v31 = vld [vmem:[%s16446_s3 + $0x16c0] sm:$0xf]  ;;  %v10702_v32 = vld [vmem:[%s16446_s3 + $0x16cc] sm:$0xf0]  ;;  %v9559_v47 = vor.u32 %v10670_v30, %v9558_v27  ;;  %5514 = vmatpush.bf16.msrb.mxu3 %v9831_v28 }
  0xaf   :  { %v9814_v38 = vld [vmem:[%s16446_s3 + $0x17c0] sm:$0xf]  ;;  %v10734_v39 = vld [vmem:[%s16446_s3 + $0x17cc] sm:$0xf0]  ;;  %v9687_v50 = vor.u32 %v10702_v32, %v9686_v31  ;;  %5473 = vmatpush.bf16.msrb.mxu0 %v9431_v46 }
  0xb0   :  { %v9414_v33 = vld [vmem:[%s16446_s3 + $0x14a0] sm:$0xf]  ;;  %v10634_v52 = vld [vmem:[%s16446_s3 + $0x14ac] sm:$0xf0]  ;;  %v9815_v56 = vor.u32 %v10734_v39, %v9814_v38  ;;  %5487 = vmatpush.bf16.msrb.mxu1 %v9559_v47 }
  0xb1   :  { %v9542_v54 = vld [vmem:[%s16446_s3 + $0x15a0] sm:$0xf]  ;;  %v10666_v57 = vld [vmem:[%s16446_s3 + $0x15ac] sm:$0xf0]  ;;  %v9415_v62 = vor.u32 %v10634_v52, %v9414_v33  ;;  %5501 = vmatpush.bf16.msrb.mxu2 %v9687_v50 }
  0xb2   :  { %v9670_v58 = vld [vmem:[%s16446_s3 + $0x16a0] sm:$0xf]  ;;  %v10698_v59 = vld [vmem:[%s16446_s3 + $0x16ac] sm:$0xf0]  ;;  %v9543_v63 = vor.u32 %v10666_v57, %v9542_v54  ;;  %5515 = vmatpush.bf16.msrb.mxu3 %v9815_v56  ;;  %v88_v56 = vld [vmem:[%s16447_s0 + $0xb4] sm:$0xff] }
  0xb3   :  { %v9798_v60 = vld [vmem:[%s16446_s3 + $0x17a0] sm:$0xf]  ;;  %v10730_v61 = vld [vmem:[%s16446_s3 + $0x17ac] sm:$0xf0]  ;;  %v9671_v1 = vor.u32 %v10698_v59, %v9670_v58  ;;  %5474 = vmatpush.bf16.msrb.mxu0 %v9415_v62  ;;  %v76_v57 = vld [vmem:[%s16447_s0 + $0x58] sm:$0xff] }
  0xb4   :  { %v9398_v3 = vld [vmem:[%s16446_s3 + $0x1480] sm:$0xf]  ;;  %v10630_v5 = vld [vmem:[%s16446_s3 + $0x148c] sm:$0xf0]  ;;  %v9799_v10 = vor.u32 %v10730_v61, %v9798_v60  ;;  %5488 = vmatpush.bf16.msrb.mxu1 %v9543_v63 }
  0xb5   :  { %v9526_v6 = vld [vmem:[%s16446_s3 + $0x1580] sm:$0xf]  ;;  %v10662_v11 = vld [vmem:[%s16446_s3 + $0x158c] sm:$0xf0]  ;;  %v9399_v55 = vor.u32 %v10630_v5, %v9398_v3  ;;  %5502 = vmatpush.bf16.msrb.mxu2 %v9671_v1 }
  0xb6   :  { %v9654_v14 = vld [vmem:[%s16446_s3 + $0x1680] sm:$0xf]  ;;  %v10694_v4 = vld [vmem:[%s16446_s3 + $0x168c] sm:$0xf0]  ;;  %v9527_v20 = vor.u32 %v10662_v11, %v9526_v6  ;;  %5516 = vmatpush.bf16.msrb.mxu3 %v9799_v10  ;;  %v169_v6 = vperm.slane %v11961_v53, 4 }
  0xb7   :  { %v9782_v15 = vld [vmem:[%s16446_s3 + $0x1780] sm:$0xf]  ;;  %v10726_v16 = vld [vmem:[%s16446_s3 + $0x178c] sm:$0xf0]  ;;  %v9655_v21 = vor.u32 %v10694_v4, %v9654_v14  ;;  %5475 = vmatpush.bf16.msrb.mxu0 %v9399_v55  ;;  %v136_v4 = vunpack.c.l.bf16 %v88_v56 }
  0xb8   :  { %v9382_v17 = vld [vmem:[%s16446_s3 + $0x1460] sm:$0xf]  ;;  %v10626_v18 = vld [vmem:[%s16446_s3 + $0x146c] sm:$0xf0]  ;;  %v9783_v25 = vor.u32 %v10726_v16, %v9782_v15  ;;  %5489 = vmatpush.bf16.msrb.mxu1 %v9527_v20  ;;  %v113_v15 = vunpack.c.l.bf16 %v76_v57  ;;  %v171_v16 = vperm.slane %v11961_v53, 6 }
  0xb9   :  { %v9510_v19 = vld [vmem:[%s16446_s3 + $0x1560] sm:$0xf]  ;;  %v10658_v22 = vld [vmem:[%s16446_s3 + $0x156c] sm:$0xf0]  ;;  %v9383_v38 = vor.u32 %v10626_v18, %v9382_v17  ;;  %5503 = vmatpush.bf16.msrb.mxu2 %v9655_v21  ;;  %v137_v18 = vunpack.c.h.bf16 %v88_v56 }
  0xba   :  { %v9638_v23 = vld [vmem:[%s16446_s3 + $0x1660] sm:$0xf]  ;;  %v10690_v24 = vld [vmem:[%s16446_s3 + $0x166c] sm:$0xf0]  ;;  %v9511_v50 = vor.u32 %v10658_v22, %v9510_v19  ;;  %5517 = vmatpush.bf16.msrb.mxu3 %v9783_v25  ;;  %v170_v19 = vperm.slane %v11961_v53, 5  ;;  %v114_v22 = vunpack.c.h.bf16 %v76_v57 }
  0xbb   :  { %v9766_v26 = vld [vmem:[%s16446_s3 + $0x1760] sm:$0xf]  ;;  %v10722_v27 = vld [vmem:[%s16446_s3 + $0x176c] sm:$0xf0]  ;;  %v9639_v33 = vor.u32 %v10690_v24, %v9638_v23  ;;  %5476 = vmatpush.bf16.msrb.mxu0 %v9383_v38  ;;  %v172_v24 = vperm.slane %v11961_v53, 7 }
  0xbc   :  { %v9366_v28 = vld [vmem:[%s16446_s3 + $0x1440] sm:$0xf]  ;;  %v10622_v30 = vld [vmem:[%s16446_s3 + $0x144c] sm:$0xf0]  ;;  %v9767_v58 = vor.u32 %v10722_v27, %v9766_v26  ;;  %5490 = vmatpush.bf16.msrb.mxu1 %v9511_v50  ;;  %v279_v50 = vperm.slane %v11999_v13, 6  ;;  %v245_v57 = vmul.f32 %v170_v19, %v137_v18 }
  0xbd   :  { %v9494_v31 = vld [vmem:[%s16446_s3 + $0x1540] sm:$0xf]  ;;  %v10654_v32 = vld [vmem:[%s16446_s3 + $0x154c] sm:$0xf0]  ;;  %v9367_v62 = vor.u32 %v10622_v30, %v9366_v28  ;;  %5504 = vmatpush.bf16.msrb.mxu2 %v9639_v33  ;;  %v10064_v18 = vld [vmem:[%s16446_s3 + $0x2e4] sm:$0xf] }
  0xbe   :  { %v9622_v39 = vld [vmem:[%s16446_s3 + $0x1640] sm:$0xf]  ;;  %v10686_v46 = vld [vmem:[%s16446_s3 + $0x164c] sm:$0xf0]  ;;  %v9495_v63 = vor.u32 %v10654_v32, %v9494_v31  ;;  %5518 = vmatpush.bf16.msrb.mxu3 %v9767_v58  ;;  %v278_v58 = vperm.slane %v11999_v13, 5 }
  0xbf   :  { %v75_v47 = vld [vmem:[%s16447_s0 + $0x50] sm:$0xff]  ;;  %v9750_v52 = vld [vmem:[%s16446_s3 + $0x1740] sm:$0xf]  ;;  %v9623_v10 = vor.u32 %v10686_v46, %v9622_v39  ;;  %5477 = vmatpush.bf16.msrb.mxu0 %v9367_v62  ;;  %v244_v39 = vmul.f32 %v169_v6, %v136_v4  ;;  %v277_v46 = vperm.slane %v11999_v13, 4  ;;  %v222_v62 = vmul.f32 %v172_v24, %v114_v22  ;;  %v10032_v4 = vld [vmem:[%s16446_s3 + $0x1e4] sm:$0xf] }
  0xc0   :  { %v10718_v54 = vld [vmem:[%s16446_s3 + $0x174c] sm:$0xf0]  ;;  %v9350_v59 = vld [vmem:[%s16446_s3 + $0x1420] sm:$0xf]  ;;  %v111_v5 = vunpack.c.l.bf16 %v75_v47  ;;  %v112_v17 = vunpack.c.h.bf16 %v75_v47  ;;  %v221_v47 = vmul.f32 %v171_v16, %v113_v15  ;;  %5491 = vmatpush.bf16.msrb.mxu1 %v9495_v63  ;;  %v7016_v15 = vld [vmem:[%s16446_s3 + $0x1f0] sm:$0xf0]  ;;  %v353_v22 = vadd.f32 %v278_v58, %v245_v57 }
  0xc1   :  { %v10618_v60 = vld [vmem:[%s16446_s3 + $0x142c] sm:$0xf0]  ;;  %v89_v61 = vld [vmem:[%s16447_s0 + $0xbc] sm:$0xff]  ;;  %v9751_v20 = vor.u32 %v10718_v54, %v9750_v52  ;;  %5505 = vmatpush.bf16.msrb.mxu2 %v9623_v10 }
  0xc2   :  { %v12219_v1 = vld [vmem:[%s16446_s3 + $0x1520] sm:$0xf]  ;;  %v12224_v3 = vld [vmem:[%s16446_s3 + $0x152c] sm:$0xf0]  ;;  %v138_v55 = vunpack.c.l.bf16 %v89_v61  ;;  %v139_v23 = vunpack.c.h.bf16 %v89_v61  ;;  %v9351_v25 = vor.u32 %v10618_v60, %v9350_v59  ;;  %v219_v32 = vmul.f32 %v169_v6, %v111_v5 }
  0xc3   :  { %v9606_v11 = vld [vmem:[%s16446_s3 + $0x1620] sm:$0xf]  ;;  %v10682_v14 = vld [vmem:[%s16446_s3 + $0x162c] sm:$0xf0]  ;;  %v9479_v26 = vor.u32 %v12224_v3, %v12219_v1  ;;  %v220_v56 = vmul.f32 %v170_v19, %v112_v17  ;;  %5519 = vmatpush.bf16.msrb.mxu3 %v9751_v20  ;;  %v280_v1 = vperm.slane %v11999_v13, 7  ;;  %v329_v17 = vadd.f32 %v279_v50, %v221_v47 }
  0xc4   :  { %v9734_v21 = vld [vmem:[%s16446_s3 + $0x1720] sm:$0xf]  ;;  %v9607_v27 = vor.u32 %v10682_v14, %v9606_v11  ;;  %v10714_v28 = vld [vmem:[%s16446_s3 + $0x172c] sm:$0xf0]  ;;  %v246_v54 = vmul.f32 %v171_v16, %v138_v55  ;;  %v247_v63 = vmul.f32 %v172_v24, %v139_v23  ;;  %v10000_v11 = vld [vmem:[%s16446_s3 + $0xe4] sm:$0xf]  ;;  %5478 = vmatpush.bf16.msrb.mxu0 %v9351_v25  ;;  %v327_v16 = vadd.f32 %v277_v46, %v219_v32 }
  0xc5   :  { %v9334_v30 = vld [vmem:[%s16446_s3 + $0x1400] sm:$0xf]  ;;  %v10614_v31 = vld [vmem:[%s16446_s3 + $0x140c] sm:$0xf0]  ;;  %v9735_v59 = vor.u32 %v10714_v28, %v9734_v21  ;;  %v6888_v13 = vld [vmem:[%s16446_s3 + $0xf0] sm:$0xf0]  ;;  %v352_v55 = vadd.f32 %v277_v46, %v244_v39  ;;  %5492 = vmatpush.bf16.msrb.mxu1 %v9479_v26  ;;  %v328_v21 = vadd.f32 %v278_v58, %v220_v56  ;;  %v330_v25 = vadd.f32 %v280_v1, %v222_v62 }
  0xc6   :  { %v9462_v53 = vld [vmem:[%s16446_s3 + $0x1500] sm:$0xf]  ;;  %v10646_v38 = vld [vmem:[%s16446_s3 + $0x150c] sm:$0xf0]  ;;  %v9335_v3 = vor.u32 %v10614_v31, %v9334_v30  ;;  %5506 = vmatpush.bf16.msrb.mxu2 %v9607_v27  ;;  %v7144_v19 = vld [vmem:[%s16446_s3 + $0x2f0] sm:$0xf0]  ;;  %v354_v20 = vadd.f32 %v279_v50, %v246_v54  ;;  %v355_v28 = vadd.f32 %v280_v1, %v247_v63  ;;  %v6891_v30 = vor.u32 %v10000_v11, %v6888_v13 }
  0xc7   :  { %v9590_v33 = vld [vmem:[%s16446_s3 + $0x1600] sm:$0xf]  ;;  %v10678_v52 = vld [vmem:[%s16446_s3 + $0x160c] sm:$0xf0]  ;;  %v9463_v5 = vor.u32 %v10646_v38, %v9462_v53  ;;  %5520 = vmatpush.bf16.msrb.mxu3 %v9735_v59  ;;  %v7019_v31 = vor.u32 %v10032_v4, %v7016_v15  ;;  %v9996_v32 = vld [vmem:[%s16446_s3 + $0xc4] sm:$0xf]  ;;  %v7147_v53 = vor.u32 %v10064_v18, %v7144_v19  ;;  %v12305_v38 = vpack.c.bf16 %v352_v55, %v327_v16 }
  0xc8   :  { %v9718_v60 = vld [vmem:[%s16446_s3 + $0x1700] sm:$0xf]  ;;  %v10710_v61 = vld [vmem:[%s16446_s3 + $0x170c] sm:$0xf0]  ;;  %v9591_v14 = vor.u32 %v10678_v52, %v9590_v33  ;;  %5479 = vmatpush.bf16.msrb.mxu0 %v9335_v3  ;;  %v6872_v39 = vld [vmem:[%s16446_s3 + $0xd0] sm:$0xf0]  ;;  %v12316_v50 = vpack.c.bf16 %v354_v20, %v329_v17  ;;  %v12318_v33 = vpack.c.bf16 %v353_v22, %v328_v21  ;;  %v12326_v56 = vpack.c.bf16 %v355_v28, %v330_v25 }
  0xc9   :  { %v9958_v6 = vld [vmem:[%s16446_s3 + $0x18e0] sm:$0xf]  ;;  %v10770_v10 = vld [vmem:[%s16446_s3 + $0x18ec] sm:$0xf0]  ;;  %v9719_v23 = vor.u32 %v10710_v61, %v9718_v60  ;;  %v10028_v46 = vld [vmem:[%s16446_s3 + $0x1c4] sm:$0xf]  ;;  %5493 = vmatpush.bf16.msrb.mxu1 %v9463_v5  ;;  %v6875_v58 = vor.u32 %v9996_v32, %v6872_v39 }
  0xca   :  { %v9959_v24 = vor.u32 %v10770_v10, %v9958_v6  ;;  %v9942_v26 = vld [vmem:[%s16446_s3 + $0x18c0] sm:$0xf]  ;;  %v10766_v27 = vld [vmem:[%s16446_s3 + $0x18cc] sm:$0xf0]  ;;  %v7000_v47 = vld [vmem:[%s16446_s3 + $0x1d0] sm:$0xf0]  ;;  %5507 = vmatpush.bf16.msrb.mxu2 %v9591_v14 }
  0xcb   :  { %v10060_v52 = vld [vmem:[%s16446_s3 + $0x2c4] sm:$0xf]  ;;  %v7128_v54 = vld [vmem:[%s16446_s3 + $0x2d0] sm:$0xf0]  ;;  %5521 = vmatpush.bf16.msrb.mxu3 %v9719_v23  ;;  %v9943_v57 = vor.u32 %v10766_v27, %v9942_v26  ;;  %v7003_v59 = vor.u32 %v10028_v46, %v7000_v47  ;;  %v9926_v60 = vld [vmem:[%s16446_s3 + $0x18a0] sm:$0xf]  ;;  %5480 = vmatmul.bf16.vlgmr.msrb.gmra.mxu0 %v12305_v38 }
  0xcc   :  { %5528 = vmatpush.bf16.msra.mxu0 %v9959_v24  ;;  %v10762_v61 = vld [vmem:[%s16446_s3 + $0x18ac] sm:$0xf0]  ;;  %v9992_v62 = vld [vmem:[%s16446_s3 + $0xa4] sm:$0xf]  ;;  %v7131_v63 = vor.u32 %v10060_v52, %v7128_v54  ;;  %v6856_v1 = vld [vmem:[%s16446_s3 + $0xb0] sm:$0xf0]  ;;  %5494 = vmatmul.bf16.vlgmr.msrb.gmra.mxu1 %v12318_v33 }
  0xcd   :  { %5542 = vmatpush.bf16.msra.mxu1 %v6891_v30  ;;  %v10024_v3 = vld [vmem:[%s16446_s3 + $0x1a4] sm:$0xf]  ;;  %v6984_v5 = vld [vmem:[%s16446_s3 + $0x1b0] sm:$0xf0]  ;;  %5508 = vmatmul.bf16.vlgmr.msrb.gmra.mxu2 %v12316_v50  ;;  %v9927_v11 = vor.u32 %v10762_v61, %v9926_v60  ;;  %v6859_v14 = vor.u32 %v9992_v62, %v6856_v1  ;;  %v9910_v4 = vld [vmem:[%s16446_s3 + $0x1880] sm:$0xf] }
  0xce   :  { %5556 = vmatpush.bf16.msra.mxu2 %v7019_v31  ;;  %v10056_v6 = vld [vmem:[%s16446_s3 + $0x2a4] sm:$0xf]  ;;  %v7112_v10 = vld [vmem:[%s16446_s3 + $0x2b0] sm:$0xf0]  ;;  %5522 = vmatmul.bf16.vlgmr.msrb.gmra.mxu3 %v12326_v56  ;;  %v6987_v13 = vor.u32 %v10024_v3, %v6984_v5  ;;  %v10758_v15 = vld [vmem:[%s16446_s3 + $0x188c] sm:$0xf0] }
  0xcf   :  { %5570 = vmatpush.bf16.msra.mxu3 %v7147_v53  ;;  %v9988_v16 = vld [vmem:[%s16446_s3 + $0x84] sm:$0xf]  ;;  %v7115_v55 = vor.u32 %v10056_v6, %v7112_v10  ;;  %v6840_v17 = vld [vmem:[%s16446_s3 + $0x90] sm:$0xf0]  ;;  %v9911_v22 = vor.u32 %v10758_v15, %v9910_v4  ;;  %v9894_v25 = vld [vmem:[%s16446_s3 + $0x1860] sm:$0xf] }
  0xd0   :  { %5529 = vmatpush.bf16.msra.mxu0 %v9943_v57  ;;  %v10020_v18 = vld [vmem:[%s16446_s3 + $0x184] sm:$0xf]  ;;  %v6968_v19 = vld [vmem:[%s16446_s3 + $0x190] sm:$0xf0]  ;;  %v6843_v23 = vor.u32 %v9988_v16, %v6840_v17  ;;  %v10754_v28 = vld [vmem:[%s16446_s3 + $0x186c] sm:$0xf0] }
  0xd1   :  { %5543 = vmatpush.bf16.msra.mxu1 %v6875_v58  ;;  %v10052_v20 = vld [vmem:[%s16446_s3 + $0x284] sm:$0xf]  ;;  %v7096_v21 = vld [vmem:[%s16446_s3 + $0x290] sm:$0xf0]  ;;  %v6971_v24 = vor.u32 %v10020_v18, %v6968_v19  ;;  %v9895_v46 = vor.u32 %v10754_v28, %v9894_v25  ;;  %v9878_v47 = vld [vmem:[%s16446_s3 + $0x1840] sm:$0xf] }
  0xd2   :  { %5557 = vmatpush.bf16.msra.mxu2 %v7003_v59  ;;  %v9984_v30 = vld [vmem:[%s16446_s3 + $0x64] sm:$0xf]  ;;  %v7099_v31 = vor.u32 %v10052_v20, %v7096_v21  ;;  %v6824_v26 = vld [vmem:[%s16446_s3 + $0x70] sm:$0xf0]  ;;  %v10750_v52 = vld [vmem:[%s16446_s3 + $0x184c] sm:$0xf0] }
  0xd3   :  { %5571 = vmatpush.bf16.msra.mxu3 %v7131_v63  ;;  %v10016_v27 = vld [vmem:[%s16446_s3 + $0x164] sm:$0xf]  ;;  %v6952_v32 = vld [vmem:[%s16446_s3 + $0x170] sm:$0xf0]  ;;  %v6827_v54 = vor.u32 %v9984_v30, %v6824_v26  ;;  %v77_v59 = vld [vmem:[%s16447_s0 + $0x60] sm:$0xf]  ;;  %v9879_v6 = vor.u32 %v10750_v52, %v9878_v47 }
  0xd4   :  { %5530 = vmatpush.bf16.msra.mxu0 %v9927_v11  ;;  %v10048_v53 = vld [vmem:[%s16446_s3 + $0x264] sm:$0xf]  ;;  %v7080_v39 = vld [vmem:[%s16446_s3 + $0x270] sm:$0xf0]  ;;  %v6955_v57 = vor.u32 %v10016_v27, %v6952_v32  ;;  %v115_v10 = vunpack.c.l.bf16 %v77_v59  ;;  %v9862_v15 = vld [vmem:[%s16446_s3 + $0x1820] sm:$0xf] }
  0xd5   :  { %5544 = vmatpush.bf16.msra.mxu1 %v6859_v14  ;;  %v9980_v58 = vld [vmem:[%s16446_s3 + $0x44] sm:$0xf]  ;;  %v7083_v61 = vor.u32 %v10048_v53, %v7080_v39  ;;  %v6808_v62 = vld [vmem:[%s16446_s3 + $0x50] sm:$0xf0]  ;;  %v10773_v14 = vld [vmem:[%s16448_s1 + $0x18] ss:$0 sm:$0xff] }
  0xd6   :  { %5558 = vmatpush.bf16.msra.mxu2 %v6987_v13  ;;  %v90_v60 = vld [vmem:[%s16447_s0 + $0xc4] sm:$0xf]  ;;  %v6936_v1 = vld [vmem:[%s16446_s3 + $0x150] sm:$0xf0]  ;;  %v6811_v13 = vor.u32 %v9980_v58, %v6808_v62  ;;  %v10746_v16 = vld [vmem:[%s16446_s3 + $0x182c] sm:$0xf0]  ;;  %v223_v28 = vmul.f32 %v10773_v14, %v115_v10 }
  0xd7   :  { %5572 = vmatpush.bf16.msra.mxu3 %v7115_v55  ;;  %v10012_v63 = vld [vmem:[%s16446_s3 + $0x144] sm:$0xf]  ;;  %v7064_v5 = vld [vmem:[%s16446_s3 + $0x250] sm:$0xf0]  ;;  %v140_v11 = vunpack.c.l.bf16 %v90_v60  ;;  %v10742_v25 = vld [vmem:[%s16446_s3 + $0x180c] sm:$0xf0] }
  0xd8   :  { %5531 = vmatpush.bf16.msra.mxu0 %v9911_v22  ;;  %v10044_v3 = vld [vmem:[%s16446_s3 + $0x244] sm:$0xf]  ;;  %v6939_v4 = vor.u32 %v10012_v63, %v6936_v1  ;;  %v6792_v18 = vld [vmem:[%s16446_s3 + $0x30] sm:$0xf0] }
  0xd9   :  { %5545 = vmatpush.bf16.msra.mxu1 %v6843_v23  ;;  %v9976_v55 = vld [vmem:[%s16446_s3 + $0x24] sm:$0xf]  ;;  %v7067_v17 = vor.u32 %v10044_v3, %v7064_v5  ;;  %v6920_v20 = vld [vmem:[%s16446_s3 + $0x130] sm:$0xf0]  ;;  %v9863_v23 = vor.u32 %v10746_v16, %v9862_v15  ;;  %v248_v30 = vmul.f32 %v10773_v14, %v140_v11 }
  0xda   :  { %5559 = vmatpush.bf16.msra.mxu2 %v6971_v24  ;;  %v10008_v19 = vld [vmem:[%s16446_s3 + $0x124] sm:$0xf]  ;;  %v7048_v22 = vld [vmem:[%s16446_s3 + $0x230] sm:$0xf0]  ;;  %v9846_v24 = vld [vmem:[%s16446_s3 + $0x1800] sm:$0xf]  ;;  %v6795_v26 = vor.u32 %v9976_v55, %v6792_v18 }
  0xdb   :  { %5573 = vmatpush.bf16.msra.mxu3 %v7099_v31  ;;  %v10040_v21 = vld [vmem:[%s16446_s3 + $0x224] sm:$0xf]  ;;  %v10774_v31 = vld [vmem:[%s16449_s2 + $0x18] ss:$0 sm:$0xff]  ;;  %v6923_v27 = vor.u32 %v10008_v19, %v6920_v20  ;;  %v6776_v53 = vld [vmem:[%s16446_s3 + $0x10] sm:$0xf0]  ;;  %v9847_v60 = vor.u32 %v10742_v25, %v9846_v24 }
  0xdc   :  { %5532 = vmatpush.bf16.msra.mxu0 %v9895_v46  ;;  %v9972_v32 = vld [vmem:[%s16446_s3 + $0x4] sm:$0xf]  ;;  %v7051_v46 = vor.u32 %v10040_v21, %v7048_v22  ;;  %v6904_v47 = vld [vmem:[%s16446_s3 + $0x110] sm:$0xf0]  ;;  %v331_v1 = vadd.f32 %v10774_v31, %v223_v28  ;;  %v356_v3 = vadd.f32 %v10774_v31, %v248_v30 }
  0xdd   :  { %5546 = vmatpush.bf16.msra.mxu1 %v6827_v54  ;;  %v10004_v39 = vld [vmem:[%s16446_s3 + $0x104] sm:$0xf]  ;;  %v7032_v54 = vld [vmem:[%s16446_s3 + $0x210] sm:$0xf0]  ;;  %v6779_v5 = vor.u32 %v9972_v32, %v6776_v53 }
  0xde   :  { %5560 = vmatpush.bf16.msra.mxu2 %v6955_v57  ;;  %v10036_v52 = vld [vmem:[%s16446_s3 + $0x204] sm:$0xf]  ;;  %v7272_v58 = vld [vmem:[%s16446_s3 + $0x3f0] sm:$0xf0]  ;;  %v12521_v19 = vpack.c.bf16 %v356_v3, %v331_v1 }
  0xdf   :  { %5574 = vmatpush.bf16.msra.mxu3 %v7083_v61  ;;  %v10096_v57 = vld [vmem:[%s16446_s3 + $0x3e4] sm:$0xf]  ;;  %v7400_v61 = vld [vmem:[%s16446_s3 + $0x4f0] sm:$0xf0]  ;;  %v7035_v14 = vor.u32 %v10036_v52, %v7032_v54 }
  0xe0   :  { %5533 = vmatpush.bf16.msra.mxu0 %v9879_v6  ;;  %v10128_v59 = vld [vmem:[%s16446_s3 + $0x4e4] sm:$0xf]  ;;  %v7528_v63 = vld [vmem:[%s16446_s3 + $0x5f0] sm:$0xf0]  ;;  %v6907_v6 = vor.u32 %v10004_v39, %v6904_v47 }
  0xe1   :  { %5547 = vmatpush.bf16.msra.mxu1 %v6811_v13  ;;  %v10160_v62 = vld [vmem:[%s16446_s3 + $0x5e4] sm:$0xf]  ;;  %v7656_v11 = vld [vmem:[%s16446_s3 + $0x6f0] sm:$0xf0]  ;;  %v7275_v13 = vor.u32 %v10096_v57, %v7272_v58 }
  0xe2   :  { %5561 = vmatpush.bf16.msra.mxu2 %v6939_v4  ;;  %v10192_v10 = vld [vmem:[%s16446_s3 + $0x6e4] sm:$0xf]  ;;  %v7403_v4 = vor.u32 %v10128_v59, %v7400_v61  ;;  %v7531_v15 = vor.u32 %v10160_v62, %v7528_v63  ;;  %v7256_v55 = vld [vmem:[%s16446_s3 + $0x3d0] sm:$0xf0] }
  0xe3   :  { %5575 = vmatpush.bf16.msra.mxu3 %v7067_v17  ;;  %v10092_v16 = vld [vmem:[%s16446_s3 + $0x3c4] sm:$0xf]  ;;  %v7659_v18 = vor.u32 %v10192_v10, %v7656_v11  ;;  %v7384_v20 = vld [vmem:[%s16446_s3 + $0x4d0] sm:$0xf0] }
  0xe4   :  { %5534 = vmatpush.bf16.msra.mxu0 %v9863_v23  ;;  %v10124_v17 = vld [vmem:[%s16446_s3 + $0x4c4] sm:$0xf]  ;;  %v7512_v22 = vld [vmem:[%s16446_s3 + $0x5d0] sm:$0xf0]  ;;  %v7259_v25 = vor.u32 %v10092_v16, %v7256_v55 }
  0xe5   :  { %5548 = vmatpush.bf16.msra.mxu1 %v6795_v26  ;;  %v10156_v21 = vld [vmem:[%s16446_s3 + $0x5c4] sm:$0xf]  ;;  %v7640_v24 = vld [vmem:[%s16446_s3 + $0x6d0] sm:$0xf0]  ;;  %v7387_v28 = vor.u32 %v10124_v17, %v7384_v20 }
  0xe6   :  { %5562 = vmatpush.bf16.msra.mxu2 %v6923_v27  ;;  %v10188_v23 = vld [vmem:[%s16446_s3 + $0x6c4] sm:$0xf]  ;;  %v7515_v30 = vor.u32 %v10156_v21, %v7512_v22  ;;  %v7240_v26 = vld [vmem:[%s16446_s3 + $0x3b0] sm:$0xf0] }
  0xe7   :  { %5576 = vmatpush.bf16.msra.mxu3 %v7051_v46  ;;  %v10088_v31 = vld [vmem:[%s16446_s3 + $0x3a4] sm:$0xf]  ;;  %v7643_v32 = vor.u32 %v10188_v23, %v7640_v24  ;;  %v7368_v53 = vld [vmem:[%s16446_s3 + $0x4b0] sm:$0xf0] }
  0xe8   :  { %5535 = vmatpush.bf16.msra.mxu0 %v9847_v60  ;;  %v10120_v27 = vld [vmem:[%s16446_s3 + $0x4a4] sm:$0xf]  ;;  %v7496_v46 = vld [vmem:[%s16446_s3 + $0x5b0] sm:$0xf0]  ;;  %v7243_v54 = vor.u32 %v10088_v31, %v7240_v26 }
  0xe9   :  { %5549 = vmatpush.bf16.msra.mxu1 %v6779_v5  ;;  %v10152_v39 = vld [vmem:[%s16446_s3 + $0x5a4] sm:$0xf]  ;;  %v7624_v52 = vld [vmem:[%s16446_s3 + $0x6b0] sm:$0xf0]  ;;  %v7371_v57 = vor.u32 %v10120_v27, %v7368_v53 }
  0xea   :  { %5563 = vmatpush.bf16.msra.mxu2 %v6907_v6  ;;  %v10184_v47 = vld [vmem:[%s16446_s3 + $0x6a4] sm:$0xf]  ;;  %v7499_v58 = vor.u32 %v10152_v39, %v7496_v46  ;;  %v7224_v60 = vld [vmem:[%s16446_s3 + $0x390] sm:$0xf0] }
  0xeb   :  { %5577 = vmatpush.bf16.msra.mxu3 %v7035_v14  ;;  %5536 = vmatmul.bf16.vlgmr.msra.gmra.mxu0 %v12521_v19  ;;  %v10084_v59 = vld [vmem:[%s16446_s3 + $0x384] sm:$0xf]  ;;  %v7627_v62 = vor.u32 %v10184_v47, %v7624_v52  ;;  %v7352_v63 = vld [vmem:[%s16446_s3 + $0x490] sm:$0xf0]  ;;  %v12638_v47 = vpop.f32.mrf.mxu0 }
  0xec   :  { %5584 = vmatpush.bf16.msrb.mxu0 %v7275_v13  ;;  %5550 = vmatmul.bf16.vlgmr.msra.gmra.mxu1 %v11165_v36  ;;  %v10116_v61 = vld [vmem:[%s16446_s3 + $0x484] sm:$0xf]  ;;  %v7480_v3 = vld [vmem:[%s16446_s3 + $0x590] sm:$0xf0]  ;;  %v7227_v10 = vor.u32 %v10084_v59, %v7224_v60 }
  0xed   :  { %5598 = vmatpush.bf16.msrb.mxu1 %v7403_v4  ;;  %5564 = vmatmul.bf16.vlgmr.msra.gmra.mxu2 %v11206_v2  ;;  %v10148_v1 = vld [vmem:[%s16446_s3 + $0x584] sm:$0xf]  ;;  %v7608_v6 = vld [vmem:[%s16446_s3 + $0x690] sm:$0xf0]  ;;  %v7355_v11 = vor.u32 %v10116_v61, %v7352_v63 }
  0xee   :  { %5612 = vmatpush.bf16.msrb.mxu2 %v7531_v15  ;;  %5578 = vmatmul.bf16.vlgmr.msra.gmra.mxu3 %v11174_v42  ;;  %v10180_v5 = vld [vmem:[%s16446_s3 + $0x684] sm:$0xf]  ;;  %v7483_v14 = vor.u32 %v10148_v1, %v7480_v3  ;;  %v7208_v4 = vld [vmem:[%s16446_s3 + $0x370] sm:$0xf0] }
  0xef   :  { %5626 = vmatpush.bf16.msrb.mxu3 %v7659_v18  ;;  %v10080_v13 = vld [vmem:[%s16446_s3 + $0x364] sm:$0xf]  ;;  %v7611_v16 = vor.u32 %v10180_v5, %v7608_v6  ;;  %v7336_v55 = vld [vmem:[%s16446_s3 + $0x470] sm:$0xf0] }
  0xf0   :  { %5585 = vmatpush.bf16.msrb.mxu0 %v7259_v25  ;;  %v10112_v15 = vld [vmem:[%s16446_s3 + $0x464] sm:$0xf]  ;;  %v7464_v18 = vld [vmem:[%s16446_s3 + $0x570] sm:$0xf0]  ;;  %v7211_v22 = vor.u32 %v10080_v13, %v7208_v4 }
  0xf1   :  { %5599 = vmatpush.bf16.msrb.mxu1 %v7387_v28  ;;  %v10144_v17 = vld [vmem:[%s16446_s3 + $0x564] sm:$0xf]  ;;  %v7592_v21 = vld [vmem:[%s16446_s3 + $0x670] sm:$0xf0]  ;;  %v7339_v23 = vor.u32 %v10112_v15, %v7336_v55 }
  0xf2   :  { %5613 = vmatpush.bf16.msrb.mxu2 %v7515_v30  ;;  %v10176_v20 = vld [vmem:[%s16446_s3 + $0x664] sm:$0xf]  ;;  %v7467_v24 = vor.u32 %v10144_v17, %v7464_v18  ;;  %v7192_v28 = vld [vmem:[%s16446_s3 + $0x350] sm:$0xf0] }
  0xf3   :  { %5627 = vmatpush.bf16.msrb.mxu3 %v7643_v32  ;;  %v10076_v25 = vld [vmem:[%s16446_s3 + $0x344] sm:$0xf]  ;;  %v7595_v31 = vor.u32 %v10176_v20, %v7592_v21  ;;  %v7320_v26 = vld [vmem:[%s16446_s3 + $0x450] sm:$0xf0]  ;;  %v12688_v20 = vpop.f32.mrf.mxu1 }
  0xf4   :  { %5586 = vmatpush.bf16.msrb.mxu0 %v7243_v54  ;;  %v10108_v30 = vld [vmem:[%s16446_s3 + $0x444] sm:$0xf]  ;;  %v7448_v32 = vld [vmem:[%s16446_s3 + $0x550] sm:$0xf0]  ;;  %v7195_v46 = vor.u32 %v10076_v25, %v7192_v28 }
  0xf5   :  { %5600 = vmatpush.bf16.msrb.mxu1 %v7371_v57  ;;  %v10140_v27 = vld [vmem:[%s16446_s3 + $0x544] sm:$0xf]  ;;  %v7576_v39 = vld [vmem:[%s16446_s3 + $0x650] sm:$0xf0]  ;;  %v7323_v52 = vor.u32 %v10108_v30, %v7320_v26 }
  0xf6   :  { %5614 = vmatpush.bf16.msrb.mxu2 %v7499_v58  ;;  %v10172_v53 = vld [vmem:[%s16446_s3 + $0x644] sm:$0xf]  ;;  %v7451_v54 = vor.u32 %v10140_v27, %v7448_v32  ;;  %v7176_v58 = vld [vmem:[%s16446_s3 + $0x330] sm:$0xf0] }
  0xf7   :  { %5628 = vmatpush.bf16.msrb.mxu3 %v7627_v62  ;;  %v10072_v57 = vld [vmem:[%s16446_s3 + $0x324] sm:$0xf]  ;;  %v7579_v60 = vor.u32 %v10172_v53, %v7576_v39  ;;  %v7304_v61 = vld [vmem:[%s16446_s3 + $0x430] sm:$0xf0] }
  0xf8   :  { %5587 = vmatpush.bf16.msrb.mxu0 %v7227_v10  ;;  %v10104_v59 = vld [vmem:[%s16446_s3 + $0x424] sm:$0xf]  ;;  %v7432_v63 = vld [vmem:[%s16446_s3 + $0x530] sm:$0xf0]  ;;  %v7179_v5 = vor.u32 %v10072_v57, %v7176_v58 }
  0xf9   :  { %5601 = vmatpush.bf16.msrb.mxu1 %v7355_v11  ;;  %v10136_v62 = vld [vmem:[%s16446_s3 + $0x524] sm:$0xf]  ;;  %v7560_v3 = vld [vmem:[%s16446_s3 + $0x630] sm:$0xf0]  ;;  %v7307_v11 = vor.u32 %v10104_v59, %v7304_v61 }
  0xfa   :  { %5615 = vmatpush.bf16.msrb.mxu2 %v7483_v14  ;;  %v10168_v1 = vld [vmem:[%s16446_s3 + $0x624] sm:$0xf]  ;;  %v7160_v10 = vld [vmem:[%s16446_s3 + $0x310] sm:$0xf0]  ;;  %v7435_v14 = vor.u32 %v10136_v62, %v7432_v63 }
  0xfb   :  { %5629 = vmatpush.bf16.msrb.mxu3 %v7611_v16  ;;  %v10068_v6 = vld [vmem:[%s16446_s3 + $0x304] sm:$0xf]  ;;  %v7288_v4 = vld [vmem:[%s16446_s3 + $0x410] sm:$0xf0]  ;;  %v7563_v16 = vor.u32 %v10168_v1, %v7560_v3  ;;  %v12736_v3 = vpop.f32.mrf.mxu3 }
  0xfc   :  { %5588 = vmatpush.bf16.msrb.mxu0 %v7211_v22  ;;  %v10100_v13 = vld [vmem:[%s16446_s3 + $0x404] sm:$0xf]  ;;  %v7416_v55 = vld [vmem:[%s16446_s3 + $0x510] sm:$0xf0] }
  0xfd   :  { %5602 = vmatpush.bf16.msrb.mxu1 %v7339_v23  ;;  %v10132_v15 = vld [vmem:[%s16446_s3 + $0x504] sm:$0xf]  ;;  %v7544_v18 = vld [vmem:[%s16446_s3 + $0x610] sm:$0xf0]  ;;  %v7291_v26 = vor.u32 %v10100_v13, %v7288_v4 }
  0xfe   :  { %5616 = vmatpush.bf16.msrb.mxu2 %v7467_v24  ;;  %v10164_v17 = vld [vmem:[%s16446_s3 + $0x604] sm:$0xf]  ;;  %v7784_v22 = vld [vmem:[%s16446_s3 + $0x7f0] sm:$0xf0]  ;;  %v7163_v24 = vor.u32 %v10068_v6, %v7160_v10  ;;  %v7419_v27 = vor.u32 %v10132_v15, %v7416_v55 }
  0xff   :  { %5630 = vmatpush.bf16.msrb.mxu3 %v7595_v31  ;;  %v10224_v21 = vld [vmem:[%s16446_s3 + $0x7e4] sm:$0xf]  ;;  %v7912_v25 = vld [vmem:[%s16446_s3 + $0x8f0] sm:$0xf0]  ;;  %v12708_v31 = vpop.f32.mrf.mxu2  ;;  %v7547_v39 = vor.u32 %v10164_v17, %v7544_v18 }
 0x100   :  { %5589 = vmatpush.bf16.msrb.mxu0 %v7195_v46  ;;  %v10256_v23 = vld [vmem:[%s16446_s3 + $0x8e4] sm:$0xf]  ;;  %v8040_v30 = vld [vmem:[%s16446_s3 + $0x9f0] sm:$0xf0]  ;;  %v7787_v46 = vor.u32 %v10224_v21, %v7784_v22  ;;  %v12763_v21 = vpop.f32.mrf.mxu1 }
 0x101   :  { %5603 = vmatpush.bf16.msrb.mxu1 %v7323_v52  ;;  %v10288_v28 = vld [vmem:[%s16446_s3 + $0x9e4] sm:$0xf]  ;;  %v8168_v53 = vld [vmem:[%s16446_s3 + $0xaf0] sm:$0xf0]  ;;  %v12716_v52 = vpop.f32.mrf.mxu0 }
 0x102   :  { %5617 = vmatpush.bf16.msrb.mxu2 %v7451_v54  ;;  %v10320_v32 = vld [vmem:[%s16446_s3 + $0xae4] sm:$0xf]  ;;  %v7915_v54 = vor.u32 %v10256_v23, %v7912_v25  ;;  %v8043_v57 = vor.u32 %v10288_v28, %v8040_v30  ;;  %v7768_v59 = vld [vmem:[%s16446_s3 + $0x7d0] sm:$0xf0] }
 0x103   :  { %5631 = vmatpush.bf16.msrb.mxu3 %v7579_v60  ;;  %v10220_v58 = vld [vmem:[%s16446_s3 + $0x7c4] sm:$0xf]  ;;  %v8171_v61 = vor.u32 %v10320_v32, %v8168_v53  ;;  %v7896_v62 = vld [vmem:[%s16446_s3 + $0x8d0] sm:$0xf0] }
 0x104   :  { %5590 = vmatpush.bf16.msrb.mxu0 %v7179_v5  ;;  %v10252_v60 = vld [vmem:[%s16446_s3 + $0x8c4] sm:$0xf]  ;;  %v8024_v1 = vld [vmem:[%s16446_s3 + $0x9d0] sm:$0xf0]  ;;  %v7771_v10 = vor.u32 %v10220_v58, %v7768_v59 }
 0x105   :  { %5604 = vmatpush.bf16.msrb.mxu1 %v7307_v11  ;;  %v10284_v63 = vld [vmem:[%s16446_s3 + $0x9c4] sm:$0xf]  ;;  %v8152_v6 = vld [vmem:[%s16446_s3 + $0xad0] sm:$0xf0]  ;;  %v7899_v11 = vor.u32 %v10252_v60, %v7896_v62 }
 0x106   :  { %5618 = vmatpush.bf16.msrb.mxu2 %v7435_v14  ;;  %v10316_v5 = vld [vmem:[%s16446_s3 + $0xac4] sm:$0xf]  ;;  %v8027_v14 = vor.u32 %v10284_v63, %v8024_v1  ;;  %v7752_v4 = vld [vmem:[%s16446_s3 + $0x7b0] sm:$0xf0] }
 0x107   :  { %5632 = vmatpush.bf16.msrb.mxu3 %v7563_v16  ;;  %v10216_v13 = vld [vmem:[%s16446_s3 + $0x7a4] sm:$0xf]  ;;  %v8155_v16 = vor.u32 %v10316_v5, %v8152_v6  ;;  %v7880_v55 = vld [vmem:[%s16446_s3 + $0x8b0] sm:$0xf0]  ;;  %v12774_v25 = vpop.f32.mrf.mxu2 }
 0x108   :  { %5591 = vmatpush.bf16.msrb.mxu0 %v7163_v24  ;;  %v10248_v15 = vld [vmem:[%s16446_s3 + $0x8a4] sm:$0xf]  ;;  %v8008_v18 = vld [vmem:[%s16446_s3 + $0x9b0] sm:$0xf0]  ;;  %v7755_v24 = vor.u32 %v10216_v13, %v7752_v4 }
 0x109   :  { %5605 = vmatpush.bf16.msrb.mxu1 %v7291_v26  ;;  %v10280_v17 = vld [vmem:[%s16446_s3 + $0x9a4] sm:$0xf]  ;;  %v8136_v23 = vld [vmem:[%s16446_s3 + $0xab0] sm:$0xf0]  ;;  %v7883_v28 = vor.u32 %v10248_v15, %v7880_v55 }
 0x10a   :  { %5619 = vmatpush.bf16.msrb.mxu2 %v7419_v27  ;;  %v10312_v22 = vld [vmem:[%s16446_s3 + $0xaa4] sm:$0xf]  ;;  %v8011_v30 = vor.u32 %v10280_v17, %v8008_v18  ;;  %v7736_v27 = vld [vmem:[%s16446_s3 + $0x790] sm:$0xf0]  ;;  %v12833_v17 = vpop.f32.mrf.mxu1 }
 0x10b   :  { %5633 = vmatpush.bf16.msrb.mxu3 %v7547_v39  ;;  %5592 = vmatmul.bf16.vlgmr.msrb.gmra.mxu0 %v11217_v8  ;;  %v10212_v26 = vld [vmem:[%s16446_s3 + $0x784] sm:$0xf]  ;;  %v8139_v53 = vor.u32 %v10312_v22, %v8136_v23  ;;  %v7864_v39 = vld [vmem:[%s16446_s3 + $0x890] sm:$0xf0] }
 0x10c   :  { %5640 = vmatpush.bf16.msra.mxu0 %v7787_v46  ;;  %5606 = vmatmul.bf16.vlgmr.msrb.gmra.mxu1 %v11353_v35  ;;  %v10244_v32 = vld [vmem:[%s16446_s3 + $0x884] sm:$0xf]  ;;  %v8120_v59 = vld [vmem:[%s16446_s3 + $0xa90] sm:$0xf0]  ;;  %v7739_v60 = vor.u32 %v10212_v26, %v7736_v27 }
 0x10d   :  { %5654 = vmatpush.bf16.msra.mxu1 %v7915_v54  ;;  %5620 = vmatmul.bf16.vlgmr.msrb.gmra.mxu2 %v11366_v41  ;;  %v10276_v46 = vld [vmem:[%s16446_s3 + $0x984] sm:$0xf]  ;;  %v7992_v54 = vld [vmem:[%s16446_s3 + $0x990] sm:$0xf0]  ;;  %v7867_v62 = vor.u32 %v10244_v32, %v7864_v39 }
 0x10e   :  { %5668 = vmatpush.bf16.msra.mxu2 %v8043_v57  ;;  %5634 = vmatmul.bf16.vlgmr.msrb.gmra.mxu3 %v11364_v40  ;;  %v12794_v57 = vpop.f32.mrf.mxu0  ;;  %v10308_v58 = vld [vmem:[%s16446_s3 + $0xa84] sm:$0xf]  ;;  %v7995_v63 = vor.u32 %v10276_v46, %v7992_v54  ;;  %v7720_v5 = vld [vmem:[%s16446_s3 + $0x770] sm:$0xf0] }
 0x10f   :  { %5682 = vmatpush.bf16.msra.mxu3 %v8171_v61  ;;  %v12802_v61 = vpop.f32.mrf.mxu3  ;;  %v10208_v1 = vld [vmem:[%s16446_s3 + $0x764] sm:$0xf]  ;;  %v7976_v13 = vld [vmem:[%s16446_s3 + $0x970] sm:$0xf0] }
 0x110   :  { %5641 = vmatpush.bf16.msra.mxu0 %v7771_v10  ;;  %v10240_v6 = vld [vmem:[%s16446_s3 + $0x864] sm:$0xf]  ;;  %v8123_v10 = vor.u32 %v10308_v58, %v8120_v59  ;;  %v8104_v15 = vld [vmem:[%s16446_s3 + $0xa70] sm:$0xf0]  ;;  %v7723_v55 = vor.u32 %v10208_v1, %v7720_v5 }
 0x111   :  { %5655 = vmatpush.bf16.msra.mxu1 %v7899_v11  ;;  %v7848_v11 = vld [vmem:[%s16446_s3 + $0x870] sm:$0xf0]  ;;  %v10304_v4 = vld [vmem:[%s16446_s3 + $0xa64] sm:$0xf] }
 0x112   :  { %5669 = vmatpush.bf16.msra.mxu2 %v8027_v14  ;;  %v10272_v14 = vld [vmem:[%s16446_s3 + $0x964] sm:$0xf]  ;;  %v7851_v18 = vor.u32 %v10240_v6, %v7848_v11  ;;  %v7832_v26 = vld [vmem:[%s16446_s3 + $0x850] sm:$0xf0] }
 0x113   :  { %5683 = vmatpush.bf16.msra.mxu3 %v8155_v16  ;;  %v12831_v16 = vld [vmem:[%s16450_s4] sm:$0xf]  ;;  %v7979_v22 = vor.u32 %v10272_v14, %v7976_v13  ;;  %v10204_v23 = vld [vmem:[%s16446_s3 + $0x744] sm:$0xf]  ;;  %v7960_v32 = vld [vmem:[%s16446_s3 + $0x950] sm:$0xf0] }
 0x114   :  { %5642 = vmatpush.bf16.msra.mxu0 %v7755_v24  ;;  %v7704_v24 = vld [vmem:[%s16446_s3 + $0x750] sm:$0xf0]  ;;  %v10268_v27 = vld [vmem:[%s16446_s3 + $0x944] sm:$0xf]  ;;  %v16454_v54 = vperm.slane %v12831_v16, 0 }
 0x115   :  { %5656 = vmatpush.bf16.msra.mxu1 %v7883_v28  ;;  %v10236_v28 = vld [vmem:[%s16446_s3 + $0x844] sm:$0xf]  ;;  %v8088_v46 = vld [vmem:[%s16446_s3 + $0xa50] sm:$0xf0]  ;;  %v7707_v58 = vor.u32 %v10204_v23, %v7704_v24 }
 0x116   :  { %5670 = vmatpush.bf16.msra.mxu2 %v8011_v30  ;;  %v8107_v30 = vor.u32 %v10304_v4, %v8104_v15  ;;  %v10300_v39 = vld [vmem:[%s16446_s3 + $0xa44] sm:$0xf]  ;;  %v12862_v59 = vpop.f32.mrf.mxu0  ;;  %v7688_v1 = vld [vmem:[%s16446_s3 + $0x730] sm:$0xf0] }
 0x117   :  { %5684 = vmatpush.bf16.msra.mxu3 %v8139_v53  ;;  %v12853_v53 = vpop.f32.mrf.mxu2  ;;  %v10232_v5 = vld [vmem:[%s16446_s3 + $0x824] sm:$0xf]  ;;  %v8091_v6 = vor.u32 %v10300_v39, %v8088_v46  ;;  %v7944_v14 = vld [vmem:[%s16446_s3 + $0x930] sm:$0xf0]  ;;  %v12882_v13 = vpop.f32.mrf.mxu3 }
 0x118   :  { %5643 = vmatpush.bf16.msra.mxu0 %v7739_v60  ;;  %v7835_v60 = vor.u32 %v10236_v28, %v7832_v26  ;;  %v10264_v11 = vld [vmem:[%s16446_s3 + $0x924] sm:$0xf]  ;;  %v8072_v15 = vld [vmem:[%s16446_s3 + $0xa30] sm:$0xf0] }
 0x119   :  { %5657 = vmatpush.bf16.msra.mxu1 %v7867_v62  ;;  %v7963_v62 = vor.u32 %v10268_v27, %v7960_v32  ;;  %v10296_v4 = vld [vmem:[%s16446_s3 + $0xa24] sm:$0xf]  ;;  %v7672_v23 = vld [vmem:[%s16446_s3 + $0x710] sm:$0xf0]  ;;  %v7947_v28 = vor.u32 %v10264_v11, %v7944_v14 }
 0x11a   :  { %5671 = vmatpush.bf16.msra.mxu2 %v7995_v63  ;;  %v10200_v63 = vld [vmem:[%s16446_s3 + $0x724] sm:$0xf]  ;;  %v8075_v27 = vor.u32 %v10296_v4, %v8072_v15  ;;  %v7928_v32 = vld [vmem:[%s16446_s3 + $0x910] sm:$0xf0] }
 0x11b   :  { %5685 = vmatpush.bf16.msra.mxu3 %v8123_v10  ;;  %v7816_v10 = vld [vmem:[%s16446_s3 + $0x830] sm:$0xf0]  ;;  %v10260_v26 = vld [vmem:[%s16446_s3 + $0x904] sm:$0xf] }
 0x11c   :  { %5644 = vmatpush.bf16.msra.mxu0 %v7723_v55  ;;  %v5202_v55 = vadd.f32 %v12638_v47, %v16454_v54  ;;  %v7819_v24 = vor.u32 %v10232_v5, %v7816_v10  ;;  %v7800_v47 = vld [vmem:[%s16446_s3 + $0x810] sm:$0xf0]  ;;  %v10292_v39 = vld [vmem:[%s16446_s3 + $0xa04] sm:$0xf]  ;;  %v7931_v15 = vor.u32 %v10260_v26, %v7928_v32 }
 0x11d   :  { %5658 = vmatpush.bf16.msra.mxu1 %v7851_v18  ;;  %v7691_v18 = vor.u32 %v10200_v63, %v7688_v1  ;;  %v8056_v46 = vld [vmem:[%s16446_s3 + $0xa10] sm:$0xf0]  ;;  %v10384_v63 = vld [vmem:[%s16446_s3 + $0xce4] sm:$0xf] }
 0x11e   :  { %5672 = vmatpush.bf16.msra.mxu2 %v7979_v22  ;;  %v10196_v22 = vld [vmem:[%s16446_s3 + $0x704] sm:$0xf]  ;;  %v5216_v1 = vadd.f32 %v12688_v20, %v5202_v55  ;;  %v8552_v11 = vld [vmem:[%s16446_s3 + $0xdf0] sm:$0xf0]  ;;  %v12940_v4 = vpop.f32.mrf.mxu0 }
 0x11f   :  { %5686 = vmatpush.bf16.msra.mxu3 %v8107_v30  ;;  %v10228_v30 = vld [vmem:[%s16446_s3 + $0x804] sm:$0xf]  ;;  %v7675_v5 = vor.u32 %v10196_v22, %v7672_v23  ;;  %v12938_v14 = vpop.f32.mrf.mxu2  ;;  %v8059_v22 = vor.u32 %v10292_v39, %v8056_v46  ;;  %v8536_v39 = vld [vmem:[%s16446_s3 + $0xdd0] sm:$0xf0]  ;;  %v16467_v46 = vperm.slane %v12831_v16, 0 }
 0x120   :  { %5645 = vmatpush.bf16.msra.mxu0 %v7707_v58  ;;  %v12917_v58 = vpop.f32.mrf.mxu1  ;;  %v10416_v10 = vld [vmem:[%s16446_s3 + $0xde4] sm:$0xf]  ;;  %v7803_v20 = vor.u32 %v10228_v30, %v7800_v47  ;;  %v5230_v47 = vadd.f32 %v12708_v31, %v5216_v1 }
 0x121   :  { %5659 = vmatpush.bf16.msra.mxu1 %v7835_v60  ;;  %v10352_v60 = vld [vmem:[%s16446_s3 + $0xbe4] sm:$0xf]  ;;  %v8555_v40 = vor.u32 %v10416_v10, %v8552_v11  ;;  %v8264_v10 = vld [vmem:[%s16446_s3 + $0xbb0] sm:$0xf0] }
 0x122   :  { %5673 = vmatpush.bf16.msra.mxu2 %v7963_v62  ;;  %v8296_v62 = vld [vmem:[%s16446_s3 + $0xbf0] sm:$0xf0]  ;;  %v10448_v55 = vld [vmem:[%s16446_s3 + $0xee4] sm:$0xf] }
 0x123   :  { %5687 = vmatpush.bf16.msra.mxu3 %v8091_v6  ;;  %v8424_v6 = vld [vmem:[%s16446_s3 + $0xcf0] sm:$0xf0]  ;;  %v8299_v23 = vor.u32 %v10352_v60, %v8296_v62  ;;  %v10380_v30 = vld [vmem:[%s16446_s3 + $0xcc4] sm:$0xf]  ;;  %v5204_v60 = vadd.f32 %v12716_v52, %v16467_v46  ;;  %v12970_v62 = vpop.f32.mrf.mxu3 }
 0x124   :  { %5646 = vmatpush.bf16.msra.mxu0 %v7691_v18  ;;  %v8680_v18 = vld [vmem:[%s16446_s3 + $0xef0] sm:$0xf0]  ;;  %v8427_v54 = vor.u32 %v10384_v63, %v8424_v6  ;;  %v10412_v32 = vld [vmem:[%s16446_s3 + $0xdc4] sm:$0xf] }
 0x125   :  { %5660 = vmatpush.bf16.msra.mxu1 %v7819_v24  ;;  %v10348_v24 = vld [vmem:[%s16446_s3 + $0xbc4] sm:$0xf]  ;;  %v8683_v26 = vor.u32 %v10448_v55, %v8680_v18  ;;  %v8664_v63 = vld [vmem:[%s16446_s3 + $0xed0] sm:$0xf0]  ;;  %v8539_v16 = vor.u32 %v10412_v32, %v8536_v39  ;;  %v5218_v18 = vadd.f32 %v12763_v21, %v5204_v60 }
 0x126   :  { %5674 = vmatpush.bf16.msra.mxu2 %v7947_v28  ;;  %v8280_v28 = vld [vmem:[%s16446_s3 + $0xbd0] sm:$0xf0]  ;;  %v10444_v31 = vld [vmem:[%s16446_s3 + $0xec4] sm:$0xf] }
 0x127   :  { %5688 = vmatpush.bf16.msra.mxu3 %v8075_v27  ;;  %v8408_v27 = vld [vmem:[%s16446_s3 + $0xcd0] sm:$0xf0]  ;;  %v8283_v1 = vor.u32 %v10348_v24, %v8280_v28  ;;  %v10344_v6 = vld [vmem:[%s16446_s3 + $0xba4] sm:$0xf]  ;;  %v13012_v28 = vpop.f32.mrf.mxu0 }
 0x128   :  { %5647 = vmatpush.bf16.msra.mxu0 %v7675_v5  ;;  %v12978_v5 = vpop.f32.mrf.mxu1  ;;  %v8411_v52 = vor.u32 %v10380_v30, %v8408_v27  ;;  %v10376_v11 = vld [vmem:[%s16446_s3 + $0xca4] sm:$0xf]  ;;  %v8520_v55 = vld [vmem:[%s16446_s3 + $0xdb0] sm:$0xf0]  ;;  %v8267_v24 = vor.u32 %v10344_v6, %v8264_v10 }
 0x129   :  { %5661 = vmatpush.bf16.msra.mxu1 %v7803_v20  ;;  %v5244_v20 = vadd.f32 %v12736_v3, %v5230_v47  ;;  %v10440_v3 = vld [vmem:[%s16446_s3 + $0xea4] sm:$0xf]  ;;  %v8376_v46 = vld [vmem:[%s16446_s3 + $0xc90] sm:$0xf0] }
 0x12a   :  { %5675 = vmatpush.bf16.msra.mxu2 %v7931_v15  ;;  %v10408_v15 = vld [vmem:[%s16446_s3 + $0xda4] sm:$0xf] }
 0x12b   :  { %5689 = vmatpush.bf16.msra.mxu3 %v8059_v22  ;;  %5648 = vmatmul.bf16.vlgmr.msra.gmra.mxu0 %v11374_v45  ;;  %v13001_v22 = vpop.f32.mrf.mxu2  ;;  %v8523_v30 = vor.u32 %v10408_v15, %v8520_v55  ;;  %v10340_v47 = vld [vmem:[%s16446_s3 + $0xb84] sm:$0xf]  ;;  %v5258_v32 = vadd.f32 %v12794_v57, %v5244_v20  ;;  %v8360_v15 = vld [vmem:[%s16446_s3 + $0xc70] sm:$0xf0] }
 0x12c   :  { %5696 = vmatpush.bf16.msrb.mxu0 %v8299_v23  ;;  %5662 = vmatmul.bf16.vlgmr.msra.gmra.mxu1 %v11599_v0  ;;  %v8648_v23 = vld [vmem:[%s16446_s3 + $0xeb0] sm:$0xf0]  ;;  %v10372_v27 = vld [vmem:[%s16446_s3 + $0xc84] sm:$0xf] }
 0x12d   :  { %5710 = vmatpush.bf16.msrb.mxu1 %v8427_v54  ;;  %v8392_v54 = vld [vmem:[%s16446_s3 + $0xcb0] sm:$0xf0]  ;;  %5676 = vmatmul.bf16.vlgmr.msra.gmra.mxu2 %v11612_v9  ;;  %v8651_v39 = vor.u32 %v10440_v3, %v8648_v23  ;;  %v10404_v60 = vld [vmem:[%s16446_s3 + $0xd84] sm:$0xf]  ;;  %v8379_v6 = vor.u32 %v10372_v27, %v8376_v46 }
 0x12e   :  { %5724 = vmatpush.bf16.msrb.mxu2 %v8555_v40  ;;  %v8667_v40 = vor.u32 %v10444_v31, %v8664_v63  ;;  %5690 = vmatmul.bf16.vlgmr.msra.gmra.mxu3 %v11610_v7  ;;  %v8395_v21 = vor.u32 %v10376_v11, %v8392_v54  ;;  %v8504_v31 = vld [vmem:[%s16446_s3 + $0xd90] sm:$0xf0]  ;;  %v5232_v63 = vadd.f32 %v12774_v25, %v5218_v18  ;;  %v10436_v57 = vld [vmem:[%s16446_s3 + $0xe84] sm:$0xf] }
 0x12f   :  { %5738 = vmatpush.bf16.msrb.mxu3 %v8683_v26  ;;  %v8248_v26 = vld [vmem:[%s16446_s3 + $0xb90] sm:$0xf0]  ;;  %v8507_v10 = vor.u32 %v10404_v60, %v8504_v31  ;;  %v10336_v25 = vld [vmem:[%s16446_s3 + $0xb64] sm:$0xf] }
 0x130   :  { %5697 = vmatpush.bf16.msrb.mxu0 %v8283_v1  ;;  %v13034_v1 = vpop.f32.mrf.mxu3  ;;  %v8232_v11 = vld [vmem:[%s16446_s3 + $0xb70] sm:$0xf0]  ;;  %v10368_v20 = vld [vmem:[%s16446_s3 + $0xc64] sm:$0xf]  ;;  %v5246_v3 = vadd.f32 %v12802_v61, %v5232_v63  ;;  %v13062_v23 = vpop.f32.mrf.mxu1 }
 0x131   :  { %5711 = vmatpush.bf16.msrb.mxu1 %v8411_v52  ;;  %v8632_v52 = vld [vmem:[%s16446_s3 + $0xe90] sm:$0xf0]  ;;  %v10400_v55 = vld [vmem:[%s16446_s3 + $0xd64] sm:$0xf] }
 0x132   :  { %5725 = vmatpush.bf16.msrb.mxu2 %v8539_v16  ;;  %v8251_v16 = vor.u32 %v10340_v47, %v8248_v26  ;;  %v8635_v54 = vor.u32 %v10436_v57, %v8632_v52  ;;  %v8488_v18 = vld [vmem:[%s16446_s3 + $0xd70] sm:$0xf0]  ;;  %v13072_v47 = vpop.f32.mrf.mxu0  ;;  %v8363_v26 = vor.u32 %v10368_v20, %v8360_v15  ;;  %v10332_v27 = vld [vmem:[%s16446_s3 + $0xb44] sm:$0xf]  ;;  %v5260_v52 = vadd.f32 %v12862_v59, %v5246_v3 }
 0x133   :  { %5739 = vmatpush.bf16.msrb.mxu3 %v8667_v40  ;;  %v5272_v40 = vadd.f32 %v12833_v17, %v5258_v32  ;;  %v10432_v17 = vld [vmem:[%s16446_s3 + $0xe64] sm:$0xf]  ;;  %v8491_v61 = vor.u32 %v10400_v55, %v8488_v18  ;;  %v8216_v32 = vld [vmem:[%s16446_s3 + $0xb50] sm:$0xf0] }
 0x134   :  { %5698 = vmatpush.bf16.msrb.mxu0 %v8267_v24  ;;  %v8616_v24 = vld [vmem:[%s16446_s3 + $0xe70] sm:$0xf0]  ;;  %v10396_v63 = vld [vmem:[%s16446_s3 + $0xd44] sm:$0xf] }
 0x135   :  { %5712 = vmatpush.bf16.msrb.mxu1 %v8395_v21  ;;  %v8235_v21 = vor.u32 %v10336_v25, %v8232_v11  ;;  %v5286_v46 = vadd.f32 %v12853_v53, %v5272_v40  ;;  %v8619_v60 = vor.u32 %v10432_v17, %v8616_v24  ;;  %v8344_v31 = vld [vmem:[%s16446_s3 + $0xc50] sm:$0xf0]  ;;  %v10428_v53 = vld [vmem:[%s16446_s3 + $0xe44] sm:$0xf]  ;;  %v5274_v17 = vadd.f32 %v12917_v58, %v5260_v52 }
 0x136   :  { %5726 = vmatpush.bf16.msrb.mxu2 %v8523_v30  ;;  %v13070_v30 = vpop.f32.mrf.mxu2  ;;  %v8472_v57 = vld [vmem:[%s16446_s3 + $0xd50] sm:$0xf0]  ;;  %v10328_v59 = vld [vmem:[%s16446_s3 + $0xb24] sm:$0xf] }
 0x137   :  { %5740 = vmatpush.bf16.msrb.mxu3 %v8651_v39  ;;  %v10364_v39 = vld [vmem:[%s16446_s3 + $0xc44] sm:$0xf]  ;;  %v8475_v11 = vor.u32 %v10396_v63, %v8472_v57  ;;  %v8200_v20 = vld [vmem:[%s16446_s3 + $0xb30] sm:$0xf0] }
 0x138   :  { %5699 = vmatpush.bf16.msrb.mxu0 %v8251_v16  ;;  %v8600_v16 = vld [vmem:[%s16446_s3 + $0xe50] sm:$0xf0]  ;;  %v8347_v25 = vor.u32 %v10364_v39, %v8344_v31  ;;  %v10360_v40 = vld [vmem:[%s16446_s3 + $0xc24] sm:$0xf]  ;;  %v13122_v24 = vpop.f32.mrf.mxu1 }
 0x139   :  { %5713 = vmatpush.bf16.msrb.mxu1 %v8379_v6  ;;  %v8219_v6 = vor.u32 %v10332_v27, %v8216_v32  ;;  %v8603_v15 = vor.u32 %v10428_v53, %v8600_v16  ;;  %v8328_v55 = vld [vmem:[%s16446_s3 + $0xc30] sm:$0xf0]  ;;  %v10392_v18 = vld [vmem:[%s16446_s3 + $0xd24] sm:$0xf]  ;;  %v5288_v32 = vadd.f32 %v12938_v14, %v5274_v17 }
 0x13a   :  { %5727 = vmatpush.bf16.msrb.mxu2 %v8507_v10  ;;  %v13100_v10 = vpop.f32.mrf.mxu3  ;;  %v8456_v3 = vld [vmem:[%s16446_s3 + $0xd30] sm:$0xf0]  ;;  %v10324_v27 = vld [vmem:[%s16446_s3 + $0xb04] sm:$0xf]  ;;  %v13158_v16 = vpop.f32.mrf.mxu0 }
 0x13b   :  { %5741 = vmatpush.bf16.msrb.mxu3 %v8635_v54  ;;  %v5300_v54 = vadd.f32 %v12882_v13, %v5286_v46  ;;  %v10424_v13 = vld [vmem:[%s16446_s3 + $0xe24] sm:$0xf]  ;;  %v8184_v58 = vld [vmem:[%s16446_s3 + $0xb10] sm:$0xf0]  ;;  %v8331_v46 = vor.u32 %v10360_v40, %v8328_v55  ;;  %v5302_v55 = vadd.f32 %v12970_v62, %v5288_v32 }
 0x13c   :  { %5700 = vmatpush.bf16.msrb.mxu0 %v8235_v21  ;;  %v8584_v21 = vld [vmem:[%s16446_s3 + $0xe30] sm:$0xf0]  ;;  %v10388_v63 = vld [vmem:[%s16446_s3 + $0xd04] sm:$0xf] }
 0x13d   :  { %5714 = vmatpush.bf16.msrb.mxu1 %v8363_v26  ;;  %v5314_v26 = vadd.f32 %v12940_v4, %v5300_v54  ;;  %v10356_v4 = vld [vmem:[%s16446_s3 + $0xc04] sm:$0xf]  ;;  %v8312_v31 = vld [vmem:[%s16446_s3 + $0xc10] sm:$0xf0]  ;;  %v8587_v14 = vor.u32 %v10424_v13, %v8584_v21  ;;  %v5316_v62 = vadd.f32 %v13012_v28, %v5302_v55 }
 0x13e   :  { %5728 = vmatpush.bf16.msrb.mxu2 %v8491_v61  ;;  %v8203_v61 = vor.u32 %v10328_v59, %v8200_v20  ;;  %v13138_v39 = vpop.f32.mrf.mxu2  ;;  %v8440_v57 = vld [vmem:[%s16446_s3 + $0xd10] sm:$0xf0]  ;;  %v10420_v52 = vld [vmem:[%s16446_s3 + $0xe04] sm:$0xf]  ;;  %v8187_v20 = vor.u32 %v10324_v27, %v8184_v58 }
 0x13f   :  { %5742 = vmatpush.bf16.msrb.mxu3 %v8619_v60  ;;  %v8459_v60 = vor.u32 %v10392_v18, %v8456_v3  ;;  %v8568_v53 = vld [vmem:[%s16446_s3 + $0xe10] sm:$0xf0]  ;;  %v5328_v59 = vadd.f32 %v12978_v5, %v5314_v26  ;;  %v10544_v54 = vld [vmem:[%s16446_s3 + $0x11e4] sm:$0xf]  ;;  %v8315_v5 = vor.u32 %v10356_v4, %v8312_v31  ;;  %v8443_v3 = vor.u32 %v10388_v63, %v8440_v57 }
 0x140   :  { %5701 = vmatpush.bf16.msrb.mxu0 %v8219_v6  ;;  %v10480_v6 = vld [vmem:[%s16446_s3 + $0xfe4] sm:$0xf]  ;;  %v8936_v40 = vld [vmem:[%s16446_s3 + $0x10f0] sm:$0xf0]  ;;  %v8571_v26 = vor.u32 %v10420_v52, %v8568_v53  ;;  %v13208_v63 = vpop.f32.mrf.mxu1 }
 0x141   :  { %5715 = vmatpush.bf16.msrb.mxu1 %v8347_v25  ;;  %v8808_v25 = vld [vmem:[%s16446_s3 + $0xff0] sm:$0xf0]  ;;  %v10576_v17 = vld [vmem:[%s16446_s3 + $0x12e4] sm:$0xf]  ;;  %v5342_v21 = vadd.f32 %v13001_v22, %v5328_v59 }
 0x142   :  { %5729 = vmatpush.bf16.msrb.mxu2 %v8475_v11  ;;  %v10512_v11 = vld [vmem:[%s16446_s3 + $0x10e4] sm:$0xf]  ;;  %v13180_v18 = vpop.f32.mrf.mxu3  ;;  %v9192_v13 = vld [vmem:[%s16446_s3 + $0x12f0] sm:$0xf0] }
 0x143   :  { %5743 = vmatpush.bf16.msrb.mxu3 %v8603_v15  ;;  %v9064_v15 = vld [vmem:[%s16446_s3 + $0x11f0] sm:$0xf0]  ;;  %v8939_v27 = vor.u32 %v10512_v11, %v8936_v40  ;;  %v10476_v32 = vld [vmem:[%s16446_s3 + $0xfc4] sm:$0xf]  ;;  %v9195_v22 = vor.u32 %v10576_v17, %v9192_v13  ;;  %v5356_v52 = vadd.f32 %v13034_v1, %v5342_v21  ;;  %v13220_v11 = vpop.f32.mrf.mxu0 }
 0x144   :  { %5702 = vmatpush.bf16.msrb.mxu0 %v8203_v61  ;;  %v8811_v61 = vor.u32 %v10480_v6, %v8808_v25  ;;  %v9067_v58 = vor.u32 %v10544_v54, %v9064_v15  ;;  %v8920_v28 = vld [vmem:[%s16446_s3 + $0x10d0] sm:$0xf0]  ;;  %v10540_v4 = vld [vmem:[%s16446_s3 + $0x11c4] sm:$0xf]  ;;  %v5330_v6 = vadd.f32 %v13062_v23, %v5316_v62 }
 0x145   :  { %5716 = vmatpush.bf16.msrb.mxu1 %v8331_v46  ;;  %v8792_v46 = vld [vmem:[%s16446_s3 + $0xfd0] sm:$0xf0]  ;;  %v10472_v40 = vld [vmem:[%s16446_s3 + $0xfa4] sm:$0xf]  ;;  %v5370_v54 = vadd.f32 %v13072_v47, %v5356_v52 }
 0x146   :  { %5730 = vmatpush.bf16.msrb.mxu2 %v8459_v60  ;;  %v10508_v60 = vld [vmem:[%s16446_s3 + $0x10c4] sm:$0xf]  ;;  %v9048_v31 = vld [vmem:[%s16446_s3 + $0x11d0] sm:$0xf0]  ;;  %v8795_v53 = vor.u32 %v10476_v32, %v8792_v46  ;;  %v13218_v25 = vpop.f32.mrf.mxu2  ;;  %v5344_v17 = vadd.f32 %v13070_v30, %v5330_v6  ;;  %v6601_v6 = vlaneseq }
 0x147   :  { %5744 = vmatpush.bf16.msrb.mxu3 %v8587_v14  ;;  %v10572_v14 = vld [vmem:[%s16446_s3 + $0x12c4] sm:$0xf]  ;;  %v9176_v57 = vld [vmem:[%s16446_s3 + $0x12d0] sm:$0xf0]  ;;  %v8923_v59 = vor.u32 %v10508_v60, %v8920_v28  ;;  %v5384_v32 = vadd.f32 %v13122_v24, %v5370_v54 }
 0x148   :  { %5703 = vmatpush.bf16.msrb.mxu0 %v8187_v20  ;;  %v9051_v20 = vor.u32 %v10540_v4, %v9048_v31  ;;  %v8776_v1 = vld [vmem:[%s16446_s3 + $0xfb0] sm:$0xf0]  ;;  %v10504_v23 = vld [vmem:[%s16446_s3 + $0x10a4] sm:$0xf]  ;;  %v9179_v15 = vor.u32 %v10572_v14, %v9176_v57  ;;  %v5358_v4 = vadd.f32 %v13100_v10, %v5344_v17  ;;  %v5439_v31 = vpop.f32.mrf.mxu1  ;;  %vm13303_vm0 = vcmp.lt.s32.totalorder %v6601_v6, 512 }
 0x149   :  { %5717 = vmatpush.bf16.msrb.mxu1 %v8315_v5  ;;  %v8904_v55 = vld [vmem:[%s16446_s3 + $0x10b0] sm:$0xf0]  ;;  %v10536_v5 = vld [vmem:[%s16446_s3 + $0x11a4] sm:$0xf]  ;;  %v8779_v21 = vor.u32 %v10472_v40, %v8776_v1  ;;  %v5398_v57 = vadd.f32 %v13138_v39, %v5384_v32 }
 0x14a   :  { %5731 = vmatpush.bf16.msrb.mxu2 %v8443_v3  ;;  %v9032_v3 = vld [vmem:[%s16446_s3 + $0x11b0] sm:$0xf0]  ;;  %v10568_v47 = vld [vmem:[%s16446_s3 + $0x12a4] sm:$0xf]  ;;  %v8907_v30 = vor.u32 %v10504_v23, %v8904_v55  ;;  %v5372_v23 = vadd.f32 %v13158_v16, %v5358_v4 }
 0x14b   :  { %5745 = vmatpush.bf16.msrb.mxu3 %v8571_v26  ;;  %5704 = vmatmul.bf16.vlgmr.msrb.gmra.mxu0 %v11620_v12  ;;  %v9160_v13 = vld [vmem:[%s16446_s3 + $0x12b0] sm:$0xf0]  ;;  %v13252_v26 = vpop.f32.mrf.mxu3  ;;  %v10468_v62 = vld [vmem:[%s16446_s3 + $0xf84] sm:$0xf] }
 0x14c   :  { %5752 = vmatpush.bf16.msra.mxu0 %v8811_v61  ;;  %5718 = vmatmul.bf16.vlgmr.msrb.gmra.mxu1 %v11829_v43  ;;  %v9035_v61 = vor.u32 %v10536_v5, %v9032_v3  ;;  %v9163_v46 = vor.u32 %v10568_v47, %v9160_v13  ;;  %v8888_v60 = vld [vmem:[%s16446_s3 + $0x1090] sm:$0xf0]  ;;  %v10564_v24 = vld [vmem:[%s16446_s3 + $0x1284] sm:$0xf]  ;;  %v16468_v5 = vmov 0  ;;  %v5427_v3 = vpop.f32.mrf.mxu0  ;;  %v10778_v47 = vmov 0.0  }
 0x14d   :  { %5766 = vmatpush.bf16.msra.mxu1 %v8939_v27  ;;  %5732 = vmatmul.bf16.vlgmr.msrb.gmra.mxu2 %v11842_v49  ;;  %v8760_v27 = vld [vmem:[%s16446_s3 + $0xf90] sm:$0xf0]  ;;  %v10496_v39 = vld [vmem:[%s16446_s3 + $0x1064] sm:$0xf]  ;;  %v16469_v5 = vsel %vm13303_vm0, 4294967295, %v16468_v5  ;;  %v5412_v13 = vadd.f32 %v13180_v18, %v5398_v57  ;;  %v5386_v32 = vadd.f32 %v13208_v63, %v5372_v23 }
 0x14e   :  { %5780 = vmatpush.bf16.msra.mxu2 %v9067_v58  ;;  %5746 = vmatmul.bf16.vlgmr.msrb.gmra.mxu3 %v11840_v48  ;;  %v10500_v58 = vld [vmem:[%s16446_s3 + $0x1084] sm:$0xf]  ;;  %v9016_v28 = vld [vmem:[%s16446_s3 + $0x1190] sm:$0xf0]  ;;  %v8763_v52 = vor.u32 %v10468_v62, %v8760_v27  ;;  %16470 = vst [vmem:[#allocation6_spill] sm:$0xff] %v16469_v5 }
 0x14f   :  { %5794 = vmatpush.bf16.msra.mxu3 %v9195_v22  ;;  %v10532_v22 = vld [vmem:[%s16446_s3 + $0x1184] sm:$0xf]  ;;  %v9144_v14 = vld [vmem:[%s16446_s3 + $0x1290] sm:$0xf0]  ;;  %v8891_v10 = vor.u32 %v10500_v58, %v8888_v60  ;;  %6629 = vst.msk [vmem:[%s16451_s6] sm:$0xf] %vm13303_vm0, %v10778_v47 }
 0x150   :  { %5753 = vmatpush.bf16.msra.mxu0 %v8795_v53  ;;  %v10464_v53 = vld [vmem:[%s16446_s3 + $0xf64] sm:$0xf]  ;;  %v8744_v40 = vld [vmem:[%s16446_s3 + $0xf70] sm:$0xf0]  ;;  %v9147_v54 = vor.u32 %v10564_v24, %v9144_v14  ;;  %6630 = vst.msk [vmem:[%s16452_s7] sm:$0xf] %vm13303_vm0, %v10778_v47  ;;  %v5400_v24 = vadd.f32 %v13218_v25, %v5386_v32  ;;  %v5441_v57 = vpop.f32.mrf.mxu1 }
 0x151   :  { %5767 = vmatpush.bf16.msra.mxu1 %v8923_v59  ;;  %v13284_v59 = vpop.f32.mrf.mxu2  ;;  %v8872_v1 = vld [vmem:[%s16446_s3 + $0x1070] sm:$0xf0]  ;;  %v10560_v16 = vld [vmem:[%s16446_s3 + $0x1264] sm:$0xf] }
 0x152   :  { %5781 = vmatpush.bf16.msra.mxu2 %v9051_v20  ;;  %v9019_v20 = vor.u32 %v10532_v22, %v9016_v28  ;;  %v9000_v55 = vld [vmem:[%s16446_s3 + $0x1170] sm:$0xf0]  ;;  %v10460_v27 = vld [vmem:[%s16446_s3 + $0xf44] sm:$0xf] }
 0x153   :  { %5795 = vmatpush.bf16.msra.mxu3 %v9179_v15  ;;  %v10528_v15 = vld [vmem:[%s16446_s3 + $0x1164] sm:$0xf]  ;;  %v9128_v17 = vld [vmem:[%s16446_s3 + $0x1270] sm:$0xf0] }
 0x154   :  { %5754 = vmatpush.bf16.msra.mxu0 %v8779_v21  ;;  %v8747_v21 = vor.u32 %v10464_v53, %v8744_v40  ;;  %v9003_v62 = vor.u32 %v10528_v15, %v9000_v55  ;;  %v8728_v18 = vld [vmem:[%s16446_s3 + $0xf50] sm:$0xf0]  ;;  %v10492_v58 = vld [vmem:[%s16446_s3 + $0x1044] sm:$0xf]  ;;  %v9131_v60 = vor.u32 %v10560_v16, %v9128_v17  ;;  %v5481_v55 = vpop.f32.mrf.mxu0  ;;  %v5414_v17 = vadd.f32 %v13252_v26, %v5400_v24 }
 0x155   :  { %5768 = vmatpush.bf16.msra.mxu1 %v8907_v30  ;;  %v5467_v30 = vpop.f32.mrf.mxu3  ;;  %v8856_v22 = vld [vmem:[%s16446_s3 + $0x1050] sm:$0xf0]  ;;  %v10524_v28 = vld [vmem:[%s16446_s3 + $0x1144] sm:$0xf]  ;;  %v8731_v14 = vor.u32 %v10460_v27, %v8728_v18 }
 0x156   :  { %5782 = vmatpush.bf16.msra.mxu2 %v9035_v61  ;;  %v8875_v61 = vor.u32 %v10496_v39, %v8872_v1  ;;  %v8984_v4 = vld [vmem:[%s16446_s3 + $0x1150] sm:$0xf0]  ;;  %v10556_v63 = vld [vmem:[%s16446_s3 + $0x1244] sm:$0xf] }
 0x157   :  { %5796 = vmatpush.bf16.msra.mxu3 %v9163_v46  ;;  %v5426_v46 = vadd.f32 %v13220_v11, %v5412_v13  ;;  %v9112_v11 = vld [vmem:[%s16446_s3 + $0x1250] sm:$0xf0]  ;;  %v8987_v53 = vor.u32 %v10524_v28, %v8984_v4  ;;  %v10488_v40 = vld [vmem:[%s16446_s3 + $0x1024] sm:$0xf] }
 0x158   :  { %5755 = vmatpush.bf16.msra.mxu0 %v8763_v52  ;;  %v8859_v52 = vor.u32 %v10492_v58, %v8856_v22  ;;  %v9115_v39 = vor.u32 %v10556_v63, %v9112_v11  ;;  %v8840_v1 = vld [vmem:[%s16446_s3 + $0x1030] sm:$0xf0]  ;;  %v10520_v23 = vld [vmem:[%s16446_s3 + $0x1124] sm:$0xf]  ;;  %v5428_v58 = vadd.f32 %v5427_v3, %v5414_v17 }
 0x159   :  { %5769 = vmatpush.bf16.msra.mxu1 %v8891_v10  ;;  %v10456_v10 = vld [vmem:[%s16446_s3 + $0xf24] sm:$0xf]  ;;  %v5440_v25 = vadd.f32 %v5439_v31, %v5426_v46  ;;  %v5455_v15 = vpop.f32.mrf.mxu2  ;;  %v9096_v16 = vld [vmem:[%s16446_s3 + $0x1230] sm:$0xf0] }
 0x15a   :  { %5783 = vmatpush.bf16.msra.mxu2 %v9019_v20  ;;  %v8712_v20 = vld [vmem:[%s16446_s3 + $0xf30] sm:$0xf0]  ;;  %v10552_v31 = vld [vmem:[%s16446_s3 + $0x1224] sm:$0xf] }
 0x15b   :  { %5797 = vmatpush.bf16.msra.mxu3 %v9147_v54  ;;  %v8968_v54 = vld [vmem:[%s16446_s3 + $0x1130] sm:$0xf0]  ;;  %v5454_v47 = vadd.f32 %v13284_v59, %v5440_v25  ;;  %v8715_v13 = vor.u32 %v10456_v10, %v8712_v20  ;;  %v10484_v26 = vld [vmem:[%s16446_s3 + $0x1004] sm:$0xf]  ;;  %v9099_v32 = vor.u32 %v10552_v31, %v9096_v16  ;;  %v5495_v10 = vpop.f32.mrf.mxu1 }
 0x15c   :  { %5756 = vmatpush.bf16.msra.mxu0 %v8747_v21  ;;  %v10452_v21 = vld [vmem:[%s16446_s3 + $0xf04] sm:$0xf]  ;;  %v8971_v27 = vor.u32 %v10520_v23, %v8968_v54  ;;  %v8824_v59 = vld [vmem:[%s16446_s3 + $0x1010] sm:$0xf0] }
 0x15d   :  { %5770 = vmatpush.bf16.msra.mxu1 %v8875_v61  ;;  %v8696_v61 = vld [vmem:[%s16446_s3 + $0xf10] sm:$0xf0]  ;;  %v10516_v18 = vld [vmem:[%s16446_s3 + $0x1104] sm:$0xf]  ;;  %v5469_v28 = vpop.f32.mrf.mxu3  ;;  %v5468_v11 = vadd.f32 %v5467_v30, %v5454_v47  ;;  %v8827_v20 = vor.u32 %v10484_v26, %v8824_v59  ;;  %v5483_v26 = vpop.f32.mrf.mxu0 }
 0x15e   :  { %5784 = vmatpush.bf16.msra.mxu2 %v9003_v62  ;;  %v8843_v62 = vor.u32 %v10488_v40, %v8840_v1  ;;  %v8952_v46 = vld [vmem:[%s16446_s3 + $0x1110] sm:$0xf0]  ;;  %v10608_v4 = vld [vmem:[%s16446_s3 + $0x13e4] sm:$0xf]  ;;  %v8699_v24 = vor.u32 %v10452_v21, %v8696_v61 }
 0x15f   :  { %5798 = vmatpush.bf16.msra.mxu3 %v9131_v60  ;;  %v10548_v60 = vld [vmem:[%s16446_s3 + $0x1204] sm:$0xf]  ;;  %v9080_v22 = vld [vmem:[%s16446_s3 + $0x1210] sm:$0xf0]  ;;  %v8955_v40 = vor.u32 %v10516_v18, %v8952_v46  ;;  %v5482_v1 = vadd.f32 %v5481_v55, %v5468_v11 }
 0x160   :  { %5757 = vmatpush.bf16.msra.mxu0 %v8731_v14  ;;  %v9320_v3 = vld [vmem:[%s16446_s3 + $0x13f0] sm:$0xf0]  ;;  %v10640_v63 = vld [vmem:[%s16446_s3 + $0x14e4] sm:$0xf]  ;;  %v9083_v23 = vor.u32 %v10548_v60, %v9080_v22 }
 0x161   :  { %5771 = vmatpush.bf16.msra.mxu1 %v8859_v52  ;;  %v9448_v14 = vld [vmem:[%s16446_s3 + $0x14f0] sm:$0xf0]  ;;  %v10672_v52 = vld [vmem:[%s16446_s3 + $0x15e4] sm:$0xf]  ;;  %v9323_v54 = vor.u32 %v10608_v4, %v9320_v3  ;;  %v5509_v31 = vpop.f32.mrf.mxu2  ;;  %v5496_v18 = vadd.f32 %v5495_v10, %v5482_v1 }
 0x162   :  { %5785 = vmatpush.bf16.msra.mxu2 %v8987_v53  ;;  %v9576_v53 = vld [vmem:[%s16446_s3 + $0x15f0] sm:$0xf0]  ;;  %v10704_v30 = vld [vmem:[%s16446_s3 + $0x16e4] sm:$0xf]  ;;  %v9451_v16 = vor.u32 %v10640_v63, %v9448_v14 }
 0x163   :  { %5799 = vmatpush.bf16.msra.mxu3 %v9115_v39  ;;  %v9704_v25 = vld [vmem:[%s16446_s3 + $0x16f0] sm:$0xf0]  ;;  %v5442_v39 = vadd.f32 %v5441_v57, %v5428_v58  ;;  %v9579_v17 = vor.u32 %v10672_v52, %v9576_v53  ;;  %v10604_v47 = vld [vmem:[%s16446_s3 + $0x13c4] sm:$0xf]  ;;  %v5510_v11 = vadd.f32 %v5509_v31, %v5496_v18 }
 0x164   :  { %5758 = vmatpush.bf16.msra.mxu0 %v8715_v13  ;;  %v9304_v13 = vld [vmem:[%s16446_s3 + $0x13d0] sm:$0xf0]  ;;  %v10636_v21 = vld [vmem:[%s16446_s3 + $0x14c4] sm:$0xf]  ;;  %v9707_v55 = vor.u32 %v10704_v30, %v9704_v25  ;;  %v5497_v25 = vpop.f32.mrf.mxu1 }
 0x165   :  { %5772 = vmatpush.bf16.msra.mxu1 %v8843_v62  ;;  %v5456_v57 = vadd.f32 %v5455_v15, %v5442_v39  ;;  %v9432_v61 = vld [vmem:[%s16446_s3 + $0x14d0] sm:$0xf0]  ;;  %v10668_v62 = vld [vmem:[%s16446_s3 + $0x15c4] sm:$0xf]  ;;  %v9307_v58 = vor.u32 %v10604_v47, %v9304_v13 }
 0x166   :  { %5786 = vmatpush.bf16.msra.mxu2 %v8971_v27  ;;  %v9560_v27 = vld [vmem:[%s16446_s3 + $0x15d0] sm:$0xf0]  ;;  %v10700_v15 = vld [vmem:[%s16446_s3 + $0x16c4] sm:$0xf]  ;;  %v9435_v46 = vor.u32 %v10636_v21, %v9432_v61 }
 0x167   :  { %5800 = vmatpush.bf16.msra.mxu3 %v9099_v32  ;;  %v9688_v59 = vld [vmem:[%s16446_s3 + $0x16d0] sm:$0xf0]  ;;  %v5523_v32 = vpop.f32.mrf.mxu3  ;;  %v9563_v60 = vor.u32 %v10668_v62, %v9560_v27  ;;  %v10600_v22 = vld [vmem:[%s16446_s3 + $0x13a4] sm:$0xf]  ;;  %v5470_v63 = vadd.f32 %v5469_v28, %v5456_v57 }
 0x168   :  { %5759 = vmatpush.bf16.msra.mxu0 %v8699_v24  ;;  %v9288_v4 = vld [vmem:[%s16446_s3 + $0x13b0] sm:$0xf0]  ;;  %v10632_v3 = vld [vmem:[%s16446_s3 + $0x14a4] sm:$0xf]  ;;  %v9691_v24 = vor.u32 %v10700_v15, %v9688_v59  ;;  %v5524_v31 = vadd.f32 %v5523_v32, %v5510_v11  ;;  %v5537_v57 = vpop.f32.mrf.mxu0 }
 0x169   :  { %5773 = vmatpush.bf16.msra.mxu1 %v8827_v20  ;;  %v9416_v14 = vld [vmem:[%s16446_s3 + $0x14b0] sm:$0xf0]  ;;  %v10664_v52 = vld [vmem:[%s16446_s3 + $0x15a4] sm:$0xf]  ;;  %v13477_v20 = vshrl.u32 %v6601_v6, 7  ;;  %v9291_v30 = vor.u32 %v10600_v22, %v9288_v4  ;;  %v5511_v21 = vpop.f32.mrf.mxu2 }
 0x16a   :  { %5787 = vmatpush.bf16.msra.mxu2 %v8955_v40  ;;  %v9544_v53 = vld [vmem:[%s16446_s3 + $0x15b0] sm:$0xf0]  ;;  %v10696_v28 = vld [vmem:[%s16446_s3 + $0x16a4] sm:$0xf]  ;;  %v5484_v40 = vadd.f32 %v5483_v26, %v5470_v63  ;;  %v9419_v39 = vor.u32 %v10632_v3, %v9416_v14  ;;  %v5538_v27 = vadd.f32 %v5537_v57, %v5524_v31 }
 0x16b   :  { %5801 = vmatpush.bf16.msra.mxu3 %v9083_v23  ;;  %5760 = vmatmul.bf16.vlgmr.msra.gmra.mxu0 %v11850_v51  ;;  %v9672_v10 = vld [vmem:[%s16446_s3 + $0x16b0] sm:$0xf0]  ;;  %v9547_v1 = vor.u32 %v10664_v52, %v9544_v53  ;;  %v10596_v23 = vld [vmem:[%s16446_s3 + $0x1384] sm:$0xf]  ;;  %vm6607_vm1 = vcmp.lt.s32.totalorder %v13477_v20, 2 }
 0x16c   :  { %5808 = vmatpush.bf16.msrb.mxu0 %v9323_v54  ;;  %5774 = vmatmul.bf16.vlgmr.msra.gmra.mxu1 %v12075_v29  ;;  %v9272_v54 = vld [vmem:[%s16446_s3 + $0x1390] sm:$0xf0]  ;;  %v10628_v6 = vld [vmem:[%s16446_s3 + $0x1484] sm:$0xf]  ;;  %v5498_v62 = vadd.f32 %v5497_v25, %v5484_v40  ;;  %6592 = vst [vmem:[%s16453_s5] sm:$0xff] %v5538_v27  ;;  %v13522_v22 = vsel %vm6607_vm1, %v5538_v27, 0.0 }
 0x16d   :  { %5822 = vmatpush.bf16.msrb.mxu1 %v9451_v16  ;;  %5788 = vmatmul.bf16.vlgmr.msra.gmra.mxu2 %v12088_v37  ;;  %v9675_v16 = vor.u32 %v10696_v28, %v9672_v10  ;;  %v10660_v47 = vld [vmem:[%s16446_s3 + $0x1584] sm:$0xf]  ;;  %v9528_v13 = vld [vmem:[%s16446_s3 + $0x1590] sm:$0xf0]  ;;  %v9275_v26 = vor.u32 %v10596_v23, %v9272_v54 }
 0x16e   :  { %5836 = vmatpush.bf16.msrb.mxu2 %v9579_v17  ;;  %5802 = vmatmul.bf16.vlgmr.msra.gmra.mxu3 %v12086_v34  ;;  %v9400_v17 = vld [vmem:[%s16446_s3 + $0x1490] sm:$0xf0]  ;;  %v10592_v15 = vld [vmem:[%s16446_s3 + $0x1364] sm:$0xf]  ;;  %v9531_v18 = vor.u32 %v10660_v47, %v9528_v13 }
 0x16f   :  { %5850 = vmatpush.bf16.msrb.mxu3 %v9707_v55  ;;  %v10692_v55 = vld [vmem:[%s16446_s3 + $0x1684] sm:$0xf]  ;;  %v9656_v61 = vld [vmem:[%s16446_s3 + $0x1690] sm:$0xf0]  ;;  %v9403_v59 = vor.u32 %v10628_v6, %v9400_v17  ;;  %v5525_v11 = vpop.f32.mrf.mxu3 }
 0x170   :  { %5809 = vmatpush.bf16.msrb.mxu0 %v9307_v58  ;;  %v9256_v58 = vld [vmem:[%s16446_s3 + $0x1370] sm:$0xf0]  ;;  %v10624_v32 = vld [vmem:[%s16446_s3 + $0x1464] sm:$0xf]  ;;  %v9659_v4 = vor.u32 %v10692_v55, %v9656_v61  ;;  %v5539_v6 = vpop.f32.mrf.mxu0 }
 0x171   :  { %5823 = vmatpush.bf16.msrb.mxu1 %v9435_v46  ;;  %v9384_v46 = vld [vmem:[%s16446_s3 + $0x1470] sm:$0xf0]  ;;  %v10656_v3 = vld [vmem:[%s16446_s3 + $0x1564] sm:$0xf]  ;;  %v9259_v52 = vor.u32 %v10592_v15, %v9256_v58 }
 0x172   :  { %5837 = vmatpush.bf16.msrb.mxu2 %v9563_v60  ;;  %v5512_v60 = vadd.f32 %v5511_v21, %v5498_v62  ;;  %v9512_v63 = vld [vmem:[%s16446_s3 + $0x1570] sm:$0xf0]  ;;  %v9387_v53 = vor.u32 %v10624_v32, %v9384_v46  ;;  %v10588_v10 = vld [vmem:[%s16446_s3 + $0x1344] sm:$0xf] }
 0x173   :  { %5851 = vmatpush.bf16.msrb.mxu3 %v9691_v24  ;;  %v10688_v24 = vld [vmem:[%s16446_s3 + $0x1664] sm:$0xf]  ;;  %v9640_v14 = vld [vmem:[%s16446_s3 + $0x1670] sm:$0xf0]  ;;  %v9515_v28 = vor.u32 %v10656_v3, %v9512_v63 }
 0x174   :  { %5810 = vmatpush.bf16.msrb.mxu0 %v9291_v30  ;;  %v9240_v40 = vld [vmem:[%s16446_s3 + $0x1350] sm:$0xf0]  ;;  %v10620_v30 = vld [vmem:[%s16446_s3 + $0x1444] sm:$0xf]  ;;  %v5526_v25 = vadd.f32 %v5525_v11, %v5512_v60 }
 0x175   :  { %5824 = vmatpush.bf16.msrb.mxu1 %v9419_v39  ;;  %v9643_v39 = vor.u32 %v10688_v24, %v9640_v14  ;;  %v10652_v23 = vld [vmem:[%s16446_s3 + $0x1544] sm:$0xf]  ;;  %v9496_v54 = vld [vmem:[%s16446_s3 + $0x1550] sm:$0xf0]  ;;  %v9243_v47 = vor.u32 %v10588_v10, %v9240_v40 }
 0x176   :  { %5838 = vmatpush.bf16.msrb.mxu2 %v9547_v1  ;;  %v9368_v1 = vld [vmem:[%s16446_s3 + $0x1450] sm:$0xf0]  ;;  %v10684_v31 = vld [vmem:[%s16446_s3 + $0x1644] sm:$0xf]  ;;  %v5540_v17 = vadd.f32 %v5539_v6, %v5526_v25  ;;  %v9499_v57 = vor.u32 %v10652_v23, %v9496_v54  ;;  %v7022_v6 = vld [vmem:[%s16446_s3 + $0x1e8] sm:$0xf] }
 0x177   :  { %5852 = vmatpush.bf16.msrb.mxu3 %v9675_v16  ;;  %v9624_v16 = vld [vmem:[%s16446_s3 + $0x1650] sm:$0xf0]  ;;  %v10584_v13 = vld [vmem:[%s16446_s3 + $0x1324] sm:$0xf]  ;;  %v9371_v21 = vor.u32 %v10620_v30, %v9368_v1  ;;  %v10003_v1 = vld [vmem:[%s16446_s3 + $0xf4] sm:$0xf0] }
 0x178   :  { %5811 = vmatpush.bf16.msrb.mxu0 %v9275_v26  ;;  %v9224_v55 = vld [vmem:[%s16446_s3 + $0x1330] sm:$0xf0]  ;;  %v10616_v61 = vld [vmem:[%s16446_s3 + $0x1424] sm:$0xf]  ;;  %6596 = vst [vmem:[%s16453_s5 + $0x20] sm:$0xff] %v5540_v17  ;;  %v9627_v27 = vor.u32 %v10684_v31, %v9624_v16 }
 0x179   :  { %5825 = vmatpush.bf16.msrb.mxu1 %v9403_v59  ;;  %v9352_v62 = vld [vmem:[%s16446_s3 + $0x1430] sm:$0xf0]  ;;  %v10648_v26 = vld [vmem:[%s16446_s3 + $0x1524] sm:$0xf]  ;;  %v9227_v58 = vor.u32 %v10584_v13, %v9224_v55  ;;  %v10035_v31 = vld [vmem:[%s16446_s3 + $0x1f4] sm:$0xf0] }
 0x17a   :  { %5839 = vmatpush.bf16.msrb.mxu2 %v9531_v18  ;;  %v9480_v15 = vld [vmem:[%s16446_s3 + $0x1530] sm:$0xf0]  ;;  %v10680_v59 = vld [vmem:[%s16446_s3 + $0x1624] sm:$0xf]  ;;  %v9355_v60 = vor.u32 %v10616_v61, %v9352_v62  ;;  %v7023_v61 = vor.u32 %v10035_v31, %v7022_v6  ;;  %v6974_v6 = vld [vmem:[%s16446_s3 + $0x188] sm:$0xf] }
 0x17b   :  { %5853 = vmatpush.bf16.msrb.mxu3 %v9659_v4  ;;  %v9608_v18 = vld [vmem:[%s16446_s3 + $0x1630] sm:$0xf0]  ;;  %v10580_v32 = vld [vmem:[%s16446_s3 + $0x1304] sm:$0xf]  ;;  %v9483_v4 = vor.u32 %v10648_v26, %v9480_v15  ;;  %v9999_v26 = vld [vmem:[%s16446_s3 + $0xd4] sm:$0xf0] }
 0x17c   :  { %5812 = vmatpush.bf16.msrb.mxu0 %v9259_v52  ;;  %v9208_v46 = vld [vmem:[%s16446_s3 + $0x1310] sm:$0xf0]  ;;  %v10612_v3 = vld [vmem:[%s16446_s3 + $0x1404] sm:$0xf]  ;;  %v9611_v24 = vor.u32 %v10680_v59, %v9608_v18  ;;  %v7006_v15 = vld [vmem:[%s16446_s3 + $0x1c8] sm:$0xf] }
 0x17d   :  { %5826 = vmatpush.bf16.msrb.mxu1 %v9387_v53  ;;  %v9336_v63 = vld [vmem:[%s16446_s3 + $0x1410] sm:$0xf0]  ;;  %v10644_v11 = vld [vmem:[%s16446_s3 + $0x1504] sm:$0xf]  ;;  %v9211_v30 = vor.u32 %v10580_v32, %v9208_v46  ;;  %v10031_v59 = vld [vmem:[%s16446_s3 + $0x1d4] sm:$0xf0] }
 0x17e   :  { %5840 = vmatpush.bf16.msrb.mxu2 %v9515_v28  ;;  %v9464_v14 = vld [vmem:[%s16446_s3 + $0x1510] sm:$0xf0]  ;;  %v10676_v52 = vld [vmem:[%s16446_s3 + $0x1604] sm:$0xf]  ;;  %v9339_v23 = vor.u32 %v10612_v3, %v9336_v63  ;;  %v7007_v3 = vor.u32 %v10031_v59, %v7006_v15  ;;  %v10023_v31 = vld [vmem:[%s16446_s3 + $0x194] sm:$0xf0] }
 0x17f   :  { %5854 = vmatpush.bf16.msrb.mxu3 %v9643_v39  ;;  %v9592_v53 = vld [vmem:[%s16446_s3 + $0x1610] sm:$0xf0]  ;;  %v10736_v28 = vld [vmem:[%s16446_s3 + $0x17e4] sm:$0xf]  ;;  %v6894_v39 = vld [vmem:[%s16446_s3 + $0xe8] sm:$0xf]  ;;  %v9467_v54 = vor.u32 %v10644_v11, %v9464_v14 }
 0x180   :  { %5813 = vmatpush.bf16.msrb.mxu0 %v9243_v47  ;;  %v9832_v10 = vld [vmem:[%s16446_s3 + $0x17f0] sm:$0xf0]  ;;  %v10768_v40 = vld [vmem:[%s16446_s3 + $0x18e4] sm:$0xf]  ;;  %v9595_v16 = vor.u32 %v10676_v52, %v9592_v53  ;;  %v6895_v13 = vor.u32 %v10003_v1, %v6894_v39  ;;  %v6862_v11 = vld [vmem:[%s16446_s3 + $0xa8] sm:$0xf] }
 0x181   :  { %5827 = vmatpush.bf16.msrb.mxu1 %v9371_v21  ;;  %v9960_v25 = vld [vmem:[%s16446_s3 + $0x18f0] sm:$0xf0]  ;;  %v9835_v17 = vor.u32 %v10736_v28, %v9832_v10  ;;  %v10732_v21 = vld [vmem:[%s16446_s3 + $0x17c4] sm:$0xf]  ;;  %v6990_v14 = vld [vmem:[%s16446_s3 + $0x1a8] sm:$0xf] }
 0x182   :  { %5841 = vmatpush.bf16.msrb.mxu2 %v9499_v57  ;;  %v9963_v47 = vor.u32 %v10768_v40, %v9960_v25  ;;  %v9816_v57 = vld [vmem:[%s16446_s3 + $0x17d0] sm:$0xf0]  ;;  %v10764_v55 = vld [vmem:[%s16446_s3 + $0x18c4] sm:$0xf]  ;;  %v10027_v52 = vld [vmem:[%s16446_s3 + $0x1b4] sm:$0xf0] }
 0x183   :  { %5855 = vmatpush.bf16.msrb.mxu3 %v9627_v27  ;;  %v9944_v62 = vld [vmem:[%s16446_s3 + $0x18d0] sm:$0xf0]  ;;  %v6878_v27 = vld [vmem:[%s16446_s3 + $0xc8] sm:$0xf]  ;;  %v9819_v18 = vor.u32 %v10732_v21, %v9816_v57  ;;  %v10728_v46 = vld [vmem:[%s16446_s3 + $0x17a4] sm:$0xf]  ;;  %v6991_v39 = vor.u32 %v10027_v52, %v6990_v14 }
 0x184   :  { %5814 = vmatpush.bf16.msrb.mxu0 %v9227_v58  ;;  %v9947_v58 = vor.u32 %v10764_v55, %v9944_v62  ;;  %v6879_v32 = vor.u32 %v9999_v26, %v6878_v27  ;;  %v9928_v63 = vld [vmem:[%s16446_s3 + $0x18b0] sm:$0xf0]  ;;  %v10724_v40 = vld [vmem:[%s16446_s3 + $0x1784] sm:$0xf]  ;;  %v6975_v55 = vor.u32 %v10023_v31, %v6974_v6  ;;  %v6830_v62 = vld [vmem:[%s16446_s3 + $0x68] sm:$0xf] }
 0x185   :  { %5828 = vmatpush.bf16.msrb.mxu1 %v9355_v60  ;;  %v9800_v60 = vld [vmem:[%s16446_s3 + $0x17b0] sm:$0xf0]  ;;  %v10756_v25 = vld [vmem:[%s16446_s3 + $0x1884] sm:$0xf]  ;;  %v9987_v27 = vld [vmem:[%s16446_s3 + $0x74] sm:$0xf0] }
 0x186   :  { %5842 = vmatpush.bf16.msrb.mxu2 %v9483_v4  ;;  %v10760_v4 = vld [vmem:[%s16446_s3 + $0x18a4] sm:$0xf]  ;;  %v9803_v53 = vor.u32 %v10728_v46, %v9800_v60  ;;  %v9912_v1 = vld [vmem:[%s16446_s3 + $0x1890] sm:$0xf0]  ;;  %v6958_v26 = vld [vmem:[%s16446_s3 + $0x168] sm:$0xf] }
 0x187   :  { %5856 = vmatpush.bf16.msrb.mxu3 %v9611_v24  ;;  %v9995_v24 = vld [vmem:[%s16446_s3 + $0xb4] sm:$0xf0]  ;;  %v9931_v28 = vor.u32 %v10760_v4, %v9928_v63  ;;  %v9768_v21 = vld [vmem:[%s16446_s3 + $0x1770] sm:$0xf0]  ;;  %v10752_v57 = vld [vmem:[%s16446_s3 + $0x1864] sm:$0xf] }
 0x188   :  { %5815 = vmatpush.bf16.msrb.mxu0 %v9211_v30  ;;  %v6863_v10 = vor.u32 %v9995_v24, %v6862_v11  ;;  %v9784_v30 = vld [vmem:[%s16446_s3 + $0x1790] sm:$0xf0]  ;;  %v10019_v15 = vld [vmem:[%s16446_s3 + $0x174] sm:$0xf0]  ;;  %v10748_v60 = vld [vmem:[%s16446_s3 + $0x1844] sm:$0xf] }
 0x189   :  { %5829 = vmatpush.bf16.msrb.mxu1 %v9339_v23  ;;  %v6846_v23 = vld [vmem:[%s16446_s3 + $0x88] sm:$0xf]  ;;  %v9752_v46 = vld [vmem:[%s16446_s3 + $0x1750] sm:$0xf0]  ;;  %v6959_v4 = vor.u32 %v10019_v15, %v6958_v26  ;;  %v9983_v11 = vld [vmem:[%s16446_s3 + $0x54] sm:$0xf0] }
 0x18a   :  { %5843 = vmatpush.bf16.msrb.mxu2 %v9467_v54  ;;  %v9991_v54 = vld [vmem:[%s16446_s3 + $0x94] sm:$0xf0]  ;;  %v6814_v63 = vld [vmem:[%s16446_s3 + $0x48] sm:$0xf] }
 0x18b   :  { %5857 = vmatpush.bf16.msrb.mxu3 %v9595_v16  ;;  %5816 = vmatmul.bf16.vlgmr.msrb.gmra.mxu0 %v12096_v44  ;;  %v9787_v16 = vor.u32 %v10724_v40, %v9784_v30  ;;  %v6942_v24 = vld [vmem:[%s16446_s3 + $0x148] sm:$0xf]  ;;  %v10015_v14 = vld [vmem:[%s16446_s3 + $0x154] sm:$0xf0]  ;;  %v9736_v40 = vld [vmem:[%s16446_s3 + $0x1730] sm:$0xf0] }
 0x18c   :  { %5864 = vmatpush.bf16.msra.mxu0 %v9835_v17  ;;  %5830 = vmatmul.bf16.vlgmr.msrb.gmra.mxu1 %v12305_v38  ;;  %v9915_v17 = vor.u32 %v10756_v25, %v9912_v1  ;;  %v10744_v30 = vld [vmem:[%s16446_s3 + $0x1824] sm:$0xf]  ;;  %v6943_v25 = vor.u32 %v10015_v14, %v6942_v24  ;;  %v6798_v1 = vld [vmem:[%s16446_s3 + $0x28] sm:$0xf]  ;;  %v10011_v6 = vld [vmem:[%s16446_s3 + $0x134] sm:$0xf0] }
 0x18d   :  { %5878 = vmatpush.bf16.msra.mxu1 %v9963_v47  ;;  %5844 = vmatmul.bf16.vlgmr.msrb.gmra.mxu2 %v12318_v33  ;;  %v6847_v47 = vor.u32 %v9991_v54, %v6846_v23  ;;  %v9979_v23 = vld [vmem:[%s16446_s3 + $0x34] sm:$0xf0]  ;;  %v6926_v54 = vld [vmem:[%s16446_s3 + $0x128] sm:$0xf] }
 0x18e   :  { %5892 = vmatpush.bf16.msra.mxu2 %v6895_v13  ;;  %5858 = vmatmul.bf16.vlgmr.msrb.gmra.mxu3 %v12316_v50  ;;  %v10720_v13 = vld [vmem:[%s16446_s3 + $0x1764] sm:$0xf]  ;;  %v10007_v26 = vld [vmem:[%s16446_s3 + $0x114] sm:$0xf0]  ;;  %v7150_v15 = vld [vmem:[%s16446_s3 + $0x2e8] sm:$0xf] }
 0x18f   :  { %5906 = vmatpush.bf16.msra.mxu3 %v7023_v61  ;;  %v9896_v61 = vld [vmem:[%s16446_s3 + $0x1870] sm:$0xf0]  ;;  %v9771_v59 = vor.u32 %v10720_v13, %v9768_v21  ;;  %v6799_v13 = vor.u32 %v9979_v23, %v6798_v1  ;;  %v10740_v21 = vld [vmem:[%s16446_s3 + $0x1804] sm:$0xf]  ;;  %v10127_v1 = vld [vmem:[%s16446_s3 + $0x4d4] sm:$0xf0] }
 0x190   :  { %5865 = vmatpush.bf16.msra.mxu0 %v9819_v18  ;;  %v9899_v18 = vor.u32 %v10752_v57, %v9896_v61  ;;  %v9848_v57 = vld [vmem:[%s16446_s3 + $0x1810] sm:$0xf0]  ;;  %v6927_v61 = vor.u32 %v10011_v6, %v6926_v54  ;;  %v7518_v23 = vld [vmem:[%s16446_s3 + $0x5c8] sm:$0xf]  ;;  %v10159_v54 = vld [vmem:[%s16446_s3 + $0x5d4] sm:$0xf0] }
 0x191   :  { %5879 = vmatpush.bf16.msra.mxu1 %v9947_v58  ;;  %v6831_v58 = vor.u32 %v9987_v27, %v6830_v62  ;;  %v9975_v62 = vld [vmem:[%s16446_s3 + $0x14] sm:$0xf0]  ;;  %v6910_v27 = vld [vmem:[%s16446_s3 + $0x108] sm:$0xf] }
 0x192   :  { %5893 = vmatpush.bf16.msra.mxu2 %v6879_v32  ;;  %v10716_v32 = vld [vmem:[%s16446_s3 + $0x1744] sm:$0xf]  ;;  %v6911_v24 = vor.u32 %v10007_v26, %v6910_v27  ;;  %v10155_v27 = vld [vmem:[%s16446_s3 + $0x5b4] sm:$0xf0] }
 0x193   :  { %5907 = vmatpush.bf16.msra.mxu3 %v7007_v3  ;;  %v9880_v3 = vld [vmem:[%s16446_s3 + $0x1850] sm:$0xf0]  ;;  %v9755_v52 = vor.u32 %v10716_v32, %v9752_v46  ;;  %v10099_v32 = vld [vmem:[%s16446_s3 + $0x3f4] sm:$0xf0]  ;;  %v7406_v46 = vld [vmem:[%s16446_s3 + $0x4e8] sm:$0xf] }
 0x194   :  { %5866 = vmatpush.bf16.msra.mxu0 %v9803_v53  ;;  %v9883_v53 = vor.u32 %v10748_v60, %v9880_v3  ;;  %v10131_v60 = vld [vmem:[%s16446_s3 + $0x4f4] sm:$0xf0] }
 0x195   :  { %5880 = vmatpush.bf16.msra.mxu1 %v9931_v28  ;;  %v6815_v28 = vor.u32 %v9983_v11, %v6814_v63  ;;  %v7534_v63 = vld [vmem:[%s16446_s3 + $0x5e8] sm:$0xf]  ;;  %v10163_v11 = vld [vmem:[%s16446_s3 + $0x5f4] sm:$0xf0] }
 0x196   :  { %5894 = vmatpush.bf16.msra.mxu2 %v6863_v10  ;;  %v10712_v10 = vld [vmem:[%s16446_s3 + $0x1724] sm:$0xf] }
 0x197   :  { %5908 = vmatpush.bf16.msra.mxu3 %v6991_v39  ;;  %v9864_v39 = vld [vmem:[%s16446_s3 + $0x1830] sm:$0xf0]  ;;  %v9739_v31 = vor.u32 %v10712_v10, %v9736_v40  ;;  %v10063_v10 = vld [vmem:[%s16446_s3 + $0x2d4] sm:$0xf0]  ;;  %v7262_v40 = vld [vmem:[%s16446_s3 + $0x3c8] sm:$0xf] }
 0x198   :  { %5867 = vmatpush.bf16.msra.mxu0 %v9787_v16  ;;  %v10708_v16 = vld [vmem:[%s16446_s3 + $0x1704] sm:$0xf] }
 0x199   :  { %5881 = vmatpush.bf16.msra.mxu1 %v9915_v17  ;;  %v9720_v17 = vld [vmem:[%s16446_s3 + $0x1710] sm:$0xf0] }
 0x19a   :  { %5895 = vmatpush.bf16.msra.mxu2 %v6847_v47  ;;  %v9867_v47 = vor.u32 %v10744_v30, %v9864_v39  ;;  %v7535_v30 = vor.u32 %v10163_v11, %v7534_v63  ;;  %v7390_v39 = vld [vmem:[%s16446_s3 + $0x4c8] sm:$0xf]  ;;  %v10151_v11 = vld [vmem:[%s16446_s3 + $0x594] sm:$0xf0] }
 0x19b   :  { %5909 = vmatpush.bf16.msra.mxu3 %v6975_v55  ;;  %v6782_v55 = vld [vmem:[%s16446_s3 + $0x8] sm:$0xf] }
 0x19c   :  { %5868 = vmatpush.bf16.msra.mxu0 %v9771_v59  ;;  %v10067_v59 = vld [vmem:[%s16446_s3 + $0x2f4] sm:$0xf0]  ;;  %v6783_v3 = vor.u32 %v9975_v62, %v6782_v55  ;;  %v7374_v55 = vld [vmem:[%s16446_s3 + $0x4a8] sm:$0xf] }
 0x19d   :  { %5882 = vmatpush.bf16.msra.mxu1 %v9899_v18  ;;  %v7278_v18 = vld [vmem:[%s16446_s3 + $0x3e8] sm:$0xf]  ;;  %v7151_v14 = vor.u32 %v10067_v59, %v7150_v15 }
 0x19e   :  { %5896 = vmatpush.bf16.msra.mxu2 %v6831_v58  ;;  %v9723_v58 = vor.u32 %v10708_v16, %v9720_v17  ;;  %v7391_v16 = vor.u32 %v10127_v1, %v7390_v39  ;;  %v7118_v17 = vld [vmem:[%s16446_s3 + $0x2a8] sm:$0xf]  ;;  %v10115_v39 = vld [vmem:[%s16446_s3 + $0x474] sm:$0xf0] }
 0x19f   :  { %5910 = vmatpush.bf16.msra.mxu3 %v6959_v4  ;;  %v9851_v4 = vor.u32 %v10740_v21, %v9848_v57  ;;  %v7519_v21 = vor.u32 %v10159_v54, %v7518_v23  ;;  %v10091_v57 = vld [vmem:[%s16446_s3 + $0x3b4] sm:$0xf0]  ;;  %v7502_v62 = vld [vmem:[%s16446_s3 + $0x5a8] sm:$0xf] }
 0x1a0   :  { %5869 = vmatpush.bf16.msra.mxu0 %v9755_v52  ;;  %v7279_v52 = vor.u32 %v10099_v32, %v7278_v18  ;;  %v7102_v18 = vld [vmem:[%s16446_s3 + $0x288] sm:$0xf]  ;;  %v10147_v23 = vld [vmem:[%s16446_s3 + $0x574] sm:$0xf0] }
 0x1a1   :  { %5883 = vmatpush.bf16.msra.mxu1 %v9883_v53  ;;  %v7407_v53 = vor.u32 %v10131_v60, %v7406_v46  ;;  %v7230_v32 = vld [vmem:[%s16446_s3 + $0x388] sm:$0xf]  ;;  %v7503_v46 = vor.u32 %v10155_v27, %v7502_v62  ;;  %v10087_v60 = vld [vmem:[%s16446_s3 + $0x394] sm:$0xf0] }
 0x1a2   :  { %5897 = vmatpush.bf16.msra.mxu2 %v6815_v28  ;;  %v7134_v28 = vld [vmem:[%s16446_s3 + $0x2c8] sm:$0xf]  ;;  %v10143_v62 = vld [vmem:[%s16446_s3 + $0x554] sm:$0xf0] }
 0x1a3   :  { %5911 = vmatpush.bf16.msra.mxu3 %v6943_v25  ;;  %v10095_v25 = vld [vmem:[%s16446_s3 + $0x3d4] sm:$0xf0]  ;;  %v7135_v6 = vor.u32 %v10063_v10, %v7134_v28  ;;  %v7486_v63 = vld [vmem:[%s16446_s3 + $0x588] sm:$0xf] }
 0x1a4   :  { %5870 = vmatpush.bf16.msra.mxu0 %v9739_v31  ;;  %v7263_v31 = vor.u32 %v10095_v25, %v7262_v40  ;;  %v10051_v28 = vld [vmem:[%s16446_s3 + $0x274] sm:$0xf0]  ;;  %v7214_v10 = vld [vmem:[%s16446_s3 + $0x368] sm:$0xf]  ;;  %v7487_v40 = vor.u32 %v10151_v11, %v7486_v63 }
 0x1a5   :  { %5884 = vmatpush.bf16.msra.mxu1 %v9867_v47  ;;  %v10059_v47 = vld [vmem:[%s16446_s3 + $0x2b4] sm:$0xf0]  ;;  %v7342_v25 = vld [vmem:[%s16446_s3 + $0x468] sm:$0xf] }
 0x1a6   :  { %5898 = vmatpush.bf16.msra.mxu2 %v6799_v13  ;;  %v7246_v13 = vld [vmem:[%s16446_s3 + $0x3a8] sm:$0xf]  ;;  %v7119_v26 = vor.u32 %v10059_v47, %v7118_v17  ;;  %v10047_v17 = vld [vmem:[%s16446_s3 + $0x254] sm:$0xf0] }
 0x1a7   :  { %5912 = vmatpush.bf16.msra.mxu3 %v6927_v61  ;;  %v10123_v61 = vld [vmem:[%s16446_s3 + $0x4b4] sm:$0xf0]  ;;  %v7247_v15 = vor.u32 %v10091_v57, %v7246_v13  ;;  %v7470_v1 = vld [vmem:[%s16446_s3 + $0x568] sm:$0xf] }
 0x1a8   :  { %5871 = vmatpush.bf16.msra.mxu0 %v9723_v58  ;;  %v7375_v59 = vor.u32 %v10123_v61, %v7374_v55  ;;  %v10055_v58 = vld [vmem:[%s16446_s3 + $0x294] sm:$0xf0]  ;;  %v7198_v47 = vld [vmem:[%s16446_s3 + $0x348] sm:$0xf]  ;;  %v7471_v13 = vor.u32 %v10147_v23, %v7470_v1 }
 0x1a9   :  { %5885 = vmatpush.bf16.msra.mxu1 %v9851_v4  ;;  %v7358_v4 = vld [vmem:[%s16446_s3 + $0x488] sm:$0xf]  ;;  %v10111_v55 = vld [vmem:[%s16446_s3 + $0x454] sm:$0xf0] }
 0x1aa   :  { %5899 = vmatpush.bf16.msra.mxu2 %v6783_v3  ;;  %v10119_v3 = vld [vmem:[%s16446_s3 + $0x494] sm:$0xf0]  ;;  %v7326_v57 = vld [vmem:[%s16446_s3 + $0x448] sm:$0xf] }
 0x1ab   :  { %5913 = vmatpush.bf16.msra.mxu3 %v6911_v24  ;;  %5872 = vmatmul.bf16.vlgmr.msra.gmra.mxu0 %v12326_v56  ;;  %v7103_v24 = vor.u32 %v10055_v58, %v7102_v18  ;;  %v7454_v61 = vld [vmem:[%s16446_s3 + $0x548] sm:$0xf]  ;;  %v10043_v18 = vld [vmem:[%s16446_s3 + $0x234] sm:$0xf0] }
 0x1ac   :  { %5920 = vmatpush.bf16.msrb.mxu0 %v7151_v14  ;;  %5886 = vmatmul.bf16.vlgmr.msra.gmra.mxu1 %v12521_v19  ;;  %v7231_v14 = vor.u32 %v10087_v60, %v7230_v32  ;;  %v7182_v58 = vld [vmem:[%s16446_s3 + $0x328] sm:$0xf]  ;;  %v13964_v32 = vpop.f32.mrf.mxu1  ;;  %v10075_v60 = vld [vmem:[%s16446_s3 + $0x334] sm:$0xf0] }
 0x1ad   :  { %5934 = vmatpush.bf16.msrb.mxu1 %v7279_v52  ;;  %5900 = vmatmul.bf16.vlgmr.msra.gmra.mxu2 %v11165_v36  ;;  %v7359_v52 = vor.u32 %v10119_v3, %v7358_v4  ;;  %v7310_v4 = vld [vmem:[%s16446_s3 + $0x428] sm:$0xf]  ;;  %v10107_v3 = vld [vmem:[%s16446_s3 + $0x434] sm:$0xf0] }
 0x1ae   :  { %5948 = vmatpush.bf16.msrb.mxu2 %v7407_v53  ;;  %5914 = vmatmul.bf16.vlgmr.msra.gmra.mxu3 %v11206_v2  ;;  %v7086_v53 = vld [vmem:[%s16446_s3 + $0x268] sm:$0xf]  ;;  %v10139_v11 = vld [vmem:[%s16446_s3 + $0x534] sm:$0xf0] }
 0x1af   :  { %5962 = vmatpush.bf16.msrb.mxu3 %v7535_v30  ;;  %v10083_v30 = vld [vmem:[%s16446_s3 + $0x374] sm:$0xf0]  ;;  %v7087_v54 = vor.u32 %v10051_v28, %v7086_v53  ;;  %v7438_v63 = vld [vmem:[%s16446_s3 + $0x528] sm:$0xf]  ;;  %v7183_v53 = vor.u32 %v10075_v60, %v7182_v58  ;;  %v7311_v28 = vor.u32 %v10107_v3, %v7310_v4 }
 0x1b0   :  { %5921 = vmatpush.bf16.msrb.mxu0 %v7135_v6  ;;  %v7215_v6 = vor.u32 %v10083_v30, %v7214_v10  ;;  %v7166_v10 = vld [vmem:[%s16446_s3 + $0x308] sm:$0xf]  ;;  %v10135_v23 = vld [vmem:[%s16446_s3 + $0x514] sm:$0xf0] }
 0x1b1   :  { %5935 = vmatpush.bf16.msrb.mxu1 %v7263_v31  ;;  %v7343_v31 = vor.u32 %v10115_v39, %v7342_v25  ;;  %v7294_v30 = vld [vmem:[%s16446_s3 + $0x408] sm:$0xf]  ;;  %v7439_v25 = vor.u32 %v10139_v11, %v7438_v63  ;;  %v10103_v39 = vld [vmem:[%s16446_s3 + $0x414] sm:$0xf0] }
 0x1b2   :  { %5949 = vmatpush.bf16.msrb.mxu2 %v7391_v16  ;;  %v7070_v16 = vld [vmem:[%s16446_s3 + $0x248] sm:$0xf]  ;;  %v10191_v58 = vld [vmem:[%s16446_s3 + $0x6d4] sm:$0xf0] }
 0x1b3   :  { %5963 = vmatpush.bf16.msrb.mxu3 %v7519_v21  ;;  %v10079_v21 = vld [vmem:[%s16446_s3 + $0x354] sm:$0xf0]  ;;  %v7071_v27 = vor.u32 %v10047_v17, %v7070_v16  ;;  %v7422_v1 = vld [vmem:[%s16446_s3 + $0x508] sm:$0xf] }
 0x1b4   :  { %5922 = vmatpush.bf16.msrb.mxu0 %v7119_v26  ;;  %v7199_v26 = vor.u32 %v10079_v21, %v7198_v47  ;;  %v10227_v17 = vld [vmem:[%s16446_s3 + $0x7f4] sm:$0xf0]  ;;  %v7918_v47 = vld [vmem:[%s16446_s3 + $0x8e8] sm:$0xf]  ;;  %v14023_v21 = vpop.f32.mrf.mxu2  ;;  %v14040_v60 = vpop.f32.mrf.mxu1 }
 0x1b5   :  { %5936 = vmatpush.bf16.msrb.mxu1 %v7247_v15  ;;  %v7327_v15 = vor.u32 %v10111_v55, %v7326_v57  ;;  %v7295_v55 = vor.u32 %v10103_v39, %v7294_v30  ;;  %v10223_v3 = vld [vmem:[%s16446_s3 + $0x7d4] sm:$0xf0]  ;;  %v7902_v63 = vld [vmem:[%s16446_s3 + $0x8c8] sm:$0xf] }
 0x1b6   :  { %5950 = vmatpush.bf16.msrb.mxu2 %v7375_v59  ;;  %v7054_v59 = vld [vmem:[%s16446_s3 + $0x228] sm:$0xf]  ;;  %v10255_v11 = vld [vmem:[%s16446_s3 + $0x8d4] sm:$0xf0] }
 0x1b7   :  { %5964 = vmatpush.bf16.msrb.mxu3 %v7503_v46  ;;  %v7455_v46 = vor.u32 %v10143_v62, %v7454_v61  ;;  %v8046_v61 = vld [vmem:[%s16446_s3 + $0x9e8] sm:$0xf]  ;;  %v10291_v62 = vld [vmem:[%s16446_s3 + $0x9f4] sm:$0xf0] }
 0x1b8   :  { %5923 = vmatpush.bf16.msrb.mxu0 %v7103_v24  ;;  %v7055_v24 = vor.u32 %v10043_v18, %v7054_v59  ;;  %v7646_v18 = vld [vmem:[%s16446_s3 + $0x6c8] sm:$0xf]  ;;  %v8047_v4 = vor.u32 %v10291_v62, %v8046_v61  ;;  %v10187_v30 = vld [vmem:[%s16446_s3 + $0x6b4] sm:$0xf0] }
 0x1b9   :  { %5937 = vmatpush.bf16.msrb.mxu1 %v7231_v14  ;;  %v7038_v14 = vld [vmem:[%s16446_s3 + $0x208] sm:$0xf] }
 0x1ba   :  { %5951 = vmatpush.bf16.msrb.mxu2 %v7359_v52  ;;  %v10039_v52 = vld [vmem:[%s16446_s3 + $0x214] sm:$0xf0]  ;;  %v7742_v61 = vld [vmem:[%s16446_s3 + $0x788] sm:$0xf] }
 0x1bb   :  { %5965 = vmatpush.bf16.msrb.mxu3 %v7487_v40  ;;  %v10071_v40 = vld [vmem:[%s16446_s3 + $0x314] sm:$0xf0]  ;;  %v7039_v16 = vor.u32 %v10039_v52, %v7038_v14  ;;  %v8030_v14 = vld [vmem:[%s16446_s3 + $0x9c8] sm:$0xf] }
 0x1bc   :  { %5924 = vmatpush.bf16.msrb.mxu0 %v7087_v54  ;;  %v7662_v54 = vld [vmem:[%s16446_s3 + $0x6e8] sm:$0xf]  ;;  %v7167_v57 = vor.u32 %v10071_v40, %v7166_v10  ;;  %v10287_v52 = vld [vmem:[%s16446_s3 + $0x9d4] sm:$0xf0]  ;;  %v7903_v10 = vor.u32 %v10255_v11, %v7902_v63 }
 0x1bd   :  { %5938 = vmatpush.bf16.msrb.mxu1 %v7215_v6  ;;  %v10195_v6 = vld [vmem:[%s16446_s3 + $0x6f4] sm:$0xf0]  ;;  %v7630_v40 = vld [vmem:[%s16446_s3 + $0x6a8] sm:$0xf]  ;;  %v8031_v39 = vor.u32 %v10287_v52, %v8030_v14 }
 0x1be   :  { %5952 = vmatpush.bf16.msrb.mxu2 %v7343_v31  ;;  %v7790_v31 = vld [vmem:[%s16446_s3 + $0x7e8] sm:$0xf]  ;;  %v10179_v52 = vld [vmem:[%s16446_s3 + $0x674] sm:$0xf0] }
 0x1bf   :  { %5966 = vmatpush.bf16.msrb.mxu3 %v7471_v13  ;;  %v10259_v13 = vld [vmem:[%s16446_s3 + $0x8f4] sm:$0xf0]  ;;  %v7598_v14 = vld [vmem:[%s16446_s3 + $0x668] sm:$0xf] }
 0x1c0   :  { %5925 = vmatpush.bf16.msrb.mxu0 %v7071_v27  ;;  %v7423_v27 = vor.u32 %v10135_v23, %v7422_v1  ;;  %v7919_v59 = vor.u32 %v10259_v13, %v7918_v47  ;;  %v10219_v1 = vld [vmem:[%s16446_s3 + $0x7b4] sm:$0xf0]  ;;  %v7886_v23 = vld [vmem:[%s16446_s3 + $0x8a8] sm:$0xf] }
 0x1c1   :  { %5939 = vmatpush.bf16.msrb.mxu1 %v7199_v26  ;;  %v7663_v26 = vor.u32 %v10195_v6, %v7662_v54  ;;  %v10251_v54 = vld [vmem:[%s16446_s3 + $0x8b4] sm:$0xf0]  ;;  %v8014_v6 = vld [vmem:[%s16446_s3 + $0x9a8] sm:$0xf] }
 0x1c2   :  { %5953 = vmatpush.bf16.msrb.mxu2 %v7327_v15  ;;  %v7791_v15 = vor.u32 %v10227_v17, %v7790_v31  ;;  %v10283_v31 = vld [vmem:[%s16446_s3 + $0x9b4] sm:$0xf0]  ;;  %v14087_v17 = vpop.f32.mrf.mxu2  ;;  %v7887_v13 = vor.u32 %v10251_v54, %v7886_v23 }
 0x1c3   :  { %5967 = vmatpush.bf16.msrb.mxu3 %v7455_v46  ;;  %v7774_v46 = vld [vmem:[%s16446_s3 + $0x7c8] sm:$0xf]  ;;  %v8015_v62 = vor.u32 %v10283_v31, %v8014_v6  ;;  %v10175_v31 = vld [vmem:[%s16446_s3 + $0x654] sm:$0xf0] }
 0x1c4   :  { %5926 = vmatpush.bf16.msrb.mxu0 %v7055_v24  ;;  %v14051_v24 = vpop.f32.mrf.mxu3  ;;  %v7582_v6 = vld [vmem:[%s16446_s3 + $0x648] sm:$0xf] }
 0x1c5   :  { %5940 = vmatpush.bf16.msrb.mxu1 %v7183_v53  ;;  %v7647_v53 = vor.u32 %v10191_v58, %v7646_v18  ;;  %v7998_v18 = vld [vmem:[%s16446_s3 + $0x988] sm:$0xf]  ;;  %v10279_v58 = vld [vmem:[%s16446_s3 + $0x994] sm:$0xf0] }
 0x1c6   :  { %5954 = vmatpush.bf16.msrb.mxu2 %v7311_v28  ;;  %v7775_v28 = vor.u32 %v10223_v3, %v7774_v46  ;;  %v14115_v46 = vpop.f32.mrf.mxu1 }
 0x1c7   :  { %5968 = vmatpush.bf16.msrb.mxu3 %v7439_v25  ;;  %v7758_v25 = vld [vmem:[%s16446_s3 + $0x7a8] sm:$0xf] }
 0x1c8   :  { %5927 = vmatpush.bf16.msrb.mxu0 %v7039_v16  ;;  %v7631_v16 = vor.u32 %v10187_v30, %v7630_v40  ;;  %v7759_v47 = vor.u32 %v10219_v1, %v7758_v25  ;;  %v7854_v40 = vld [vmem:[%s16446_s3 + $0x868] sm:$0xf]  ;;  %v10243_v30 = vld [vmem:[%s16446_s3 + $0x874] sm:$0xf0]  ;;  %v7599_v1 = vor.u32 %v10179_v52, %v7598_v14 }
 0x1c9   :  { %5941 = vmatpush.bf16.msrb.mxu1 %v7167_v57  ;;  %v7614_v57 = vld [vmem:[%s16446_s3 + $0x688] sm:$0xf]  ;;  %v7855_v54 = vor.u32 %v10243_v30, %v7854_v40 }
 0x1ca   :  { %5955 = vmatpush.bf16.msrb.mxu2 %v7295_v55  ;;  %v10183_v55 = vld [vmem:[%s16446_s3 + $0x694] sm:$0xf0]  ;;  %v7982_v25 = vld [vmem:[%s16446_s3 + $0x968] sm:$0xf] }
 0x1cb   :  { %5969 = vmatpush.bf16.msrb.mxu3 %v7423_v27  ;;  %5928 = vmatmul.bf16.vlgmr.msrb.gmra.mxu0 %v11174_v42  ;;  %v10215_v27 = vld [vmem:[%s16446_s3 + $0x794] sm:$0xf0]  ;;  %v7950_v30 = vld [vmem:[%s16446_s3 + $0x928] sm:$0xf] }
 0x1cc   :  { %5976 = vmatpush.bf16.msra.mxu0 %v7663_v26  ;;  %5942 = vmatmul.bf16.vlgmr.msrb.gmra.mxu1 %v11217_v8  ;;  %v7870_v26 = vld [vmem:[%s16446_s3 + $0x888] sm:$0xf]  ;;  %v14117_v3 = vpop.f32.mrf.mxu3  ;;  %v7743_v63 = vor.u32 %v10215_v27, %v7742_v61  ;;  %v14161_v61 = vpop.f32.mrf.mxu2  ;;  %v10271_v27 = vld [vmem:[%s16446_s3 + $0x954] sm:$0xf0] }
 0x1cd   :  { %5990 = vmatpush.bf16.msra.mxu1 %v7791_v15  ;;  %5956 = vmatmul.bf16.vlgmr.msrb.gmra.mxu2 %v11353_v35  ;;  %v10247_v15 = vld [vmem:[%s16446_s3 + $0x894] sm:$0xf0] }
 0x1ce   :  { %6004 = vmatpush.bf16.msra.mxu2 %v7919_v59  ;;  %5970 = vmatmul.bf16.vlgmr.msrb.gmra.mxu3 %v11366_v41  ;;  %v14107_v59 = vpop.f32.mrf.mxu0  ;;  %v7871_v11 = vor.u32 %v10247_v15, %v7870_v26  ;;  %v7583_v26 = vor.u32 %v10175_v31, %v7582_v6  ;;  %v14180_v14 = vpop.f32.mrf.mxu1  ;;  %v10167_v6 = vld [vmem:[%s16446_s3 + $0x614] sm:$0xf0] }
 0x1cf   :  { %6018 = vmatpush.bf16.msra.mxu3 %v8047_v4  ;;  %v7615_v4 = vor.u32 %v10183_v55, %v7614_v57  ;;  %v7838_v57 = vld [vmem:[%s16446_s3 + $0x848] sm:$0xf]  ;;  %v10239_v55 = vld [vmem:[%s16446_s3 + $0x854] sm:$0xf0] }
 0x1d0   :  { %5977 = vmatpush.bf16.msra.mxu0 %v7647_v53  ;;  %v7726_v53 = vld [vmem:[%s16446_s3 + $0x768] sm:$0xf] }
 0x1d1   :  { %5991 = vmatpush.bf16.msra.mxu1 %v7775_v28  ;;  %v7999_v28 = vor.u32 %v10279_v58, %v7998_v18  ;;  %v7839_v58 = vor.u32 %v10239_v55, %v7838_v57  ;;  %v7806_v57 = vld [vmem:[%s16446_s3 + $0x808] sm:$0xf] }
 0x1d2   :  { %6005 = vmatpush.bf16.msra.mxu2 %v7903_v10  ;;  %v10211_v10 = vld [vmem:[%s16446_s3 + $0x774] sm:$0xf0] }
 0x1d3   :  { %6019 = vmatpush.bf16.msra.mxu3 %v8031_v39  ;;  %v10275_v39 = vld [vmem:[%s16446_s3 + $0x974] sm:$0xf0]  ;;  %v7727_v23 = vor.u32 %v10211_v10, %v7726_v53 }
 0x1d4   :  { %5978 = vmatpush.bf16.msra.mxu0 %v7631_v16  ;;  %v7710_v16 = vld [vmem:[%s16446_s3 + $0x748] sm:$0xf]  ;;  %v10203_v53 = vld [vmem:[%s16446_s3 + $0x734] sm:$0xf0]  ;;  %v14191_v40 = vpop.f32.mrf.mxu3 }
 0x1d5   :  { %5992 = vmatpush.bf16.msra.mxu1 %v7759_v47  ;;  %v7983_v47 = vor.u32 %v10275_v39, %v7982_v25  ;;  %v10235_v10 = vld [vmem:[%s16446_s3 + $0x834] sm:$0xf0]  ;;  %v14202_v39 = vld [vmem:[%s16450_s4] sm:$0xf] }
 0x1d6   :  { %6006 = vmatpush.bf16.msra.mxu2 %v7887_v13  ;;  %v10207_v13 = vld [vmem:[%s16446_s3 + $0x754] sm:$0xf0]  ;;  %v14169_v15 = vpop.f32.mrf.mxu0 }
 0x1d7   :  { %6020 = vmatpush.bf16.msra.mxu3 %v8015_v62  ;;  %v7966_v62 = vld [vmem:[%s16446_s3 + $0x948] sm:$0xf]  ;;  %v7711_v18 = vor.u32 %v10207_v13, %v7710_v16  ;;  %v10267_v25 = vld [vmem:[%s16446_s3 + $0x934] sm:$0xf0] }
 0x1d8   :  { %5979 = vmatpush.bf16.msra.mxu0 %v7615_v4  ;;  %v7566_v4 = vld [vmem:[%s16446_s3 + $0x628] sm:$0xf]  ;;  %v7967_v52 = vor.u32 %v10271_v27, %v7966_v62  ;;  %v10199_v13 = vld [vmem:[%s16446_s3 + $0x714] sm:$0xf0]  ;;  %v7951_v55 = vor.u32 %v10267_v25, %v7950_v30 }
 0x1d9   :  { %5993 = vmatpush.bf16.msra.mxu1 %v7743_v63  ;;  %v10171_v63 = vld [vmem:[%s16446_s3 + $0x634] sm:$0xf0]  ;;  %v7934_v27 = vld [vmem:[%s16446_s3 + $0x908] sm:$0xf] }
 0x1da   :  { %6007 = vmatpush.bf16.msra.mxu2 %v7871_v11  ;;  %v7694_v11 = vld [vmem:[%s16446_s3 + $0x728] sm:$0xf]  ;;  %v10231_v62 = vld [vmem:[%s16446_s3 + $0x814] sm:$0xf0] }
 0x1db   :  { %6021 = vmatpush.bf16.msra.mxu3 %v7999_v28  ;;  %v7822_v28 = vld [vmem:[%s16446_s3 + $0x828] sm:$0xf]  ;;  %v7695_v31 = vor.u32 %v10203_v53, %v7694_v11  ;;  %v7807_v25 = vor.u32 %v10231_v62, %v7806_v57 }
 0x1dc   :  { %5980 = vmatpush.bf16.msra.mxu0 %v7599_v1  ;;  %v16457_v1 = vperm.slane %v14202_v39, 1  ;;  %v7823_v16 = vor.u32 %v10235_v10, %v7822_v28  ;;  %v8430_v53 = vld [vmem:[%s16446_s3 + $0xce8] sm:$0xf]  ;;  %v10387_v28 = vld [vmem:[%s16446_s3 + $0xcf4] sm:$0xf0]  ;;  %v14250_v10 = vpop.f32.mrf.mxu2 }
 0x1dd   :  { %5994 = vmatpush.bf16.msra.mxu1 %v7727_v23  ;;  %v7567_v23 = vor.u32 %v10171_v63, %v7566_v4  ;;  %v8302_v4 = vld [vmem:[%s16446_s3 + $0xbe8] sm:$0xf]  ;;  %v8431_v35 = vor.u32 %v10387_v28, %v8430_v53 }
 0x1de   :  { %6008 = vmatpush.bf16.msra.mxu2 %v7855_v54  ;;  %v7550_v54 = vld [vmem:[%s16446_s3 + $0x608] sm:$0xf]  ;;  %v5552_v63 = vadd.f32 %v13964_v32, %v16457_v1  ;;  %v14252_v30 = vpop.f32.mrf.mxu0 }
 0x1df   :  { %6022 = vmatpush.bf16.msra.mxu3 %v7983_v47  ;;  %v7678_v47 = vld [vmem:[%s16446_s3 + $0x708] sm:$0xf]  ;;  %v7551_v11 = vor.u32 %v10167_v6, %v7550_v54  ;;  %v10419_v54 = vld [vmem:[%s16446_s3 + $0xdf4] sm:$0xf0]  ;;  %v14260_v6 = vpop.f32.mrf.mxu1 }
 0x1e0   :  { %5981 = vmatpush.bf16.msra.mxu0 %v7583_v26  ;;  %v10263_v26 = vld [vmem:[%s16446_s3 + $0x914] sm:$0xf0]  ;;  %v7679_v32 = vor.u32 %v10199_v13, %v7678_v47  ;;  %v8286_v47 = vld [vmem:[%s16446_s3 + $0xbc8] sm:$0xf]  ;;  %v5566_v13 = vadd.f32 %v14023_v21, %v5552_v63 }
 0x1e1   :  { %5995 = vmatpush.bf16.msra.mxu1 %v7711_v18  ;;  %v8174_v18 = vld [vmem:[%s16446_s3 + $0xae8] sm:$0xf]  ;;  %v7935_v1 = vor.u32 %v10263_v26, %v7934_v27  ;;  %v10383_v27 = vld [vmem:[%s16446_s3 + $0xcd4] sm:$0xf0]  ;;  %v14281_v26 = vpop.f32.mrf.mxu3 }
 0x1e2   :  { %6009 = vmatpush.bf16.msra.mxu2 %v7839_v58  ;;  %v10323_v58 = vld [vmem:[%s16446_s3 + $0xaf4] sm:$0xf0]  ;;  %v8414_v62 = vld [vmem:[%s16446_s3 + $0xcc8] sm:$0xf] }
 0x1e3   :  { %6023 = vmatpush.bf16.msra.mxu3 %v7967_v52  ;;  %v10355_v52 = vld [vmem:[%s16446_s3 + $0xbf4] sm:$0xf0]  ;;  %v8175_v5 = vor.u32 %v10323_v58, %v8174_v18  ;;  %v8542_v21 = vld [vmem:[%s16446_s3 + $0xdc8] sm:$0xf]  ;;  %v8415_v63 = vor.u32 %v10383_v27, %v8414_v62 }
 0x1e4   :  { %5982 = vmatpush.bf16.msra.mxu0 %v7567_v23  ;;  %v8558_v23 = vld [vmem:[%s16446_s3 + $0xde8] sm:$0xf]  ;;  %v8303_v41 = vor.u32 %v10355_v52, %v8302_v4  ;;  %v10415_v18 = vld [vmem:[%s16446_s3 + $0xdd4] sm:$0xf0] }
 0x1e5   :  { %5996 = vmatpush.bf16.msra.mxu1 %v7695_v31  ;;  %v8158_v31 = vld [vmem:[%s16446_s3 + $0xac8] sm:$0xf]  ;;  %v8559_v57 = vor.u32 %v10419_v54, %v8558_v23  ;;  %v10315_v52 = vld [vmem:[%s16446_s3 + $0xab4] sm:$0xf0]  ;;  %v16472_v54 = vperm.slane %v14202_v39, 1 }
 0x1e6   :  { %6010 = vmatpush.bf16.msra.mxu2 %v7823_v16  ;;  %v10319_v16 = vld [vmem:[%s16446_s3 + $0xad4] sm:$0xf0]  ;;  %v8270_v53 = vld [vmem:[%s16446_s3 + $0xba8] sm:$0xf] }
 0x1e7   :  { %6024 = vmatpush.bf16.msra.mxu3 %v7951_v55  ;;  %v10351_v55 = vld [vmem:[%s16446_s3 + $0xbd4] sm:$0xf0]  ;;  %v8159_v58 = vor.u32 %v10319_v16, %v8158_v31  ;;  %v8398_v28 = vld [vmem:[%s16446_s3 + $0xca8] sm:$0xf]  ;;  %v5554_v31 = vadd.f32 %v14040_v60, %v16472_v54  ;;  %v14335_v27 = vpop.f32.mrf.mxu1 }
 0x1e8   :  { %5983 = vmatpush.bf16.msra.mxu0 %v7551_v11  ;;  %v8287_v4 = vor.u32 %v10351_v55, %v8286_v47  ;;  %v8142_v11 = vld [vmem:[%s16446_s3 + $0xaa8] sm:$0xf]  ;;  %v10411_v23 = vld [vmem:[%s16446_s3 + $0xdb4] sm:$0xf0]  ;;  %v14323_v47 = vpop.f32.mrf.mxu0 }
 0x1e9   :  { %5997 = vmatpush.bf16.msra.mxu1 %v7679_v32  ;;  %v10379_v32 = vld [vmem:[%s16446_s3 + $0xcb4] sm:$0xf0]  ;;  %v8143_v16 = vor.u32 %v10315_v52, %v8142_v11  ;;  %v8126_v55 = vld [vmem:[%s16446_s3 + $0xa88] sm:$0xf]  ;;  %v5568_v52 = vadd.f32 %v14087_v17, %v5554_v31 }
 0x1ea   :  { %6011 = vmatpush.bf16.msra.mxu2 %v7807_v25  ;;  %v14309_v25 = vpop.f32.mrf.mxu2  ;;  %v10311_v39 = vld [vmem:[%s16446_s3 + $0xa94] sm:$0xf0]  ;;  %v8254_v60 = vld [vmem:[%s16446_s3 + $0xb88] sm:$0xf] }
 0x1eb   :  { %6025 = vmatpush.bf16.msra.mxu3 %v7935_v1  ;;  %v5580_v1 = vadd.f32 %v14051_v24, %v5566_v13  ;;  %v8526_v24 = vld [vmem:[%s16446_s3 + $0xda8] sm:$0xf]  ;;  %v10407_v11 = vld [vmem:[%s16446_s3 + $0xd94] sm:$0xf0] }
 0x1ec   :  { %6032 = vmatpush.bf16.msrb.mxu0 %v8175_v5  ;;  %v16471_v5 = vld [vmem:[#allocation3_spill] sm:$0xff]  ;;  %5998 = vmatmul.bf16.vlgmr.msra.gmra.mxu1 %v11374_v45  ;;  %v10371_v31 = vld [vmem:[%s16446_s3 + $0xc74] sm:$0xf0] }
 0x1ed   :  { %6046 = vmatpush.bf16.msrb.mxu1 %v8303_v41  ;;  %5984 = vmatmul.bf16.vlgmr.msra.gmra.mxu0 %v16471_v5  ;;  %v10347_v41 = vld [vmem:[%s16446_s3 + $0xbb4] sm:$0xf0]  ;;  %v5594_v62 = vadd.f32 %v14107_v59, %v5580_v1  ;;  %v8510_v59 = vld [vmem:[%s16446_s3 + $0xd88] sm:$0xf] }
 0x1ee   :  { %6060 = vmatpush.bf16.msrb.mxu2 %v8431_v35  ;;  %v8543_v35 = vor.u32 %v10415_v18, %v8542_v21  ;;  %6026 = vmatmul.bf16.vlgmr.msra.gmra.mxu3 %v11612_v9  ;;  %v8271_v13 = vor.u32 %v10347_v41, %v8270_v53  ;;  %v8527_v21 = vor.u32 %v10411_v23, %v8526_v24  ;;  %v10343_v18 = vld [vmem:[%s16446_s3 + $0xb94] sm:$0xf0]  ;;  %v8110_v41 = vld [vmem:[%s16446_s3 + $0xa68] sm:$0xf] }
 0x1ef   :  { %6074 = vmatpush.bf16.msrb.mxu3 %v8559_v57  ;;  %6012 = vmatmul.bf16.vlgmr.msra.gmra.mxu2 %v11599_v0  ;;  %v8399_v57 = vor.u32 %v10379_v32, %v8398_v28  ;;  %v8127_v53 = vor.u32 %v10311_v39, %v8126_v55  ;;  %v8255_v1 = vor.u32 %v10343_v18, %v8254_v60  ;;  %v10307_v28 = vld [vmem:[%s16446_s3 + $0xa74] sm:$0xf0]  ;;  %v8238_v32 = vld [vmem:[%s16446_s3 + $0xb68] sm:$0xf] }
 0x1f0   :  { %6033 = vmatpush.bf16.msrb.mxu0 %v8159_v58  ;;  %v8382_v58 = vld [vmem:[%s16446_s3 + $0xc88] sm:$0xf]  ;;  %v5608_v17 = vadd.f32 %v14115_v46, %v5594_v62  ;;  %v8511_v24 = vor.u32 %v10407_v11, %v8510_v59  ;;  %v10339_v23 = vld [vmem:[%s16446_s3 + $0xb74] sm:$0xf0]  ;;  %v14383_v39 = vpop.f32.mrf.mxu0 }
 0x1f1   :  { %6047 = vmatpush.bf16.msrb.mxu1 %v8287_v4  ;;  %v10375_v4 = vld [vmem:[%s16446_s3 + $0xc94] sm:$0xf0]  ;;  %v8366_v54 = vld [vmem:[%s16446_s3 + $0xc68] sm:$0xf]  ;;  %v8239_v60 = vor.u32 %v10339_v23, %v8238_v32 }
 0x1f2   :  { %6061 = vmatpush.bf16.msrb.mxu2 %v8415_v63  ;;  %v14346_v63 = vpop.f32.mrf.mxu3  ;;  %v10403_v46 = vld [vmem:[%s16446_s3 + $0xd74] sm:$0xf0]  ;;  %v14381_v55 = vpop.f32.mrf.mxu2  ;;  %v8367_v62 = vor.u32 %v10371_v31, %v8366_v54 }
 0x1f3   :  { %6075 = vmatpush.bf16.msrb.mxu3 %v8543_v35  ;;  %v8383_v35 = vor.u32 %v10375_v4, %v8382_v58  ;;  %v10303_v18 = vld [vmem:[%s16446_s3 + $0xa54] sm:$0xf0]  ;;  %v5622_v58 = vadd.f32 %v14161_v61, %v5608_v17  ;;  %v14395_v4 = vpop.f32.mrf.mxu1  ;;  %v8478_v61 = vld [vmem:[%s16446_s3 + $0xd48] sm:$0xf] }
 0x1f4   :  { %6034 = vmatpush.bf16.msrb.mxu0 %v8143_v16  ;;  %v8494_v16 = vld [vmem:[%s16446_s3 + $0xd68] sm:$0xf]  ;;  %v10335_v11 = vld [vmem:[%s16446_s3 + $0xb54] sm:$0xf0] }
 0x1f5   :  { %6048 = vmatpush.bf16.msrb.mxu1 %v8271_v13  ;;  %v5582_v13 = vadd.f32 %v14117_v3, %v5568_v52  ;;  %v8222_v3 = vld [vmem:[%s16446_s3 + $0xb48] sm:$0xf]  ;;  %v8495_v59 = vor.u32 %v10403_v46, %v8494_v16  ;;  %v10299_v23 = vld [vmem:[%s16446_s3 + $0xa34] sm:$0xf0]  ;;  %v5636_v54 = vadd.f32 %v14191_v40, %v5622_v58 }
 0x1f6   :  { %6062 = vmatpush.bf16.msrb.mxu2 %v8399_v57  ;;  %v8111_v57 = vor.u32 %v10307_v28, %v8110_v41  ;;  %v8350_v52 = vld [vmem:[%s16446_s3 + $0xc48] sm:$0xf]  ;;  %v8223_v32 = vor.u32 %v10335_v11, %v8222_v3  ;;  %v10331_v16 = vld [vmem:[%s16446_s3 + $0xb34] sm:$0xf0] }
 0x1f7   :  { %6076 = vmatpush.bf16.msrb.mxu3 %v8527_v21  ;;  %v8094_v21 = vld [vmem:[%s16446_s3 + $0xa48] sm:$0xf]  ;;  %v10395_v40 = vld [vmem:[%s16446_s3 + $0xd34] sm:$0xf0] }
 0x1f8   :  { %6035 = vmatpush.bf16.msrb.mxu0 %v8127_v53  ;;  %v10367_v53 = vld [vmem:[%s16446_s3 + $0xc54] sm:$0xf0]  ;;  %v8095_v41 = vor.u32 %v10303_v18, %v8094_v21  ;;  %v8334_v46 = vld [vmem:[%s16446_s3 + $0xc28] sm:$0xf] }
 0x1f9   :  { %6049 = vmatpush.bf16.msrb.mxu1 %v8255_v1  ;;  %v10399_v1 = vld [vmem:[%s16446_s3 + $0xd54] sm:$0xf0]  ;;  %v8351_v17 = vor.u32 %v10367_v53, %v8350_v52  ;;  %v8062_v18 = vld [vmem:[%s16446_s3 + $0xa08] sm:$0xf] }
 0x1fa   :  { %6063 = vmatpush.bf16.msrb.mxu2 %v8383_v35  ;;  %v5596_v35 = vadd.f32 %v14169_v15, %v5582_v13  ;;  %v14413_v28 = vpop.f32.mrf.mxu3  ;;  %v8206_v15 = vld [vmem:[%s16446_s3 + $0xb28] sm:$0xf]  ;;  %v8479_v31 = vor.u32 %v10399_v1, %v8478_v61  ;;  %v10363_v13 = vld [vmem:[%s16446_s3 + $0xc34] sm:$0xf0]  ;;  %v14448_v58 = vpop.f32.mrf.mxu2 }
 0x1fb   :  { %6077 = vmatpush.bf16.msrb.mxu3 %v8511_v24  ;;  %v8078_v24 = vld [vmem:[%s16446_s3 + $0xa28] sm:$0xf]  ;;  %v10295_v3 = vld [vmem:[%s16446_s3 + $0xa14] sm:$0xf0]  ;;  %v8335_v11 = vor.u32 %v10363_v13, %v8334_v46 }
 0x1fc   :  { %6036 = vmatpush.bf16.msrb.mxu0 %v8111_v57  ;;  %v8462_v57 = vld [vmem:[%s16446_s3 + $0xd28] sm:$0xf]  ;;  %v8079_v21 = vor.u32 %v10299_v23, %v8078_v24  ;;  %v10359_v1 = vld [vmem:[%s16446_s3 + $0xc14] sm:$0xf0] }
 0x1fd   :  { %6050 = vmatpush.bf16.msrb.mxu1 %v8239_v60  ;;  %v5610_v60 = vadd.f32 %v14180_v14, %v5596_v35  ;;  %v8190_v14 = vld [vmem:[%s16446_s3 + $0xb08] sm:$0xf]  ;;  %v8463_v61 = vor.u32 %v10395_v40, %v8462_v57  ;;  %v10515_v46 = vld [vmem:[%s16446_s3 + $0x10f4] sm:$0xf0] }
 0x1fe   :  { %6064 = vmatpush.bf16.msrb.mxu2 %v8367_v62  ;;  %v5650_v62 = vadd.f32 %v14252_v30, %v5636_v54  ;;  %v10327_v30 = vld [vmem:[%s16446_s3 + $0xb14] sm:$0xf0]  ;;  %v8318_v52 = vld [vmem:[%s16446_s3 + $0xc08] sm:$0xf]  ;;  %v8063_v54 = vor.u32 %v10295_v3, %v8062_v18 }
 0x1ff   :  { %6078 = vmatpush.bf16.msrb.mxu3 %v8495_v59  ;;  %v8207_v59 = vor.u32 %v10331_v16, %v8206_v15  ;;  %v5624_v53 = vadd.f32 %v14250_v10, %v5610_v60  ;;  %v8446_v35 = vld [vmem:[%s16446_s3 + $0xd08] sm:$0xf]  ;;  %v14481_v15 = vpop.f32.mrf.mxu1  ;;  %v8319_v57 = vor.u32 %v10359_v1, %v8318_v52  ;;  %v10547_v60 = vld [vmem:[%s16446_s3 + $0x11f4] sm:$0xf0] }
 0x200   :  { %6037 = vmatpush.bf16.msrb.mxu0 %v8095_v41  ;;  %v10391_v41 = vld [vmem:[%s16446_s3 + $0xd14] sm:$0xf0]  ;;  %v8686_v10 = vld [vmem:[%s16446_s3 + $0xee8] sm:$0xf]  ;;  %v5664_v23 = vadd.f32 %v14260_v6, %v5650_v62  ;;  %v8191_v6 = vor.u32 %v10327_v30, %v8190_v14 }
 0x201   :  { %6051 = vmatpush.bf16.msrb.mxu1 %v8223_v32  ;;  %v14469_v32 = vpop.f32.mrf.mxu0  ;;  %v8814_v24 = vld [vmem:[%s16446_s3 + $0xfe8] sm:$0xf]  ;;  %v5638_v62 = vadd.f32 %v14281_v26, %v5624_v53  ;;  %v8447_v18 = vor.u32 %v10391_v41, %v8446_v35  ;;  %v10447_v14 = vld [vmem:[%s16446_s3 + $0xed4] sm:$0xf0] }
 0x202   :  { %6065 = vmatpush.bf16.msrb.mxu2 %v8351_v17  ;;  %v10451_v17 = vld [vmem:[%s16446_s3 + $0xef4] sm:$0xf0]  ;;  %v8942_v16 = vld [vmem:[%s16446_s3 + $0x10e8] sm:$0xf]  ;;  %v14492_v13 = vpop.f32.mrf.mxu3 }
 0x203   :  { %6079 = vmatpush.bf16.msrb.mxu3 %v8479_v31  ;;  %v10483_v31 = vld [vmem:[%s16446_s3 + $0xff4] sm:$0xf0]  ;;  %v9070_v40 = vld [vmem:[%s16446_s3 + $0x11e8] sm:$0xf]  ;;  %v8687_v3 = vor.u32 %v10451_v17, %v8686_v10  ;;  %v5652_v26 = vadd.f32 %v14323_v47, %v5638_v62  ;;  %v14528_v10 = vpop.f32.mrf.mxu2 }
 0x204   :  { %6038 = vmatpush.bf16.msrb.mxu0 %v8079_v21  ;;  %v5678_v21 = vadd.f32 %v14309_v25, %v5664_v23  ;;  %v8815_v9 = vor.u32 %v10483_v31, %v8814_v24  ;;  %v8798_v30 = vld [vmem:[%s16446_s3 + $0xfc8] sm:$0xf]  ;;  %v9071_v25 = vor.u32 %v10547_v60, %v9070_v40  ;;  %v10479_v52 = vld [vmem:[%s16446_s3 + $0xfd4] sm:$0xf0] }
 0x205   :  { %6052 = vmatpush.bf16.msrb.mxu1 %v8207_v59  ;;  %v8943_v59 = vor.u32 %v10515_v46, %v8942_v16  ;;  %v8926_v53 = vld [vmem:[%s16446_s3 + $0x10c8] sm:$0xf]  ;;  %v10543_v1 = vld [vmem:[%s16446_s3 + $0x11d4] sm:$0xf0]  ;;  %v8799_v24 = vor.u32 %v10479_v52, %v8798_v30  ;;  %v5666_v16 = vadd.f32 %v14335_v27, %v5652_v26 }
 0x206   :  { %6066 = vmatpush.bf16.msrb.mxu2 %v8335_v11  ;;  %v8670_v11 = vld [vmem:[%s16446_s3 + $0xec8] sm:$0xf]  ;;  %v5692_v35 = vadd.f32 %v14346_v63, %v5678_v21  ;;  %v10443_v31 = vld [vmem:[%s16446_s3 + $0xeb4] sm:$0xf0] }
 0x207   :  { %6080 = vmatpush.bf16.msrb.mxu3 %v8463_v61  ;;  %v10511_v61 = vld [vmem:[%s16446_s3 + $0x10d4] sm:$0xf0]  ;;  %v9054_v47 = vld [vmem:[%s16446_s3 + $0x11c8] sm:$0xf]  ;;  %v8671_v41 = vor.u32 %v10447_v14, %v8670_v11  ;;  %v5680_v62 = vadd.f32 %v14381_v55, %v5666_v16 }
 0x208   :  { %6039 = vmatpush.bf16.msrb.mxu0 %v8063_v54  ;;  %v8927_v23 = vor.u32 %v10511_v61, %v8926_v53  ;;  %v8654_v54 = vld [vmem:[%s16446_s3 + $0xea8] sm:$0xf]  ;;  %v5706_v46 = vadd.f32 %v14383_v39, %v5692_v35  ;;  %v10507_v27 = vld [vmem:[%s16446_s3 + $0x10b4] sm:$0xf0] }
 0x209   :  { %6053 = vmatpush.bf16.msrb.mxu1 %v8191_v6  ;;  %v14530_v17 = vpop.f32.mrf.mxu0  ;;  %v8782_v63 = vld [vmem:[%s16446_s3 + $0xfa8] sm:$0xf]  ;;  %v9055_v6 = vor.u32 %v10543_v1, %v9054_v47  ;;  %v10539_v60 = vld [vmem:[%s16446_s3 + $0x11b4] sm:$0xf0]  ;;  %v8655_v21 = vor.u32 %v10443_v31, %v8654_v54  ;;  %v5694_v47 = vadd.f32 %v14413_v28, %v5680_v62 }
 0x20a   :  { %6067 = vmatpush.bf16.msrb.mxu2 %v8319_v57  ;;  %v10475_v57 = vld [vmem:[%s16446_s3 + $0xfb4] sm:$0xf0]  ;;  %v8910_v40 = vld [vmem:[%s16446_s3 + $0x10a8] sm:$0xf]  ;;  %v5720_v30 = vadd.f32 %v14395_v4, %v5706_v46 }
 0x20b   :  { %6081 = vmatpush.bf16.msrb.mxu3 %v8447_v18  ;;  %6040 = vmatmul.bf16.vlgmr.msrb.gmra.mxu0 %v11610_v7  ;;  %v9038_v39 = vld [vmem:[%s16446_s3 + $0x11a8] sm:$0xf]  ;;  %v14565_v18 = vpop.f32.mrf.mxu3  ;;  %v10439_v14 = vld [vmem:[%s16446_s3 + $0xe94] sm:$0xf0] }
 0x20c   :  { %6088 = vmatpush.bf16.msra.mxu0 %v8687_v3  ;;  %6054 = vmatmul.bf16.vlgmr.msrb.gmra.mxu1 %v11620_v12  ;;  %v8783_v3 = vor.u32 %v10475_v57, %v8782_v63  ;;  %v8638_v11 = vld [vmem:[%s16446_s3 + $0xe88] sm:$0xf]  ;;  %v9039_v26 = vor.u32 %v10539_v60, %v9038_v39  ;;  %v10503_v53 = vld [vmem:[%s16446_s3 + $0x1094] sm:$0xf0]  ;;  %v5734_v1 = vadd.f32 %v14448_v58, %v5720_v30 }
 0x20d   :  { %6102 = vmatpush.bf16.msra.mxu1 %v8815_v9  ;;  %v14543_v9 = vpop.f32.mrf.mxu1  ;;  %6068 = vmatmul.bf16.vlgmr.msrb.gmra.mxu2 %v11829_v43  ;;  %v8766_v55 = vld [vmem:[%s16446_s3 + $0xf88] sm:$0xf]  ;;  %v10535_v4 = vld [vmem:[%s16446_s3 + $0x1194] sm:$0xf0]  ;;  %v8639_v35 = vor.u32 %v10439_v14, %v8638_v11  ;;  %v5708_v58 = vadd.f32 %v14469_v32, %v5694_v47 }
 0x20e   :  { %6116 = vmatpush.bf16.msra.mxu2 %v8943_v59  ;;  %6082 = vmatmul.bf16.vlgmr.msrb.gmra.mxu3 %v11842_v49  ;;  %v8911_v59 = vor.u32 %v10507_v27, %v8910_v40  ;;  %v8894_v52 = vld [vmem:[%s16446_s3 + $0x1088] sm:$0xf]  ;;  %v10435_v31 = vld [vmem:[%s16446_s3 + $0xe74] sm:$0xf0]  ;;  %v5748_v27 = vadd.f32 %v14492_v13, %v5734_v1 }
 0x20f   :  { %6130 = vmatpush.bf16.msra.mxu3 %v9071_v25  ;;  %v10471_v25 = vld [vmem:[%s16446_s3 + $0xf94] sm:$0xf0]  ;;  %v9022_v61 = vld [vmem:[%s16446_s3 + $0x1188] sm:$0xf]  ;;  %v5722_v14 = vadd.f32 %v14481_v15, %v5708_v58 }
 0x210   :  { %6089 = vmatpush.bf16.msra.mxu0 %v8671_v41  ;;  %v5789_v41 = vpop.f32.mrf.mxu2  ;;  %v8622_v54 = vld [vmem:[%s16446_s3 + $0xe68] sm:$0xf]  ;;  %v9023_v63 = vor.u32 %v10535_v4, %v9022_v61  ;;  %v10467_v16 = vld [vmem:[%s16446_s3 + $0xf74] sm:$0xf0] }
 0x211   :  { %6103 = vmatpush.bf16.msra.mxu1 %v8799_v24  ;;  %v8767_v24 = vor.u32 %v10471_v25, %v8766_v55  ;;  %v8750_v28 = vld [vmem:[%s16446_s3 + $0xf68] sm:$0xf]  ;;  %v5763_v57 = vpop.f32.mrf.mxu0  ;;  %v10531_v32 = vld [vmem:[%s16446_s3 + $0x1174] sm:$0xf0]  ;;  %v8623_v60 = vor.u32 %v10435_v31, %v8622_v54  ;;  %v5762_v55 = vadd.f32 %v14530_v17, %v5748_v27 }
 0x212   :  { %6117 = vmatpush.bf16.msra.mxu2 %v8927_v23  ;;  %v8895_v23 = vor.u32 %v10503_v53, %v8894_v52  ;;  %v8878_v46 = vld [vmem:[%s16446_s3 + $0x1068] sm:$0xf]  ;;  %v10431_v11 = vld [vmem:[%s16446_s3 + $0xe54] sm:$0xf0]  ;;  %v5736_v53 = vadd.f32 %v14528_v10, %v5722_v14 }
 0x213   :  { %6131 = vmatpush.bf16.msra.mxu3 %v9055_v6  ;;  %v10499_v6 = vld [vmem:[%s16446_s3 + $0x1074] sm:$0xf0]  ;;  %v9006_v40 = vld [vmem:[%s16446_s3 + $0x1168] sm:$0xf]  ;;  %v5803_v62 = vpop.f32.mrf.mxu3  ;;  %v5776_v10 = vadd.f32 %v14543_v9, %v5762_v55 }
 0x214   :  { %6090 = vmatpush.bf16.msra.mxu0 %v8655_v21  ;;  %v8751_v21 = vor.u32 %v10467_v16, %v8750_v28  ;;  %v8734_v13 = vld [vmem:[%s16446_s3 + $0xf48] sm:$0xf]  ;;  %v9007_v30 = vor.u32 %v10531_v32, %v9006_v40  ;;  %v10495_v52 = vld [vmem:[%s16446_s3 + $0x1054] sm:$0xf0] }
 0x215   :  { %6104 = vmatpush.bf16.msra.mxu1 %v8783_v3  ;;  %v14620_v39 = vpop.f32.mrf.mxu1  ;;  %v8879_v3 = vor.u32 %v10499_v6, %v8878_v46  ;;  %v8862_v25 = vld [vmem:[%s16446_s3 + $0x1048] sm:$0xf]  ;;  %v10527_v17 = vld [vmem:[%s16446_s3 + $0x1154] sm:$0xf0]  ;;  %v5750_v46 = vadd.f32 %v14565_v18, %v5736_v53  ;;  %v5790_v6 = vadd.f32 %v5789_v41, %v5776_v10 }
 0x216   :  { %6118 = vmatpush.bf16.msra.mxu2 %v8911_v59  ;;  %v8606_v59 = vld [vmem:[%s16446_s3 + $0xe48] sm:$0xf]  ;;  %v8863_v47 = vor.u32 %v10495_v52, %v8862_v25  ;;  %v10459_v54 = vld [vmem:[%s16446_s3 + $0xf34] sm:$0xf0] }
 0x217   :  { %6132 = vmatpush.bf16.msra.mxu3 %v9039_v26  ;;  %v10463_v26 = vld [vmem:[%s16446_s3 + $0xf54] sm:$0xf0]  ;;  %v8990_v15 = vld [vmem:[%s16446_s3 + $0x1148] sm:$0xf]  ;;  %v8607_v61 = vor.u32 %v10431_v11, %v8606_v59  ;;  %v5764_v11 = vadd.f32 %v5763_v57, %v5750_v46 }
 0x218   :  { %6091 = vmatpush.bf16.msra.mxu0 %v8639_v35  ;;  %v8735_v4 = vor.u32 %v10463_v26, %v8734_v13  ;;  %v8590_v1 = vld [vmem:[%s16446_s3 + $0xe28] sm:$0xf]  ;;  %v10427_v35 = vld [vmem:[%s16446_s3 + $0xe34] sm:$0xf0]  ;;  %v5791_v58 = vpop.f32.mrf.mxu2 }
 0x219   :  { %6105 = vmatpush.bf16.msra.mxu1 %v8767_v24  ;;  %v8718_v24 = vld [vmem:[%s16446_s3 + $0xf28] sm:$0xf]  ;;  %v10491_v28 = vld [vmem:[%s16446_s3 + $0x1034] sm:$0xf0]  ;;  %v8591_v32 = vor.u32 %v10427_v35, %v8590_v1 }
 0x21a   :  { %6119 = vmatpush.bf16.msra.mxu2 %v8895_v23  ;;  %v8991_v23 = vor.u32 %v10527_v17, %v8990_v15  ;;  %v8846_v31 = vld [vmem:[%s16446_s3 + $0x1028] sm:$0xf]  ;;  %v10523_v16 = vld [vmem:[%s16446_s3 + $0x1134] sm:$0xf0]  ;;  %v5804_v15 = vadd.f32 %v5803_v62, %v5790_v6 }
 0x21b   :  { %6133 = vmatpush.bf16.msra.mxu3 %v9023_v63  ;;  %v5817_v63 = vpop.f32.mrf.mxu0  ;;  %v8974_v9 = vld [vmem:[%s16446_s3 + $0x1128] sm:$0xf]  ;;  %v10455_v41 = vld [vmem:[%s16446_s3 + $0xf14] sm:$0xf0]  ;;  %v5805_v26 = vpop.f32.mrf.mxu3 }
 0x21c   :  { %6092 = vmatpush.bf16.msra.mxu0 %v8623_v60  ;;  %v8574_v27 = vld [vmem:[%s16446_s3 + $0xe08] sm:$0xf]  ;;  %v10423_v60 = vld [vmem:[%s16446_s3 + $0xe14] sm:$0xf0]  ;;  %v8975_v13 = vor.u32 %v10523_v16, %v8974_v9  ;;  %v5818_v10 = vadd.f32 %v5817_v63, %v5804_v15 }
 0x21d   :  { %6106 = vmatpush.bf16.msra.mxu1 %v8751_v21  ;;  %v5831_v40 = vpop.f32.mrf.mxu1  ;;  %v8719_v21 = vor.u32 %v10459_v54, %v8718_v24  ;;  %v8702_v18 = vld [vmem:[%s16446_s3 + $0xf08] sm:$0xf]  ;;  %v10487_v14 = vld [vmem:[%s16446_s3 + $0x1014] sm:$0xf0]  ;;  %v8575_v17 = vor.u32 %v10423_v60, %v8574_v27  ;;  %v5778_v24 = vadd.f32 %v14620_v39, %v5764_v11 }
 0x21e   :  { %6120 = vmatpush.bf16.msra.mxu2 %v8879_v3  ;;  %v8847_v3 = vor.u32 %v10491_v28, %v8846_v31  ;;  %v8830_v59 = vld [vmem:[%s16446_s3 + $0x1008] sm:$0xf]  ;;  %v10579_v57 = vld [vmem:[%s16446_s3 + $0x12f4] sm:$0xf0] }
 0x21f   :  { %6134 = vmatpush.bf16.msra.mxu3 %v9007_v30  ;;  %v8958_v55 = vld [vmem:[%s16446_s3 + $0x1108] sm:$0xf]  ;;  %v10519_v30 = vld [vmem:[%s16446_s3 + $0x1114] sm:$0xf0]  ;;  %v8831_v1 = vor.u32 %v10487_v14, %v8830_v59  ;;  %v5792_v39 = vadd.f32 %v5791_v58, %v5778_v24 }
 0x220   :  { %6093 = vmatpush.bf16.msra.mxu0 %v8607_v61  ;;  %v9198_v25 = vld [vmem:[%s16446_s3 + $0x12e8] sm:$0xf]  ;;  %v10611_v53 = vld [vmem:[%s16446_s3 + $0x13f4] sm:$0xf0]  ;;  %v5845_v31 = vpop.f32.mrf.mxu2 }
 0x221   :  { %6107 = vmatpush.bf16.msra.mxu1 %v8735_v4  ;;  %v9326_v52 = vld [vmem:[%s16446_s3 + $0x13e8] sm:$0xf]  ;;  %v10643_v4 = vld [vmem:[%s16446_s3 + $0x14f4] sm:$0xf0]  ;;  %v9199_v54 = vor.u32 %v10579_v57, %v9198_v25  ;;  %v5806_v57 = vadd.f32 %v5805_v26, %v5792_v39 }
 0x222   :  { %6121 = vmatpush.bf16.msra.mxu2 %v8863_v47  ;;  %v9454_v61 = vld [vmem:[%s16446_s3 + $0x14e8] sm:$0xf]  ;;  %v8703_v47 = vor.u32 %v10455_v41, %v8702_v18  ;;  %v10675_v35 = vld [vmem:[%s16446_s3 + $0x15f4] sm:$0xf0]  ;;  %v9327_v28 = vor.u32 %v10611_v53, %v9326_v52  ;;  %v6681_v18 = vmul.f32 %v13522_v22, %v13522_v22  ;;  %v5832_v41 = vadd.f32 %v5831_v40, %v5818_v10 }
 0x223   :  { %6135 = vmatpush.bf16.msra.mxu3 %v8991_v23  ;;  %v9582_v62 = vld [vmem:[%s16446_s3 + $0x15e8] sm:$0xf]  ;;  %v8959_v23 = vor.u32 %v10519_v30, %v8958_v55  ;;  %v9455_v9 = vor.u32 %v10643_v4, %v9454_v61  ;;  %v10575_v46 = vld [vmem:[%s16446_s3 + $0x12d4] sm:$0xf0]  ;;  %v6633_v4 = vrot.slane %v13522_v22, 4 }
 0x224   :  { %6094 = vmatpush.bf16.msra.mxu0 %v8591_v32  ;;  %v9182_v16 = vld [vmem:[%s16446_s3 + $0x12c8] sm:$0xf]  ;;  %v9583_v63 = vor.u32 %v10675_v35, %v9582_v62  ;;  %v10607_v32 = vld [vmem:[%s16446_s3 + $0x13d4] sm:$0xf0]  ;;  %v5846_v52 = vadd.f32 %v5845_v31, %v5832_v41 }
 0x225   :  { %6108 = vmatpush.bf16.msra.mxu1 %v8719_v21  ;;  %v9310_v6 = vld [vmem:[%s16446_s3 + $0x13c8] sm:$0xf]  ;;  %v10639_v60 = vld [vmem:[%s16446_s3 + $0x14d4] sm:$0xf0]  ;;  %v5819_v21 = vpop.f32.mrf.mxu0  ;;  %v5833_v59 = vpop.f32.mrf.mxu1  ;;  %v9183_v11 = vor.u32 %v10575_v46, %v9182_v16  ;;  %v6634_v39 = vadd.f32 %v6633_v4, %v13522_v22 }
 0x226   :  { %6122 = vmatpush.bf16.msra.mxu2 %v8847_v3  ;;  %v9438_v27 = vld [vmem:[%s16446_s3 + $0x14c8] sm:$0xf]  ;;  %v10671_v3 = vld [vmem:[%s16446_s3 + $0x15d4] sm:$0xf0]  ;;  %v9311_v14 = vor.u32 %v10607_v32, %v9310_v6  ;;  %v5820_v62 = vadd.f32 %v5819_v21, %v5806_v57 }
 0x227   :  { %6136 = vmatpush.bf16.msra.mxu3 %v8975_v13  ;;  %v9566_v58 = vld [vmem:[%s16446_s3 + $0x15c8] sm:$0xf]  ;;  %v5859_v13 = vpop.f32.mrf.mxu3  ;;  %v9439_v55 = vor.u32 %v10639_v60, %v9438_v27  ;;  %v10571_v25 = vld [vmem:[%s16446_s3 + $0x12b4] sm:$0xf0] }
 0x228   :  { %6095 = vmatpush.bf16.msra.mxu0 %v8575_v17  ;;  %v9166_v30 = vld [vmem:[%s16446_s3 + $0x12a8] sm:$0xf]  ;;  %v9567_v15 = vor.u32 %v10671_v3, %v9566_v58  ;;  %v10603_v17 = vld [vmem:[%s16446_s3 + $0x13b4] sm:$0xf0]  ;;  %v5834_v58 = vadd.f32 %v5833_v59, %v5820_v62 }
 0x229   :  { %6109 = vmatpush.bf16.msra.mxu1 %v8703_v47  ;;  %v9294_v40 = vld [vmem:[%s16446_s3 + $0x13a8] sm:$0xf]  ;;  %v10635_v61 = vld [vmem:[%s16446_s3 + $0x14b4] sm:$0xf0]  ;;  %v9167_v35 = vor.u32 %v10571_v25, %v9166_v30 }
 0x22a   :  { %6123 = vmatpush.bf16.msra.mxu2 %v8831_v1  ;;  %v9422_v53 = vld [vmem:[%s16446_s3 + $0x14a8] sm:$0xf]  ;;  %v10667_v47 = vld [vmem:[%s16446_s3 + $0x15b4] sm:$0xf0]  ;;  %v6690_v1 = vrot.slane %v6681_v18, 4  ;;  %v9295_v24 = vor.u32 %v10603_v17, %v9294_v40 }
 0x22b   :  { %6137 = vmatpush.bf16.msra.mxu3 %v8959_v23  ;;  %6096 = vmatmul.bf16.vlgmr.msra.gmra.mxu0 %v11840_v48  ;;  %v9550_v26 = vld [vmem:[%s16446_s3 + $0x15a8] sm:$0xf]  ;;  %v9423_v10 = vor.u32 %v10635_v61, %v9422_v53  ;;  %v10599_v16 = vld [vmem:[%s16446_s3 + $0x1394] sm:$0xf0] }
 0x22c   :  { %6144 = vmatpush.bf16.msrb.mxu0 %v9199_v54  ;;  %6110 = vmatmul.bf16.vlgmr.msra.gmra.mxu1 %v11850_v51  ;;  %v9150_v23 = vld [vmem:[%s16446_s3 + $0x1288] sm:$0xf]  ;;  %v10567_v54 = vld [vmem:[%s16446_s3 + $0x1294] sm:$0xf0]  ;;  %v6691_v21 = vadd.f32 %v6690_v1, %v6681_v18 }
 0x22d   :  { %6158 = vmatpush.bf16.msrb.mxu1 %v9327_v28  ;;  %6124 = vmatmul.bf16.vlgmr.msra.gmra.mxu2 %v12075_v29  ;;  %v9278_v31 = vld [vmem:[%s16446_s3 + $0x1388] sm:$0xf]  ;;  %v5860_v28 = vadd.f32 %v5859_v13, %v5846_v52  ;;  %v10631_v6 = vld [vmem:[%s16446_s3 + $0x1494] sm:$0xf0]  ;;  %v5873_v32 = vpop.f32.mrf.mxu0  ;;  %v9151_v41 = vor.u32 %v10567_v54, %v9150_v23 }
 0x22e   :  { %6172 = vmatpush.bf16.msrb.mxu2 %v9455_v9  ;;  %6138 = vmatmul.bf16.vlgmr.msra.gmra.mxu3 %v12088_v37  ;;  %v9551_v9 = vor.u32 %v10667_v47, %v9550_v26  ;;  %v9406_v46 = vld [vmem:[%s16446_s3 + $0x1488] sm:$0xf]  ;;  %v10663_v60 = vld [vmem:[%s16446_s3 + $0x1594] sm:$0xf0]  ;;  %v9279_v13 = vor.u32 %v10599_v16, %v9278_v31  ;;  %v6692_v4 = vrot.slane %v6691_v21, 2 }
 0x22f   :  { %6186 = vmatpush.bf16.msrb.mxu3 %v9583_v63  ;;  %v5847_v63 = vpop.f32.mrf.mxu2  ;;  %v9534_v27 = vld [vmem:[%s16446_s3 + $0x1588] sm:$0xf]  ;;  %v5874_v3 = vadd.f32 %v5873_v32, %v5860_v28  ;;  %v9407_v22 = vor.u32 %v10631_v6, %v9406_v46  ;;  %v10595_v40 = vld [vmem:[%s16446_s3 + $0x1374] sm:$0xf0]  ;;  %v5861_v17 = vpop.f32.mrf.mxu3 }
 0x230   :  { %6145 = vmatpush.bf16.msrb.mxu0 %v9183_v11  ;;  %v5887_v11 = vpop.f32.mrf.mxu1  ;;  %v9262_v18 = vld [vmem:[%s16446_s3 + $0x1368] sm:$0xf]  ;;  %v5848_v59 = vadd.f32 %v5847_v63, %v5834_v58  ;;  %v9535_v30 = vor.u32 %v10663_v60, %v9534_v27  ;;  %v10627_v52 = vld [vmem:[%s16446_s3 + $0x1474] sm:$0xf0] }
 0x231   :  { %6159 = vmatpush.bf16.msrb.mxu1 %v9311_v14  ;;  %v9134_v14 = vld [vmem:[%s16446_s3 + $0x1268] sm:$0xf]  ;;  %v5888_v25 = vadd.f32 %v5887_v11, %v5874_v3  ;;  %v10659_v61 = vld [vmem:[%s16446_s3 + $0x1574] sm:$0xf0]  ;;  %v14857_v3 = vadd.f32 %v6692_v4, %v6691_v21 }
 0x232   :  { %6173 = vmatpush.bf16.msrb.mxu2 %v9439_v55  ;;  %v10563_v55 = vld [vmem:[%s16446_s3 + $0x1274] sm:$0xf0]  ;;  %v9390_v57 = vld [vmem:[%s16446_s3 + $0x1468] sm:$0xf]  ;;  %v5862_v31 = vadd.f32 %v5861_v17, %v5848_v59 }
 0x233   :  { %6187 = vmatpush.bf16.msrb.mxu3 %v9567_v15  ;;  %v6635_v15 = vrot.slane %v6634_v39, 2  ;;  %v9518_v53 = vld [vmem:[%s16446_s3 + $0x1568] sm:$0xf]  ;;  %6593 = vst [vmem:[%s16453_s5 + $0x8] sm:$0xff] %v5888_v25  ;;  %v6614_v26 = vsel %vm6607_vm1, %v5888_v25, 0.0  ;;  %v9135_v47 = vor.u32 %v10563_v55, %v9134_v14 }
 0x234   :  { %6146 = vmatpush.bf16.msrb.mxu0 %v9167_v35  ;;  %v9118_v1 = vld [vmem:[%s16446_s3 + $0x1248] sm:$0xf]  ;;  %v6640_v62 = vrot.slane %v6614_v26, 4  ;;  %v6682_v35 = vmul.f32 %v6614_v26, %v6614_v26  ;;  %v10559_v23 = vld [vmem:[%s16446_s3 + $0x1254] sm:$0xf0]  ;;  %v9519_v28 = vor.u32 %v10659_v61, %v9518_v53 }
 0x235   :  { %6160 = vmatpush.bf16.msrb.mxu1 %v9295_v24  ;;  %v9263_v24 = vor.u32 %v10595_v40, %v9262_v18  ;;  %v9246_v54 = vld [vmem:[%s16446_s3 + $0x1348] sm:$0xf]  ;;  %v10623_v46 = vld [vmem:[%s16446_s3 + $0x1454] sm:$0xf0]  ;;  %v6636_v6 = vadd.f32 %v6635_v15, %v6634_v39  ;;  %v5875_v27 = vpop.f32.mrf.mxu0  ;;  %v9119_v11 = vor.u32 %v10559_v23, %v9118_v1  ;;  %v6694_v1 = vrot.slane %v14857_v3, 1 }
 0x236   :  { %6174 = vmatpush.bf16.msrb.mxu2 %v9423_v10  ;;  %v9391_v10 = vor.u32 %v10627_v52, %v9390_v57  ;;  %v9374_v16 = vld [vmem:[%s16446_s3 + $0x1448] sm:$0xf]  ;;  %v6641_v63 = vadd.f32 %v6640_v62, %v6614_v26  ;;  %v6697_v32 = vrot.slane %v6682_v35, 4  ;;  %v10655_v58 = vld [vmem:[%s16446_s3 + $0x1554] sm:$0xf0] }
 0x237   :  { %6188 = vmatpush.bf16.msrb.mxu3 %v9551_v9  ;;  %v10591_v9 = vld [vmem:[%s16446_s3 + $0x1354] sm:$0xf0]  ;;  %v9502_v60 = vld [vmem:[%s16446_s3 + $0x1548] sm:$0xf]  ;;  %v9375_v59 = vor.u32 %v10623_v46, %v9374_v16  ;;  %v6637_v53 = vrot.slane %v6636_v6, 1 }
 0x238   :  { %6147 = vmatpush.bf16.msrb.mxu0 %v9151_v41  ;;  %v5876_v41 = vadd.f32 %v5875_v27, %v5862_v31  ;;  %v9102_v39 = vld [vmem:[%s16446_s3 + $0x1228] sm:$0xf]  ;;  %v6642_v55 = vrot.slane %v6641_v63, 2  ;;  %v6698_v18 = vadd.f32 %v6697_v32, %v6682_v35  ;;  %v9247_v21 = vor.u32 %v10591_v9, %v9246_v54  ;;  %v10619_v52 = vld [vmem:[%s16446_s3 + $0x1434] sm:$0xf0] }
 0x239   :  { %6161 = vmatpush.bf16.msrb.mxu1 %v9279_v13  ;;  %v5889_v13 = vpop.f32.mrf.mxu1  ;;  %v9230_v14 = vld [vmem:[%s16446_s3 + $0x1328] sm:$0xf]  ;;  %v9503_v40 = vor.u32 %v10655_v58, %v9502_v60  ;;  %v10651_v17 = vld [vmem:[%s16446_s3 + $0x1534] sm:$0xf0] }
 0x23a   :  { %6175 = vmatpush.bf16.msrb.mxu2 %v9407_v22  ;;  %v10555_v22 = vld [vmem:[%s16446_s3 + $0x1234] sm:$0xf0]  ;;  %v9358_v25 = vld [vmem:[%s16446_s3 + $0x1428] sm:$0xf]  ;;  %v5890_v57 = vadd.f32 %v5889_v13, %v5876_v41  ;;  %v6643_v61 = vadd.f32 %v6642_v55, %v6641_v63  ;;  %v6699_v4 = vrot.slane %v6698_v18, 2 }
 0x23b   :  { %6189 = vmatpush.bf16.msrb.mxu3 %v9535_v30  ;;  %v10587_v30 = vld [vmem:[%s16446_s3 + $0x1334] sm:$0xf0]  ;;  %v9486_v15 = vld [vmem:[%s16446_s3 + $0x1528] sm:$0xf]  ;;  %v9103_v62 = vor.u32 %v10555_v22, %v9102_v39  ;;  %v9359_v31 = vor.u32 %v10619_v52, %v9358_v25  ;;  %v6695_v25 = vadd.f32 %v6694_v1, %v14857_v3 }
 0x23c   :  { %6148 = vmatpush.bf16.msrb.mxu0 %v9135_v47  ;;  %v9086_v26 = vld [vmem:[%s16446_s3 + $0x1208] sm:$0xf]  ;;  %v10551_v47 = vld [vmem:[%s16446_s3 + $0x1214] sm:$0xf0]  ;;  %6597 = vst [vmem:[%s16453_s5 + $0x28] sm:$0xff] %v5890_v57  ;;  %v6700_v23 = vadd.f32 %v6699_v4, %v6698_v18  ;;  %v9231_v54 = vor.u32 %v10587_v30, %v9230_v14  ;;  %v9487_v16 = vor.u32 %v10651_v17, %v9486_v15 }
 0x23d   :  { %6162 = vmatpush.bf16.msrb.mxu1 %v9263_v24  ;;  %v9214_v35 = vld [vmem:[%s16446_s3 + $0x1308] sm:$0xf]  ;;  %v10583_v24 = vld [vmem:[%s16446_s3 + $0x1314] sm:$0xf0]  ;;  %v9087_v13 = vor.u32 %v10551_v47, %v9086_v26  ;;  %v6896_v30 = vld [vmem:[%s16446_s3 + $0xf8] sm:$0xf0] }
 0x23e   :  { %6176 = vmatpush.bf16.msrb.mxu2 %v9391_v10  ;;  %v6644_v10 = vrot.slane %v6643_v61, 1  ;;  %v10615_v9 = vld [vmem:[%s16446_s3 + $0x1414] sm:$0xf0]  ;;  %v9470_v46 = vld [vmem:[%s16446_s3 + $0x1508] sm:$0xf]  ;;  %v6701_v60 = vrot.slane %v6700_v23, 1 }
 0x23f   :  { %6190 = vmatpush.bf16.msrb.mxu3 %v9519_v28  ;;  %v9342_v28 = vld [vmem:[%s16446_s3 + $0x1408] sm:$0xf]  ;;  %v10647_v63 = vld [vmem:[%s16446_s3 + $0x1514] sm:$0xf0] }
 0x240   :  { %6149 = vmatpush.bf16.msrb.mxu0 %v9119_v11  ;;  %v9710_v32 = vld [vmem:[%s16446_s3 + $0x16e8] sm:$0xf]  ;;  %v6645_v27 = vadd.f32 %v6644_v10, %v6643_v61  ;;  %v10707_v58 = vld [vmem:[%s16446_s3 + $0x16f4] sm:$0xf0]  ;;  %v6638_v11 = vadd.f32 %v6637_v53, %v6636_v6  ;;  %v6702_v18 = vadd.f32 %v6701_v60, %v6700_v23  ;;  %v9343_v6 = vor.u32 %v10615_v9, %v9342_v28  ;;  %v6880_v10 = vld [vmem:[%s16446_s3 + $0xd8] sm:$0xf0] }
 0x241   :  { %6163 = vmatpush.bf16.msrb.mxu1 %v9247_v21  ;;  %v9838_v41 = vld [vmem:[%s16446_s3 + $0x17e8] sm:$0xf]  ;;  %v10739_v39 = vld [vmem:[%s16446_s3 + $0x17f4] sm:$0xf0]  ;;  %v9215_v21 = vor.u32 %v10583_v24, %v9214_v35  ;;  %v9711_v57 = vor.u32 %v10707_v58, %v9710_v32  ;;  %v9997_v24 = vld [vmem:[%s16446_s3 + $0xcc] sm:$0xf] }
 0x242   :  { %6177 = vmatpush.bf16.msrb.mxu2 %v9375_v59  ;;  %v9966_v22 = vld [vmem:[%s16446_s3 + $0x18e8] sm:$0xf]  ;;  %v10771_v14 = vld [vmem:[%s16446_s3 + $0x18f4] sm:$0xf0]  ;;  %v6664_v55 = vrot.slane %v6645_v27, 7  ;;  %v6721_v17 = vrot.slane %v6702_v18, 7  ;;  %v9839_v53 = vor.u32 %v10739_v39, %v9838_v41 }
 0x243   :  { %6191 = vmatpush.bf16.msrb.mxu3 %v9503_v40  ;;  %v10001_v59 = vld [vmem:[%s16446_s3 + $0xec] sm:$0xf]  ;;  %v9471_v40 = vor.u32 %v10647_v63, %v9470_v46  ;;  %v9694_v52 = vld [vmem:[%s16446_s3 + $0x16c8] sm:$0xf]  ;;  %v9967_v61 = vor.u32 %v10771_v14, %v9966_v22  ;;  %v10703_v4 = vld [vmem:[%s16446_s3 + $0x16d4] sm:$0xf0]  ;;  %v6883_v46 = vor.u32 %v9997_v24, %v6880_v10 }
 0x244   :  { %6150 = vmatpush.bf16.msrb.mxu0 %v9103_v62  ;;  %v14940_v15 = vsel %vm6667_vm2, %v6638_v11, %v6664_v55  ;;  %v9822_v3 = vld [vmem:[%s16446_s3 + $0x17c8] sm:$0xf]  ;;  %v6899_v26 = vor.u32 %v10001_v59, %v6896_v30  ;;  %v10735_v47 = vld [vmem:[%s16446_s3 + $0x17d4] sm:$0xf0]  ;;  %v14958_v35 = vsel %vm6667_vm2, %v6695_v25, %v6721_v17  ;;  %v9695_v23 = vor.u32 %v10703_v4, %v9694_v52  ;;  %v9993_v60 = vld [vmem:[%s16446_s3 + $0xac] sm:$0xf] }
 0x245   :  { %6164 = vmatpush.bf16.msrb.mxu1 %v9231_v54  ;;  %v9950_v1 = vld [vmem:[%s16446_s3 + $0x18c8] sm:$0xf]  ;;  %v10767_v62 = vld [vmem:[%s16446_s3 + $0x18d4] sm:$0xf0]  ;;  %v9823_v54 = vor.u32 %v10735_v47, %v9822_v3  ;;  %v6864_v58 = vld [vmem:[%s16446_s3 + $0xb8] sm:$0xf0] }
 0x246   :  { %6178 = vmatpush.bf16.msrb.mxu2 %v9359_v31  ;;  %v9951_v31 = vor.u32 %v10767_v62, %v9950_v1  ;;  %v9678_v28 = vld [vmem:[%s16446_s3 + $0x16a8] sm:$0xf]  ;;  %v10699_v9 = vld [vmem:[%s16446_s3 + $0x16b4] sm:$0xf0]  ;;  %v6867_v55 = vor.u32 %v9993_v60, %v6864_v58  ;;  %v9989_v59 = vld [vmem:[%s16446_s3 + $0x8c] sm:$0xf] }
 0x247   :  { %6192 = vmatpush.bf16.msrb.mxu3 %v9487_v16  ;;  %v9806_v16 = vld [vmem:[%s16446_s3 + $0x17a8] sm:$0xf]  ;;  %v10731_v63 = vld [vmem:[%s16446_s3 + $0x17b4] sm:$0xf0]  ;;  %v9679_v41 = vor.u32 %v10699_v9, %v9678_v28  ;;  %v6848_v30 = vld [vmem:[%s16446_s3 + $0x98] sm:$0xf0] }
 0x248   :  { %6151 = vmatpush.bf16.msrb.mxu0 %v9087_v13  ;;  %v9934_v32 = vld [vmem:[%s16446_s3 + $0x18a8] sm:$0xf]  ;;  %v10763_v27 = vld [vmem:[%s16446_s3 + $0x18b4] sm:$0xf0]  ;;  %v9807_v11 = vor.u32 %v10731_v63, %v9806_v16  ;;  %v9985_v47 = vld [vmem:[%s16446_s3 + $0x6c] sm:$0xf] }
 0x249   :  { %6165 = vmatpush.bf16.msrb.mxu1 %v9215_v21  ;;  %v9935_v13 = vor.u32 %v10763_v27, %v9934_v32  ;;  %v9662_v39 = vld [vmem:[%s16446_s3 + $0x1688] sm:$0xf]  ;;  %v10695_v22 = vld [vmem:[%s16446_s3 + $0x1694] sm:$0xf0]  ;;  %v6832_v1 = vld [vmem:[%s16446_s3 + $0x78] sm:$0xf0] }
 0x24a   :  { %6179 = vmatpush.bf16.msrb.mxu2 %v9343_v6  ;;  %v9790_v14 = vld [vmem:[%s16446_s3 + $0x1788] sm:$0xf]  ;;  %v10727_v18 = vld [vmem:[%s16446_s3 + $0x1794] sm:$0xf0]  ;;  %v9663_v25 = vor.u32 %v10695_v22, %v9662_v39  ;;  %v6835_v28 = vor.u32 %v9985_v47, %v6832_v1  ;;  %v9981_v63 = vld [vmem:[%s16446_s3 + $0x4c] sm:$0xf] }
 0x24b   :  { %6193 = vmatpush.bf16.msrb.mxu3 %v9471_v40  ;;  %6152 = vmatmul.bf16.vlgmr.msrb.gmra.mxu0 %v12086_v34  ;;  %v9918_v21 = vld [vmem:[%s16446_s3 + $0x1888] sm:$0xf]  ;;  %v10759_v6 = vld [vmem:[%s16446_s3 + $0x1894] sm:$0xf0]  ;;  %v9791_v40 = vor.u32 %v10727_v18, %v9790_v14  ;;  %v6816_v32 = vld [vmem:[%s16446_s3 + $0x58] sm:$0xf0] }
 0x24c   :  { %6200 = vmatpush.bf16.msra.mxu0 %v9711_v57  ;;  %6166 = vmatmul.bf16.vlgmr.msrb.gmra.mxu1 %v12096_v44  ;;  %v9919_v57 = vor.u32 %v10759_v6, %v9918_v21  ;;  %v9646_v52 = vld [vmem:[%s16446_s3 + $0x1668] sm:$0xf]  ;;  %v10691_v17 = vld [vmem:[%s16446_s3 + $0x1674] sm:$0xf0]  ;;  %v6819_v39 = vor.u32 %v9981_v63, %v6816_v32  ;;  %v9977_v18 = vld [vmem:[%s16446_s3 + $0x2c] sm:$0xf] }
 0x24d   :  { %6214 = vmatpush.bf16.msra.mxu1 %v9839_v53  ;;  %6180 = vmatmul.bf16.vlgmr.msrb.gmra.mxu2 %v12305_v38  ;;  %v9774_v53 = vld [vmem:[%s16446_s3 + $0x1768] sm:$0xf]  ;;  %v10723_v4 = vld [vmem:[%s16446_s3 + $0x1774] sm:$0xf0]  ;;  %v9647_v62 = vor.u32 %v10691_v17, %v9646_v52  ;;  %v6800_v21 = vld [vmem:[%s16446_s3 + $0x38] sm:$0xf0] }
 0x24e   :  { %6228 = vmatpush.bf16.msra.mxu2 %v9967_v61  ;;  %6194 = vmatmul.bf16.vlgmr.msrb.gmra.mxu3 %v12318_v33  ;;  %v6851_v61 = vor.u32 %v9989_v59, %v6848_v30  ;;  %v9902_v3 = vld [vmem:[%s16446_s3 + $0x1868] sm:$0xf]  ;;  %v9775_v24 = vor.u32 %v10723_v4, %v9774_v53  ;;  %v10719_v9 = vld [vmem:[%s16446_s3 + $0x1754] sm:$0xf0]  ;;  %v6803_v53 = vor.u32 %v9977_v18, %v6800_v21  ;;  %v9973_v4 = vld [vmem:[%s16446_s3 + $0xc] sm:$0xf] }
 0x24f   :  { %6242 = vmatpush.bf16.msra.mxu3 %v6899_v26  ;;  %v10755_v26 = vld [vmem:[%s16446_s3 + $0x1874] sm:$0xf0]  ;;  %v9886_v16 = vld [vmem:[%s16446_s3 + $0x1848] sm:$0xf]  ;;  %v7024_v47 = vld [vmem:[%s16446_s3 + $0x1f8] sm:$0xf0] }
 0x250   :  { %6201 = vmatpush.bf16.msra.mxu0 %v9695_v23  ;;  %v9903_v10 = vor.u32 %v10755_v26, %v9902_v3  ;;  %v9630_v23 = vld [vmem:[%s16446_s3 + $0x1648] sm:$0xf]  ;;  %v10715_v22 = vld [vmem:[%s16446_s3 + $0x1734] sm:$0xf0]  ;;  %v6784_v3 = vld [vmem:[%s16446_s3 + $0x18] sm:$0xf0] }
 0x251   :  { %6215 = vmatpush.bf16.msra.mxu1 %v9823_v54  ;;  %v10687_v54 = vld [vmem:[%s16446_s3 + $0x1654] sm:$0xf0]  ;;  %v9870_v14 = vld [vmem:[%s16446_s3 + $0x1828] sm:$0xf]  ;;  %v10033_v26 = vld [vmem:[%s16446_s3 + $0x1ec] sm:$0xf] }
 0x252   :  { %6229 = vmatpush.bf16.msra.mxu2 %v9951_v31  ;;  %v9758_v31 = vld [vmem:[%s16446_s3 + $0x1748] sm:$0xf]  ;;  %v9631_v27 = vor.u32 %v10687_v54, %v9630_v23  ;;  %v10679_v30 = vld [vmem:[%s16446_s3 + $0x1614] sm:$0xf0]  ;;  %v10065_v1 = vld [vmem:[%s16446_s3 + $0x2ec] sm:$0xf] }
 0x253   :  { %6243 = vmatpush.bf16.msra.mxu3 %v6883_v46  ;;  %v10751_v46 = vld [vmem:[%s16446_s3 + $0x1854] sm:$0xf0]  ;;  %v9759_v60 = vor.u32 %v10719_v9, %v9758_v31  ;;  %v9598_v59 = vld [vmem:[%s16446_s3 + $0x1608] sm:$0xf]  ;;  %v7280_v23 = vld [vmem:[%s16446_s3 + $0x3f8] sm:$0xf0] }
 0x254   :  { %6202 = vmatpush.bf16.msra.mxu0 %v9679_v41  ;;  %v9887_v58 = vor.u32 %v10751_v46, %v9886_v16  ;;  %v9614_v41 = vld [vmem:[%s16446_s3 + $0x1628] sm:$0xf]  ;;  %v10711_v52 = vld [vmem:[%s16446_s3 + $0x1714] sm:$0xf0]  ;;  %v7408_v9 = vld [vmem:[%s16446_s3 + $0x4f8] sm:$0xf0]  ;;  %v6787_v16 = vor.u32 %v9973_v4, %v6784_v3  ;;  %v7027_v46 = vor.u32 %v10033_v26, %v7024_v47 }
 0x255   :  { %6216 = vmatpush.bf16.msra.mxu1 %v9807_v11  ;;  %v10683_v11 = vld [vmem:[%s16446_s3 + $0x1634] sm:$0xf0]  ;;  %v9854_v17 = vld [vmem:[%s16446_s3 + $0x1808] sm:$0xf]  ;;  %v10021_v26 = vld [vmem:[%s16446_s3 + $0x18c] sm:$0xf] }
 0x256   :  { %6230 = vmatpush.bf16.msra.mxu2 %v9935_v13  ;;  %v9742_v13 = vld [vmem:[%s16446_s3 + $0x1728] sm:$0xf]  ;;  %v9615_v6 = vor.u32 %v10683_v11, %v9614_v41  ;;  %v7136_v11 = vld [vmem:[%s16446_s3 + $0x2d8] sm:$0xf0] }
 0x257   :  { %6244 = vmatpush.bf16.msra.mxu3 %v6867_v55  ;;  %v10747_v55 = vld [vmem:[%s16446_s3 + $0x1834] sm:$0xf0]  ;;  %v6976_v47 = vld [vmem:[%s16446_s3 + $0x198] sm:$0xf0] }
 0x258   :  { %6203 = vmatpush.bf16.msra.mxu0 %v9663_v25  ;;  %v9743_v25 = vor.u32 %v10715_v22, %v9742_v13  ;;  %v10093_v13 = vld [vmem:[%s16446_s3 + $0x3cc] sm:$0xf] }
 0x259   :  { %6217 = vmatpush.bf16.msra.mxu1 %v9791_v40  ;;  %v9871_v40 = vor.u32 %v10747_v55, %v9870_v14  ;;  %v10125_v22 = vld [vmem:[%s16446_s3 + $0x4cc] sm:$0xf]  ;;  %v7392_v14 = vld [vmem:[%s16446_s3 + $0x4d8] sm:$0xf0] }
 0x25a   :  { %6231 = vmatpush.bf16.msra.mxu2 %v9919_v57  ;;  %v9726_v57 = vld [vmem:[%s16446_s3 + $0x1708] sm:$0xf] }
 0x25b   :  { %6245 = vmatpush.bf16.msra.mxu3 %v6851_v61  ;;  %v10743_v61 = vld [vmem:[%s16446_s3 + $0x1814] sm:$0xf0]  ;;  %v9727_v54 = vor.u32 %v10711_v52, %v9726_v57  ;;  %v10089_v57 = vld [vmem:[%s16446_s3 + $0x3ac] sm:$0xf]  ;;  %v7248_v52 = vld [vmem:[%s16446_s3 + $0x3b8] sm:$0xf0] }
 0x25c   :  { %6204 = vmatpush.bf16.msra.mxu0 %v9647_v62  ;;  %v9599_v62 = vor.u32 %v10679_v30, %v9598_v59  ;;  %v9855_v31 = vor.u32 %v10743_v61, %v9854_v17  ;;  %v6992_v59 = vld [vmem:[%s16446_s3 + $0x1b8] sm:$0xf0]  ;;  %v10057_v30 = vld [vmem:[%s16446_s3 + $0x2ac] sm:$0xf]  ;;  %v7251_v3 = vor.u32 %v10089_v57, %v7248_v52 }
 0x25d   :  { %6218 = vmatpush.bf16.msra.mxu1 %v9775_v24  ;;  %v7152_v24 = vld [vmem:[%s16446_s3 + $0x2f8] sm:$0xf0]  ;;  %v10121_v17 = vld [vmem:[%s16446_s3 + $0x4ac] sm:$0xf] }
 0x25e   :  { %6232 = vmatpush.bf16.msra.mxu2 %v9903_v10  ;;  %v10097_v10 = vld [vmem:[%s16446_s3 + $0x3ec] sm:$0xf]  ;;  %v7155_v63 = vor.u32 %v10065_v1, %v7152_v24 }
 0x25f   :  { %6246 = vmatpush.bf16.msra.mxu3 %v6835_v28  ;;  %v10129_v28 = vld [vmem:[%s16446_s3 + $0x4ec] sm:$0xf]  ;;  %v7283_v32 = vor.u32 %v10097_v10, %v7280_v23  ;;  %v7232_v10 = vld [vmem:[%s16446_s3 + $0x398] sm:$0xf0] }
 0x260   :  { %6205 = vmatpush.bf16.msra.mxu0 %v9631_v27  ;;  %v10029_v27 = vld [vmem:[%s16446_s3 + $0x1cc] sm:$0xf]  ;;  %v7411_v41 = vor.u32 %v10129_v28, %v7408_v9 }
 0x261   :  { %6219 = vmatpush.bf16.msra.mxu1 %v9759_v60  ;;  %v7008_v60 = vld [vmem:[%s16446_s3 + $0x1d8] sm:$0xf0]  ;;  %v10053_v1 = vld [vmem:[%s16446_s3 + $0x28c] sm:$0xf] }
 0x262   :  { %6233 = vmatpush.bf16.msra.mxu2 %v9887_v58  ;;  %v10061_v58 = vld [vmem:[%s16446_s3 + $0x2cc] sm:$0xf]  ;;  %v7011_v55 = vor.u32 %v10029_v27, %v7008_v60  ;;  %v7088_v27 = vld [vmem:[%s16446_s3 + $0x278] sm:$0xf0] }
 0x263   :  { %6247 = vmatpush.bf16.msra.mxu3 %v6819_v39  ;;  %v7264_v39 = vld [vmem:[%s16446_s3 + $0x3d8] sm:$0xf0]  ;;  %v7139_v18 = vor.u32 %v10061_v58, %v7136_v11  ;;  %v10085_v24 = vld [vmem:[%s16446_s3 + $0x38c] sm:$0xf] }
 0x264   :  { %6206 = vmatpush.bf16.msra.mxu0 %v9615_v6  ;;  %v7267_v21 = vor.u32 %v10093_v13, %v7264_v39  ;;  %v10025_v6 = vld [vmem:[%s16446_s3 + $0x1ac] sm:$0xf]  ;;  %v7235_v9 = vor.u32 %v10085_v24, %v7232_v10  ;;  %v7216_v58 = vld [vmem:[%s16446_s3 + $0x378] sm:$0xf0] }
 0x265   :  { %6220 = vmatpush.bf16.msra.mxu1 %v9743_v25  ;;  %v7395_v25 = vor.u32 %v10125_v22, %v7392_v14  ;;  %v6995_v61 = vor.u32 %v10025_v6, %v6992_v59  ;;  %v10117_v23 = vld [vmem:[%s16446_s3 + $0x48c] sm:$0xf]  ;;  %v7344_v11 = vld [vmem:[%s16446_s3 + $0x478] sm:$0xf0] }
 0x266   :  { %6234 = vmatpush.bf16.msra.mxu2 %v9871_v40  ;;  %v7120_v40 = vld [vmem:[%s16446_s3 + $0x2b8] sm:$0xf0]  ;;  %v10081_v60 = vld [vmem:[%s16446_s3 + $0x36c] sm:$0xf] }
 0x267   :  { %6248 = vmatpush.bf16.msra.mxu3 %v6803_v53  ;;  %v7376_v53 = vld [vmem:[%s16446_s3 + $0x4b8] sm:$0xf0]  ;;  %v7123_v4 = vor.u32 %v10057_v30, %v7120_v40  ;;  %v7219_v22 = vor.u32 %v10081_v60, %v7216_v58  ;;  %v10013_v14 = vld [vmem:[%s16446_s3 + $0x14c] sm:$0xf] }
 0x268   :  { %6207 = vmatpush.bf16.msra.mxu0 %v9599_v62  ;;  %v7379_v62 = vor.u32 %v10121_v17, %v7376_v53  ;;  %v7072_v6 = vld [vmem:[%s16446_s3 + $0x258] sm:$0xf0]  ;;  %v10077_v59 = vld [vmem:[%s16446_s3 + $0x34c] sm:$0xf] }
 0x269   :  { %6221 = vmatpush.bf16.msra.mxu1 %v9727_v54  ;;  %v7360_v54 = vld [vmem:[%s16446_s3 + $0x498] sm:$0xf0]  ;;  %v10009_v53 = vld [vmem:[%s16446_s3 + $0x12c] sm:$0xf] }
 0x26a   :  { %6235 = vmatpush.bf16.msra.mxu2 %v9855_v31  ;;  %v6979_v31 = vor.u32 %v10021_v26, %v6976_v47  ;;  %v7200_v30 = vld [vmem:[%s16446_s3 + $0x358] sm:$0xf0]  ;;  %v10073_v47 = vld [vmem:[%s16446_s3 + $0x32c] sm:$0xf] }
 0x26b   :  { %6249 = vmatpush.bf16.msra.mxu3 %v6787_v16  ;;  %6208 = vmatmul.bf16.vlgmr.msra.gmra.mxu0 %v12316_v50  ;;  %v10017_v16 = vld [vmem:[%s16446_s3 + $0x16c] sm:$0xf]  ;;  %v7328_v40 = vld [vmem:[%s16446_s3 + $0x458] sm:$0xf0]  ;;  %v7203_v17 = vor.u32 %v10077_v59, %v7200_v30 }
 0x26c   :  { %6256 = vmatpush.bf16.msrb.mxu0 %v7027_v46  ;;  %6222 = vmatmul.bf16.vlgmr.msra.gmra.mxu1 %v12326_v56  ;;  %v6960_v46 = vld [vmem:[%s16446_s3 + $0x178] sm:$0xf0]  ;;  %v10005_v10 = vld [vmem:[%s16446_s3 + $0x10c] sm:$0xf] }
 0x26d   :  { %6270 = vmatpush.bf16.msrb.mxu1 %v7155_v63  ;;  %6236 = vmatmul.bf16.vlgmr.msra.gmra.mxu2 %v12521_v19  ;;  %v10049_v63 = vld [vmem:[%s16446_s3 + $0x26c] sm:$0xf]  ;;  %v6963_v13 = vor.u32 %v10017_v16, %v6960_v46  ;;  %v7056_v26 = vld [vmem:[%s16446_s3 + $0x238] sm:$0xf0] }
 0x26e   :  { %6284 = vmatpush.bf16.msrb.mxu2 %v7283_v32  ;;  %6250 = vmatmul.bf16.vlgmr.msra.gmra.mxu3 %v11165_v36  ;;  %v7104_v36 = vld [vmem:[%s16446_s3 + $0x298] sm:$0xf0]  ;;  %v7363_v32 = vor.u32 %v10117_v23, %v7360_v54  ;;  %v7091_v39 = vor.u32 %v10049_v63, %v7088_v27  ;;  %v10069_v16 = vld [vmem:[%s16446_s3 + $0x30c] sm:$0xf] }
 0x26f   :  { %6298 = vmatpush.bf16.msrb.mxu3 %v7411_v41  ;;  %v7107_v28 = vor.u32 %v10053_v1, %v7104_v36  ;;  %v10113_v41 = vld [vmem:[%s16446_s3 + $0x46c] sm:$0xf]  ;;  %v7184_v1 = vld [vmem:[%s16446_s3 + $0x338] sm:$0xf0] }
 0x270   :  { %6257 = vmatpush.bf16.msrb.mxu0 %v7011_v55  ;;  %v6944_v55 = vld [vmem:[%s16446_s3 + $0x158] sm:$0xf0]  ;;  %v10161_v60 = vld [vmem:[%s16446_s3 + $0x5ec] sm:$0xf] }
 0x271   :  { %6271 = vmatpush.bf16.msrb.mxu1 %v7139_v18  ;;  %v10045_v18 = vld [vmem:[%s16446_s3 + $0x24c] sm:$0xf]  ;;  %v6947_v57 = vor.u32 %v10013_v14, %v6944_v55  ;;  %v7312_v36 = vld [vmem:[%s16446_s3 + $0x438] sm:$0xf0] }
 0x272   :  { %6285 = vmatpush.bf16.msrb.mxu2 %v7267_v21  ;;  %v7347_v21 = vor.u32 %v10113_v41, %v7344_v11  ;;  %v7075_v52 = vor.u32 %v10045_v18, %v7072_v6  ;;  %v6912_v23 = vld [vmem:[%s16446_s3 + $0x118] sm:$0xf0]  ;;  %v10193_v41 = vld [vmem:[%s16446_s3 + $0x6ec] sm:$0xf]  ;;  %v15319_v11 = vpop.f32.mrf.mxu2 }
 0x273   :  { %6299 = vmatpush.bf16.msrb.mxu3 %v7395_v25  ;;  %v10109_v25 = vld [vmem:[%s16446_s3 + $0x44c] sm:$0xf]  ;;  %v7168_v63 = vld [vmem:[%s16446_s3 + $0x318] sm:$0xf0] }
 0x274   :  { %6258 = vmatpush.bf16.msrb.mxu0 %v6995_v61  ;;  %v6928_v61 = vld [vmem:[%s16446_s3 + $0x138] sm:$0xf0]  ;;  %v7171_v18 = vor.u32 %v10069_v16, %v7168_v63 }
 0x275   :  { %6272 = vmatpush.bf16.msrb.mxu1 %v7123_v4  ;;  %v10041_v4 = vld [vmem:[%s16446_s3 + $0x22c] sm:$0xf]  ;;  %v6931_v24 = vor.u32 %v10009_v53, %v6928_v61  ;;  %v7296_v27 = vld [vmem:[%s16446_s3 + $0x418] sm:$0xf0] }
 0x276   :  { %6286 = vmatpush.bf16.msrb.mxu2 %v7251_v3  ;;  %v7331_v3 = vor.u32 %v10109_v25, %v7328_v40  ;;  %v7059_v54 = vor.u32 %v10041_v4, %v7056_v26  ;;  %v7536_v58 = vld [vmem:[%s16446_s3 + $0x5f8] sm:$0xf0]  ;;  %v10221_v4 = vld [vmem:[%s16446_s3 + $0x7cc] sm:$0xf] }
 0x277   :  { %6300 = vmatpush.bf16.msrb.mxu3 %v7379_v62  ;;  %v10105_v62 = vld [vmem:[%s16446_s3 + $0x42c] sm:$0xf]  ;;  %v7792_v14 = vld [vmem:[%s16446_s3 + $0x7f8] sm:$0xf0]  ;;  %v7539_v30 = vor.u32 %v10161_v60, %v7536_v58 }
 0x278   :  { %6259 = vmatpush.bf16.msrb.mxu0 %v6979_v31  ;;  %v7187_v31 = vor.u32 %v10073_v47, %v7184_v1  ;;  %v7315_v46 = vor.u32 %v10105_v62, %v7312_v36  ;;  %v7920_v6 = vld [vmem:[%s16446_s3 + $0x8f8] sm:$0xf0]  ;;  %v10253_v26 = vld [vmem:[%s16446_s3 + $0x8cc] sm:$0xf]  ;;  %v15360_v1 = vpop.f32.mrf.mxu3 }
 0x279   :  { %6273 = vmatpush.bf16.msrb.mxu1 %v7107_v28  ;;  %v10037_v28 = vld [vmem:[%s16446_s3 + $0x20c] sm:$0xf]  ;;  %v7648_v61 = vld [vmem:[%s16446_s3 + $0x6d8] sm:$0xf0] }
 0x27a   :  { %6287 = vmatpush.bf16.msrb.mxu2 %v7235_v9  ;;  %v7040_v9 = vld [vmem:[%s16446_s3 + $0x218] sm:$0xf0]  ;;  %v15389_v63 = vpop.f32.mrf.mxu2 }
 0x27b   :  { %6301 = vmatpush.bf16.msrb.mxu3 %v7363_v32  ;;  %v10101_v32 = vld [vmem:[%s16446_s3 + $0x40c] sm:$0xf]  ;;  %v7043_v55 = vor.u32 %v10037_v28, %v7040_v9  ;;  %v7904_v47 = vld [vmem:[%s16446_s3 + $0x8d8] sm:$0xf0] }
 0x27c   :  { %6260 = vmatpush.bf16.msrb.mxu0 %v6963_v13  ;;  %v6915_v13 = vor.u32 %v10005_v10, %v6912_v23  ;;  %v7299_v59 = vor.u32 %v10101_v32, %v7296_v27  ;;  %v10153_v10 = vld [vmem:[%s16446_s3 + $0x5ac] sm:$0xf]  ;;  %v7504_v23 = vld [vmem:[%s16446_s3 + $0x5b8] sm:$0xf0]  ;;  %v16473_v32 = vld [vmem:[#allocation2_spill] sm:$0xff] }
 0x27d   :  { %6274 = vmatpush.bf16.msrb.mxu1 %v7091_v39  ;;  %v7664_v39 = vld [vmem:[%s16446_s3 + $0x6f8] sm:$0xf0]  ;;  %v10217_v9 = vld [vmem:[%s16446_s3 + $0x7ac] sm:$0xf]  ;;  %v7507_v27 = vor.u32 %v10153_v10, %v7504_v23 }
 0x27e   :  { %6288 = vmatpush.bf16.msrb.mxu2 %v7219_v22  ;;  %v10225_v22 = vld [vmem:[%s16446_s3 + $0x7ec] sm:$0xf]  ;;  %v7667_v25 = vor.u32 %v10193_v41, %v7664_v39  ;;  %v7632_v28 = vld [vmem:[%s16446_s3 + $0x6b8] sm:$0xf0] }
 0x27f   :  { %6302 = vmatpush.bf16.msrb.mxu3 %v7347_v21  ;;  %v10257_v21 = vld [vmem:[%s16446_s3 + $0x8ec] sm:$0xf]  ;;  %v7795_v40 = vor.u32 %v10225_v22, %v7792_v14  ;;  %v7760_v16 = vld [vmem:[%s16446_s3 + $0x7b8] sm:$0xf0] }
 0x280   :  { %6261 = vmatpush.bf16.msrb.mxu0 %v6947_v57  ;;  %v10157_v57 = vld [vmem:[%s16446_s3 + $0x5cc] sm:$0xf]  ;;  %v7923_v53 = vor.u32 %v10257_v21, %v7920_v6  ;;  %v7488_v58 = vld [vmem:[%s16446_s3 + $0x598] sm:$0xf0]  ;;  %v15418_v6 = vpop.f32.mrf.mxu1 }
 0x281   :  { %6275 = vmatpush.bf16.msrb.mxu1 %v7075_v52  ;;  %v7520_v52 = vld [vmem:[%s16446_s3 + $0x5d8] sm:$0xf0]  ;;  %v10181_v41 = vld [vmem:[%s16446_s3 + $0x68c] sm:$0xf] }
 0x282   :  { %6289 = vmatpush.bf16.msrb.mxu2 %v7203_v17  ;;  %v10189_v17 = vld [vmem:[%s16446_s3 + $0x6cc] sm:$0xf]  ;;  %v7523_v62 = vor.u32 %v10157_v57, %v7520_v52  ;;  %v7616_v39 = vld [vmem:[%s16446_s3 + $0x698] sm:$0xf0] }
 0x283   :  { %6303 = vmatpush.bf16.msrb.mxu3 %v7331_v3  ;;  %v7776_v3 = vld [vmem:[%s16446_s3 + $0x7d8] sm:$0xf0]  ;;  %v7651_v36 = vor.u32 %v10189_v17, %v7648_v61  ;;  %v10213_v22 = vld [vmem:[%s16446_s3 + $0x78c] sm:$0xf]  ;;  %v15429_v17 = vpop.f32.mrf.mxu3 }
 0x284   :  { %6262 = vmatpush.bf16.msrb.mxu0 %v6931_v24  ;;  %v7779_v24 = vor.u32 %v10221_v4, %v7776_v3  ;;  %v7744_v14 = vld [vmem:[%s16446_s3 + $0x798] sm:$0xf0]  ;;  %v10177_v52 = vld [vmem:[%s16446_s3 + $0x66c] sm:$0xf] }
 0x285   :  { %6276 = vmatpush.bf16.msrb.mxu1 %v7059_v54  ;;  %v10185_v54 = vld [vmem:[%s16446_s3 + $0x6ac] sm:$0xf]  ;;  %v7872_v21 = vld [vmem:[%s16446_s3 + $0x898] sm:$0xf0] }
 0x286   :  { %6290 = vmatpush.bf16.msrb.mxu2 %v7187_v31  ;;  %v7907_v31 = vor.u32 %v10253_v26, %v7904_v47  ;;  %v7635_v60 = vor.u32 %v10185_v54, %v7632_v28  ;;  %v7472_v57 = vld [vmem:[%s16446_s3 + $0x578] sm:$0xf0]  ;;  %v10209_v4 = vld [vmem:[%s16446_s3 + $0x76c] sm:$0xf] }
 0x287   :  { %6304 = vmatpush.bf16.msrb.mxu3 %v7315_v46  ;;  %v7888_v46 = vld [vmem:[%s16446_s3 + $0x8b8] sm:$0xf0]  ;;  %v10241_v26 = vld [vmem:[%s16446_s3 + $0x86c] sm:$0xf] }
 0x288   :  { %6263 = vmatpush.bf16.msrb.mxu0 %v6915_v13  ;;  %v7600_v61 = vld [vmem:[%s16446_s3 + $0x678] sm:$0xf0]  ;;  %v10141_v10 = vld [vmem:[%s16446_s3 + $0x54c] sm:$0xf] }
 0x289   :  { %6277 = vmatpush.bf16.msrb.mxu1 %v7043_v55  ;;  %v15410_v55 = vpop.f32.mrf.mxu0  ;;  %v7728_v3 = vld [vmem:[%s16446_s3 + $0x778] sm:$0xf0]  ;;  %v10173_v54 = vld [vmem:[%s16446_s3 + $0x64c] sm:$0xf] }
 0x28a   :  { %6291 = vmatpush.bf16.msrb.mxu2 %v7171_v18  ;;  %v10245_v18 = vld [vmem:[%s16446_s3 + $0x88c] sm:$0xf]  ;;  %v7856_v47 = vld [vmem:[%s16446_s3 + $0x878] sm:$0xf0] }
 0x28b   :  { %6305 = vmatpush.bf16.msrb.mxu3 %v7299_v59  ;;  %6264 = vmatmul.bf16.vlgmr.msrb.gmra.mxu0 %v11206_v2  ;;  %v10249_v2 = vld [vmem:[%s16446_s3 + $0x8ac] sm:$0xf]  ;;  %v7456_v23 = vld [vmem:[%s16446_s3 + $0x558] sm:$0xf0]  ;;  %v7859_v28 = vor.u32 %v10241_v26, %v7856_v47 }
 0x28c   :  { %6312 = vmatpush.bf16.msra.mxu0 %v7539_v30  ;;  %6278 = vmatmul.bf16.vlgmr.msrb.gmra.mxu1 %v11174_v42  ;;  %v10149_v42 = vld [vmem:[%s16446_s3 + $0x58c] sm:$0xf]  ;;  %v7891_v13 = vor.u32 %v10249_v2, %v7888_v46  ;;  %v7619_v30 = vor.u32 %v10181_v41, %v7616_v39  ;;  %v7712_v2 = vld [vmem:[%s16446_s3 + $0x758] sm:$0xf0]  ;;  %v15483_v39 = vpop.f32.mrf.mxu1 }
 0x28d   :  { %6326 = vmatpush.bf16.msra.mxu1 %v7667_v25  ;;  %6292 = vmatmul.bf16.vlgmr.msrb.gmra.mxu2 %v11217_v8  ;;  %v7763_v8 = vor.u32 %v10217_v9, %v7760_v16  ;;  %v7491_v59 = vor.u32 %v10149_v42, %v7488_v58  ;;  %v7747_v25 = vor.u32 %v10213_v22, %v7744_v14  ;;  %v7584_v9 = vld [vmem:[%s16446_s3 + $0x658] sm:$0xf0]  ;;  %v10205_v16 = vld [vmem:[%s16446_s3 + $0x74c] sm:$0xf] }
 0x28e   :  { %6340 = vmatpush.bf16.msra.mxu2 %v7795_v40  ;;  %6306 = vmatmul.bf16.vlgmr.msrb.gmra.mxu3 %v16473_v32  ;;  %v10145_v40 = vld [vmem:[%s16446_s3 + $0x56c] sm:$0xf]  ;;  %v7840_v32 = vld [vmem:[%s16446_s3 + $0x858] sm:$0xf0]  ;;  %v7715_v42 = vor.u32 %v10205_v16, %v7712_v2 }
 0x28f   :  { %6354 = vmatpush.bf16.msra.mxu3 %v7923_v53  ;;  %v7875_v53 = vor.u32 %v10245_v18, %v7872_v21  ;;  %v10237_v46 = vld [vmem:[%s16446_s3 + $0x84c] sm:$0xf]  ;;  %v7440_v41 = vld [vmem:[%s16446_s3 + $0x538] sm:$0xf0] }
 0x290   :  { %6313 = vmatpush.bf16.msra.mxu0 %v7523_v62  ;;  %v7475_v62 = vor.u32 %v10145_v40, %v7472_v57  ;;  %v10137_v58 = vld [vmem:[%s16446_s3 + $0x52c] sm:$0xf]  ;;  %v7843_v22 = vor.u32 %v10237_v46, %v7840_v32  ;;  %v7568_v14 = vld [vmem:[%s16446_s3 + $0x638] sm:$0xf0]  ;;  %v15549_v32 = vld [vmem:[%s16450_s4] sm:$0xf] }
 0x291   :  { %6327 = vmatpush.bf16.msra.mxu1 %v7651_v36  ;;  %v7603_v36 = vor.u32 %v10177_v52, %v7600_v61  ;;  %v10201_v18 = vld [vmem:[%s16446_s3 + $0x72c] sm:$0xf]  ;;  %v7696_v21 = vld [vmem:[%s16446_s3 + $0x738] sm:$0xf0]  ;;  %v7443_v40 = vor.u32 %v10137_v58, %v7440_v41 }
 0x292   :  { %6341 = vmatpush.bf16.msra.mxu2 %v7779_v24  ;;  %v7731_v24 = vor.u32 %v10209_v4, %v7728_v3  ;;  %v10133_v57 = vld [vmem:[%s16446_s3 + $0x50c] sm:$0xf]  ;;  %v7424_v52 = vld [vmem:[%s16446_s3 + $0x518] sm:$0xf0]  ;;  %v7699_v61 = vor.u32 %v10201_v18, %v7696_v21 }
 0x293   :  { %6355 = vmatpush.bf16.msra.mxu3 %v7907_v31  ;;  %v15455_v31 = vpop.f32.mrf.mxu2  ;;  %v10165_v4 = vld [vmem:[%s16446_s3 + $0x60c] sm:$0xf]  ;;  %v7552_v3 = vld [vmem:[%s16446_s3 + $0x618] sm:$0xf0] }
 0x294   :  { %6314 = vmatpush.bf16.msra.mxu0 %v7507_v27  ;;  %v7459_v27 = vor.u32 %v10141_v10, %v7456_v23  ;;  %v10197_v26 = vld [vmem:[%s16446_s3 + $0x70c] sm:$0xf]  ;;  %v8048_v23 = vld [vmem:[%s16446_s3 + $0x9f8] sm:$0xf0] }
 0x295   :  { %6328 = vmatpush.bf16.msra.mxu1 %v7635_v60  ;;  %v15472_v60 = vpop.f32.mrf.mxu0  ;;  %v10289_v10 = vld [vmem:[%s16446_s3 + $0x9ec] sm:$0xf]  ;;  %v8176_v16 = vld [vmem:[%s16446_s3 + $0xaf8] sm:$0xf0] }
 0x296   :  { %6342 = vmatpush.bf16.msra.mxu2 %v7763_v8  ;;  %v7587_v8 = vor.u32 %v10173_v54, %v7584_v9  ;;  %v10321_v54 = vld [vmem:[%s16446_s3 + $0xaec] sm:$0xf]  ;;  %v7427_v9 = vor.u32 %v10133_v57, %v7424_v52  ;;  %v8304_v46 = vld [vmem:[%s16446_s3 + $0xbf8] sm:$0xf0]  ;;  %v8051_v18 = vor.u32 %v10289_v10, %v8048_v23 }
 0x297   :  { %6356 = vmatpush.bf16.msra.mxu3 %v7891_v13  ;;  %v10169_v13 = vld [vmem:[%s16446_s3 + $0x62c] sm:$0xf]  ;;  %v8179_v21 = vor.u32 %v10321_v54, %v8176_v16  ;;  %v8016_v23 = vld [vmem:[%s16446_s3 + $0x9b8] sm:$0xf0]  ;;  %v16474_v16 = vld [vmem:[#allocation4_spill] sm:$0xff] }
 0x298   :  { %6315 = vmatpush.bf16.msra.mxu0 %v7491_v59  ;;  %v10233_v59 = vld [vmem:[%s16446_s3 + $0x82c] sm:$0xf] }
 0x299   :  { %6329 = vmatpush.bf16.msra.mxu1 %v7619_v30  ;;  %v7824_v30 = vld [vmem:[%s16446_s3 + $0x838] sm:$0xf0]  ;;  %v10353_v2 = vld [vmem:[%s16446_s3 + $0xbec] sm:$0xf] }
 0x29a   :  { %6343 = vmatpush.bf16.msra.mxu2 %v7747_v25  ;;  %v15500_v25 = vpop.f32.mrf.mxu3  ;;  %v7827_v47 = vor.u32 %v10233_v59, %v7824_v30  ;;  %v10385_v41 = vld [vmem:[%s16446_s3 + $0xcec] sm:$0xf]  ;;  %v8307_v59 = vor.u32 %v10353_v2, %v8304_v46  ;;  %v8144_v46 = vld [vmem:[%s16446_s3 + $0xab8] sm:$0xf0] }
 0x29b   :  { %6357 = vmatpush.bf16.msra.mxu3 %v7875_v53  ;;  %v7571_v53 = vor.u32 %v10169_v13, %v7568_v14  ;;  %v8432_v13 = vld [vmem:[%s16446_s3 + $0xcf8] sm:$0xf0]  ;;  %v10285_v30 = vld [vmem:[%s16446_s3 + $0x9cc] sm:$0xf] }
 0x29c   :  { %6316 = vmatpush.bf16.msra.mxu0 %v7475_v62  ;;  %v7680_v62 = vld [vmem:[%s16446_s3 + $0x718] sm:$0xf0]  ;;  %v10317_v57 = vld [vmem:[%s16446_s3 + $0xacc] sm:$0xf]  ;;  %v8435_v52 = vor.u32 %v10385_v41, %v8432_v13 }
 0x29d   :  { %6330 = vmatpush.bf16.msra.mxu1 %v7603_v36  ;;  %v10229_v36 = vld [vmem:[%s16446_s3 + $0x80c] sm:$0xf]  ;;  %v7683_v58 = vor.u32 %v10197_v26, %v7680_v62 }
 0x29e   :  { %6344 = vmatpush.bf16.msra.mxu2 %v7731_v24  ;;  %v7808_v24 = vld [vmem:[%s16446_s3 + $0x818] sm:$0xf0]  ;;  %v10381_v26 = vld [vmem:[%s16446_s3 + $0xccc] sm:$0xf] }
 0x29f   :  { %6358 = vmatpush.bf16.msra.mxu3 %v7859_v28  ;;  %v15535_v28 = vpop.f32.mrf.mxu2  ;;  %v7811_v14 = vor.u32 %v10229_v36, %v7808_v24  ;;  %v10313_v54 = vld [vmem:[%s16446_s3 + $0xaac] sm:$0xf] }
 0x2a0   :  { %6317 = vmatpush.bf16.msra.mxu0 %v7459_v27  ;;  %v1186_v27 = vperm.slane %v15549_v32, 2  ;;  %v10377_v13 = vld [vmem:[%s16446_s3 + $0xcac] sm:$0xf] }
 0x2a1   :  { %6331 = vmatpush.bf16.msra.mxu1 %v7587_v8  ;;  %v15552_v8 = vpop.f32.mrf.mxu0 }
 0x2a2   :  { %6345 = vmatpush.bf16.msra.mxu2 %v7715_v42  ;;  %v7555_v42 = vor.u32 %v10165_v4, %v7552_v3  ;;  %v8288_v4 = vld [vmem:[%s16446_s3 + $0xbd8] sm:$0xf0]  ;;  %v5902_v3 = vadd.f32 %v15319_v11, %v1186_v27  ;;  %v15589_v62 = vpop.f32.mrf.mxu3  ;;  %v10281_v11 = vld [vmem:[%s16446_s3 + $0x9ac] sm:$0xf] }
 0x2a3   :  { %6359 = vmatpush.bf16.msra.mxu3 %v7843_v22  ;;  %v15560_v22 = vpop.f32.mrf.mxu1 }
 0x2a4   :  { %6318 = vmatpush.bf16.msra.mxu0 %v7443_v40  ;;  %v8032_v40 = vld [vmem:[%s16446_s3 + $0x9d8] sm:$0xf0]  ;;  %v5916_v41 = vadd.f32 %v15360_v1, %v5902_v3  ;;  %v8147_v1 = vor.u32 %v10313_v54, %v8144_v46 }
 0x2a5   :  { %6332 = vmatpush.bf16.msra.mxu1 %v7571_v53  ;;  %v8160_v53 = vld [vmem:[%s16446_s3 + $0xad8] sm:$0xf0]  ;;  %v8035_v36 = vor.u32 %v10285_v30, %v8032_v40 }
 0x2a6   :  { %6346 = vmatpush.bf16.msra.mxu2 %v7699_v61  ;;  %v10349_v61 = vld [vmem:[%s16446_s3 + $0xbcc] sm:$0xf]  ;;  %v8163_v24 = vor.u32 %v10317_v57, %v8160_v53  ;;  %v8128_v57 = vld [vmem:[%s16446_s3 + $0xa98] sm:$0xf0] }
 0x2a7   :  { %6360 = vmatpush.bf16.msra.mxu3 %v7827_v47  ;;  %v8416_v47 = vld [vmem:[%s16446_s3 + $0xcd8] sm:$0xf0]  ;;  %v8291_v10 = vor.u32 %v10349_v61, %v8288_v4  ;;  %v5930_v61 = vadd.f32 %v15410_v55, %v5916_v41  ;;  %v10373_v4 = vld [vmem:[%s16446_s3 + $0xc8c] sm:$0xf] }
 0x2a8   :  { %6319 = vmatpush.bf16.msra.mxu0 %v7427_v9  ;;  %v15600_v9 = vpop.f32.mrf.mxu2  ;;  %v8419_v2 = vor.u32 %v10381_v26, %v8416_v47  ;;  %v8256_v53 = vld [vmem:[%s16446_s3 + $0xb98] sm:$0xf0]  ;;  %v5904_v26 = vadd.f32 %v15389_v63, %v1186_v27  ;;  %v10305_v63 = vld [vmem:[%s16446_s3 + $0xa6c] sm:$0xf] }
 0x2a9   :  { %6333 = vmatpush.bf16.msra.mxu1 %v7555_v42  ;;  %v10345_v42 = vld [vmem:[%s16446_s3 + $0xbac] sm:$0xf]  ;;  %v8384_v3 = vld [vmem:[%s16446_s3 + $0xc98] sm:$0xf0] }
 0x2aa   :  { %6347 = vmatpush.bf16.msra.mxu2 %v7683_v58  ;;  %v8272_v58 = vld [vmem:[%s16446_s3 + $0xbb8] sm:$0xf0]  ;;  %v15654_v47 = vpop.f32.mrf.mxu3  ;;  %v8387_v32 = vor.u32 %v10373_v4, %v8384_v3 }
 0x2ab   :  { %6361 = vmatpush.bf16.msra.mxu3 %v7811_v14  ;;  %6320 = vmatmul.bf16.vlgmr.msra.gmra.mxu0 %v16474_v16  ;;  %v8400_v14 = vld [vmem:[%s16446_s3 + $0xcb8] sm:$0xf0]  ;;  %v15633_v30 = vpop.f32.mrf.mxu1  ;;  %v5944_v16 = vadd.f32 %v15418_v6, %v5930_v61 }
 0x2ac   :  { %6368 = vmatpush.bf16.msrb.mxu0 %v8051_v18  ;;  %6334 = vmatmul.bf16.vlgmr.msra.gmra.mxu1 %v16471_v5  ;;  %v8019_v18 = vor.u32 %v10281_v11, %v8016_v23  ;;  %v10277_v5 = vld [vmem:[%s16446_s3 + $0x98c] sm:$0xf]  ;;  %v8403_v40 = vor.u32 %v10377_v13, %v8400_v14  ;;  %v7984_v11 = vld [vmem:[%s16446_s3 + $0x978] sm:$0xf0] }
 0x2ad   :  { %6382 = vmatpush.bf16.msrb.mxu1 %v8179_v21  ;;  %6348 = vmatmul.bf16.vlgmr.msra.gmra.mxu2 %v11374_v45  ;;  %v15622_v21 = vpop.f32.mrf.mxu0  ;;  %v8275_v45 = vor.u32 %v10345_v42, %v8272_v58  ;;  %v8112_v27 = vld [vmem:[%s16446_s3 + $0xa78] sm:$0xf0]  ;;  %v10337_v23 = vld [vmem:[%s16446_s3 + $0xb6c] sm:$0xf]  ;;  %v5918_v42 = vadd.f32 %v15429_v17, %v5904_v26 }
 0x2ae   :  { %6396 = vmatpush.bf16.msrb.mxu2 %v8307_v59  ;;  %6362 = vmatmul.bf16.vlgmr.msra.gmra.mxu3 %v11599_v0  ;;  %v8000_v59 = vld [vmem:[%s16446_s3 + $0x998] sm:$0xf0]  ;;  %v10309_v0 = vld [vmem:[%s16446_s3 + $0xa8c] sm:$0xf]  ;;  %v8115_v14 = vor.u32 %v10305_v63, %v8112_v27 }
 0x2af   :  { %6410 = vmatpush.bf16.msrb.mxu3 %v8435_v52  ;;  %v10341_v52 = vld [vmem:[%s16446_s3 + $0xb8c] sm:$0xf]  ;;  %v8240_v54 = vld [vmem:[%s16446_s3 + $0xb78] sm:$0xf0]  ;;  %v5932_v61 = vadd.f32 %v15472_v60, %v5918_v42 }
 0x2b0   :  { %6369 = vmatpush.bf16.msrb.mxu0 %v8035_v36  ;;  %v8003_v36 = vor.u32 %v10277_v5, %v8000_v59  ;;  %v8259_v55 = vor.u32 %v10341_v52, %v8256_v53  ;;  %v8368_v46 = vld [vmem:[%s16446_s3 + $0xc78] sm:$0xf0]  ;;  %v15682_v58 = vpop.f32.mrf.mxu2  ;;  %v8243_v6 = vor.u32 %v10337_v23, %v8240_v54  ;;  %v10301_v17 = vld [vmem:[%s16446_s3 + $0xa4c] sm:$0xf] }
 0x2b1   :  { %6383 = vmatpush.bf16.msrb.mxu1 %v8163_v24  ;;  %v8131_v24 = vor.u32 %v10309_v0, %v8128_v57  ;;  %v8096_v59 = vld [vmem:[%s16446_s3 + $0xa58] sm:$0xf0]  ;;  %v10333_v0 = vld [vmem:[%s16446_s3 + $0xb4c] sm:$0xf]  ;;  %v5958_v57 = vadd.f32 %v15455_v31, %v5944_v16  ;;  %v5946_v54 = vadd.f32 %v15483_v39, %v5932_v61 }
 0x2b2   :  { %6397 = vmatpush.bf16.msrb.mxu2 %v8291_v10  ;;  %v10273_v10 = vld [vmem:[%s16446_s3 + $0x96c] sm:$0xf]  ;;  %v8352_v53 = vld [vmem:[%s16446_s3 + $0xc58] sm:$0xf0]  ;;  %v8099_v3 = vor.u32 %v10301_v17, %v8096_v59 }
 0x2b3   :  { %6411 = vmatpush.bf16.msrb.mxu3 %v8419_v2  ;;  %v10369_v2 = vld [vmem:[%s16446_s3 + $0xc6c] sm:$0xf]  ;;  %v7987_v41 = vor.u32 %v10273_v10, %v7984_v11  ;;  %v8080_v10 = vld [vmem:[%s16446_s3 + $0xa38] sm:$0xf0] }
 0x2b4   :  { %6370 = vmatpush.bf16.msrb.mxu0 %v8019_v18  ;;  %v10269_v18 = vld [vmem:[%s16446_s3 + $0x94c] sm:$0xf]  ;;  %v8371_v5 = vor.u32 %v10369_v2, %v8368_v46  ;;  %v8208_v63 = vld [vmem:[%s16446_s3 + $0xb38] sm:$0xf0] }
 0x2b5   :  { %6384 = vmatpush.bf16.msrb.mxu1 %v8147_v1  ;;  %v15684_v13 = vpop.f32.mrf.mxu0  ;;  %v7968_v1 = vld [vmem:[%s16446_s3 + $0x958] sm:$0xf0]  ;;  %v10365_v52 = vld [vmem:[%s16446_s3 + $0xc4c] sm:$0xf] }
 0x2b6   :  { %6398 = vmatpush.bf16.msrb.mxu2 %v8275_v45  ;;  %v15695_v45 = vpop.f32.mrf.mxu1  ;;  %v7971_v4 = vor.u32 %v10269_v18, %v7968_v1  ;;  %v10265_v31 = vld [vmem:[%s16446_s3 + $0x92c] sm:$0xf]  ;;  %v8355_v60 = vor.u32 %v10365_v52, %v8352_v53  ;;  %v8336_v23 = vld [vmem:[%s16446_s3 + $0xc38] sm:$0xf0]  ;;  %v5960_v1 = vadd.f32 %v15535_v28, %v5946_v54 }
 0x2b7   :  { %6412 = vmatpush.bf16.msrb.mxu3 %v8403_v40  ;;  %v8224_v40 = vld [vmem:[%s16446_s3 + $0xb58] sm:$0xf0]  ;;  %v10329_v11 = vld [vmem:[%s16446_s3 + $0xb2c] sm:$0xf] }
 0x2b8   :  { %6371 = vmatpush.bf16.msrb.mxu0 %v8003_v36  ;;  %v8227_v26 = vor.u32 %v10333_v0, %v8224_v40  ;;  %v7952_v36 = vld [vmem:[%s16446_s3 + $0x938] sm:$0xf0]  ;;  %v10361_v27 = vld [vmem:[%s16446_s3 + $0xc2c] sm:$0xf]  ;;  %v15742_v16 = vpop.f32.mrf.mxu2 }
 0x2b9   :  { %6385 = vmatpush.bf16.msrb.mxu1 %v8131_v24  ;;  %v10297_v24 = vld [vmem:[%s16446_s3 + $0xa2c] sm:$0xf]  ;;  %v7955_v2 = vor.u32 %v10265_v31, %v7952_v36  ;;  %v8192_v17 = vld [vmem:[%s16446_s3 + $0xb18] sm:$0xf0] }
 0x2ba   :  { %6399 = vmatpush.bf16.msrb.mxu2 %v8259_v55  ;;  %v15723_v55 = vpop.f32.mrf.mxu3  ;;  %v10261_v46 = vld [vmem:[%s16446_s3 + $0x90c] sm:$0xf]  ;;  %v8320_v59 = vld [vmem:[%s16446_s3 + $0xc18] sm:$0xf0] }
 0x2bb   :  { %6413 = vmatpush.bf16.msrb.mxu3 %v8387_v32  ;;  %v5972_v32 = vadd.f32 %v15500_v25, %v5958_v57  ;;  %v7936_v25 = vld [vmem:[%s16446_s3 + $0x918] sm:$0xf0]  ;;  %v10293_v39 = vld [vmem:[%s16446_s3 + $0xa0c] sm:$0xf] }
 0x2bc   :  { %6372 = vmatpush.bf16.msrb.mxu0 %v7987_v41  ;;  %v8083_v41 = vor.u32 %v10297_v24, %v8080_v10  ;;  %v10325_v18 = vld [vmem:[%s16446_s3 + $0xb0c] sm:$0xf]  ;;  %v8560_v40 = vld [vmem:[%s16446_s3 + $0xdf8] sm:$0xf0]  ;;  %v7939_v53 = vor.u32 %v10261_v46, %v7936_v25  ;;  %v5974_v10 = vadd.f32 %v15589_v62, %v5960_v1 }
 0x2bd   :  { %6386 = vmatpush.bf16.msrb.mxu1 %v8115_v14  ;;  %v5986_v42 = vadd.f32 %v15552_v8, %v5972_v32  ;;  %v8211_v14 = vor.u32 %v10329_v11, %v8208_v63  ;;  %v8339_v8 = vor.u32 %v10361_v27, %v8336_v23  ;;  %v15770_v0 = vpop.f32.mrf.mxu0  ;;  %v10417_v28 = vld [vmem:[%s16446_s3 + $0xdec] sm:$0xf]  ;;  %v8688_v61 = vld [vmem:[%s16446_s3 + $0xef8] sm:$0xf0]  ;;  %v8195_v36 = vor.u32 %v10325_v18, %v8192_v17 }
 0x2be   :  { %6400 = vmatpush.bf16.msrb.mxu2 %v8243_v6  ;;  %v8064_v6 = vld [vmem:[%s16446_s3 + $0xa18] sm:$0xf0]  ;;  %v10449_v57 = vld [vmem:[%s16446_s3 + $0xeec] sm:$0xf]  ;;  %v15781_v52 = vpop.f32.mrf.mxu1  ;;  %v8563_v32 = vor.u32 %v10417_v28, %v8560_v40  ;;  %v5988_v46 = vadd.f32 %v15622_v21, %v5974_v10 }
 0x2bf   :  { %6414 = vmatpush.bf16.msrb.mxu3 %v8371_v5  ;;  %v10357_v5 = vld [vmem:[%s16446_s3 + $0xc0c] sm:$0xf]  ;;  %v8067_v31 = vor.u32 %v10293_v39, %v8064_v6  ;;  %v8691_v27 = vor.u32 %v10449_v57, %v8688_v61  ;;  %v16475_v57 = vld [vmem:[#allocation5_spill] sm:$0xff] }
 0x2c0   :  { %6373 = vmatpush.bf16.msrb.mxu0 %v7971_v4  ;;  %v10481_v4 = vld [vmem:[%s16446_s3 + $0xfec] sm:$0xf]  ;;  %v8323_v63 = vor.u32 %v10357_v5, %v8320_v59  ;;  %v15828_v39 = vpop.f32.mrf.mxu2  ;;  %v8528_v59 = vld [vmem:[%s16446_s3 + $0xdb8] sm:$0xf0] }
 0x2c1   :  { %6387 = vmatpush.bf16.msrb.mxu1 %v8099_v3  ;;  %v8816_v3 = vld [vmem:[%s16446_s3 + $0xff8] sm:$0xf0]  ;;  %v10513_v24 = vld [vmem:[%s16446_s3 + $0x10ec] sm:$0xf] }
 0x2c2   :  { %6401 = vmatpush.bf16.msrb.mxu2 %v8227_v26  ;;  %v6000_v26 = vadd.f32 %v15560_v22, %v5986_v42  ;;  %v15800_v11 = vpop.f32.mrf.mxu3  ;;  %v8819_v23 = vor.u32 %v10481_v4, %v8816_v3  ;;  %v10413_v54 = vld [vmem:[%s16446_s3 + $0xdcc] sm:$0xf]  ;;  %v8656_v61 = vld [vmem:[%s16446_s3 + $0xeb8] sm:$0xf0] }
 0x2c3   :  { %6415 = vmatpush.bf16.msrb.mxu3 %v8355_v60  ;;  %v8944_v60 = vld [vmem:[%s16446_s3 + $0x10f8] sm:$0xf0]  ;;  %v10445_v62 = vld [vmem:[%s16446_s3 + $0xecc] sm:$0xf] }
 0x2c4   :  { %6374 = vmatpush.bf16.msrb.mxu0 %v7955_v2  ;;  %v6014_v22 = vadd.f32 %v15600_v9, %v6000_v26  ;;  %v8544_v2 = vld [vmem:[%s16446_s3 + $0xdd8] sm:$0xf0]  ;;  %v8947_v25 = vor.u32 %v10513_v24, %v8944_v60  ;;  %v10477_v42 = vld [vmem:[%s16446_s3 + $0xfcc] sm:$0xf] }
 0x2c5   :  { %6388 = vmatpush.bf16.msrb.mxu1 %v8083_v41  ;;  %v8672_v9 = vld [vmem:[%s16446_s3 + $0xed8] sm:$0xf0]  ;;  %v10509_v21 = vld [vmem:[%s16446_s3 + $0x10cc] sm:$0xf]  ;;  %v8547_v6 = vor.u32 %v10413_v54, %v8544_v2  ;;  %v15831_v1 = vpop.f32.mrf.mxu0 }
 0x2c6   :  { %6402 = vmatpush.bf16.msrb.mxu2 %v8211_v14  ;;  %v8800_v41 = vld [vmem:[%s16446_s3 + $0xfd8] sm:$0xf0]  ;;  %v6028_v18 = vadd.f32 %v15654_v47, %v6014_v22  ;;  %v10409_v5 = vld [vmem:[%s16446_s3 + $0xdac] sm:$0xf]  ;;  %v6002_v47 = vadd.f32 %v15633_v30, %v5988_v46  ;;  %v15843_v40 = vpop.f32.mrf.mxu1 }
 0x2c7   :  { %6416 = vmatpush.bf16.msrb.mxu3 %v8339_v8  ;;  %v8928_v14 = vld [vmem:[%s16446_s3 + $0x10d8] sm:$0xf0]  ;;  %v8675_v8 = vor.u32 %v10445_v62, %v8672_v9  ;;  %v8803_v17 = vor.u32 %v10477_v42, %v8800_v41  ;;  %v10441_v28 = vld [vmem:[%s16446_s3 + $0xeac] sm:$0xf]  ;;  %v8531_v24 = vor.u32 %v10409_v5, %v8528_v59 }
 0x2c8   :  { %6375 = vmatpush.bf16.msrb.mxu0 %v7939_v53  ;;  %v8931_v53 = vor.u32 %v10509_v21, %v8928_v14  ;;  %v10473_v4 = vld [vmem:[%s16446_s3 + $0xfac] sm:$0xf]  ;;  %v8784_v3 = vld [vmem:[%s16446_s3 + $0xfb8] sm:$0xf0]  ;;  %v6042_v30 = vadd.f32 %v15684_v13, %v6028_v18  ;;  %v8659_v13 = vor.u32 %v10441_v28, %v8656_v61  ;;  %v15894_v62 = vpop.f32.mrf.mxu2 }
 0x2c9   :  { %6389 = vmatpush.bf16.msrb.mxu1 %v8067_v31  ;;  %v10505_v26 = vld [vmem:[%s16446_s3 + $0x10ac] sm:$0xf]  ;;  %v8912_v31 = vld [vmem:[%s16446_s3 + $0x10b8] sm:$0xf0] }
 0x2ca   :  { %6403 = vmatpush.bf16.msrb.mxu2 %v8195_v36  ;;  %v6016_v36 = vadd.f32 %v15682_v58, %v6002_v47  ;;  %v8512_v60 = vld [vmem:[%s16446_s3 + $0xd98] sm:$0xf0]  ;;  %v10437_v58 = vld [vmem:[%s16446_s3 + $0xe8c] sm:$0xf]  ;;  %v15875_v10 = vpop.f32.mrf.mxu3 }
 0x2cb   :  { %6417 = vmatpush.bf16.msrb.mxu3 %v8323_v63  ;;  %6376 = vmatmul.bf16.vlgmr.msrb.gmra.mxu0 %v16475_v57  ;;  %v8640_v63 = vld [vmem:[%s16446_s3 + $0xe98] sm:$0xf0]  ;;  %v10401_v42 = vld [vmem:[%s16446_s3 + $0xd6c] sm:$0xf] }
 0x2cc   :  { %6424 = vmatpush.bf16.msra.mxu0 %v8563_v32  ;;  %6390 = vmatmul.bf16.vlgmr.msrb.gmra.mxu1 %v11610_v7  ;;  %v10405_v7 = vld [vmem:[%s16446_s3 + $0xd8c] sm:$0xf]  ;;  %v8768_v22 = vld [vmem:[%s16446_s3 + $0xf98] sm:$0xf0]  ;;  %v6030_v2 = vadd.f32 %v15723_v55, %v6016_v36  ;;  %v8643_v9 = vor.u32 %v10437_v58, %v8640_v63 }
 0x2cd   :  { %6438 = vmatpush.bf16.msra.mxu1 %v8691_v27  ;;  %6404 = vmatmul.bf16.vlgmr.msrb.gmra.mxu2 %v11620_v12  ;;  %v8787_v12 = vor.u32 %v10473_v4, %v8784_v3  ;;  %v10469_v32 = vld [vmem:[%s16446_s3 + $0xf8c] sm:$0xf]  ;;  %v6056_v27 = vadd.f32 %v15695_v45, %v6042_v30  ;;  %v8896_v54 = vld [vmem:[%s16446_s3 + $0x1098] sm:$0xf0]  ;;  %v8515_v46 = vor.u32 %v10405_v7, %v8512_v60 }
 0x2ce   :  { %6452 = vmatpush.bf16.msra.mxu2 %v8819_v23  ;;  %6418 = vmatmul.bf16.vlgmr.msrb.gmra.mxu3 %v11829_v43  ;;  %v8915_v43 = vor.u32 %v10505_v26, %v8912_v31  ;;  %v10501_v23 = vld [vmem:[%s16446_s3 + $0x108c] sm:$0xf]  ;;  %v8771_v45 = vor.u32 %v10469_v32, %v8768_v22  ;;  %v8496_v41 = vld [vmem:[%s16446_s3 + $0xd78] sm:$0xf0]  ;;  %v6044_v21 = vadd.f32 %v15770_v0, %v6030_v2  ;;  %v15924_v5 = vpop.f32.mrf.mxu1 }
 0x2cf   :  { %6466 = vmatpush.bf16.msra.mxu3 %v8947_v25  ;;  %v6070_v25 = vadd.f32 %v15742_v16, %v6056_v27  ;;  %v10433_v55 = vld [vmem:[%s16446_s3 + $0xe6c] sm:$0xf]  ;;  %v8899_v16 = vor.u32 %v10501_v23, %v8896_v54  ;;  %v8624_v14 = vld [vmem:[%s16446_s3 + $0xe78] sm:$0xf0]  ;;  %v8499_v59 = vor.u32 %v10401_v42, %v8496_v41 }
 0x2d0   :  { %6425 = vmatpush.bf16.msra.mxu0 %v8547_v6  ;;  %v10465_v6 = vld [vmem:[%s16446_s3 + $0xf6c] sm:$0xf]  ;;  %v8752_v18 = vld [vmem:[%s16446_s3 + $0xf78] sm:$0xf0]  ;;  %v8627_v47 = vor.u32 %v10433_v55, %v8624_v14  ;;  %v6058_v3 = vadd.f32 %v15781_v52, %v6044_v21  ;;  %v6127_v32 = vpop.f32.mrf.mxu2 }
 0x2d1   :  { %6439 = vmatpush.bf16.msra.mxu1 %v8675_v8  ;;  %v15916_v8 = vpop.f32.mrf.mxu0  ;;  %v10497_v0 = vld [vmem:[%s16446_s3 + $0x106c] sm:$0xf]  ;;  %v6084_v28 = vadd.f32 %v15800_v11, %v6070_v25  ;;  %v8755_v57 = vor.u32 %v10465_v6, %v8752_v18  ;;  %v8480_v61 = vld [vmem:[%s16446_s3 + $0xd58] sm:$0xf0] }
 0x2d2   :  { %6453 = vmatpush.bf16.msra.mxu2 %v8803_v17  ;;  %v8880_v17 = vld [vmem:[%s16446_s3 + $0x1078] sm:$0xf0]  ;;  %v10429_v4 = vld [vmem:[%s16446_s3 + $0xe4c] sm:$0xf]  ;;  %v6139_v30 = vpop.f32.mrf.mxu3 }
 0x2d3   :  { %6467 = vmatpush.bf16.msra.mxu3 %v8931_v53  ;;  %v10397_v53 = vld [vmem:[%s16446_s3 + $0xd4c] sm:$0xf]  ;;  %v8883_v11 = vor.u32 %v10497_v0, %v8880_v17  ;;  %v8608_v26 = vld [vmem:[%s16446_s3 + $0xe58] sm:$0xf0] }
 0x2d4   :  { %6426 = vmatpush.bf16.msra.mxu0 %v8531_v24  ;;  %v10461_v31 = vld [vmem:[%s16446_s3 + $0xf4c] sm:$0xf]  ;;  %v8736_v36 = vld [vmem:[%s16446_s3 + $0xf58] sm:$0xf0]  ;;  %v6098_v24 = vadd.f32 %v15831_v1, %v6084_v28  ;;  %v8483_v7 = vor.u32 %v10397_v53, %v8480_v61  ;;  %v8611_v60 = vor.u32 %v10429_v4, %v8608_v26 }
 0x2d5   :  { %6440 = vmatpush.bf16.msra.mxu1 %v8659_v13  ;;  %v10493_v52 = vld [vmem:[%s16446_s3 + $0x104c] sm:$0xf]  ;;  %v8864_v13 = vld [vmem:[%s16446_s3 + $0x1058] sm:$0xf0]  ;;  %v8739_v58 = vor.u32 %v10461_v31, %v8736_v36 }
 0x2d6   :  { %6454 = vmatpush.bf16.msra.mxu2 %v8787_v12  ;;  %v6072_v12 = vadd.f32 %v15828_v39, %v6058_v3  ;;  %v10393_v1 = vld [vmem:[%s16446_s3 + $0xd2c] sm:$0xf]  ;;  %v8867_v39 = vor.u32 %v10493_v52, %v8864_v13  ;;  %v8592_v22 = vld [vmem:[%s16446_s3 + $0xe38] sm:$0xf0]  ;;  %v6112_v54 = vadd.f32 %v15843_v40, %v6098_v24 }
 0x2d7   :  { %6468 = vmatpush.bf16.msra.mxu3 %v8915_v43  ;;  %v8464_v43 = vld [vmem:[%s16446_s3 + $0xd38] sm:$0xf0]  ;;  %v10425_v63 = vld [vmem:[%s16446_s3 + $0xe2c] sm:$0xf] }
 0x2d8   :  { %6427 = vmatpush.bf16.msra.mxu0 %v8515_v46  ;;  %v10457_v27 = vld [vmem:[%s16446_s3 + $0xf2c] sm:$0xf]  ;;  %v8720_v23 = vld [vmem:[%s16446_s3 + $0xf38] sm:$0xf0]  ;;  %v8467_v42 = vor.u32 %v10393_v1, %v8464_v43  ;;  %v6126_v55 = vadd.f32 %v15894_v62, %v6112_v54  ;;  %v8595_v21 = vor.u32 %v10425_v63, %v8592_v22  ;;  %v6181_v52 = vpop.f32.mrf.mxu2 }
 0x2d9   :  { %6441 = vmatpush.bf16.msra.mxu1 %v8643_v9  ;;  %v6153_v2 = vpop.f32.mrf.mxu0  ;;  %v10489_v46 = vld [vmem:[%s16446_s3 + $0x102c] sm:$0xf]  ;;  %v8848_v25 = vld [vmem:[%s16446_s3 + $0x1038] sm:$0xf0]  ;;  %v6086_v9 = vadd.f32 %v15875_v10, %v6072_v12 }
 0x2da   :  { %6455 = vmatpush.bf16.msra.mxu2 %v8771_v45  ;;  %v6167_v45 = vpop.f32.mrf.mxu1  ;;  %v10389_v41 = vld [vmem:[%s16446_s3 + $0xd0c] sm:$0xf]  ;;  %v8448_v40 = vld [vmem:[%s16446_s3 + $0xd18] sm:$0xf0]  ;;  %v8851_v18 = vor.u32 %v10489_v46, %v8848_v25  ;;  %v6141_v53 = vpop.f32.mrf.mxu3 }
 0x2db   :  { %6469 = vmatpush.bf16.msra.mxu3 %v8899_v16  ;;  %v8723_v16 = vor.u32 %v10457_v27, %v8720_v23  ;;  %v10421_v10 = vld [vmem:[%s16446_s3 + $0xe0c] sm:$0xf]  ;;  %v8576_v14 = vld [vmem:[%s16446_s3 + $0xe18] sm:$0xf0]  ;;  %v8451_v61 = vor.u32 %v10389_v41, %v8448_v40 }
 0x2dc   :  { %6428 = vmatpush.bf16.msra.mxu0 %v8499_v59  ;;  %v10453_v6 = vld [vmem:[%s16446_s3 + $0xf0c] sm:$0xf]  ;;  %v8704_v62 = vld [vmem:[%s16446_s3 + $0xf18] sm:$0xf0]  ;;  %v6100_v59 = vadd.f32 %v15916_v8, %v6086_v9  ;;  %v8579_v26 = vor.u32 %v10421_v10, %v8576_v14 }
 0x2dd   :  { %6442 = vmatpush.bf16.msra.mxu1 %v8627_v47  ;;  %v10485_v0 = vld [vmem:[%s16446_s3 + $0x100c] sm:$0xf]  ;;  %v8832_v17 = vld [vmem:[%s16446_s3 + $0x1018] sm:$0xf0]  ;;  %v8707_v31 = vor.u32 %v10453_v6, %v8704_v62 }
 0x2de   :  { %6456 = vmatpush.bf16.msra.mxu2 %v8755_v57  ;;  %v10545_v28 = vld [vmem:[%s16446_s3 + $0x11ec] sm:$0xf]  ;;  %v9072_v47 = vld [vmem:[%s16446_s3 + $0x11f8] sm:$0xf0]  ;;  %v8835_v13 = vor.u32 %v10485_v0, %v8832_v17 }
 0x2df   :  { %6470 = vmatpush.bf16.msra.mxu3 %v8883_v11  ;;  %v10577_v57 = vld [vmem:[%s16446_s3 + $0x12ec] sm:$0xf]  ;;  %v9200_v4 = vld [vmem:[%s16446_s3 + $0x12f8] sm:$0xf0]  ;;  %v6140_v11 = vadd.f32 %v6139_v30, %v6126_v55  ;;  %v9075_v12 = vor.u32 %v10545_v28, %v9072_v47 }
 0x2e0   :  { %6429 = vmatpush.bf16.msra.mxu0 %v8483_v7  ;;  %v10609_v8 = vld [vmem:[%s16446_s3 + $0x13ec] sm:$0xf]  ;;  %v9328_v3 = vld [vmem:[%s16446_s3 + $0x13f8] sm:$0xf0]  ;;  %v6114_v7 = vadd.f32 %v15924_v5, %v6100_v59  ;;  %v9203_v30 = vor.u32 %v10577_v57, %v9200_v4 }
 0x2e1   :  { %6443 = vmatpush.bf16.msra.mxu1 %v8611_v60  ;;  %v10641_v36 = vld [vmem:[%s16446_s3 + $0x14ec] sm:$0xf]  ;;  %v9456_v24 = vld [vmem:[%s16446_s3 + $0x14f8] sm:$0xf0]  ;;  %v6154_v60 = vadd.f32 %v6153_v2, %v6140_v11  ;;  %v6155_v54 = vpop.f32.mrf.mxu0 }
 0x2e2   :  { %6457 = vmatpush.bf16.msra.mxu2 %v8739_v58  ;;  %v9331_v58 = vor.u32 %v10609_v8, %v9328_v3  ;;  %v10541_v1 = vld [vmem:[%s16446_s3 + $0x11cc] sm:$0xf]  ;;  %v9056_v43 = vld [vmem:[%s16446_s3 + $0x11d8] sm:$0xf0]  ;;  %v6128_v23 = vadd.f32 %v6127_v32, %v6114_v7  ;;  %v6169_v25 = vpop.f32.mrf.mxu1 }
 0x2e3   :  { %6471 = vmatpush.bf16.msra.mxu3 %v8867_v39  ;;  %v10573_v63 = vld [vmem:[%s16446_s3 + $0x12cc] sm:$0xf]  ;;  %v9459_v39 = vor.u32 %v10641_v36, %v9456_v24  ;;  %v9184_v5 = vld [vmem:[%s16446_s3 + $0x12d8] sm:$0xf0]  ;;  %v9059_v9 = vor.u32 %v10541_v1, %v9056_v43 }
 0x2e4   :  { %6430 = vmatpush.bf16.msra.mxu0 %v8467_v42  ;;  %v10605_v22 = vld [vmem:[%s16446_s3 + $0x13cc] sm:$0xf]  ;;  %v9312_v27 = vld [vmem:[%s16446_s3 + $0x13d8] sm:$0xf0]  ;;  %v6168_v42 = vadd.f32 %v6167_v45, %v6154_v60  ;;  %v9187_v41 = vor.u32 %v10573_v63, %v9184_v5 }
 0x2e5   :  { %6444 = vmatpush.bf16.msra.mxu1 %v8595_v21  ;;  %v10637_v2 = vld [vmem:[%s16446_s3 + $0x14cc] sm:$0xf]  ;;  %v9440_v46 = vld [vmem:[%s16446_s3 + $0x14d8] sm:$0xf0]  ;;  %v9315_v32 = vor.u32 %v10605_v22, %v9312_v27 }
 0x2e6   :  { %6458 = vmatpush.bf16.msra.mxu2 %v8723_v16  ;;  %v10537_v40 = vld [vmem:[%s16446_s3 + $0x11ac] sm:$0xf]  ;;  %v9040_v55 = vld [vmem:[%s16446_s3 + $0x11b8] sm:$0xf0]  ;;  %v6195_v16 = vpop.f32.mrf.mxu3  ;;  %v9443_v45 = vor.u32 %v10637_v2, %v9440_v46  ;;  %v6182_v62 = vadd.f32 %v6181_v52, %v6168_v42 }
 0x2e7   :  { %6472 = vmatpush.bf16.msra.mxu3 %v8851_v18  ;;  %v10569_v21 = vld [vmem:[%s16446_s3 + $0x12ac] sm:$0xf]  ;;  %v9168_v10 = vld [vmem:[%s16446_s3 + $0x12b8] sm:$0xf0]  ;;  %v6142_v18 = vadd.f32 %v6141_v53, %v6128_v23  ;;  %v9043_v17 = vor.u32 %v10537_v40, %v9040_v55  ;;  %v6183_v53 = vpop.f32.mrf.mxu2 }
 0x2e8   :  { %6431 = vmatpush.bf16.msra.mxu0 %v8451_v61  ;;  %v10601_v14 = vld [vmem:[%s16446_s3 + $0x13ac] sm:$0xf]  ;;  %v9296_v6 = vld [vmem:[%s16446_s3 + $0x13b8] sm:$0xf0]  ;;  %v6196_v3 = vadd.f32 %v6195_v16, %v6182_v62 }
 0x2e9   :  { %6445 = vmatpush.bf16.msra.mxu1 %v8579_v26  ;;  %v9424_v0 = vld [vmem:[%s16446_s3 + $0x14b8] sm:$0xf0]  ;;  %v10533_v59 = vld [vmem:[%s16446_s3 + $0x118c] sm:$0xf]  ;;  %v6156_v28 = vadd.f32 %v6155_v54, %v6142_v18  ;;  %v6209_v11 = vpop.f32.mrf.mxu0 }
 0x2ea   :  { %6459 = vmatpush.bf16.msra.mxu2 %v8707_v31  ;;  %v9024_v47 = vld [vmem:[%s16446_s3 + $0x1198] sm:$0xf0]  ;;  %v10565_v57 = vld [vmem:[%s16446_s3 + $0x128c] sm:$0xf]  ;;  %v6223_v52 = vpop.f32.mrf.mxu1 }
 0x2eb   :  { %6473 = vmatpush.bf16.msra.mxu3 %v8835_v13  ;;  %6432 = vmatmul.bf16.vlgmr.msra.gmra.mxu0 %v11842_v49  ;;  %v10633_v49 = vld [vmem:[%s16446_s3 + $0x14ac] sm:$0xf]  ;;  %v9280_v8 = vld [vmem:[%s16446_s3 + $0x1398] sm:$0xf0]  ;;  %v9027_v36 = vor.u32 %v10533_v59, %v9024_v47  ;;  %v6170_v13 = vadd.f32 %v6169_v25, %v6156_v28 }
 0x2ec   :  { %6480 = vmatpush.bf16.msrb.mxu0 %v9075_v12  ;;  %6446 = vmatmul.bf16.vlgmr.msra.gmra.mxu1 %v11840_v48  ;;  %v9171_v48 = vor.u32 %v10569_v21, %v9168_v10  ;;  %v9427_v61 = vor.u32 %v10633_v49, %v9424_v0  ;;  %v10597_v4 = vld [vmem:[%s16446_s3 + $0x138c] sm:$0xf]  ;;  %v9408_v31 = vld [vmem:[%s16446_s3 + $0x1498] sm:$0xf0]  ;;  %v6210_v12 = vadd.f32 %v6209_v11, %v6196_v3 }
 0x2ed   :  { %6494 = vmatpush.bf16.msrb.mxu1 %v9203_v30  ;;  %6460 = vmatmul.bf16.vlgmr.msra.gmra.mxu2 %v11850_v51  ;;  %v9299_v51 = vor.u32 %v10601_v14, %v9296_v6  ;;  %v10629_v26 = vld [vmem:[%s16446_s3 + $0x148c] sm:$0xf]  ;;  %v9283_v7 = vor.u32 %v10597_v4, %v9280_v8  ;;  %v9008_v30 = vld [vmem:[%s16446_s3 + $0x1178] sm:$0xf0]  ;;  %v6184_v5 = vadd.f32 %v6183_v53, %v6170_v13 }
 0x2ee   :  { %6508 = vmatpush.bf16.msrb.mxu2 %v9331_v58  ;;  %6474 = vmatmul.bf16.vlgmr.msra.gmra.mxu3 %v12075_v29  ;;  %v9152_v29 = vld [vmem:[%s16446_s3 + $0x1298] sm:$0xf0]  ;;  %v10529_v60 = vld [vmem:[%s16446_s3 + $0x116c] sm:$0xf]  ;;  %v9411_v1 = vor.u32 %v10629_v26, %v9408_v31  ;;  %v6197_v23 = vpop.f32.mrf.mxu3  ;;  %v6224_v46 = vadd.f32 %v6223_v52, %v6210_v12 }
 0x2ef   :  { %6522 = vmatpush.bf16.msrb.mxu3 %v9459_v39  ;;  %v9155_v24 = vor.u32 %v10565_v57, %v9152_v29  ;;  %v10561_v58 = vld [vmem:[%s16446_s3 + $0x126c] sm:$0xf]  ;;  %v9136_v43 = vld [vmem:[%s16446_s3 + $0x1278] sm:$0xf0]  ;;  %v9011_v54 = vor.u32 %v10529_v60, %v9008_v30 }
 0x2f0   :  { %6481 = vmatpush.bf16.msrb.mxu0 %v9059_v9  ;;  %v10593_v63 = vld [vmem:[%s16446_s3 + $0x136c] sm:$0xf]  ;;  %v9264_v39 = vld [vmem:[%s16446_s3 + $0x1378] sm:$0xf0]  ;;  %v9139_v25 = vor.u32 %v10561_v58, %v9136_v43  ;;  %v6237_v55 = vpop.f32.mrf.mxu2 }
 0x2f1   :  { %6495 = vmatpush.bf16.msrb.mxu1 %v9187_v41  ;;  %v10625_v22 = vld [vmem:[%s16446_s3 + $0x146c] sm:$0xf]  ;;  %v9392_v27 = vld [vmem:[%s16446_s3 + $0x1478] sm:$0xf0]  ;;  %v9267_v9 = vor.u32 %v10593_v63, %v9264_v39  ;;  %v6238_v10 = vadd.f32 %v6237_v55, %v6224_v46  ;;  %v6211_v14 = vpop.f32.mrf.mxu0 }
 0x2f2   :  { %6509 = vmatpush.bf16.msrb.mxu2 %v9315_v32  ;;  %v10525_v2 = vld [vmem:[%s16446_s3 + $0x114c] sm:$0xf]  ;;  %v8992_v42 = vld [vmem:[%s16446_s3 + $0x1158] sm:$0xf0]  ;;  %v9395_v40 = vor.u32 %v10625_v22, %v9392_v27  ;;  %v6225_v57 = vpop.f32.mrf.mxu1 }
 0x2f3   :  { %6523 = vmatpush.bf16.msrb.mxu3 %v9443_v45  ;;  %v10557_v41 = vld [vmem:[%s16446_s3 + $0x124c] sm:$0xf]  ;;  %v9120_v32 = vld [vmem:[%s16446_s3 + $0x1258] sm:$0xf0]  ;;  %v6198_v45 = vadd.f32 %v6197_v23, %v6184_v5  ;;  %v8995_v62 = vor.u32 %v10525_v2, %v8992_v42  ;;  %6594 = vst [vmem:[%s16453_s5 + $0x10] sm:$0xff] %v6238_v10 }
 0x2f4   :  { %6482 = vmatpush.bf16.msrb.mxu0 %v9043_v17  ;;  %v10589_v21 = vld [vmem:[%s16446_s3 + $0x134c] sm:$0xf]  ;;  %v9248_v16 = vld [vmem:[%s16446_s3 + $0x1358] sm:$0xf0]  ;;  %v9123_v49 = vor.u32 %v10557_v41, %v9120_v32  ;;  %v16163_v17 = vsel %vm6607_vm1, %v6238_v10, 0.0 }
 0x2f5   :  { %6496 = vmatpush.bf16.msrb.mxu1 %v9171_v48  ;;  %v10621_v6 = vld [vmem:[%s16446_s3 + $0x144c] sm:$0xf]  ;;  %v9376_v18 = vld [vmem:[%s16446_s3 + $0x1458] sm:$0xf0]  ;;  %v6212_v59 = vadd.f32 %v6211_v14, %v6198_v45  ;;  %v9251_v28 = vor.u32 %v10589_v21, %v9248_v16 }
 0x2f6   :  { %6510 = vmatpush.bf16.msrb.mxu2 %v9299_v51  ;;  %v10521_v0 = vld [vmem:[%s16446_s3 + $0x112c] sm:$0xf]  ;;  %v8976_v48 = vld [vmem:[%s16446_s3 + $0x1138] sm:$0xf0]  ;;  %v9379_v47 = vor.u32 %v10621_v6, %v9376_v18 }
 0x2f7   :  { %6524 = vmatpush.bf16.msrb.mxu3 %v9427_v61  ;;  %v10553_v51 = vld [vmem:[%s16446_s3 + $0x122c] sm:$0xf]  ;;  %v9104_v29 = vld [vmem:[%s16446_s3 + $0x1238] sm:$0xf0]  ;;  %v8979_v3 = vor.u32 %v10521_v0, %v8976_v48  ;;  %v6226_v31 = vadd.f32 %v6225_v57, %v6212_v59 }
 0x2f8   :  { %6483 = vmatpush.bf16.msrb.mxu0 %v9027_v36  ;;  %v10585_v53 = vld [vmem:[%s16446_s3 + $0x132c] sm:$0xf]  ;;  %v9232_v61 = vld [vmem:[%s16446_s3 + $0x1338] sm:$0xf0]  ;;  %v9107_v36 = vor.u32 %v10553_v51, %v9104_v29  ;;  %v6239_v60 = vpop.f32.mrf.mxu2 }
 0x2f9   :  { %6497 = vmatpush.bf16.msrb.mxu1 %v9155_v24  ;;  %v10617_v4 = vld [vmem:[%s16446_s3 + $0x142c] sm:$0xf]  ;;  %v9360_v8 = vld [vmem:[%s16446_s3 + $0x1438] sm:$0xf0]  ;;  %v9235_v24 = vor.u32 %v10585_v53, %v9232_v61  ;;  %v6240_v43 = vadd.f32 %v6239_v60, %v6226_v31 }
 0x2fa   :  { %6511 = vmatpush.bf16.msrb.mxu2 %v9283_v7  ;;  %v10517_v11 = vld [vmem:[%s16446_s3 + $0x110c] sm:$0xf]  ;;  %v8960_v26 = vld [vmem:[%s16446_s3 + $0x1118] sm:$0xf0]  ;;  %v9363_v7 = vor.u32 %v10617_v4, %v9360_v8 }
 0x2fb   :  { %6525 = vmatpush.bf16.msrb.mxu3 %v9411_v1  ;;  %v10549_v52 = vld [vmem:[%s16446_s3 + $0x120c] sm:$0xf]  ;;  %v9088_v13 = vld [vmem:[%s16446_s3 + $0x1218] sm:$0xf0]  ;;  %v8963_v22 = vor.u32 %v10517_v11, %v8960_v26  ;;  %6598 = vst [vmem:[%s16453_s5 + $0x30] sm:$0xff] %v6240_v43 }
 0x2fc   :  { %6484 = vmatpush.bf16.msrb.mxu0 %v9011_v54  ;;  %v10581_v12 = vld [vmem:[%s16446_s3 + $0x130c] sm:$0xf]  ;;  %v9216_v30 = vld [vmem:[%s16446_s3 + $0x1318] sm:$0xf0]  ;;  %v9091_v2 = vor.u32 %v10549_v52, %v9088_v13 }
 0x2fd   :  { %6498 = vmatpush.bf16.msrb.mxu1 %v9139_v25  ;;  %v10613_v58 = vld [vmem:[%s16446_s3 + $0x140c] sm:$0xf]  ;;  %v9344_v1 = vld [vmem:[%s16446_s3 + $0x1418] sm:$0xf0]  ;;  %v9219_v46 = vor.u32 %v10581_v12, %v9216_v30 }
 0x2fe   :  { %6512 = vmatpush.bf16.msrb.mxu2 %v9267_v9  ;;  %v10673_v63 = vld [vmem:[%s16446_s3 + $0x15ec] sm:$0xf]  ;;  %v9584_v39 = vld [vmem:[%s16446_s3 + $0x15f8] sm:$0xf0]  ;;  %v9347_v42 = vor.u32 %v10613_v58, %v9344_v1 }
 0x2ff   :  { %6526 = vmatpush.bf16.msrb.mxu3 %v9395_v40  ;;  %v10705_v5 = vld [vmem:[%s16446_s3 + $0x16ec] sm:$0xf]  ;;  %v9712_v27 = vld [vmem:[%s16446_s3 + $0x16f8] sm:$0xf0]  ;;  %v9587_v41 = vor.u32 %v10673_v63, %v9584_v39 }
 0x300   :  { %6485 = vmatpush.bf16.msrb.mxu0 %v8995_v62  ;;  %v10737_v23 = vld [vmem:[%s16446_s3 + $0x17ec] sm:$0xf]  ;;  %v9840_v54 = vld [vmem:[%s16446_s3 + $0x17f8] sm:$0xf0]  ;;  %v9715_v32 = vor.u32 %v10705_v5, %v9712_v27 }
 0x301   :  { %6499 = vmatpush.bf16.msrb.mxu1 %v9123_v49  ;;  %v10769_v25 = vld [vmem:[%s16446_s3 + $0x18ec] sm:$0xf]  ;;  %v9968_v9 = vld [vmem:[%s16446_s3 + $0x18f8] sm:$0xf0]  ;;  %v9843_v40 = vor.u32 %v10737_v23, %v9840_v54 }
 0x302   :  { %6513 = vmatpush.bf16.msrb.mxu2 %v9251_v28  ;;  %v10669_v55 = vld [vmem:[%s16446_s3 + $0x15cc] sm:$0xf]  ;;  %v9568_v21 = vld [vmem:[%s16446_s3 + $0x15d8] sm:$0xf0]  ;;  %v9971_v45 = vor.u32 %v10769_v25, %v9968_v9 }
 0x303   :  { %6527 = vmatpush.bf16.msrb.mxu3 %v9379_v47  ;;  %v10701_v16 = vld [vmem:[%s16446_s3 + $0x16cc] sm:$0xf]  ;;  %v9696_v10 = vld [vmem:[%s16446_s3 + $0x16d8] sm:$0xf0]  ;;  %v9571_v49 = vor.u32 %v10669_v55, %v9568_v21 }
 0x304   :  { %6486 = vmatpush.bf16.msrb.mxu0 %v8979_v3  ;;  %v10733_v14 = vld [vmem:[%s16446_s3 + $0x17cc] sm:$0xf]  ;;  %v9824_v6 = vld [vmem:[%s16446_s3 + $0x17d8] sm:$0xf0]  ;;  %v9699_v0 = vor.u32 %v10701_v16, %v9696_v10 }
 0x305   :  { %6500 = vmatpush.bf16.msrb.mxu1 %v9107_v36  ;;  %v10765_v18 = vld [vmem:[%s16446_s3 + $0x18cc] sm:$0xf]  ;;  %v9952_v62 = vld [vmem:[%s16446_s3 + $0x18d8] sm:$0xf0]  ;;  %v9827_v59 = vor.u32 %v10733_v14, %v9824_v6 }
 0x306   :  { %6514 = vmatpush.bf16.msrb.mxu2 %v9235_v24  ;;  %v10665_v28 = vld [vmem:[%s16446_s3 + $0x15ac] sm:$0xf]  ;;  %v9552_v48 = vld [vmem:[%s16446_s3 + $0x15b8] sm:$0xf0]  ;;  %v9955_v47 = vor.u32 %v10765_v18, %v9952_v62 }
 0x307   :  { %6528 = vmatpush.bf16.msrb.mxu3 %v9363_v7  ;;  %v10697_v51 = vld [vmem:[%s16446_s3 + $0x16ac] sm:$0xf]  ;;  %v9680_v57 = vld [vmem:[%s16446_s3 + $0x16b8] sm:$0xf0]  ;;  %v9555_v4 = vor.u32 %v10665_v28, %v9552_v48 }
 0x308   :  { %6487 = vmatpush.bf16.msrb.mxu0 %v8963_v22  ;;  %v10729_v29 = vld [vmem:[%s16446_s3 + $0x17ac] sm:$0xf]  ;;  %v9808_v53 = vld [vmem:[%s16446_s3 + $0x17b8] sm:$0xf0]  ;;  %v9683_v8 = vor.u32 %v10697_v51, %v9680_v57 }
 0x309   :  { %6501 = vmatpush.bf16.msrb.mxu1 %v9091_v2  ;;  %v9936_v61 = vld [vmem:[%s16446_s3 + $0x18b8] sm:$0xf0]  ;;  %v9811_v3 = vor.u32 %v10729_v29, %v9808_v53  ;;  %v10693_v11 = vld [vmem:[%s16446_s3 + $0x168c] sm:$0xf] }
 0x30a   :  { %6515 = vmatpush.bf16.msrb.mxu2 %v9219_v46  ;;  %v9664_v26 = vld [vmem:[%s16446_s3 + $0x1698] sm:$0xf0]  ;;  %v10725_v31 = vld [vmem:[%s16446_s3 + $0x178c] sm:$0xf] }
 0x30b   :  { %6529 = vmatpush.bf16.msrb.mxu3 %v9347_v42  ;;  %6488 = vmatmul.bf16.vlgmr.msrb.gmra.mxu0 %v12088_v37  ;;  %v10761_v37 = vld [vmem:[%s16446_s3 + $0x18ac] sm:$0xf]  ;;  %v9792_v36 = vld [vmem:[%s16446_s3 + $0x1798] sm:$0xf0]  ;;  %v9667_v12 = vor.u32 %v10693_v11, %v9664_v26 }
 0x30c   :  { %6536 = vmatpush.bf16.msra.mxu0 %v9587_v41  ;;  %6502 = vmatmul.bf16.vlgmr.msrb.gmra.mxu1 %v12086_v34  ;;  %v10661_v34 = vld [vmem:[%s16446_s3 + $0x158c] sm:$0xf]  ;;  %v9920_v52 = vld [vmem:[%s16446_s3 + $0x1898] sm:$0xf0]  ;;  %v9795_v7 = vor.u32 %v10725_v31, %v9792_v36  ;;  %v6251_v31 = vpop.f32.mrf.mxu3 }
 0x30d   :  { %6550 = vmatpush.bf16.msra.mxu1 %v9715_v32  ;;  %6516 = vmatmul.bf16.vlgmr.msrb.gmra.mxu2 %v12096_v44  ;;  %v9536_v44 = vld [vmem:[%s16446_s3 + $0x1598] sm:$0xf0]  ;;  %v10757_v24 = vld [vmem:[%s16446_s3 + $0x188c] sm:$0xf] }
 0x30e   :  { %6564 = vmatpush.bf16.msra.mxu2 %v9843_v40  ;;  %6530 = vmatmul.bf16.vlgmr.msrb.gmra.mxu3 %v12305_v38  ;;  %v9939_v38 = vor.u32 %v10761_v37, %v9936_v61  ;;  %v9539_v13 = vor.u32 %v10661_v34, %v9536_v44  ;;  %v10657_v60 = vld [vmem:[%s16446_s3 + $0x156c] sm:$0xf]  ;;  %v9520_v30 = vld [vmem:[%s16446_s3 + $0x1578] sm:$0xf0]  ;;  %v9923_v1 = vor.u32 %v10757_v24, %v9920_v52  ;;  %v6265_v24 = vpop.f32.mrf.mxu0  ;;  %v6279_v52 = vpop.f32.mrf.mxu1 }
 0x30f   :  { %6578 = vmatpush.bf16.msra.mxu3 %v9971_v45  ;;  %v10689_v58 = vld [vmem:[%s16446_s3 + $0x166c] sm:$0xf]  ;;  %v9648_v43 = vld [vmem:[%s16446_s3 + $0x1678] sm:$0xf0]  ;;  %v9523_v27 = vor.u32 %v10657_v60, %v9520_v30 }
 0x310   :  { %6537 = vmatpush.bf16.msra.mxu0 %v9571_v49  ;;  %v10721_v63 = vld [vmem:[%s16446_s3 + $0x176c] sm:$0xf]  ;;  %v9776_v39 = vld [vmem:[%s16446_s3 + $0x1778] sm:$0xf0]  ;;  %v9651_v23 = vor.u32 %v10689_v58, %v9648_v43 }
 0x311   :  { %6551 = vmatpush.bf16.msra.mxu1 %v9699_v0  ;;  %v10753_v5 = vld [vmem:[%s16446_s3 + $0x186c] sm:$0xf]  ;;  %v9904_v22 = vld [vmem:[%s16446_s3 + $0x1878] sm:$0xf0]  ;;  %v9779_v54 = vor.u32 %v10721_v63, %v9776_v39 }
 0x312   :  { %6565 = vmatpush.bf16.msra.mxu2 %v9827_v59  ;;  %v10653_v2 = vld [vmem:[%s16446_s3 + $0x154c] sm:$0xf]  ;;  %v9504_v46 = vld [vmem:[%s16446_s3 + $0x1558] sm:$0xf0]  ;;  %v9907_v9 = vor.u32 %v10753_v5, %v9904_v22 }
 0x313   :  { %6579 = vmatpush.bf16.msra.mxu3 %v9955_v47  ;;  %v10685_v25 = vld [vmem:[%s16446_s3 + $0x164c] sm:$0xf]  ;;  %v9632_v42 = vld [vmem:[%s16446_s3 + $0x1658] sm:$0xf0]  ;;  %v9507_v21 = vor.u32 %v10653_v2, %v9504_v46 }
 0x314   :  { %6538 = vmatpush.bf16.msra.mxu0 %v9555_v4  ;;  %v10717_v41 = vld [vmem:[%s16446_s3 + $0x174c] sm:$0xf]  ;;  %v9760_v32 = vld [vmem:[%s16446_s3 + $0x1758] sm:$0xf0]  ;;  %v9635_v16 = vor.u32 %v10685_v25, %v9632_v42  ;;  %v6253_v36 = vpop.f32.mrf.mxu3 }
 0x315   :  { %6552 = vmatpush.bf16.msra.mxu1 %v9683_v8  ;;  %v10749_v40 = vld [vmem:[%s16446_s3 + $0x184c] sm:$0xf]  ;;  %v9888_v55 = vld [vmem:[%s16446_s3 + $0x1858] sm:$0xf0]  ;;  %v9763_v45 = vor.u32 %v10717_v41, %v9760_v32 }
 0x316   :  { %6566 = vmatpush.bf16.msra.mxu2 %v9811_v3  ;;  %v10649_v10 = vld [vmem:[%s16446_s3 + $0x152c] sm:$0xf]  ;;  %v9488_v14 = vld [vmem:[%s16446_s3 + $0x1538] sm:$0xf0]  ;;  %v9891_v18 = vor.u32 %v10749_v40, %v9888_v55  ;;  %v6281_v60 = vpop.f32.mrf.mxu1 }
 0x317   :  { %6580 = vmatpush.bf16.msra.mxu3 %v9939_v38  ;;  %v10681_v6 = vld [vmem:[%s16446_s3 + $0x162c] sm:$0xf]  ;;  %v9616_v62 = vld [vmem:[%s16446_s3 + $0x1638] sm:$0xf0]  ;;  %v9491_v48 = vor.u32 %v10649_v10, %v9488_v14 }
 0x318   :  { %6539 = vmatpush.bf16.msra.mxu0 %v9539_v13  ;;  %v10713_v49 = vld [vmem:[%s16446_s3 + $0x172c] sm:$0xf]  ;;  %v9744_v0 = vld [vmem:[%s16446_s3 + $0x1738] sm:$0xf0]  ;;  %v9619_v51 = vor.u32 %v10681_v6, %v9616_v62  ;;  %v6293_v13 = vpop.f32.mrf.mxu2 }
 0x319   :  { %6553 = vmatpush.bf16.msra.mxu1 %v9667_v12  ;;  %v10745_v59 = vld [vmem:[%s16446_s3 + $0x182c] sm:$0xf]  ;;  %v9872_v28 = vld [vmem:[%s16446_s3 + $0x1838] sm:$0xf0]  ;;  %v9747_v47 = vor.u32 %v10713_v49, %v9744_v0 }
 0x31a   :  { %6567 = vmatpush.bf16.msra.mxu2 %v9795_v7  ;;  %v10645_v57 = vld [vmem:[%s16446_s3 + $0x150c] sm:$0xf]  ;;  %v9472_v29 = vld [vmem:[%s16446_s3 + $0x1518] sm:$0xf0]  ;;  %v9875_v37 = vor.u32 %v10745_v59, %v9872_v28  ;;  %v6267_v7 = vpop.f32.mrf.mxu0 }
 0x31b   :  { %6581 = vmatpush.bf16.msra.mxu3 %v9923_v1  ;;  %v10677_v53 = vld [vmem:[%s16446_s3 + $0x160c] sm:$0xf]  ;;  %v9600_v61 = vld [vmem:[%s16446_s3 + $0x1618] sm:$0xf0]  ;;  %v9475_v44 = vor.u32 %v10645_v57, %v9472_v29 }
 0x31c   :  { %6540 = vmatpush.bf16.msra.mxu0 %v9523_v27  ;;  %v10709_v4 = vld [vmem:[%s16446_s3 + $0x170c] sm:$0xf]  ;;  %v9728_v8 = vld [vmem:[%s16446_s3 + $0x1718] sm:$0xf0]  ;;  %v9603_v11 = vor.u32 %v10677_v53, %v9600_v61  ;;  %v6307_v12 = vpop.f32.mrf.mxu3 }
 0x31d   :  { %6554 = vmatpush.bf16.msra.mxu1 %v9651_v23  ;;  %v10741_v3 = vld [vmem:[%s16446_s3 + $0x180c] sm:$0xf]  ;;  %v9856_v34 = vld [vmem:[%s16446_s3 + $0x1818] sm:$0xf0]  ;;  %v9731_v38 = vor.u32 %v10709_v4, %v9728_v8 }
 0x31e   :  { %6568 = vmatpush.bf16.msra.mxu2 %v9779_v54  ;;  %v9859_v26 = vor.u32 %v10741_v3, %v9856_v34 }
 0x31f   :  { %6582 = vmatpush.bf16.msra.mxu3 %v9907_v9 }
 0x320   :  { %6541 = vmatpush.bf16.msra.mxu0 %v9507_v21  ;;  %v6295_v30 = vpop.f32.mrf.mxu2 }
 0x321   :  { %6555 = vmatpush.bf16.msra.mxu1 %v9635_v16 }
 0x322   :  { %6569 = vmatpush.bf16.msra.mxu2 %v9763_v45 }
 0x323   :  { %6583 = vmatpush.bf16.msra.mxu3 %v9891_v18 }
 0x324   :  { %6542 = vmatpush.bf16.msra.mxu0 %v9491_v48  ;;  %v6309_v58 = vpop.f32.mrf.mxu3 }
 0x325   :  { %6556 = vmatpush.bf16.msra.mxu1 %v9619_v51 }
 0x326   :  { %6570 = vmatpush.bf16.msra.mxu2 %v9747_v47 }
 0x327   :  { %6584 = vmatpush.bf16.msra.mxu3 %v9875_v37 }
 0x328   :  { %6543 = vmatpush.bf16.msra.mxu0 %v9475_v44  ;;  %v6321_v1 = vpop.f32.mrf.mxu0 }
 0x329   :  { %6557 = vmatpush.bf16.msra.mxu1 %v9603_v11  ;;  %v6335_v43 = vpop.f32.mrf.mxu1 }
 0x32a   :  { %6571 = vmatpush.bf16.msra.mxu2 %v9731_v38 }
 0x32b   :  { %6585 = vmatpush.bf16.msra.mxu3 %v9859_v26  ;;  %6544 = vmatmul.bf16.vlgmr.msra.gmra.mxu0 %v12318_v33 }
 0x32c   :  { %6558 = vmatmul.bf16.vlgmr.msra.gmra.mxu1 %v12316_v50  ;;  %v10777_v50 = vld [vmem:[%s16450_s4] sm:$0xf] }
 0x32d   :  { %6572 = vmatmul.bf16.vlgmr.msra.gmra.mxu2 %v12326_v56  ;;  %v1187_v33 = vperm.slane %v10777_v50, 3 }
 0x32e   :  { %6586 = vmatmul.bf16.vlgmr.msra.gmra.mxu3 %v12521_v19 }
 0x32f   :  { %v6252_v63 = vadd.f32 %v6251_v31, %v1187_v33  ;;  %v6254_v54 = vadd.f32 %v6253_v36, %v1187_v33 }
 0x330   :  { %v6349_v56 = vpop.f32.mrf.mxu2  ;;  %v6323_v39 = vpop.f32.mrf.mxu0 }
 0x331   :  { %v6363_v19 = vpop.f32.mrf.mxu3  ;;  %v6266_v5 = vadd.f32 %v6265_v24, %v6252_v63  ;;  %v6337_v22 = vpop.f32.mrf.mxu1  ;;  %v6268_v42 = vadd.f32 %v6267_v7, %v6254_v54 }
 0x333   :  { %v6280_v27 = vadd.f32 %v6279_v52, %v6266_v5  ;;  %v6282_v40 = vadd.f32 %v6281_v60, %v6268_v42 }
 0x335   :  { %v6294_v25 = vadd.f32 %v6293_v13, %v6280_v27  ;;  %v6296_v16 = vadd.f32 %v6295_v30, %v6282_v40  ;;  %v6683_v27 = vmul.f32 %v16163_v17, %v16163_v17 }
 0x337   :  { %v6308_v41 = vadd.f32 %v6307_v12, %v6294_v25  ;;  %v6310_v6 = vadd.f32 %v6309_v58, %v6296_v16  ;;  %v6647_v25 = vrot.slane %v16163_v17, 4 }
 0x338   :  { %v6351_v23 = vpop.f32.mrf.mxu2 }
 0x339   :  { %v6365_v2 = vpop.f32.mrf.mxu3  ;;  %v6322_v55 = vadd.f32 %v6321_v1, %v6308_v41  ;;  %v6324_v62 = vadd.f32 %v6323_v39, %v6310_v6  ;;  %v6704_v41 = vrot.slane %v6683_v27, 4 }
 0x33b   :  { %v6336_v10 = vadd.f32 %v6335_v43, %v6322_v55  ;;  %v6338_v48 = vadd.f32 %v6337_v22, %v6324_v62  ;;  %v6648_v55 = vadd.f32 %v6647_v25, %v16163_v17  ;;  %v6705_v16 = vadd.f32 %v6704_v41, %v6683_v27 }
 0x33d   :  { %v6350_v18 = vadd.f32 %v6349_v56, %v6336_v10  ;;  %v6352_v57 = vadd.f32 %v6351_v23, %v6338_v48  ;;  %v6649_v62 = vrot.slane %v6648_v55, 2 }
 0x33f   :  { %v6364_v0 = vadd.f32 %v6363_v19, %v6350_v18  ;;  %v6366_v37 = vadd.f32 %v6365_v2, %v6352_v57  ;;  %v6650_v48 = vadd.f32 %v6649_v62, %v6648_v55 }
 0x348   :  { %v6377_v46 = vpop.f32.mrf.mxu0 }
 0x349   :  { %v6391_v9 = vpop.f32.mrf.mxu1  ;;  %v6378_v51 = vadd.f32 %v6377_v46, %v6364_v0 }
 0x34b   :  { %v6392_v29 = vadd.f32 %v6391_v9, %v6378_v51 }
 0x350   :  { %v6405_v32 = vpop.f32.mrf.mxu2  ;;  %v6379_v45 = vpop.f32.mrf.mxu0 }
 0x351   :  { %v6419_v21 = vpop.f32.mrf.mxu3  ;;  %v6393_v14 = vpop.f32.mrf.mxu1  ;;  %v6406_v61 = vadd.f32 %v6405_v32, %v6392_v29  ;;  %v6380_v8 = vadd.f32 %v6379_v45, %v6366_v37 }
 0x353   :  { %v6420_v34 = vadd.f32 %v6419_v21, %v6406_v61  ;;  %v6394_v11 = vadd.f32 %v6393_v14, %v6380_v8  ;;  %v6651_v8 = vrot.slane %v6650_v48, 1 }
 0x355   :  { %v6652_v20 = vadd.f32 %v6651_v8, %v6650_v48 }
 0x358   :  { %v6407_v49 = vpop.f32.mrf.mxu2 }
 0x359   :  { %v6421_v59 = vpop.f32.mrf.mxu3  ;;  %v6408_v26 = vadd.f32 %v6407_v49, %v6394_v11 }
 0x35b   :  { %v6422_v13 = vadd.f32 %v6421_v59, %v6408_v26  ;;  %v6706_v59 = vrot.slane %v6705_v16, 2 }
 0x35d   :  { %v6707_v29 = vadd.f32 %v6706_v59, %v6705_v16 }
 0x368   :  { %v6433_v28 = vpop.f32.mrf.mxu0 }
 0x369   :  { %v6447_v47 = vpop.f32.mrf.mxu1  ;;  %v6434_v38 = vadd.f32 %v6433_v28, %v6420_v34 }
 0x36b   :  { %v6448_v36 = vadd.f32 %v6447_v47, %v6434_v38  ;;  %v6708_v38 = vrot.slane %v6707_v29, 1 }
 0x370   :  { %v6461_v53 = vpop.f32.mrf.mxu2  ;;  %v6435_v3 = vpop.f32.mrf.mxu0 }
 0x371   :  { %v6475_v4 = vpop.f32.mrf.mxu3  ;;  %v6449_v44 = vpop.f32.mrf.mxu1  ;;  %v6462_v12 = vadd.f32 %v6461_v53, %v6448_v36  ;;  %v6436_v60 = vadd.f32 %v6435_v3, %v6422_v13 }
 0x373   :  { %v6476_v30 = vadd.f32 %v6475_v4, %v6462_v12  ;;  %v6450_v1 = vadd.f32 %v6449_v44, %v6436_v60 }
 0x378   :  { %v6463_v31 = vpop.f32.mrf.mxu2 }
 0x379   :  { %v6477_v24 = vpop.f32.mrf.mxu3  ;;  %v6464_v33 = vadd.f32 %v6463_v31, %v6450_v1 }
 0x37b   :  { %v6478_v39 = vadd.f32 %v6477_v24, %v6464_v33  ;;  %v6680_v33 = vld [vmem:[%s16452_s7] sm:$0xf] }
 0x388   :  { %v6489_v52 = vpop.f32.mrf.mxu0 }
 0x389   :  { %v6503_v7 = vpop.f32.mrf.mxu1  ;;  %v6490_v43 = vadd.f32 %v6489_v52, %v6476_v30  ;;  %v6709_v52 = vadd.f32 %v6708_v38, %v6707_v29 }
 0x38b   :  { %v6504_v63 = vadd.f32 %v6503_v7, %v6490_v43  ;;  %v6665_v7 = vrot.slane %v6652_v20, 6  ;;  %v6722_v1 = vrot.slane %v6709_v52, 6 }
 0x390   :  { %v6517_v58 = vpop.f32.mrf.mxu2  ;;  %v6491_v56 = vpop.f32.mrf.mxu0 }
 0x391   :  { %v6531_v50 = vpop.f32.mrf.mxu3  ;;  %v6505_v19 = vpop.f32.mrf.mxu1  ;;  %v6518_v5 = vadd.f32 %v6517_v58, %v6504_v63  ;;  %v6492_v22 = vadd.f32 %v6491_v56, %v6478_v39  ;;  %v6631_v58 = vld [vmem:[%s16451_s6] sm:$0xf] }
 0x393   :  { %v6532_v54 = vadd.f32 %v6531_v50, %v6518_v5  ;;  %v6506_v9 = vadd.f32 %v6505_v19, %v6492_v22 }
 0x398   :  { %v6519_v23 = vpop.f32.mrf.mxu2 }
 0x399   :  { %v6533_v2 = vpop.f32.mrf.mxu3  ;;  %v6520_v40 = vadd.f32 %v6519_v23, %v6506_v9 }
 0x39b   :  { %v6534_v10 = vadd.f32 %v6533_v2, %v6520_v40 }
 0x3a8   :  { %v6545_v46 = vpop.f32.mrf.mxu0 }
 0x3a9   :  { %v6546_v42 = vadd.f32 %v6545_v46, %v6532_v54  ;;  %v6559_v32 = vpop.f32.mrf.mxu1 }
 0x3ab   :  { %v6560_v21 = vadd.f32 %v6559_v32, %v6546_v42 }
 0x3b0   :  { %v6573_v45 = vpop.f32.mrf.mxu2  ;;  %v6547_v18 = vpop.f32.mrf.mxu0 }
 0x3b1   :  { %v6574_v14 = vadd.f32 %v6573_v45, %v6560_v21  ;;  %v6587_v6 = vpop.f32.mrf.mxu3  ;;  %v6548_v0 = vadd.f32 %v6547_v18, %v6534_v10  ;;  %v6561_v47 = vpop.f32.mrf.mxu1 }
 0x3b3   :  { %v6588_v49 = vadd.f32 %v6587_v6, %v6574_v14  ;;  %v6562_v57 = vadd.f32 %v6561_v47, %v6548_v0 }
 0x3b5   :  { %6595 = vst [vmem:[%s16453_s5 + $0x18] sm:$0xff] %v6588_v49  ;;  %v6616_v28 = vsel %vm6607_vm1, %v6588_v49, 0.0 }
 0x3b6   :  { %v6654_v17 = vrot.slane %v6616_v28, 4  ;;  %v6684_v51 = vmul.f32 %v6616_v28, %v6616_v28 }
 0x3b8   :  { %v6655_v53 = vadd.f32 %v6654_v17, %v6616_v28  ;;  %v6711_v37 = vrot.slane %v6684_v51, 4  ;;  %v6575_v61 = vpop.f32.mrf.mxu2 }
 0x3b9   :  { %v6576_v4 = vadd.f32 %v6575_v61, %v6562_v57  ;;  %v6589_v44 = vpop.f32.mrf.mxu3 }
 0x3ba   :  { %v6656_v3 = vrot.slane %v6655_v53, 2  ;;  %v6712_v34 = vadd.f32 %v6711_v37, %v6684_v51 }
 0x3bb   :  { %v6590_v11 = vadd.f32 %v6589_v44, %v6576_v4 }
 0x3bc   :  { %v6657_v26 = vadd.f32 %v6656_v3, %v6655_v53  ;;  %v6713_v31 = vrot.slane %v6712_v34, 2 }
 0x3bd   :  { %6599 = vst [vmem:[%s16453_s5 + $0x38] sm:$0xff] %v6590_v11 }
 0x3be   :  { %v6658_v36 = vrot.slane %v6657_v26, 1  ;;  %v6714_v24 = vadd.f32 %v6713_v31, %v6712_v34 }
 0x3c0   :  { %v6659_v13 = vadd.f32 %v6658_v36, %v6657_v26  ;;  %v6715_v12 = vrot.slane %v6714_v24, 1 }
 0x3c2   :  { %v6666_v60 = vrot.slane %v6659_v13, 5  ;;  %v6716_v30 = vadd.f32 %v6715_v12, %v6714_v24 }
 0x3c4   :  { %v6670_v43 = vsel %vm6669_vm3, %v6665_v7, %v6666_v60  ;;  %v6723_v50 = vrot.slane %v6716_v30, 5 }
 0x3c5   :  { %v6672_v56 = vsel %vm6671_vm4, %v14940_v15, %v6670_v43 }
 0x3c6   :  { %v6674_v63 = vadd.f32 %v6672_v56, %v6631_v58  ;;  %v6725_v19 = vsel %vm6669_vm3, %v6722_v1, %v6723_v50 }
 0x3c7   :  { %v6726_v39 = vsel %vm6671_vm4, %v14958_v35, %v6725_v19 }
 0x3c8   :  { %6679 = vst.msk [vmem:[%s16451_s6] sm:$0xf] %vm13303_vm0, %v6674_v63  ;;  %v6728_v22 = vadd.f32 %v6726_v39, %v6680_v33 }
 0x3ca   :  { %6729 = vst.msk [vmem:[%s16452_s7] sm:$0xf] %vm13303_vm0, %v6728_v22 }

</bundles_post_ra>
